<compile_context>
chip_gen: v6e
topology: v6e:2x2x1
jax: 0.10.0
libtpu: 0.0.40
codegen_flags: <defaults>
</compile_context>

<pallas_src>
import jax
import jax.numpy as jnp
from jax.experimental import pallas as pl
from jax.experimental.pallas import tpu as pltpu


_MASK_FILL = -100000000.0          # finite fill, same constant as the PyTorch module


def _vta_kernel(hidp_ref, ctx_ref, bias_ref, w_ctx_ref,
                alpha_ref, wout_ref,
                mt_ref, m_ref, l_ref, acc_ref):
    s_idx = pl.program_id(1)
    n_s = pl.num_programs(1)

    # ---- once per batch block: init online-softmax state -------------------
    @pl.when(s_idx == 0)
    def _init():
        m_ref[...] = jnp.full(m_ref.shape, -jnp.inf, jnp.float32)
        l_ref[...] = jnp.zeros(l_ref.shape, jnp.float32)
        acc_ref[...] = jnp.zeros(acc_ref.shape, jnp.float32)

    ctx = ctx_ref[...]                                    # (Bb, St, C)
    Bb, St, C = ctx.shape
    ctx2d = ctx.reshape(Bb * St, C)                       # free: St%8==0, C%128==0

    # ---- ctx2ctx projection: one MXU matmul over folded rows ---------------
    ctx_p = jnp.tanh(
        jnp.dot(ctx2d, w_ctx_ref[...], preferred_element_type=jnp.float32)
    ).reshape(Bb, St, C)                                  # f32

    # ---- scores[b, s] = <hid_[b], ctx_[b, s]>  (VPU mult + lane reduce) ----
    scores = jnp.sum(ctx_p * hidp_ref[...][:, None, :], axis=-1)     # (Bb, St)
    scores = scores + bias_ref[...]     # additive mask bias (0 / -1e8, finite!)

    # ---- online softmax: store e wrt the running max (no 2nd exp pass) -----
    m_prev = m_ref[...]                                               # (Bb, 1)
    m_new = jnp.maximum(m_prev, jnp.max(scores, axis=-1, keepdims=True))
    corr = jnp.exp(m_prev - m_new)                                    # (Bb, 1)
    e = jnp.exp(scores - m_new)                                       # (Bb, St)
    alpha_ref[s_idx] = e                  # lane-dense store (St lanes)
    mt_ref[s_idx] = m_new                 # per-tile reference max
    l_ref[...] = corr * l_ref[...] + jnp.sum(e, axis=-1, keepdims=True)

    # ---- weighted-ctx accumulation on the MXU (block-diagonal matmul) ------
    # acc[b,:] += sum_s e[b,s]*ctx[b,s,:]  ==  E_bd(Bb, Bb*St) @ ctx2d(Bb*St, C)
    e_c = e.astype(ctx.dtype)
    row_ids = jax.lax.broadcasted_iota(jnp.int32, (Bb, St), 0)
    e_bd = jnp.concatenate(
        [jnp.where(row_ids == j, e_c, jnp.zeros_like(e_c)) for j in range(Bb)],
        axis=1)                                                       # (Bb, Bb*St)
    acc_ref[...] = corr * acc_ref[...] + jnp.dot(
        e_bd, ctx2d, preferred_element_type=jnp.float32)              # (Bb, C)
    m_ref[...] = m_new

    # ---- epilogue: rescale stored tile exps, normalize ----------------------
    @pl.when(s_idx == n_s - 1)
    def _finish():
        inv_l = pl.reciprocal(l_ref[...], approx=False)   # exact; (Bb,1) once/block
        scale = (jnp.exp(mt_ref[...] - m_ref[...][None, :, :])
                 * inv_l[None, :, :])                     # (n_s, Bb, 1)
        alpha_ref[...] = alpha_ref[...] * scale
        wout_ref[...] = (acc_ref[...] * inv_l).astype(wout_ref.dtype)


def _round_up(x, m):
    return (x + m - 1) // m * m


def _vmem_limit_bytes():
    """Per-generation VMEM budget: ~3/4 of physical capacity, capped at 96 MiB."""
    cap = 64 * 1024 * 1024                      # conservative fallback (v7x-sized)
    try:
        info = pltpu.get_tpu_info()
        cap = int(getattr(info, "vmem_capacity_bytes", cap))
    except Exception:
        pass
    return int(min(cap * 3 // 4, 96 * 1024 * 1024))


def visual_text_attention(hid, ctx, w_hid_t, w_ctx_t, ctx_mask=None, *,
                          s_tile=None, b_block=8, use_bf16=False):
    """JAX/Pallas port of VisualTextAttention.forward.

    hid:      (1, B, H) or (B, H)
    ctx:      (S, B, C)   sequence-major, like the PyTorch module
    ctx_mask: (S, B) or None  (1 = valid, 0 = masked)
    w_hid_t:  (H, C) = hid2ctx Linear weight pre-transposed (x @ W)
    w_ctx_t:  (C, C) = ctx2ctx Linear weight pre-transposed
    returns   alpha (S, B) float32, weighted_ctx (B, C) float32
    """
    if hid.ndim == 3:
        hid = hid[0]                               # squeeze time dim of 1
    S, B, C = ctx.shape
    if ctx_mask is None:
        ctx_mask = jnp.ones((S, B), jnp.float32)

    assert b_block % 8 == 0
    in_dtype = jnp.bfloat16 if use_bf16 else jnp.float32
    ib = 2 if use_bf16 else 4

    C_pad = _round_up(C, 128)
    B_pad = _round_up(B, b_block)
    S128 = _round_up(S, 128)

    # ---- VMEM budget -> sequence tile size ----------------------------------
    limit = _vmem_limit_bytes()
    fixed = (2 * C_pad * C_pad * ib          # resident W_ctx (double-buffered)
             + 4 * b_block * C_pad * 4       # hid_ input block + wctx output block
             + b_block * C_pad * 4           # acc scratch
             + 2 * b_block * S128 * 4        # resident alpha output block (bulk)
             + b_block * S128 * 4            # per-tile max scratch (lane-padded)
             + 512 * 1024)                   # misc (sems, small scratch)
    per_tile = b_block * (C_pad * (2 * ib + 8)   # ctx x2 bufs + ctx_p f32 + score temp f32
                          + 4 * 8               # bias / e / scores / alpha-extra temps
                          + (4 + ib) * b_block)  # block-diagonal E (+cast copy)
    slack = 2 * 1024 * 1024
    s_fit = max((limit - fixed - slack) // per_tile, 128)
    s_auto = max((s_fit // 128) * 128, 128)
    if s_tile is None:
        s_tile = s_auto
    s_tile = int(max(128, min(s_tile, s_auto, 2048, S128)))
    s_tile = (s_tile // 128) * 128

    S_pad = _round_up(S, s_tile)
    n_s = S_pad // s_tile
    n_b = B_pad // b_block

    # ---- one-time relayout / padding / hoisted hid projection (XLA) --------
    ctx_bsc = jnp.pad(jnp.transpose(ctx, (1, 0, 2)).astype(in_dtype),
                      ((0, B_pad - B), (0, S_pad - S), (0, C_pad - C)))
    # Additive mask bias; padded S positions are masked too.  Must stay finite.
    bias = jnp.where(ctx_mask > 0, 0.0, _MASK_FILL).astype(jnp.float32)
    bias_bs = jnp.pad(jnp.transpose(bias, (1, 0)),
                      ((0, B_pad - B), (0, S_pad - S)),
                      constant_values=_MASK_FILL)
    hid_proj = jnp.tanh(hid.astype(jnp.float32) @ w_hid_t.astype(jnp.float32))
    hidp = jnp.pad(hid_proj, ((0, B_pad - B), (0, C_pad - C)))
    w_ctx_p = jnp.pad(w_ctx_t.astype(in_dtype),
                      ((0, C_pad - C), (0, C_pad - C)))

    alpha_tiles, wctx_p = pl.pallas_call(
        _vta_kernel,
        out_shape=(
            jax.ShapeDtypeStruct((n_s, B_pad, s_tile), jnp.float32),
            jax.ShapeDtypeStruct((B_pad, C_pad), jnp.float32),
        ),
        grid_spec=pltpu.PrefetchScalarGridSpec(
            num_scalar_prefetch=0,
            grid=(n_b, n_s),
            in_specs=[
                pl.BlockSpec((b_block, C_pad), lambda b, s: (b, 0)),        # hid_
                pl.BlockSpec((b_block, s_tile, C_pad), lambda b, s: (b, s, 0)),
                pl.BlockSpec((b_block, s_tile), lambda b, s: (b, s)),       # bias
                pl.BlockSpec((C_pad, C_pad), lambda b, s: (0, 0)),          # W_ctx
            ],
            out_specs=(
                pl.BlockSpec((n_s, b_block, s_tile), lambda b, s: (0, b, 0)),
                pl.BlockSpec((b_block, C_pad), lambda b, s: (b, 0)),
            ),
            scratch_shapes=[
                pltpu.VMEM((n_s, b_block, 1), jnp.float32),   # per-tile ref max
                pltpu.VMEM((b_block, 1), jnp.float32),        # running max
                pltpu.VMEM((b_block, 1), jnp.float32),        # running denom
                pltpu.VMEM((b_block, C_pad), jnp.float32),    # wctx accumulator
            ],
        ),
        compiler_params=pltpu.CompilerParams(
            dimension_semantics=("parallel", "arbitrary"),
            vmem_limit_bytes=int(limit)),
    )(hidp, ctx_bsc, bias_bs, w_ctx_p)

    # (n_s, B_pad, s_tile) -> (B_pad, S_pad) -> (S, B).  Tiny XLA relayout.
    alpha_bs = jnp.transpose(alpha_tiles, (1, 0, 2)).reshape(B_pad, S_pad)
    alpha = jnp.transpose(alpha_bs[:B, :S], (1, 0))
    wctx = wctx_p[:B, :C]
    return alpha, wctx


def _reference(hid, ctx, w_hid_t, w_ctx_t, ctx_mask):
    if hid.ndim == 3:
        hid = hid[0]
    hid_ = jnp.tanh(hid @ w_hid_t)                          # (B, C)
    ctx_ = jnp.tanh(ctx @ w_ctx_t)                          # (S, B, C)
    scores = jnp.einsum("bc,sbc->sb", hid_, ctx_)           # (S, B)
    scores = jnp.where(ctx_mask > 0, scores, _MASK_FILL)
    alpha = jax.nn.softmax(scores, axis=0)
    wctx = jnp.sum(alpha[:, :, None] * ctx, axis=0)
    return alpha, wctx


if __name__ == "__main__":
    # Shapes consistent with the module: hid (1,B,H), ctx (S,B,C), mask (S,B).
    B, S, HID, CTX = 2, 8, 32, 32

    key = jax.random.PRNGKey(0)
    k_hid, k_ctx, k_wh, k_wc = jax.random.split(key, 4)

    hid = jax.random.normal(k_hid, (1, B, HID), jnp.float32)
    ctx = jax.random.normal(k_ctx, (S, B, CTX), jnp.float32)
    w_hid_t = jax.random.normal(k_wh, (HID, CTX), jnp.float32) / jnp.sqrt(HID)
    w_ctx_t = jax.random.normal(k_wc, (CTX, CTX), jnp.float32) / jnp.sqrt(CTX)

    ctx_mask = jnp.ones((S, B), jnp.float32)
    ctx_mask = ctx_mask.at[S - 2:, 1].set(0.0)              # some padded steps

    alpha_ref, wctx_ref = _reference(hid, ctx, w_hid_t, w_ctx_t, ctx_mask)

    # f32 path.
    alpha, wctx = visual_text_attention(hid, ctx, w_hid_t, w_ctx_t, ctx_mask)
    alpha, wctx = jax.block_until_ready((alpha, wctx))
    assert alpha.shape == (S, B) and wctx.shape == (B, CTX)
    assert jnp.allclose(alpha, alpha_ref, atol=1e-2, rtol=1e-2)
    assert jnp.allclose(wctx, wctx_ref, atol=1e-2, rtol=1e-2)
    # alpha columns sum to 1 (exact reciprocal in the epilogue).
    assert jnp.allclose(alpha.sum(axis=0), 1.0, atol=1e-2)

    # bf16 MXU path (halves ctx HBM traffic; softmax stats stay f32; wctx then
    # carries bf16 rounding of ctx / e -> looser tolerance).
    alpha16, wctx16 = visual_text_attention(hid, ctx, w_hid_t, w_ctx_t,
                                            ctx_mask, use_bf16=True)
    alpha16, wctx16 = jax.block_until_ready((alpha16, wctx16))
    assert jnp.allclose(alpha16, alpha_ref, atol=1e-1, rtol=1e-1)
    assert jnp.allclose(wctx16, wctx_ref, atol=1e-1, rtol=1e-1)

    print("KERNEL_OK")
</pallas_src>

<mosaic_0001>
module attributes {stable_mosaic.version = 11 : i64} {
  func.func @_vta_kernel(%arg0: i32, %arg1: i32, %arg2: memref<8x128xf32, #tpu.memory_space<vmem>>, %arg3: memref<8x128x128xf32, #tpu.memory_space<vmem>>, %arg4: memref<8x128xf32, #tpu.memory_space<vmem>>, %arg5: memref<128x128xf32, #tpu.memory_space<vmem>>, %arg6: memref<1x8x128xf32, #tpu.memory_space<vmem>>, %arg7: memref<8x128xf32, #tpu.memory_space<vmem>>, %arg8: memref<1x8x1xf32, #tpu.memory_space<vmem>>, %arg9: memref<8x1xf32, #tpu.memory_space<vmem>>, %arg10: memref<8x1xf32, #tpu.memory_space<vmem>>, %arg11: memref<8x128xf32, #tpu.memory_space<vmem>>) attributes {dimension_semantics = [#tpu.dimension_semantics<parallel>, #tpu.dimension_semantics<arbitrary>], iteration_bounds = array<i64: 1, 1>, scalar_prefetch = 0 : i64, scratch_operands = 4 : i64, tpu.core_type = #tpu.core_type<tc>, window_params = [{transform_indices = @transform_0, window_bounds = array<i64: 8, 128>}, {transform_indices = @transform_1, window_bounds = array<i64: 8, 128, 128>}, {transform_indices = @transform_2, window_bounds = array<i64: 8, 128>}, {pipeline_mode = #tpu.pipeline_mode<synchronous>, transform_indices = @transform_3, window_bounds = array<i64: 128, 128>}, {transform_indices = @transform_4, window_bounds = array<i64: 1, 8, 128>}, {transform_indices = @transform_5, window_bounds = array<i64: 8, 128>}]} {
    %c0_i32 = arith.constant 0 : i32
    %0 = arith.cmpi eq, %arg1, %c0_i32 : i32
    %1 = arith.extui %0 : i1 to i32
    %c0_i32_0 = arith.constant 0 : i32
    %2 = arith.cmpi ne, %1, %c0_i32_0 : i32
    scf.if %2 {
      %cst_40 = arith.constant 0xFF800000 : f32
      %83 = vector.broadcast %cst_40 : f32 to vector<8x1xf32>
      %c0_41 = arith.constant 0 : index
      %c0_42 = arith.constant 0 : index
      %84 = vector.load %arg9[%c0_41, %c0_42] : memref<8x1xf32, #tpu.memory_space<vmem>>, vector<8x1xf32>
      tpu.vector_store %arg9[%c0_41, %c0_42], %83 {strides = array<i32>} : memref<8x1xf32, #tpu.memory_space<vmem>>, vector<8x1xf32>,
      %cst_43 = arith.constant 0.000000e+00 : f32
      %85 = vector.broadcast %cst_43 : f32 to vector<8x1xf32>
      %c0_44 = arith.constant 0 : index
      %c0_45 = arith.constant 0 : index
      %86 = vector.load %arg10[%c0_44, %c0_45] : memref<8x1xf32, #tpu.memory_space<vmem>>, vector<8x1xf32>
      tpu.vector_store %arg10[%c0_44, %c0_45], %85 {strides = array<i32>} : memref<8x1xf32, #tpu.memory_space<vmem>>, vector<8x1xf32>,
      %cst_46 = arith.constant 0.000000e+00 : f32
      %87 = vector.broadcast %cst_46 : f32 to vector<8x128xf32>
      %c0_47 = arith.constant 0 : index
      %c0_48 = arith.constant 0 : index
      %88 = vector.load %arg11[%c0_47, %c0_48] : memref<8x128xf32, #tpu.memory_space<vmem>>, vector<8x128xf32>
      tpu.vector_store %arg11[%c0_47, %c0_48], %87 {strides = array<i32>} : memref<8x128xf32, #tpu.memory_space<vmem>>, vector<8x128xf32>,
    } else {
    }
    %c0 = arith.constant 0 : index
    %c0_1 = arith.constant 0 : index
    %c0_2 = arith.constant 0 : index
    %3 = vector.load %arg3[%c0, %c0_1, %c0_2] : memref<8x128x128xf32, #tpu.memory_space<vmem>>, vector<8x128x128xf32>
    %4 = vector.shape_cast %3 : vector<8x128x128xf32> to vector<1024x128xf32>
    %c0_3 = arith.constant 0 : index
    %c0_4 = arith.constant 0 : index
    %5 = vector.load %arg5[%c0_3, %c0_4] : memref<128x128xf32, #tpu.memory_space<vmem>>, vector<128x128xf32>
    %cst = arith.constant dense<0.000000e+00> : vector<1024x128xf32>
    %6 = tpu.matmul %4, %5, %cst {dimension_numbers = #tpu.dot_dimension_numbers<[1], [0], [0], [1], [0, 0, 1, 1], [], []>} : vector<1024x128xf32>, vector<128x128xf32>, vector<1024x128xf32> -> vector<1024x128xf32>
    %7 = math.tanh %6 : vector<1024x128xf32>
    %8 = vector.shape_cast %7 : vector<1024x128xf32> to vector<8x128x128xf32>
    %c0_5 = arith.constant 0 : index
    %c0_6 = arith.constant 0 : index
    %9 = vector.load %arg2[%c0_5, %c0_6] : memref<8x128xf32, #tpu.memory_space<vmem>>, vector<8x128xf32>
    %10 = vector.shape_cast %9 : vector<8x128xf32> to vector<8x1x128xf32>
    %11 = vector.broadcast %10 : vector<8x1x128xf32> to vector<8x128x128xf32>
    %12 = arith.mulf %8, %11 : vector<8x128x128xf32>
    %cst_7 = arith.constant dense<0.000000e+00> : vector<8x128xf32>
    %13 = vector.multi_reduction <add>, %12, %cst_7 [2] : vector<8x128x128xf32> to vector<8x128xf32>
    %c0_8 = arith.constant 0 : index
    %c0_9 = arith.constant 0 : index
    %14 = vector.load %arg4[%c0_8, %c0_9] : memref<8x128xf32, #tpu.memory_space<vmem>>, vector<8x128xf32>
    %15 = arith.addf %13, %14 : vector<8x128xf32>
    %c0_10 = arith.constant 0 : index
    %c0_11 = arith.constant 0 : index
    %16 = vector.load %arg9[%c0_10, %c0_11] : memref<8x1xf32, #tpu.memory_space<vmem>>, vector<8x1xf32>
    %cst_12 = arith.constant dense<0xFF800000> : vector<8xf32>
    %17 = vector.multi_reduction <maximumf>, %15, %cst_12 [1] : vector<8x128xf32> to vector<8xf32>
    %18 = vector.shape_cast %17 : vector<8xf32> to vector<8x1xf32>
    %19 = arith.maximumf %16, %18 : vector<8x1xf32>
    %20 = arith.subf %16, %19 : vector<8x1xf32>
    %21 = math.exp %20 : vector<8x1xf32>
    %22 = vector.broadcast %19 : vector<8x1xf32> to vector<8x128xf32>
    %23 = arith.subf %15, %22 : vector<8x128xf32>
    %24 = math.exp %23 : vector<8x128xf32>
    %25 = arith.index_cast %arg1 : i32 to index
    %c0_13 = arith.constant 0 : index
    %c0_14 = arith.constant 0 : index
    %26 = vector.load %arg6[%25, %c0_13, %c0_14] : memref<1x8x128xf32, #tpu.memory_space<vmem>>, vector<1x8x128xf32>
    %27 = vector.shape_cast %26 : vector<1x8x128xf32> to vector<8x128xf32>
    %28 = vector.shape_cast %24 : vector<8x128xf32> to vector<1x8x128xf32>
    tpu.vector_store %arg6[%25, %c0_13, %c0_14], %28 {strides = array<i32>} : memref<1x8x128xf32, #tpu.memory_space<vmem>>, vector<1x8x128xf32>,
    %29 = arith.index_cast %arg1 : i32 to index
    %c0_15 = arith.constant 0 : index
    %c0_16 = arith.constant 0 : index
    %30 = vector.load %arg8[%29, %c0_15, %c0_16] : memref<1x8x1xf32, #tpu.memory_space<vmem>>, vector<1x8x1xf32>
    %31 = vector.shape_cast %30 : vector<1x8x1xf32> to vector<8x1xf32>
    %32 = vector.shape_cast %19 : vector<8x1xf32> to vector<1x8x1xf32>
    tpu.vector_store %arg8[%29, %c0_15, %c0_16], %32 {strides = array<i32>} : memref<1x8x1xf32, #tpu.memory_space<vmem>>, vector<1x8x1xf32>,
    %c0_17 = arith.constant 0 : index
    %c0_18 = arith.constant 0 : index
    %33 = vector.load %arg10[%c0_17, %c0_18] : memref<8x1xf32, #tpu.memory_space<vmem>>, vector<8x1xf32>
    %34 = arith.mulf %21, %33 : vector<8x1xf32>
    %cst_19 = arith.constant dense<0.000000e+00> : vector<8xf32>
    %35 = vector.multi_reduction <add>, %24, %cst_19 [1] : vector<8x128xf32> to vector<8xf32>
    %36 = vector.shape_cast %35 : vector<8xf32> to vector<8x1xf32>
    %37 = arith.addf %34, %36 : vector<8x1xf32>
    %c0_20 = arith.constant 0 : index
    %c0_21 = arith.constant 0 : index
    %38 = vector.load %arg10[%c0_20, %c0_21] : memref<8x1xf32, #tpu.memory_space<vmem>>, vector<8x1xf32>
    tpu.vector_store %arg10[%c0_20, %c0_21], %37 {strides = array<i32>} : memref<8x1xf32, #tpu.memory_space<vmem>>, vector<8x1xf32>,
    %39 = tpu.iota {dimensions = array<i32: 0>} : vector<8x128xi32>
    %c0_i32_22 = arith.constant 0 : i32
    %40 = vector.broadcast %c0_i32_22 : i32 to vector<8x128xi32>
    %41 = arith.cmpi eq, %39, %40 : vector<8x128xi32>
    %cst_23 = arith.constant 0.000000e+00 : f32
    %42 = vector.broadcast %cst_23 : f32 to vector<8x128xf32>
    %43 = arith.select %41, %24, %42 : vector<8x128xi1>, vector<8x128xf32>
    %c1_i32 = arith.constant 1 : i32
    %44 = vector.broadcast %c1_i32 : i32 to vector<8x128xi32>
    %45 = arith.cmpi eq, %39, %44 : vector<8x128xi32>
    %cst_24 = arith.constant 0.000000e+00 : f32
    %46 = vector.broadcast %cst_24 : f32 to vector<8x128xf32>
    %47 = arith.select %45, %24, %46 : vector<8x128xi1>, vector<8x128xf32>
    %c2_i32 = arith.constant 2 : i32
    %48 = vector.broadcast %c2_i32 : i32 to vector<8x128xi32>
    %49 = arith.cmpi eq, %39, %48 : vector<8x128xi32>
    %cst_25 = arith.constant 0.000000e+00 : f32
    %50 = vector.broadcast %cst_25 : f32 to vector<8x128xf32>
    %51 = arith.select %49, %24, %50 : vector<8x128xi1>, vector<8x128xf32>
    %c3_i32 = arith.constant 3 : i32
    %52 = vector.broadcast %c3_i32 : i32 to vector<8x128xi32>
    %53 = arith.cmpi eq, %39, %52 : vector<8x128xi32>
    %cst_26 = arith.constant 0.000000e+00 : f32
    %54 = vector.broadcast %cst_26 : f32 to vector<8x128xf32>
    %55 = arith.select %53, %24, %54 : vector<8x128xi1>, vector<8x128xf32>
    %c4_i32 = arith.constant 4 : i32
    %56 = vector.broadcast %c4_i32 : i32 to vector<8x128xi32>
    %57 = arith.cmpi eq, %39, %56 : vector<8x128xi32>
    %cst_27 = arith.constant 0.000000e+00 : f32
    %58 = vector.broadcast %cst_27 : f32 to vector<8x128xf32>
    %59 = arith.select %57, %24, %58 : vector<8x128xi1>, vector<8x128xf32>
    %c5_i32 = arith.constant 5 : i32
    %60 = vector.broadcast %c5_i32 : i32 to vector<8x128xi32>
    %61 = arith.cmpi eq, %39, %60 : vector<8x128xi32>
    %cst_28 = arith.constant 0.000000e+00 : f32
    %62 = vector.broadcast %cst_28 : f32 to vector<8x128xf32>
    %63 = arith.select %61, %24, %62 : vector<8x128xi1>, vector<8x128xf32>
    %c6_i32 = arith.constant 6 : i32
    %64 = vector.broadcast %c6_i32 : i32 to vector<8x128xi32>
    %65 = arith.cmpi eq, %39, %64 : vector<8x128xi32>
    %cst_29 = arith.constant 0.000000e+00 : f32
    %66 = vector.broadcast %cst_29 : f32 to vector<8x128xf32>
    %67 = arith.select %65, %24, %66 : vector<8x128xi1>, vector<8x128xf32>
    %c7_i32 = arith.constant 7 : i32
    %68 = vector.broadcast %c7_i32 : i32 to vector<8x128xi32>
    %69 = arith.cmpi eq, %39, %68 : vector<8x128xi32>
    %cst_30 = arith.constant 0.000000e+00 : f32
    %70 = vector.broadcast %cst_30 : f32 to vector<8x128xf32>
    %71 = arith.select %69, %24, %70 : vector<8x128xi1>, vector<8x128xf32>
    %72 = tpu.concatenate %43, %47, %51, %55, %59, %63, %67, %71 in 1 : vector<8x128xf32>, vector<8x128xf32>, vector<8x128xf32>, vector<8x128xf32>, vector<8x128xf32>, vector<8x128xf32>, vector<8x128xf32>, vector<8x128xf32> -> vector<8x1024xf32>
    %c0_31 = arith.constant 0 : index
    %c0_32 = arith.constant 0 : index
    %73 = vector.load %arg11[%c0_31, %c0_32] : memref<8x128xf32, #tpu.memory_space<vmem>>, vector<8x128xf32>
    %74 = vector.broadcast %21 : vector<8x1xf32> to vector<8x128xf32>
    %75 = arith.mulf %74, %73 : vector<8x128xf32>
    %cst_33 = arith.constant dense<0.000000e+00> : vector<8x128xf32>
    %76 = tpu.matmul %72, %4, %cst_33 {dimension_numbers = #tpu.dot_dimension_numbers<[1], [0], [0], [1], [0, 0, 1, 1], [], []>} : vector<8x1024xf32>, vector<1024x128xf32>, vector<8x128xf32> -> vector<8x128xf32>
    %77 = arith.addf %75, %76 : vector<8x128xf32>
    %c0_34 = arith.constant 0 : index
    %c0_35 = arith.constant 0 : index
    %78 = vector.load %arg11[%c0_34, %c0_35] : memref<8x128xf32, #tpu.memory_space<vmem>>, vector<8x128xf32>
    tpu.vector_store %arg11[%c0_34, %c0_35], %77 {strides = array<i32>} : memref<8x128xf32, #tpu.memory_space<vmem>>, vector<8x128xf32>,
    %c0_36 = arith.constant 0 : index
    %c0_37 = arith.constant 0 : index
    %79 = vector.load %arg9[%c0_36, %c0_37] : memref<8x1xf32, #tpu.memory_space<vmem>>, vector<8x1xf32>
    tpu.vector_store %arg9[%c0_36, %c0_37], %19 {strides = array<i32>} : memref<8x1xf32, #tpu.memory_space<vmem>>, vector<8x1xf32>,
    %c0_i32_38 = arith.constant 0 : i32
    %80 = arith.cmpi eq, %arg1, %c0_i32_38 : i32
    %81 = arith.extui %80 : i1 to i32
    %c0_i32_39 = arith.constant 0 : i32
    %82 = arith.cmpi ne, %81, %c0_i32_39 : i32
    scf.if %82 {
      %c0_40 = arith.constant 0 : index
      %c0_41 = arith.constant 0 : index
      %83 = vector.load %arg10[%c0_40, %c0_41] : memref<8x1xf32, #tpu.memory_space<vmem>>, vector<8x1xf32>
      %84 = tpu.reciprocal %83 : vector<8x1xf32> -> vector<8x1xf32>
      %c0_42 = arith.constant 0 : index
      %c0_43 = arith.constant 0 : index
      %c0_44 = arith.constant 0 : index
      %85 = vector.load %arg8[%c0_42, %c0_43, %c0_44] : memref<1x8x1xf32, #tpu.memory_space<vmem>>, vector<1x8x1xf32>
      %c0_45 = arith.constant 0 : index
      %c0_46 = arith.constant 0 : index
      %86 = vector.load %arg9[%c0_45, %c0_46] : memref<8x1xf32, #tpu.memory_space<vmem>>, vector<8x1xf32>
      %87 = vector.shape_cast %86 : vector<8x1xf32> to vector<1x8x1xf32>
      %88 = arith.subf %85, %87 : vector<1x8x1xf32>
      %89 = math.exp %88 : vector<1x8x1xf32>
      %90 = vector.shape_cast %84 : vector<8x1xf32> to vector<1x8x1xf32>
      %91 = arith.mulf %89, %90 : vector<1x8x1xf32>
      %c0_47 = arith.constant 0 : index
      %c0_48 = arith.constant 0 : index
      %c0_49 = arith.constant 0 : index
      %92 = vector.load %arg6[%c0_47, %c0_48, %c0_49] : memref<1x8x128xf32, #tpu.memory_space<vmem>>, vector<1x8x128xf32>
      %93 = vector.broadcast %91 : vector<1x8x1xf32> to vector<1x8x128xf32>
      %94 = arith.mulf %92, %93 : vector<1x8x128xf32>
      %c0_50 = arith.constant 0 : index
      %c0_51 = arith.constant 0 : index
      %c0_52 = arith.constant 0 : index
      %95 = vector.load %arg6[%c0_50, %c0_51, %c0_52] : memref<1x8x128xf32, #tpu.memory_space<vmem>>, vector<1x8x128xf32>
      tpu.vector_store %arg6[%c0_50, %c0_51, %c0_52], %94 {strides = array<i32>} : memref<1x8x128xf32, #tpu.memory_space<vmem>>, vector<1x8x128xf32>,
      %c0_53 = arith.constant 0 : index
      %c0_54 = arith.constant 0 : index
      %96 = vector.load %arg11[%c0_53, %c0_54] : memref<8x128xf32, #tpu.memory_space<vmem>>, vector<8x128xf32>
      %97 = vector.broadcast %84 : vector<8x1xf32> to vector<8x128xf32>
      %98 = arith.mulf %96, %97 : vector<8x128xf32>
      %c0_55 = arith.constant 0 : index
      %c0_56 = arith.constant 0 : index
      %99 = vector.load %arg7[%c0_55, %c0_56] : memref<8x128xf32, #tpu.memory_space<vmem>>, vector<8x128xf32>
      tpu.vector_store %arg7[%c0_55, %c0_56], %98 {strides = array<i32>} : memref<8x128xf32, #tpu.memory_space<vmem>>, vector<8x128xf32>,
    } else {
    }
    return
  }
  func.func @transform_0(%arg0: i32, %arg1: i32) -> (i32, i32) {
    %c0_i32 = arith.constant 0 : i32
    %c0_i32_0 = arith.constant 0 : i32
    return %arg0, %c0_i32 : i32, i32
  }
  func.func @transform_1(%arg0: i32, %arg1: i32) -> (i32, i32, i32) {
    %c0_i32 = arith.constant 0 : i32
    %c0_i32_0 = arith.constant 0 : i32
    return %arg0, %arg1, %c0_i32 : i32, i32, i32
  }
  func.func @transform_2(%arg0: i32, %arg1: i32) -> (i32, i32) {
    %c0_i32 = arith.constant 0 : i32
    return %arg0, %arg1 : i32, i32
  }
  func.func @transform_3(%arg0: i32, %arg1: i32) -> (i32, i32) {
    %c0_i32 = arith.constant 0 : i32
    %c0_i32_0 = arith.constant 0 : i32
    %c0_i32_1 = arith.constant 0 : i32
    return %c0_i32, %c0_i32_0 : i32, i32
  }
  func.func @transform_4(%arg0: i32, %arg1: i32) -> (i32, i32, i32) {
    %c0_i32 = arith.constant 0 : i32
    %c0_i32_0 = arith.constant 0 : i32
    %c0_i32_1 = arith.constant 0 : i32
    return %c0_i32, %arg0, %c0_i32_0 : i32, i32, i32
  }
  func.func @transform_5(%arg0: i32, %arg1: i32) -> (i32, i32) {
    %c0_i32 = arith.constant 0 : i32
    %c0_i32_0 = arith.constant 0 : i32
    return %arg0, %c0_i32 : i32, i32
  }
}

</mosaic_0001>

<bundles_post_ra>
// kernel: tpu_custom_call.1
= control target key start
LH: loop header
LB: loop body
LE: loop exit
PB: predicated region body
PF: predicated region fallthrough
CT: control target
= control target key end

     0   :  { %11 = vsyncpa [#allocation7], 0  ;;  %s10147_s0 = inlined_call_operand.hbm [shape: f32[8,128], index: 0, kind: input, shape index: {}]   ;;  %s10148_s1 = inlined_call_operand.hbm [shape: f32[8,128,128], index: 1, kind: input, shape index: {}]   ;;  %s10149_s2 = inlined_call_operand.hbm [shape: f32[8,128], index: 2, kind: input, shape index: {}]   ;;  %s10150_s3 = inlined_call_operand.hbm [shape: f32[128,128], index: 3, kind: input, shape index: {}]   ;;  %s10151_s4 = inlined_call_operand.hbm [shape: f32[1,8,128], index: 4, kind: output, shape index: {0}]   ;;  %s10152_s5 = inlined_call_operand.hbm [shape: f32[8,128], index: 5, kind: output, shape index: {1}]  }
   0x1   :  { %12 = vsyncpa [#allocation10], 0 }
   0x2   :  { %13 = vsyncpa [#allocation13], 0 }
   0x3   :  { %14 = vsyncpa [#allocation8], 0 }
   0x4   :  { %15 = vsyncpa [#allocation16], 0  ;;  %s6789_s18 = smov [#allocation9]  }
   0x5   :  { %s31_s19 = sshll.u32 %s6789_s18, 4  ;;  %s32_s19 = int_to_ptr.vmem [resolvable:$true] %s31_s19 }
   0x6   :  { %s6667_s20 = scalar_lea.vmem %s32_s19, 16384  ;;  %p6672_p1 = scmp.lt.s32.totalorder %s32_s19, %s32_s19 }
   0x7   :  { %p6668_p0 = scmp.ne.s32.totalorder %s32_s19, %s6667_s20  ;;  %p6673_p2 = scmp.lt.s32.totalorder %s6667_s20, %s6667_s20 }
   0x9   :  { %p6674_p3 = por %p6673_p2, %p6672_p1 }
   0xb   :  { %p6675_p4 = pnand %p6674_p3, %p6668_p0 }
   0xd   :  { %6678 = shalt.err (!%p6675_p4)
}
   0xe   :  { %s6790_s21 = smov 128   ;;  %s6791_s22 = smov 8  }
   0xf   :  { %37 = dma.hbm_to_vmem [thread:$0]  %s10148_s1, 16384, %s32_s19, [#allocation10], %s6790_s21, %s6790_s21, %s6791_s22  }
  0x10   :  { %s6792_s25 = smov [#allocation6]   ;;  %s6793_s27 = smov [#allocation11]  }
  0x11   :  { %s22_s26 = sshll.u32 %s6792_s25, 4  ;;  %s44_s28 = sshll.u32 %s6793_s27, 4  ;;  %s23_s26 = int_to_ptr.vmem [resolvable:$true] %s22_s26  ;;  %s45_s28 = int_to_ptr.vmem [resolvable:$true] %s44_s28 }
  0x12   :  { %s6687_s29 = scalar_lea.vmem %s23_s26, 128  ;;  %p6692_p6 = scmp.lt.s32.totalorder %s23_s26, %s23_s26 }
  0x13   :  { %p6688_p5 = scmp.ne.s32.totalorder %s23_s26, %s6687_s29  ;;  %p6693_p7 = scmp.lt.s32.totalorder %s6687_s29, %s6687_s29 }
  0x15   :  { %p6694_p8 = por %p6693_p7, %p6692_p6 }
  0x17   :  { %p6695_p9 = pnand %p6694_p8, %p6688_p5 }
  0x19   :  { %6698 = shalt.err (!%p6695_p9)
}
  0x1a   :  { %25 = dma.hbm_to_vmem [thread:$0]  %s10147_s0, 128, %s23_s26, [#allocation7]  }
  0x1b   :  { %s6707_s7 = scalar_lea.vmem %s45_s28, 128  ;;  %p6712_p11 = scmp.lt.s32.totalorder %s45_s28, %s45_s28 }
  0x1c   :  { %p6708_p10 = scmp.ne.s32.totalorder %s45_s28, %s6707_s7  ;;  %p6713_p12 = scmp.lt.s32.totalorder %s6707_s7, %s6707_s7 }
  0x1e   :  { %p6714_p13 = por %p6713_p12, %p6712_p11 }
  0x20   :  { %p6715_p0 = pnand %p6714_p13, %p6708_p10 }
  0x22   :  { %6718 = shalt.err (!%p6715_p0)
}
  0x23   :  { %47 = dma.hbm_to_vmem [thread:$0]  %s10149_s2, 128, %s45_s28, [#allocation10]  }
  0x24   :  { %s6794_s9 = smov [#allocation12]  }
  0x25   :  { %s53_s10 = sshll.u32 %s6794_s9, 4  ;;  %s54_s10 = int_to_ptr.vmem [resolvable:$true] %s53_s10 }
  0x26   :  { %s6727_s11 = scalar_lea.vmem %s54_s10, 2048  ;;  %p6732_p2 = scmp.lt.s32.totalorder %s54_s10, %s54_s10 }
  0x27   :  { %p6728_p1 = scmp.ne.s32.totalorder %s54_s10, %s6727_s11  ;;  %p6733_p3 = scmp.lt.s32.totalorder %s6727_s11, %s6727_s11 }
  0x29   :  { %p6734_p4 = por %p6733_p3, %p6732_p2 }
  0x2b   :  { %p6735_p5 = pnand %p6734_p4, %p6728_p1 }
  0x2d   :  { %6738 = shalt.err (!%p6735_p5)
}
  0x2e   :  { %59 = dma.hbm_to_vmem [thread:$0]  %s10150_s3, 2048, %s54_s10, [#allocation13], %s6790_s21, %s6790_s21, %s6791_s22  }
  0x2f   :  { %6779 = dma.done.wait [#allocation7], 128  }
  0x30   :  { %6780 = vsyncadd [#allocation7], 4294967168 }
  0x31   :  { %6781 = dma.done.wait [#allocation10], 16512  }
  0x32   :  { %6782 = vsyncadd [#allocation10], 4294950784 }
  0x33   :  { %6783 = dma.done.wait [#allocation13], 2048  }
  0x34   :  { %6784 = vsyncadd [#allocation13], 4294965248  ;;  %v223_v0 = vld [vmem:[#allocation12 + $0x78] sm:$0xff]  ;;  %v222_v1 = vld [vmem:[#allocation12 + $0x70] sm:$0xff]  ;;  %v10157_v12 = vlaneseq  ;;  %vm10308_vm0 = vcmask 7168   ;;  %vm2850_vm1 = vcmask 130112  }
  0x35   :  { %5774 = vmatprep.subr.mxu0 %v223_v0  ;;  %5998 = vmatprep.subr.mxu1 %v223_v0  ;;  %v221_v2 = vld [vmem:[#allocation12 + $0x68] sm:$0xff]  ;;  %v220_v3 = vld [vmem:[#allocation12 + $0x60] sm:$0xff]  ;;  %v219_v4 = vld [vmem:[#allocation12 + $0x58] sm:$0xff]  ;;  %vm2857_vm2 = vcmask 195712   ;;  %vm2864_vm3 = vcmask 261312   ;;  %vm10294_vm4 = vcmask 326912  }
  0x36   :  { %5775 = vmatpush3.msra.mxu0 %v223_v0  ;;  %6014 = vmatpush3.msra.mxu1 %v223_v0  ;;  %v218_v5 = vld [vmem:[#allocation12 + $0x50] sm:$0xff]  ;;  %v217_v6 = vld [vmem:[#allocation12 + $0x48] sm:$0xff]  ;;  %v216_v7 = vld [vmem:[#allocation12 + $0x40] sm:$0xff]  ;;  %v6850_v15 = vshrl.u32 %v10157_v12, 7  ;;  %vm10295_vm5 = vcmask 392512   ;;  %vm10296_vm6 = vcmask 458112  }
  0x37   :  { %5776 = vmatprep.subr.mxu0 %v222_v1  ;;  %5999 = vmatprep.subr.mxu1 %v222_v1  ;;  %v215_v8 = vld [vmem:[#allocation12 + $0x38] sm:$0xff]  ;;  %v214_v9 = vld [vmem:[#allocation12 + $0x30] sm:$0xff]  ;;  %v213_v10 = vld [vmem:[#allocation12 + $0x28] sm:$0xff]  ;;  %vm2892_vm7 = vcmask 523712   ;;  %vm2899_vm8 = vcmask 589312   ;;  %vm2906_vm9 = vcmask 654912  }
  0x38   :  { %5777 = vmatpush3.msra.mxu0 %v222_v1  ;;  %6015 = vmatpush3.msra.mxu1 %v222_v1  ;;  %v212_v11 = vld [vmem:[#allocation12 + $0x20] sm:$0xff]  ;;  %v211_v13 = vld [vmem:[#allocation12 + $0x18] sm:$0xff]  ;;  %v210_v14 = vld [vmem:[#allocation12 + $0x10] sm:$0xff]  ;;  %10312 = vst [vmem:[#allocation22_spill] sm:$0xff] %v6850_v15  ;;  %v6853_v18 = vsub.s32 0, %v6850_v15  ;;  %v10156_v54 = vsub.s32 1, %v6850_v15 }
  0x39   :  { %5778 = vmatprep.subr.mxu0 %v221_v2  ;;  %6000 = vmatprep.subr.mxu1 %v221_v2  ;;  %v209_v16 = vld [vmem:[#allocation12 + $0x8] sm:$0xff]  ;;  %v208_v17 = vld [vmem:[#allocation12] sm:$0xff]  ;;  %v6855_v19 = vld [vmem:[#allocation11] sm:$0xff]  ;;  %vm10297_vm10 = vcmask 720512   ;;  %vm10298_vm11 = vcmask 786112   ;;  %vm10300_vm12 = vcmask 851712  }
  0x3a   :  { %5779 = vmatpush3.msra.mxu0 %v221_v2  ;;  %6016 = vmatpush3.msra.mxu1 %v221_v2  ;;  %10313 = vst [vmem:[#allocation23_spill] sm:$0xff] %v6853_v18  ;;  %v6857_v20 = vld [vmem:[#allocation9] sm:$0xff]  ;;  %v170_v21 = vld [vmem:[#allocation9 + $0x2d0] sm:$0xff]  ;;  %v6859_v22 = vld [vmem:[#allocation9 + $0x8] sm:$0xff]  ;;  %v6865_v26 = vrot.slane %v6855_v19, %v6853_v18  ;;  %v6924_v57 = vrot.slane %v6855_v19, %v10156_v54  ;;  %vm2934_vm13 = vcmask 917312   ;;  %vm2941_vm14 = vcmask 982912  }
  0x3b   :  { %5780 = vmatprep.subr.mxu0 %v220_v3  ;;  %6001 = vmatprep.subr.mxu1 %v220_v3  ;;  %v171_v23 = vld [vmem:[#allocation9 + $0x2d8] sm:$0xff]  ;;  %v6861_v24 = vld [vmem:[#allocation9 + $0x10] sm:$0xff]  ;;  %v172_v25 = vld [vmem:[#allocation9 + $0x2e0] sm:$0xff]  ;;  %vm2948_vm15 = vcmask 1048512   ;;  %s6799_s2 = smov [#allocation14]  }
  0x3c   :  { %5781 = vmatpush3.msra.mxu0 %v220_v3  ;;  %6017 = vmatpush3.msra.mxu1 %v220_v3  ;;  %v6870_v27 = vld [vmem:[#allocation9 + $0x18] sm:$0xff]  ;;  %v173_v28 = vld [vmem:[#allocation9 + $0x2e8] sm:$0xff]  ;;  %v6872_v29 = vld [vmem:[#allocation9 + $0x20] sm:$0xff]  ;;  %s5457_s3 = sshll.u32 %s6799_s2, 4  ;;  %s5458_s3 = int_to_ptr.vmem [resolvable:$true] %s5457_s3 }
  0x3d   :  { %5782 = vmatprep.subr.mxu0 %v219_v4  ;;  %6002 = vmatprep.subr.mxu1 %v219_v4  ;;  %v174_v30 = vld [vmem:[#allocation9 + $0x2f0] sm:$0xff]  ;;  %v6876_v31 = vld [vmem:[#allocation9 + $0xf8] sm:$0xff]  ;;  %v6881_v32 = vld [vmem:[#allocation9 + $0x28] sm:$0xff]  ;;  %s6739_s13 = scalar_lea.vmem %s5458_s3, 128  ;;  %p6744_p7 = scmp.lt.s32.totalorder %s5458_s3, %s5458_s3 }
  0x3e   :  { %5783 = vmatpush3.msra.mxu0 %v219_v4  ;;  %6018 = vmatpush3.msra.mxu1 %v219_v4  ;;  %v175_v33 = vld [vmem:[#allocation9 + $0x2f8] sm:$0xff]  ;;  %v6883_v34 = vld [vmem:[#allocation9 + $0x30] sm:$0xff]  ;;  %v176_v35 = vld [vmem:[#allocation9 + $0x300] sm:$0xff]  ;;  %p6740_p6 = scmp.ne.s32.totalorder %s5458_s3, %s6739_s13  ;;  %p6745_p8 = scmp.lt.s32.totalorder %s6739_s13, %s6739_s13 }
  0x3f   :  { %5784 = vmatprep.subr.mxu0 %v218_v5  ;;  %6003 = vmatprep.subr.mxu1 %v218_v5  ;;  %v95_v36 = vld [vmem:[#allocation9 + $0x78] sm:$0xff]  ;;  %v177_v38 = vld [vmem:[#allocation9 + $0x308] sm:$0xff]  ;;  %v6892_v39 = vld [vmem:[#allocation9 + $0x40] sm:$0xff] }
  0x40   :  { %5785 = vmatpush3.msra.mxu0 %v218_v5  ;;  %6019 = vmatpush3.msra.mxu1 %v218_v5  ;;  %v6889_v37 = vld [vmem:[#allocation9 + $0x38] sm:$0xff]  ;;  %v178_v40 = vld [vmem:[#allocation9 + $0x310] sm:$0xff]  ;;  %v6900_v42 = vld [vmem:[#allocation9 + $0x48] sm:$0xff]  ;;  %p6746_p9 = por %p6745_p8, %p6744_p7 }
  0x41   :  { %5786 = vmatprep.subr.mxu0 %v217_v6  ;;  %6004 = vmatprep.subr.mxu1 %v217_v6  ;;  %v6895_v41 = vld [vmem:[#allocation9 + $0xf0] sm:$0xff]  ;;  %v179_v43 = vld [vmem:[#allocation9 + $0x318] sm:$0xff]  ;;  %v180_v45 = vld [vmem:[#allocation9 + $0x320] sm:$0xff] }
  0x42   :  { %5787 = vmatpush3.msra.mxu0 %v217_v6  ;;  %6020 = vmatpush3.msra.mxu1 %v217_v6  ;;  %v6903_v44 = vld [vmem:[#allocation9 + $0x50] sm:$0xff]  ;;  %v6908_v47 = vld [vmem:[#allocation9 + $0x58] sm:$0xff]  ;;  %v181_v48 = vld [vmem:[#allocation9 + $0x328] sm:$0xff]  ;;  %p6747_p10 = pnand %p6746_p9, %p6740_p6 }
  0x43   :  { %5788 = vmatprep.subr.mxu0 %v216_v7  ;;  %6005 = vmatprep.subr.mxu1 %v216_v7  ;;  %v94_v46 = vld [vmem:[#allocation9 + $0x70] sm:$0xff]  ;;  %v92_v49 = vld [vmem:[#allocation9 + $0x60] sm:$0xff]  ;;  %v6912_v51 = vld [vmem:[#allocation9 + $0xe8] sm:$0xff] }
  0x44   :  { %5789 = vmatpush3.msra.mxu0 %v216_v7  ;;  %6021 = vmatpush3.msra.mxu1 %v216_v7  ;;  %v182_v50 = vld [vmem:[#allocation9 + $0x330] sm:$0xff]  ;;  %v93_v52 = vld [vmem:[#allocation9 + $0x68] sm:$0xff]  ;;  %v183_v53 = vld [vmem:[#allocation9 + $0x338] sm:$0xff] }
  0x45   :  { %5790 = vmatprep.subr.mxu0 %v215_v8  ;;  %6006 = vmatprep.subr.mxu1 %v215_v8  ;;  %v184_v55 = vld [vmem:[#allocation9 + $0x340] sm:$0xff]  ;;  %v185_v56 = vld [vmem:[#allocation9 + $0x348] sm:$0xff]  ;;  %v186_v59 = vld [vmem:[#allocation9 + $0x350] sm:$0xff] }
  0x46   :  { %5791 = vmatpush3.msra.mxu0 %v215_v8  ;;  %6022 = vmatpush3.msra.mxu1 %v215_v8  ;;  %v6926_v58 = vld [vmem:[#allocation9 + $0x80] sm:$0xff]  ;;  %v6932_v61 = vld [vmem:[#allocation9 + $0x88] sm:$0xff]  ;;  %v187_v62 = vld [vmem:[#allocation9 + $0x358] sm:$0xff] }
  0x47   :  { %5792 = vmatprep.subr.mxu0 %v214_v9  ;;  %6007 = vmatprep.subr.mxu1 %v214_v9  ;;  %v6928_v60 = vld [vmem:[#allocation9 + $0xe0] sm:$0xff]  ;;  %v6936_v63 = vld [vmem:[#allocation9 + $0x90] sm:$0xff]  ;;  %v6940_v1 = vld [vmem:[#allocation9 + $0x98] sm:$0xff] }
  0x48   :  { %5793 = vmatpush3.msra.mxu0 %v214_v9  ;;  %6023 = vmatpush3.msra.mxu1 %v214_v9  ;;  %v188_v0 = vld [vmem:[#allocation9 + $0x360] sm:$0xff]  ;;  %v189_v2 = vld [vmem:[#allocation9 + $0x368] sm:$0xff]  ;;  %v190_v4 = vld [vmem:[#allocation9 + $0x370] sm:$0xff] }
  0x49   :  { %5794 = vmatprep.subr.mxu0 %v213_v10  ;;  %6008 = vmatprep.subr.mxu1 %v213_v10  ;;  %v6944_v3 = vld [vmem:[#allocation9 + $0xa0] sm:$0xff]  ;;  %v107_v5 = vld [vmem:[#allocation9 + $0xd8] sm:$0xff]  ;;  %v6948_v6 = vld [vmem:[#allocation9 + $0xa8] sm:$0xff] }
  0x4a   :  { %5795 = vmatpush3.msra.mxu0 %v213_v10  ;;  %6024 = vmatpush3.msra.mxu1 %v213_v10  ;;  %v191_v7 = vld [vmem:[#allocation9 + $0x378] sm:$0xff]  ;;  %v6952_v8 = vld [vmem:[#allocation9 + $0xb0] sm:$0xff]  ;;  %v192_v9 = vld [vmem:[#allocation9 + $0x380] sm:$0xff] }
  0x4b   :  { %5796 = vmatprep.subr.mxu0 %v212_v11  ;;  %6009 = vmatprep.subr.mxu1 %v212_v11  ;;  %v6957_v10 = vld [vmem:[#allocation9 + $0xb8] sm:$0xff] }
  0x4c   :  { %5797 = vmatpush3.msra.mxu0 %v212_v11  ;;  %6025 = vmatpush3.msra.mxu1 %v212_v11  ;;  %v193_v11 = vld [vmem:[#allocation9 + $0x388] sm:$0xff] }
  0x4d   :  { %5798 = vmatprep.subr.mxu0 %v211_v13  ;;  %6010 = vmatprep.subr.mxu1 %v211_v13 }
  0x4e   :  { %5799 = vmatpush3.msra.mxu0 %v211_v13  ;;  %6026 = vmatpush3.msra.mxu1 %v211_v13  ;;  %v104_v13 = vld [vmem:[#allocation9 + $0xc0] sm:$0xff] }
  0x4f   :  { %5800 = vmatprep.subr.mxu0 %v210_v14  ;;  %6011 = vmatprep.subr.mxu1 %v210_v14 }
  0x50   :  { %5801 = vmatpush3.msra.mxu0 %v210_v14  ;;  %6027 = vmatpush3.msra.mxu1 %v210_v14  ;;  %v194_v14 = vld [vmem:[#allocation9 + $0x390] sm:$0xff] }
  0x51   :  { %5802 = vmatprep.subr.mxu0 %v209_v16  ;;  %6012 = vmatprep.subr.mxu1 %v209_v16 }
  0x52   :  { %5803 = vmatpush3.msra.mxu0 %v209_v16  ;;  %6028 = vmatpush3.msra.mxu1 %v209_v16  ;;  %v106_v16 = vld [vmem:[#allocation9 + $0xd0] sm:$0xff] }
  0x53   :  { %5804 = vmatprep.subr.mxu0 %v208_v17  ;;  %6013 = vmatprep.subr.mxu1 %v208_v17 }
  0x54   :  { %5805 = vmatpush3.msra.mxu0 %v208_v17  ;;  %6029 = vmatpush3.msra.mxu1 %v208_v17  ;;  %v105_v17 = vld [vmem:[#allocation9 + $0xc8] sm:$0xff] }
  0x55   :  { %5806 = vmatprep.mubr.f32.mxu0 %v6857_v20  ;;  %5941 = vmatprep.mubr.f32.mxu1 %v170_v21  ;;  %v195_v21 = vld [vmem:[#allocation9 + $0x398] sm:$0xff] }
  0x56   :  { %5807 = vmatmul.mubr.f32.vlgmr.msra.gmra.mxu0 %v6859_v22  ;;  %5942 = vmatmul.mubr.f32.vlgmr.msra.gmra.mxu1 %v171_v23  ;;  %v196_v23 = vld [vmem:[#allocation9 + $0x3a0] sm:$0xff] }
  0x57   :  { %5809 = vmatprep.mubr.f32.mxu0 %v6861_v24  ;;  %5944 = vmatprep.mubr.f32.mxu1 %v172_v25  ;;  %v197_v25 = vld [vmem:[#allocation9 + $0x3a8] sm:$0xff] }
  0x58   :  { %1543 = vbcast.lane.b32.xlu1 %v6865_v26, 264  ;;  %1539 = vbcast.lane.b32.xlu0 %v6865_v26, 256 }
  0x59   :  { %5634 = vmatprep.subr.mxu1 %v6876_v31 }
  0x5a   :  { %5810 = vmatmul.mubr.f32.gmra.mxu0 %v6870_v27  ;;  %5945 = vmatmul.mubr.f32.gmra.mxu1 %v173_v28  ;;  %v199_v28 = vld [vmem:[#allocation9 + $0x3b8] sm:$0xff] }
  0x5b   :  { %5812 = vmatprep.mubr.f32.mxu0 %v6872_v29  ;;  %5947 = vmatprep.mubr.f32.mxu1 %v174_v30  ;;  %v10155_v30 = vsub.s32 2, %v6850_v15 }
  0x5c   :  { %1547 = vbcast.lane.b32.xlu1 %v6865_v26, 272  ;;  %1555 = vbcast.lane.b32.xlu0 %v6865_v26, 288 }
  0x5d   :  { %5635 = vmatpush3.msra.mxu1 %v95_v36 }
  0x5e   :  { %5813 = vmatmul.mubr.f32.gmra.mxu0 %v6881_v32  ;;  %5948 = vmatmul.mubr.f32.gmra.mxu1 %v175_v33  ;;  %v200_v33 = vld [vmem:[#allocation9 + $0x3c0] sm:$0xff] }
  0x5f   :  { %5815 = vmatprep.mubr.f32.mxu0 %v6883_v34  ;;  %5950 = vmatprep.mubr.f32.mxu1 %v176_v35  ;;  %v201_v35 = vld [vmem:[#allocation9 + $0x3c8] sm:$0xff] }
  0x60   :  { %1551 = vbcast.lane.b32.xlu1 %v6865_v26, 280  ;;  %1563 = vbcast.lane.b32.xlu0 %v6865_v26, 304 }
  0x61   :  { %5636 = vmatprep.subr.mxu1 %v6895_v41 }
  0x62   :  { %5816 = vmatmul.mubr.f32.gmra.mxu0 %v6889_v37  ;;  %5951 = vmatmul.mubr.f32.gmra.mxu1 %v177_v38  ;;  %v112_v38 = vld [vmem:[#allocation9 + $0x100] sm:$0xff] }
  0x63   :  { %5818 = vmatprep.mubr.f32.mxu0 %v6892_v39  ;;  %5953 = vmatprep.mubr.f32.mxu1 %v178_v40  ;;  %v202_v40 = vld [vmem:[#allocation9 + $0x3d0] sm:$0xff] }
  0x64   :  { %1559 = vbcast.lane.b32.xlu1 %v6865_v26, 296  ;;  %1571 = vbcast.lane.b32.xlu0 %v6865_v26, 320 }
  0x65   :  { %5637 = vmatpush3.msra.mxu1 %v94_v46 }
  0x66   :  { %5819 = vmatmul.mubr.f32.gmra.mxu0 %v6900_v42  ;;  %5954 = vmatmul.mubr.f32.gmra.mxu1 %v179_v43  ;;  %v114_v43 = vld [vmem:[#allocation9 + $0x110] sm:$0xff] }
  0x67   :  { %5821 = vmatprep.mubr.f32.mxu0 %v6903_v44  ;;  %5956 = vmatprep.mubr.f32.mxu1 %v180_v45  ;;  %v115_v45 = vld [vmem:[#allocation9 + $0x118] sm:$0xff] }
  0x68   :  { %1567 = vbcast.lane.b32.xlu1 %v6865_v26, 312  ;;  %1579 = vbcast.lane.b32.xlu0 %v6865_v26, 336 }
  0x69   :  { %5638 = vmatprep.subr.mxu1 %v6912_v51 }
  0x6a   :  { %5822 = vmatmul.mubr.f32.gmra.mxu0 %v6908_v47  ;;  %5957 = vmatmul.mubr.f32.gmra.mxu1 %v181_v48  ;;  %v117_v48 = vld [vmem:[#allocation9 + $0x128] sm:$0xff] }
  0x6b   :  { %5824 = vmatprep.mubr.f32.mxu0 %v92_v49  ;;  %5959 = vmatprep.mubr.f32.mxu1 %v182_v50  ;;  %v119_v50 = vld [vmem:[#allocation9 + $0x138] sm:$0xff] }
  0x6c   :  { %1575 = vbcast.lane.b32.xlu1 %v6865_v26, 328  ;;  %1587 = vbcast.lane.b32.xlu0 %v6865_v26, 352 }
  0x6d   :  { %5639 = vmatpush3.msra.mxu1 %v93_v52 }
  0x6e   :  { %5825 = vmatmul.mubr.f32.gmra.mxu0 %v93_v52  ;;  %5960 = vmatmul.mubr.f32.gmra.mxu1 %v183_v53  ;;  %v121_v52 = vld [vmem:[#allocation9 + $0x148] sm:$0xff]  ;;  %v123_v53 = vld [vmem:[#allocation9 + $0x158] sm:$0xff] }
  0x6f   :  { %5827 = vmatprep.mubr.f32.mxu0 %v94_v46  ;;  %5962 = vmatprep.mubr.f32.mxu1 %v184_v55  ;;  %v205_v46 = vld [vmem:[#allocation9 + $0x3e8] sm:$0xff]  ;;  %v126_v55 = vld [vmem:[#allocation9 + $0x170] sm:$0xff] }
  0x70   :  { %1583 = vbcast.lane.b32.xlu1 %v6865_v26, 344  ;;  %1595 = vbcast.lane.b32.xlu0 %v6865_v26, 368 }
  0x71   :  { %5640 = vmatprep.subr.mxu1 %v6928_v60 }
  0x72   :  { %5828 = vmatmul.mubr.f32.gmra.mxu0 %v95_v36  ;;  %5963 = vmatmul.mubr.f32.gmra.mxu1 %v185_v56  ;;  %v6979_v36 = vrot.slane %v6855_v19, %v10155_v30  ;;  %v128_v56 = vld [vmem:[#allocation9 + $0x180] sm:$0xff] }
  0x73   :  { %5830 = vmatprep.mubr.f32.mxu0 %v6926_v58  ;;  %5965 = vmatprep.mubr.f32.mxu1 %v186_v59  ;;  %v131_v59 = vld [vmem:[#allocation9 + $0x198] sm:$0xff] }
  0x74   :  { %1591 = vbcast.lane.b32.xlu1 %v6865_v26, 360  ;;  %1606 = vbcast.lane.b32.xlu0 %v6924_v57, 256 }
  0x75   :  { %5641 = vmatpush3.msra.mxu1 %v92_v49  ;;  %v118_v49 = vld [vmem:[#allocation9 + $0x130] sm:$0xff] }
  0x76   :  { %5831 = vmatmul.mubr.f32.gmra.mxu0 %v6932_v61  ;;  %5966 = vmatmul.mubr.f32.gmra.mxu1 %v187_v62  ;;  %v135_v62 = vld [vmem:[#allocation9 + $0x1b8] sm:$0xff] }
  0x77   :  { %5833 = vmatprep.mubr.f32.mxu0 %v6936_v63  ;;  %5968 = vmatprep.mubr.f32.mxu1 %v188_v0  ;;  %v137_v0 = vld [vmem:[#allocation9 + $0x1c8] sm:$0xff] }
  0x78   :  { %1599 = vbcast.lane.b32.xlu1 %v6865_v26, 376  ;;  %1614 = vbcast.lane.b32.xlu0 %v6924_v57, 272  ;;  %v198_v26 = vld [vmem:[#allocation9 + $0x3b0] sm:$0xff] }
  0x79   :  { %5642 = vmatprep.subr.mxu1 %v107_v5 }
  0x7a   :  { %5834 = vmatmul.mubr.f32.gmra.mxu0 %v6940_v1  ;;  %5969 = vmatmul.mubr.f32.gmra.mxu1 %v189_v2  ;;  %v139_v2 = vld [vmem:[#allocation9 + $0x1d8] sm:$0xff] }
  0x7b   :  { %5836 = vmatprep.mubr.f32.mxu0 %v6944_v3  ;;  %5971 = vmatprep.mubr.f32.mxu1 %v190_v4 }
  0x7c   :  { %1610 = vbcast.lane.b32.xlu1 %v6924_v57, 264  ;;  %1622 = vbcast.lane.b32.xlu0 %v6924_v57, 288 }
  0x7d   :  { %5643 = vmatpush3.msra.mxu1 %v6908_v47  ;;  %v206_v47 = vld [vmem:[#allocation9 + $0x3f0] sm:$0xff] }
  0x7e   :  { %5837 = vmatmul.mubr.f32.gmra.mxu0 %v6948_v6  ;;  %5972 = vmatmul.mubr.f32.gmra.mxu1 %v191_v7  ;;  %v10153_v7 = vsub.s32 4, %v6850_v15 }
  0x7f   :  { %5839 = vmatprep.mubr.f32.mxu0 %v6952_v8  ;;  %5974 = vmatprep.mubr.f32.mxu1 %v192_v9 }
  0x80   :  { %1618 = vbcast.lane.b32.xlu1 %v6924_v57, 280  ;;  %1630 = vbcast.lane.b32.xlu0 %v6924_v57, 304 }
  0x81   :  { %5644 = vmatprep.subr.mxu1 %v106_v16 }
  0x82   :  { %5840 = vmatmul.mubr.f32.gmra.mxu0 %v6957_v10  ;;  %5975 = vmatmul.mubr.f32.gmra.mxu1 %v193_v11  ;;  %v7049_v11 = vrot.slane %v6855_v19, %v10153_v7 }
  0x83   :  { %5842 = vmatprep.mubr.f32.mxu0 %v104_v13  ;;  %5977 = vmatprep.mubr.f32.mxu1 %v194_v14 }
  0x84   :  { %1626 = vbcast.lane.b32.xlu1 %v6924_v57, 296  ;;  %1638 = vbcast.lane.b32.xlu0 %v6924_v57, 320 }
  0x85   :  { %5645 = vmatpush3.msra.mxu1 %v6903_v44  ;;  %v204_v44 = vld [vmem:[#allocation9 + $0x3e0] sm:$0xff] }
  0x86   :  { %5843 = vmatmul.mubr.f32.gmra.mxu0 %v105_v17  ;;  %5978 = vmatmul.mubr.f32.gmra.mxu1 %v195_v21  ;;  %v146_v21 = vld [vmem:[#allocation9 + $0x210] sm:$0xff] }
  0x87   :  { %5845 = vmatprep.mubr.f32.mxu0 %v106_v16  ;;  %5980 = vmatprep.mubr.f32.mxu1 %v196_v23 }
  0x88   :  { %1634 = vbcast.lane.b32.xlu1 %v6924_v57, 312  ;;  %1646 = vbcast.lane.b32.xlu0 %v6924_v57, 336 }
  0x89   :  { %5646 = vmatprep.subr.mxu1 %v105_v17  ;;  %v145_v17 = vld [vmem:[#allocation9 + $0x208] sm:$0xff] }
  0x8a   :  { %5846 = vmatmul.mubr.f32.gmra.mxu0 %v107_v5  ;;  %5981 = vmatmul.mubr.f32.gmra.mxu1 %v197_v25  ;;  %v147_v25 = vld [vmem:[#allocation9 + $0x218] sm:$0xff] }
  0x8b   :  { %5848 = vmatprep.mubr.f32.mxu0 %v6928_v60  ;;  %5983 = vmatprep.mubr.f32.mxu1 %v198_v26  ;;  %v132_v60 = vld [vmem:[#allocation9 + $0x1a0] sm:$0xff] }
  0x8c   :  { %1642 = vbcast.lane.b32.xlu1 %v6924_v57, 328  ;;  %1654 = vbcast.lane.b32.xlu0 %v6924_v57, 352 }
  0x8d   :  { %5647 = vmatpush3.msra.mxu1 %v6900_v42  ;;  %v113_v42 = vld [vmem:[#allocation9 + $0x108] sm:$0xff] }
  0x8e   :  { %5849 = vmatmul.mubr.f32.gmra.mxu0 %v6912_v51  ;;  %5984 = vmatmul.mubr.f32.gmra.mxu1 %v199_v28  ;;  %v120_v51 = vld [vmem:[#allocation9 + $0x140] sm:$0xff] }
  0x8f   :  { %5851 = vmatprep.mubr.f32.mxu0 %v6895_v41  ;;  %5986 = vmatprep.mubr.f32.mxu1 %v200_v33  ;;  %v203_v41 = vld [vmem:[#allocation9 + $0x3d8] sm:$0xff]  ;;  %v149_v33 = vld [vmem:[#allocation9 + $0x228] sm:$0xff] }
  0x90   :  { %1650 = vbcast.lane.b32.xlu1 %v6924_v57, 344  ;;  %1662 = vbcast.lane.b32.xlu0 %v6924_v57, 368 }
  0x91   :  { %5648 = vmatprep.subr.mxu1 %v104_v13  ;;  %v144_v13 = vld [vmem:[#allocation9 + $0x200] sm:$0xff] }
  0x92   :  { %5852 = vmatmul.mubr.f32.gmra.mxu0 %v6876_v31  ;;  %5987 = vmatmul.mubr.f32.gmra.mxu1 %v201_v35  ;;  %v116_v31 = vld [vmem:[#allocation9 + $0x120] sm:$0xff]  ;;  %v150_v35 = vld [vmem:[#allocation9 + $0x230] sm:$0xff] }
  0x93   :  { %5854 = vmatprep.mubr.f32.mxu0 %v112_v38  ;;  %5989 = vmatprep.mubr.f32.mxu1 %v202_v40  ;;  %v151_v38 = vld [vmem:[#allocation9 + $0x238] sm:$0xff]  ;;  %v152_v40 = vld [vmem:[#allocation9 + $0x240] sm:$0xff] }
  0x94   :  { %1658 = vbcast.lane.b32.xlu1 %v6924_v57, 360  ;;  %1673 = vbcast.lane.b32.xlu0 %v6979_v36, 256 }
  0x95   :  { %5649 = vmatpush3.msra.mxu1 %v6892_v39  ;;  %v207_v39 = vld [vmem:[#allocation9 + $0x3f8] sm:$0xff] }
  0x96   :  { %5855 = vmatmul.mubr.f32.gmra.mxu0 %v113_v42  ;;  %5990 = vmatmul.mubr.f32.gmra.mxu1 %v203_v41  ;;  %v153_v41 = vld [vmem:[#allocation9 + $0x248] sm:$0xff] }
  0x97   :  { %5857 = vmatprep.mubr.f32.mxu0 %v114_v43  ;;  %5992 = vmatprep.mubr.f32.mxu1 %v204_v44  ;;  %v154_v43 = vld [vmem:[#allocation9 + $0x250] sm:$0xff] }
  0x98   :  { %1666 = vbcast.lane.b32.xlu1 %v6924_v57, 376  ;;  %1681 = vbcast.lane.b32.xlu0 %v6979_v36, 272  ;;  %v143_v57 = vld [vmem:[#allocation9 + $0x1f8] sm:$0xff] }
  0x99   :  { %5650 = vmatprep.subr.mxu1 %v6957_v10 }
  0x9a   :  { %5858 = vmatmul.mubr.f32.gmra.mxu0 %v115_v45  ;;  %5993 = vmatmul.mubr.f32.gmra.mxu1 %v205_v46  ;;  %v155_v46 = vld [vmem:[#allocation9 + $0x258] sm:$0xff] }
  0x9b   :  { %5860 = vmatprep.mubr.f32.mxu0 %v116_v31  ;;  %5995 = vmatprep.mubr.f32.mxu1 %v206_v47  ;;  %v156_v31 = vld [vmem:[#allocation9 + $0x260] sm:$0xff] }
  0x9c   :  { %1677 = vbcast.lane.b32.xlu1 %v6979_v36, 264  ;;  %1689 = vbcast.lane.b32.xlu0 %v6979_v36, 288 }
  0x9d   :  { %5651 = vmatpush3.msra.mxu1 %v6889_v37  ;;  %v122_v37 = vld [vmem:[#allocation9 + $0x150] sm:$0xff] }
  0x9e   :  { %5861 = vmatmul.mubr.f32.gmra.mxu0 %v117_v48  ;;  %5996 = vmatmul.mubr.f32.gmra.mxu1 %v207_v39  ;;  %v157_v48 = vld [vmem:[#allocation9 + $0x268] sm:$0xff]  ;;  %v158_v39 = vld [vmem:[#allocation9 + $0x270] sm:$0xff] }
  0x9f   :  { %5863 = vmatprep.mubr.f32.mxu0 %v118_v49  ;;  %5652 = vmatprep.subr.mxu1 %v6952_v8  ;;  %v142_v8 = vld [vmem:[#allocation9 + $0x1f0] sm:$0xff] }
  0xa0   :  { %1685 = vbcast.lane.b32.xlu1 %v6979_v36, 280  ;;  %1697 = vbcast.lane.b32.xlu0 %v6979_v36, 304 }
  0xa1   :  { %5653 = vmatpush3.msra.mxu1 %v6883_v34  ;;  %v124_v34 = vld [vmem:[#allocation9 + $0x160] sm:$0xff] }
  0xa2   :  { %5864 = vmatmul.mubr.f32.gmra.mxu0 %v119_v50  ;;  %5654 = vmatprep.subr.mxu1 %v6948_v6  ;;  %v141_v6 = vld [vmem:[#allocation9 + $0x1e8] sm:$0xff]  ;;  %v159_v50 = vld [vmem:[#allocation9 + $0x278] sm:$0xff] }
  0xa3   :  { %5866 = vmatprep.mubr.f32.mxu0 %v120_v51  ;;  %5655 = vmatpush3.msra.mxu1 %v6881_v32  ;;  %v125_v32 = vld [vmem:[#allocation9 + $0x168] sm:$0xff]  ;;  %v160_v51 = vld [vmem:[#allocation9 + $0x280] sm:$0xff] }
  0xa4   :  { %1693 = vbcast.lane.b32.xlu1 %v6979_v36, 296  ;;  %1705 = vbcast.lane.b32.xlu0 %v6979_v36, 320 }
  0xa5   :  { %5656 = vmatprep.subr.mxu1 %v6944_v3  ;;  %v140_v3 = vld [vmem:[#allocation9 + $0x1e0] sm:$0xff] }
  0xa6   :  { %5867 = vmatmul.mubr.f32.gmra.mxu0 %v121_v52  ;;  %5657 = vmatpush3.msra.mxu1 %v6872_v29  ;;  %v10154_v29 = vsub.s32 3, %v6850_v15 }
  0xa7   :  { %5869 = vmatprep.mubr.f32.mxu0 %v122_v37  ;;  %5658 = vmatprep.subr.mxu1 %v6940_v1  ;;  %v138_v1 = vld [vmem:[#allocation9 + $0x1d0] sm:$0xff] }
  0xa8   :  { %1701 = vbcast.lane.b32.xlu1 %v6979_v36, 312  ;;  %1713 = vbcast.lane.b32.xlu0 %v6979_v36, 336 }
  0xa9   :  { %5659 = vmatpush3.msra.mxu1 %v6870_v27  ;;  %v127_v27 = vld [vmem:[#allocation9 + $0x178] sm:$0xff] }
  0xaa   :  { %5870 = vmatmul.mubr.f32.gmra.mxu0 %v123_v53  ;;  %5660 = vmatprep.subr.mxu1 %v6936_v63  ;;  %v136_v63 = vld [vmem:[#allocation9 + $0x1c0] sm:$0xff]  ;;  %v161_v53 = vld [vmem:[#allocation9 + $0x288] sm:$0xff] }
  0xab   :  { %5872 = vmatprep.mubr.f32.mxu0 %v124_v34  ;;  %5661 = vmatpush3.msra.mxu1 %v6861_v24  ;;  %v7018_v24 = vrot.slane %v6855_v19, %v10154_v29  ;;  %v148_v19 = vld [vmem:[#allocation9 + $0x220] sm:$0xff]  ;;  %v162_v34 = vld [vmem:[#allocation9 + $0x290] sm:$0xff] }
  0xac   :  { %1709 = vbcast.lane.b32.xlu1 %v6979_v36, 328  ;;  %1721 = vbcast.lane.b32.xlu0 %v6979_v36, 352 }
  0xad   :  { %5662 = vmatprep.subr.mxu1 %v6932_v61  ;;  %v134_v61 = vld [vmem:[#allocation9 + $0x1b0] sm:$0xff] }
  0xae   :  { %5873 = vmatmul.mubr.f32.gmra.mxu0 %v125_v32  ;;  %5663 = vmatpush3.msra.mxu1 %v6859_v22  ;;  %v129_v22 = vld [vmem:[#allocation9 + $0x188] sm:$0xff] }
  0xaf   :  { %5875 = vmatprep.mubr.f32.mxu0 %v126_v55  ;;  %5664 = vmatprep.subr.mxu1 %v6926_v58  ;;  %v130_v58 = vld [vmem:[#allocation9 + $0x190] sm:$0xff]  ;;  %v163_v55 = vld [vmem:[#allocation9 + $0x298] sm:$0xff] }
  0xb0   :  { %1717 = vbcast.lane.b32.xlu1 %v6979_v36, 344  ;;  %1729 = vbcast.lane.b32.xlu0 %v6979_v36, 368 }
  0xb1   :  { %5665 = vmatpush3.msra.mxu1 %v6857_v20  ;;  %v133_v20 = vld [vmem:[#allocation9 + $0x1a8] sm:$0xff] }
  0xb2   :  { %5876 = vmatmul.mubr.f32.gmra.mxu0 %v127_v27  ;;  %5669 = vmatprep.subr.mxu1 %v143_v57  ;;  %v164_v27 = vld [vmem:[#allocation9 + $0x2a0] sm:$0xff] }
  0xb3   :  { %5878 = vmatprep.mubr.f32.mxu0 %v128_v56  ;;  %v165_v56 = vld [vmem:[#allocation9 + $0x2a8] sm:$0xff] }
  0xb4   :  { %1725 = vbcast.lane.b32.xlu1 %v6979_v36, 360  ;;  %1740 = vbcast.lane.b32.xlu0 %v7018_v24, 256 }
  0xb6   :  { %5879 = vmatmul.mubr.f32.gmra.mxu0 %v129_v22 }
  0xb7   :  { %5881 = vmatprep.mubr.f32.mxu0 %v130_v58 }
  0xb8   :  { %1733 = vbcast.lane.b32.xlu1 %v6979_v36, 376  ;;  %1748 = vbcast.lane.b32.xlu0 %v7018_v24, 272 }
  0xba   :  { %5882 = vmatmul.mubr.f32.gmra.mxu0 %v131_v59  ;;  %v167_v59 = vld [vmem:[#allocation9 + $0x2b8] sm:$0xff] }
  0xbb   :  { %5884 = vmatprep.mubr.f32.mxu0 %v132_v60  ;;  %v168_v60 = vld [vmem:[#allocation9 + $0x2c0] sm:$0xff] }
  0xbc   :  { %1744 = vbcast.lane.b32.xlu1 %v7018_v24, 264  ;;  %1756 = vbcast.lane.b32.xlu0 %v7018_v24, 288 }
  0xbe   :  { %5885 = vmatmul.mubr.f32.gmra.mxu0 %v133_v20 }
  0xbf   :  { %5887 = vmatprep.mubr.f32.mxu0 %v134_v61  ;;  %v169_v61 = vld [vmem:[#allocation9 + $0x2c8] sm:$0xff] }
  0xc0   :  { %1752 = vbcast.lane.b32.xlu1 %v7018_v24, 280  ;;  %1764 = vbcast.lane.b32.xlu0 %v7018_v24, 304 }
  0xc2   :  { %5888 = vmatmul.mubr.f32.gmra.mxu0 %v135_v62 }
  0xc3   :  { %5890 = vmatprep.mubr.f32.mxu0 %v136_v63 }
  0xc4   :  { %1760 = vbcast.lane.b32.xlu1 %v7018_v24, 296  ;;  %1772 = vbcast.lane.b32.xlu0 %v7018_v24, 320 }
  0xc6   :  { %5891 = vmatmul.mubr.f32.gmra.mxu0 %v137_v0  ;;  %v6795_v0 = vmov 1966171168  }
  0xc7   :  { %5893 = vmatprep.mubr.f32.mxu0 %v138_v1  ;;  %v1061_v1 = vunpack.c.l.s4 %v6795_v0 }
  0xc8   :  { %1768 = vbcast.lane.b32.xlu1 %v7018_v24, 312  ;;  %1780 = vbcast.lane.b32.xlu0 %v7018_v24, 336 }
  0xca   :  { %v7033_v4 = vpop.permute.xlu1 %1543  ;;  %v7035_v5 = vpop.permute.xlu0 %1539  ;;  %5894 = vmatmul.mubr.f32.gmra.mxu0 %v139_v2 }
  0xcb   :  { %5896 = vmatprep.mubr.f32.mxu0 %v140_v3  ;;  %v1062_v3 = vunpack.c.0.s8 %v1061_v1 }
  0xcc   :  { %1776 = vbcast.lane.b32.xlu1 %v7018_v24, 328  ;;  %1788 = vbcast.lane.b32.xlu0 %v7018_v24, 352 }
  0xce   :  { %v7040_v9 = vpop.permute.xlu1 %1547  ;;  %v7042_v10 = vpop.permute.xlu0 %1555  ;;  %5897 = vmatmul.mubr.f32.gmra.mxu0 %v141_v6 }
  0xcf   :  { %5899 = vmatprep.mubr.f32.mxu0 %v142_v8  ;;  %v1057_v8 = vld [vmem:[#allocation6] sm:$0xff] }
  0xd0   :  { %1784 = vbcast.lane.b32.xlu1 %v7018_v24, 344  ;;  %1796 = vbcast.lane.b32.xlu0 %v7018_v24, 368 }
  0xd2   :  { %v7051_v14 = vpop.permute.xlu1 %1551  ;;  %5900 = vmatmul.mubr.f32.gmra.mxu0 %v143_v57  ;;  %v7053_v16 = vpop.permute.xlu0 %1563  ;;  %v166_v57 = vld [vmem:[#allocation9 + $0x2b0] sm:$0xff] }
  0xd3   :  { %5902 = vmatprep.mubr.f32.mxu0 %v144_v13 }
  0xd4   :  { %1792 = vbcast.lane.b32.xlu1 %v7018_v24, 360  ;;  %1807 = vbcast.lane.b32.xlu0 %v7049_v11, 256 }
  0xd6   :  { %v7057_v23 = vpop.permute.xlu1 %1559  ;;  %5903 = vmatmul.mubr.f32.gmra.mxu0 %v145_v17  ;;  %v7061_v26 = vpop.permute.xlu0 %1571  ;;  %v1059_v17 = vcombine.high %v1057_v8, %v1057_v8 }
  0xd7   :  { %5905 = vmatprep.mubr.f32.mxu0 %v146_v21  ;;  %v7115_v21 = vsub.s32 %v1062_v3, %v6850_v15 }
  0xd8   :  { %1800 = vbcast.lane.b32.xlu1 %v7018_v24, 376  ;;  %1815 = vbcast.lane.b32.xlu0 %v7049_v11, 272 }
  0xda   :  { %5906 = vmatmul.mubr.f32.gmra.mxu0 %v147_v25  ;;  %v7063_v28 = vpop.permute.xlu1 %1567  ;;  %v7067_v36 = vpop.permute.xlu0 %1579 }
  0xdb   :  { %5908 = vmatprep.mubr.f32.mxu0 %v148_v19 }
  0xdc   :  { %1811 = vbcast.lane.b32.xlu1 %v7049_v11, 264  ;;  %1823 = vbcast.lane.b32.xlu0 %v7049_v11, 288 }
  0xde   :  { %5909 = vmatmul.mubr.f32.gmra.mxu0 %v149_v33  ;;  %v7071_v42 = vpop.permute.xlu1 %1575  ;;  %v7075_v44 = vpop.permute.xlu0 %1587 }
  0xdf   :  { %5911 = vmatprep.mubr.f32.mxu0 %v150_v35  ;;  %10314 = vst [vmem:[#allocation24_spill] sm:$0xff] %v7075_v44  ;;  %v7120_v35 = vrot.slane %v1059_v17, %v7115_v21 }
  0xe0   :  { %1819 = vbcast.lane.b32.xlu1 %v7049_v11, 280  ;;  %1831 = vbcast.lane.b32.xlu0 %v7049_v11, 304 }
  0xe2   :  { %5912 = vmatmul.mubr.f32.gmra.mxu0 %v151_v38  ;;  %v7077_v45 = vpop.permute.xlu1 %1583  ;;  %v7081_v47 = vpop.permute.xlu0 %1595 }
  0xe3   :  { %5914 = vmatprep.mubr.f32.mxu0 %v152_v40  ;;  %10315 = vst [vmem:[#allocation25_spill] sm:$0xff] %v7081_v47 }
  0xe4   :  { %1827 = vbcast.lane.b32.xlu1 %v7049_v11, 296  ;;  %1839 = vbcast.lane.b32.xlu0 %v7049_v11, 320 }
  0xe6   :  { %5915 = vmatmul.mubr.f32.gmra.mxu0 %v153_v41  ;;  %v7085_v49 = vpop.permute.xlu1 %1591  ;;  %v7089_v52 = vpop.permute.xlu0 %1606 }
  0xe7   :  { %5917 = vmatprep.mubr.f32.mxu0 %v154_v43  ;;  %10316 = vst [vmem:[#allocation26_spill] sm:$0xff] %v7089_v52  ;;  %v7125_v43 = vrot.slane %v1057_v8, %v7115_v21 }
  0xe8   :  { %1835 = vbcast.lane.b32.xlu1 %v7049_v11, 312  ;;  %1847 = vbcast.lane.b32.xlu0 %v7049_v11, 336 }
  0xea   :  { %5918 = vmatmul.mubr.f32.gmra.mxu0 %v155_v46  ;;  %v7091_v37 = vpop.permute.xlu1 %1599  ;;  %v7094_v32 = vpop.permute.xlu0 %1614 }
  0xeb   :  { %5920 = vmatprep.mubr.f32.mxu0 %v156_v31  ;;  %10317 = vst [vmem:[#allocation27_spill] sm:$0xff] %v7091_v37  ;;  %10318 = vst [vmem:[#allocation28_spill] sm:$0xff] %v7094_v32 }
  0xec   :  { %1843 = vbcast.lane.b32.xlu1 %v7049_v11, 328  ;;  %1855 = vbcast.lane.b32.xlu0 %v7049_v11, 352 }
  0xee   :  { %5921 = vmatmul.mubr.f32.gmra.mxu0 %v157_v48  ;;  %v7096_v24 = vpop.permute.xlu1 %1610  ;;  %v7098_v22 = vpop.permute.xlu0 %1622  ;;  %v1075_v48 = vcombine.high %v7120_v35, %v7120_v35 }
  0xef   :  { %5923 = vmatprep.mubr.f32.mxu0 %v158_v39  ;;  %10319 = vst [vmem:[#allocation29_spill] sm:$0xff] %v7096_v24  ;;  %10320 = vst [vmem:[#allocation30_spill] sm:$0xff] %v7098_v22 }
  0xf0   :  { %1851 = vbcast.lane.b32.xlu1 %v7049_v11, 344  ;;  %1863 = vbcast.lane.b32.xlu0 %v7049_v11, 368 }
  0xf2   :  { %5924 = vmatmul.mubr.f32.gmra.mxu0 %v159_v50  ;;  %v7100_v58 = vpop.permute.xlu1 %1618  ;;  %v7102_v20 = vpop.permute.xlu0 %1630 }
  0xf3   :  { %5926 = vmatprep.mubr.f32.mxu0 %v160_v51  ;;  %10321 = vst [vmem:[#allocation31_spill] sm:$0xff] %v7100_v58  ;;  %10322 = vst [vmem:[#allocation32_spill] sm:$0xff] %v7102_v20 }
  0xf4   :  { %1859 = vbcast.lane.b32.xlu1 %v7049_v11, 360 }
  0xf6   :  { %5927 = vmatmul.mubr.f32.gmra.mxu0 %v161_v53  ;;  %v7104_v62 = vpop.permute.xlu1 %1626  ;;  %v7106_v63 = vpop.permute.xlu0 %1638  ;;  %v7135_v53 = vrot.slane %v7125_v43, %v7115_v21 }
  0xf7   :  { %5929 = vmatprep.mubr.f32.mxu0 %v162_v34  ;;  %10323 = vst [vmem:[#allocation33_spill] sm:$0xff] %v7104_v62  ;;  %10324 = vst [vmem:[#allocation34_spill] sm:$0xff] %v7106_v63 }
  0xfa   :  { %5930 = vmatmul.mubr.f32.gmra.mxu0 %v163_v55  ;;  %v7108_v2 = vpop.permute.xlu1 %1634  ;;  %v7110_v6 = vpop.permute.xlu0 %1646 }
  0xfb   :  { %5932 = vmatprep.mubr.f32.mxu0 %v164_v27  ;;  %10325 = vst [vmem:[#allocation35_spill] sm:$0xff] %v7108_v2  ;;  %10326 = vst [vmem:[#allocation36_spill] sm:$0xff] %v7110_v6  ;;  %v7138_v27 = vrot.slane %v1075_v48, %v7115_v21 }
  0xfe   :  { %5933 = vmatmul.mubr.f32.gmra.mxu0 %v165_v56  ;;  %v7112_v13 = vpop.permute.xlu1 %1642  ;;  %v7117_v25 = vpop.permute.xlu0 %1654 }
  0xff   :  { %5935 = vmatprep.mubr.f32.mxu0 %v166_v57  ;;  %10327 = vst [vmem:[#allocation37_spill] sm:$0xff] %v7112_v13  ;;  %10328 = vst [vmem:[#allocation38_spill] sm:$0xff] %v7117_v25 }
 0x102   :  { %5936 = vmatmul.mubr.f32.gmra.mxu0 %v167_v59  ;;  %v7122_v38 = vpop.permute.xlu1 %1650  ;;  %v7129_v39 = vpop.permute.xlu0 %1662 }
 0x103   :  { %5938 = vmatprep.mubr.f32.mxu0 %v168_v60  ;;  %10329 = vst [vmem:[#allocation39_spill] sm:$0xff] %v7122_v38  ;;  %10330 = vst [vmem:[#allocation40_spill] sm:$0xff] %v7129_v39  ;;  %v7144_v60 = vrot.slane %v7135_v53, %v6853_v18 }
 0x106   :  { %5939 = vmatmul.mubr.f32.gmra.mxu0 %v169_v61  ;;  %v7131_v51 = vpop.permute.xlu1 %1658  ;;  %v7140_v59 = vpop.permute.xlu0 %1673  ;;  %v7148_v61 = vrot.slane %v7138_v27, %v6853_v18 }
 0x107   :  { %10331 = vst [vmem:[#allocation41_spill] sm:$0xff] %v7131_v51  ;;  %10332 = vst [vmem:[#allocation42_spill] sm:$0xff] %v7140_v59 }
 0x10a   :  { %v7150_v1 = vpop.permute.xlu1 %1666 }
 0x10b   :  { %10333 = vst [vmem:[#allocation43_spill] sm:$0xff] %v7150_v1 }
 0x116   :  { %v5808_v19 = vpop.f32.mrf.mxu0  ;;  %v5943_v33 = vpop.f32.mrf.mxu1 }
 0x117   :  { %6045 = vtanh.f32 %v5808_v19 }
 0x118   :  { %6047 = vtanh.f32 %v5943_v33  ;;  %v290_v40 = vpop.f32.mrf.mxu0  ;;  %v740_v41 = vpop.f32.mrf.mxu1 }
 0x119   :  { %6049 = vtanh.f32 %v290_v40 }
 0x11a   :  { %v5811_v46 = vpop.f32.mrf.mxu0  ;;  %v5946_v31 = vpop.f32.mrf.mxu1 }
 0x11b   :  { %6051 = vtanh.f32 %v5811_v46 }
 0x11c   :  { %v300_v50 = vpop.f32.mrf.mxu0  ;;  %6053 = vtanh.f32 %v5946_v31  ;;  %v750_v34 = vpop.f32.mrf.mxu1 }
 0x11d   :  { %6055 = vtanh.f32 %v740_v41  ;;  %v7154_v31 = vpop.permute.xlu0 %1681 }
 0x11e   :  { %v5814_v55 = vpop.f32.mrf.mxu0  ;;  %v5949_v57 = vpop.f32.mrf.mxu1  ;;  %6057 = vtanh.f32 %v750_v34  ;;  %10334 = vst [vmem:[#allocation44_spill] sm:$0xff] %v7154_v31 }
 0x11f   :  { %6059 = vtanh.f32 %v300_v50 }
 0x120   :  { %v310_v56 = vpop.f32.mrf.mxu0  ;;  %v760_v8 = vpop.f32.mrf.mxu1 }
 0x121   :  { %6061 = vtanh.f32 %v310_v56 }
 0x122   :  { %v5817_v0 = vpop.f32.mrf.mxu0  ;;  %6063 = vtanh.f32 %v5814_v55  ;;  %v5952_v50 = vpop.f32.mrf.mxu1 }
 0x123   :  { %6065 = vtanh.f32 %v760_v8  ;;  %v7156_v55 = vpop.permute.xlu1 %1677 }
 0x124   :  { %v6046_v3 = vpop.eup %6045  ;;  %v320_v17 = vpop.f32.mrf.mxu0  ;;  %6067 = vtanh.f32 %v5949_v57  ;;  %10335 = vst [vmem:[#allocation45_spill] sm:$0xff] %v7156_v55 }
 0x125   :  { %v6048_v19 = vpop.eup %6047  ;;  %v1149_v33 = vmul.f32 %v6046_v3, %v7144_v60  ;;  %6069 = vtanh.f32 %v320_v17  ;;  %v7161_v57 = vpop.permute.xlu0 %1689 }
 0x126   :  { %v6050_v40 = vpop.eup %6049  ;;  %v1239_v41 = vmul.f32 %v6048_v19, %v7148_v61  ;;  %v5820_v46 = vpop.f32.mrf.mxu0  ;;  %6071 = vtanh.f32 %v5817_v0  ;;  %10336 = vst [vmem:[#allocation46_spill] sm:$0xff] %v7161_v57 }
 0x127   :  { %1278 = vadd.xlane.f32.xlu0 %v1149_v33  ;;  %v1148_v7 = vmul.f32 %v6050_v40, %v7144_v60  ;;  %v770_v19 = vpop.f32.mrf.mxu1  ;;  %v7166_v31 = vpop.permute.xlu1 %1685 }
 0x128   :  { %v6052_v48 = vpop.eup %6051  ;;  %1458 = vadd.xlane.f32.xlu1 %v1239_v41  ;;  %v330_v34 = vpop.f32.mrf.mxu0  ;;  %10337 = vst [vmem:[#allocation47_spill] sm:$0xff] %v7166_v31  ;;  %6073 = vtanh.f32 %v770_v19  ;;  %v7177_v19 = vrot.slane %v7120_v35, %v7115_v21 }
 0x129   :  { %v6054_v56 = vpop.eup %6053  ;;  %v1151_v3 = vmul.f32 %v6052_v48, %v7144_v60  ;;  %6075 = vtanh.f32 %v5952_v50  ;;  %v5955_v0 = vpop.f32.mrf.mxu1 }
 0x12a   :  { %v6056_v29 = vpop.eup %6055  ;;  %v5823_v30 = vpop.f32.mrf.mxu0  ;;  %v1241_v8 = vmul.f32 %v6054_v56, %v7148_v61  ;;  %6077 = vtanh.f32 %v330_v34  ;;  %v1105_v35 = vcombine.high %v7177_v19, %v7177_v19 }
 0x12b   :  { %1276 = vadd.xlane.f32.xlu0 %v1148_v7  ;;  %v1238_v41 = vmul.f32 %v6056_v29, %v7148_v61  ;;  %v6058_v54 = vpop.eup %6057  ;;  %v7172_v29 = vpop.permute.xlu0 %1697  ;;  %6079 = vtanh.f32 %v5820_v46 }
 0x12c   :  { %1282 = vadd.xlane.f32.xlu1 %v1151_v3  ;;  %v340_v33 = vpop.f32.mrf.mxu0  ;;  %v6060_v40 = vpop.eup %6059  ;;  %v1240_v56 = vmul.f32 %v6058_v54, %v7148_v61  ;;  %10338 = vst [vmem:[#allocation48_spill] sm:$0xff] %v7172_v29 }
 0x12d   :  { %v1150_v3 = vmul.f32 %v6060_v40, %v7144_v60  ;;  %v780_v54 = vpop.f32.mrf.mxu1  ;;  %v7182_v59 = vpop.permute.xlu1 %1693 }
 0x12e   :  { %v7164_v12 = vpop.f32.mrf.mxu0  ;;  %v6062_v7 = vpop.eup %6061  ;;  %10339 = vst [vmem:[#allocation49_spill] sm:$0xff] %v7182_v59  ;;  %6081 = vtanh.f32 %v780_v54  ;;  %v7200_v54 = vrot.slane %v1105_v35, %v6853_v18 }
 0x12f   :  { %1456 = vadd.xlane.f32.xlu0 %v1238_v41  ;;  %v6064_v48 = vpop.eup %6063  ;;  %v1152_v31 = vmul.f32 %v6062_v7, %v7144_v60  ;;  %6083 = vtanh.f32 %v5955_v0  ;;  %v7192_v55 = vpop.permute.xlu0 %1705 }
 0x130   :  { %1462 = vadd.xlane.f32.xlu1 %v1241_v8  ;;  %v350_v17 = vpop.f32.mrf.mxu0  ;;  %v6066_v50 = vpop.eup %6065  ;;  %v1153_v8 = vmul.f32 %v6064_v48, %v7144_v60  ;;  %10340 = vst [vmem:[#allocation50_spill] sm:$0xff] %v7192_v55  ;;  %6085 = vtanh.f32 %v340_v33 }
 0x131   :  { %v6068_v40 = vpop.eup %6067  ;;  %v1242_v34 = vmul.f32 %v6066_v50, %v7148_v61  ;;  %v5958_v48 = vpop.f32.mrf.mxu1  ;;  %6087 = vtanh.f32 %v5823_v30 }
 0x132   :  { %v7170_v57 = vpop.f32.mrf.mxu0  ;;  %v6070_v7 = vpop.eup %6069  ;;  %v1243_v46 = vmul.f32 %v6068_v40, %v7148_v61 }
 0x133   :  { %1460 = vadd.xlane.f32.xlu0 %v1240_v56  ;;  %v1154_v50 = vmul.f32 %v6070_v7, %v7144_v60  ;;  %v790_v40 = vpop.f32.mrf.mxu1  ;;  %v7207_v25 = vpop.permute.xlu0 %1713 }
 0x134   :  { %1280 = vadd.xlane.f32.xlu1 %v1150_v3  ;;  %v7180_v41 = vpop.f32.mrf.mxu0  ;;  %v6072_v3 = vpop.eup %6071  ;;  %10342 = vst [vmem:[#allocation52_spill] sm:$0xff] %v7207_v25  ;;  %6089 = vtanh.f32 %v790_v40 }
 0x135   :  { %v6074_v0 = vpop.eup %6073  ;;  %6091 = vtanh.f32 %v5958_v48  ;;  %v5961_v30 = vpop.f32.mrf.mxu1 }
 0x136   :  { %v7184_v29 = vpop.f32.mrf.mxu0  ;;  %v6076_v55 = vpop.eup %6075  ;;  %v1244_v33 = vmul.f32 %v6074_v0, %v7200_v54  ;;  %6093 = vtanh.f32 %v350_v17 }
 0x137   :  { %1284 = vadd.xlane.f32.xlu0 %v1152_v31  ;;  %v7196_v31 = vpop.permute.xlu1 %1701  ;;  %v1245_v35 = vmul.f32 %v6076_v55, %v7200_v54  ;;  %6095 = vtanh.f32 %v7164_v12  ;;  %v800_v0 = vpop.f32.mrf.mxu1 }
 0x138   :  { %1286 = vadd.xlane.f32.xlu1 %v1153_v8  ;;  %v7190_v56 = vpop.f32.mrf.mxu0  ;;  %10341 = vst [vmem:[#allocation51_spill] sm:$0xff] %v7196_v31  ;;  %v1155_v8 = vmul.f32 %v6072_v3, %v7144_v60  ;;  %v7222_v25 = vpop.permute.xlu0 %1721  ;;  %6097 = vtanh.f32 %v800_v0 }
 0x139   :  { %10344 = vst [vmem:[#allocation54_spill] sm:$0xff] %v7222_v25  ;;  %6099 = vtanh.f32 %v5961_v30 }
 0x13a   :  { %v7194_v59 = vpop.f32.mrf.mxu0  ;;  %6101 = vtanh.f32 %v7180_v41 }
 0x13b   :  { %1464 = vadd.xlane.f32.xlu0 %v1242_v34  ;;  %v6078_v34 = vpop.eup %6077  ;;  %v7213_v3 = vpop.permute.xlu1 %1709  ;;  %6103 = vtanh.f32 %v7170_v57 }
 0x13c   :  { %1466 = vadd.xlane.f32.xlu1 %v1243_v46  ;;  %v7203_v39 = vpop.f32.mrf.mxu0  ;;  %v6080_v46 = vpop.eup %6079  ;;  %10343 = vst [vmem:[#allocation53_spill] sm:$0xff] %v7213_v3 }
 0x13d   :  { %v6082_v40 = vpop.eup %6081  ;;  %v1157_v48 = vmul.f32 %v6080_v46, %v7144_v60  ;;  %v7234_v25 = vpop.permute.xlu0 %1729 }
 0x13e   :  { %v7205_v1 = vpop.f32.mrf.mxu0  ;;  %v1246_v17 = vmul.f32 %v6082_v40, %v7200_v54  ;;  %10346 = vst [vmem:[#allocation56_spill] sm:$0xff] %v7234_v25 }
 0x13f   :  { %1288 = vadd.xlane.f32.xlu0 %v1154_v50  ;;  %v1156_v50 = vmul.f32 %v6078_v34, %v7144_v60  ;;  %v7226_v3 = vpop.permute.xlu1 %1717  ;;  %v5964_v34 = vpop.f32.mrf.mxu1 }
 0x140   :  { %1290 = vadd.xlane.f32.xlu1 %v1155_v8  ;;  %v7211_v7 = vpop.f32.mrf.mxu0  ;;  %v6084_v8 = vpop.eup %6083  ;;  %10345 = vst [vmem:[#allocation55_spill] sm:$0xff] %v7226_v3 }
 0x141   :  { %v1247_v12 = vmul.f32 %v6084_v8, %v7200_v54  ;;  %v810_v40 = vpop.f32.mrf.mxu1  ;;  %v7250_v25 = vpop.permute.xlu0 %1740 }
 0x142   :  { %v7215_v31 = vpop.f32.mrf.mxu0  ;;  %6105 = vtanh.f32 %v810_v40  ;;  %10348 = vst [vmem:[#allocation58_spill] sm:$0xff] %v7250_v25 }
 0x143   :  { %1468 = vadd.xlane.f32.xlu0 %v1244_v33  ;;  %v6086_v33 = vpop.eup %6085  ;;  %v7242_v3 = vpop.permute.xlu1 %1725  ;;  %6107 = vtanh.f32 %v5964_v34 }
 0x144   :  { %1470 = vadd.xlane.f32.xlu1 %v1245_v35  ;;  %v7220_v55 = vpop.f32.mrf.mxu0  ;;  %v6088_v46 = vpop.eup %6087  ;;  %10347 = vst [vmem:[#allocation57_spill] sm:$0xff] %v7242_v3  ;;  %6109 = vtanh.f32 %v7190_v56 }
 0x145   :  { %v6090_v0 = vpop.eup %6089  ;;  %v1159_v30 = vmul.f32 %v6088_v46, %v7144_v60  ;;  %v5967_v57 = vpop.f32.mrf.mxu1  ;;  %6111 = vtanh.f32 %v7184_v29 }
 0x146   :  { %v7224_v51 = vpop.f32.mrf.mxu0  ;;  %v6092_v8 = vpop.eup %6091  ;;  %v1248_v41 = vmul.f32 %v6090_v0, %v7200_v54 }
 0x147   :  { %1292 = vadd.xlane.f32.xlu0 %v1156_v50  ;;  %v1158_v50 = vmul.f32 %v6086_v33, %v7144_v60  ;;  %v1249_v33 = vmul.f32 %v6092_v8, %v7200_v54  ;;  %v7254_v3 = vpop.permute.xlu1 %1733 }
 0x148   :  { %1294 = vadd.xlane.f32.xlu1 %v1157_v48  ;;  %v7230_v35 = vpop.f32.mrf.mxu0  ;;  %10349 = vst [vmem:[#allocation59_spill] sm:$0xff] %v7254_v3  ;;  %v1074_v3 = vcombine.high %v7125_v43, %v7125_v43 }
 0x14a   :  { %v7232_v6 = vpop.f32.mrf.mxu0 }
 0x14b   :  { %1472 = vadd.xlane.f32.xlu0 %v1246_v17  ;;  %v6094_v17 = vpop.eup %6093  ;;  %v7272_v20 = vpop.permute.xlu1 %1744 }
 0x14c   :  { %1474 = vadd.xlane.f32.xlu1 %v1247_v12  ;;  %v7240_v48 = vpop.f32.mrf.mxu0  ;;  %v6096_v46 = vpop.eup %6095  ;;  %10351 = vst [vmem:[#allocation61_spill] sm:$0xff] %v7272_v20 }
 0x14d   :  { %v6098_v0 = vpop.eup %6097  ;;  %v1161_v34 = vmul.f32 %v6096_v46, %v7144_v60 }
 0x14e   :  { %v7244_v38 = vpop.f32.mrf.mxu0  ;;  %v6100_v8 = vpop.eup %6099  ;;  %v1250_v56 = vmul.f32 %v6098_v0, %v7200_v54 }
 0x14f   :  { %1296 = vadd.xlane.f32.xlu0 %v1158_v50  ;;  %v1160_v50 = vmul.f32 %v6094_v17, %v7144_v60  ;;  %v6102_v17 = vpop.eup %6101  ;;  %v1251_v29 = vmul.f32 %v6100_v8, %v7200_v54 }
 0x150   :  { %1298 = vadd.xlane.f32.xlu1 %v1159_v30  ;;  %v7248_v12 = vpop.f32.mrf.mxu0  ;;  %v820_v30 = vpop.f32.mrf.mxu1  ;;  %v1162_v43 = vmul.f32 %v6102_v17, %v7144_v60 }
 0x151   :  { %6113 = vtanh.f32 %v820_v30  ;;  %v6104_v13 = vpop.eup %6103 }
 0x152   :  { %v7252_v63 = vpop.f32.mrf.mxu0  ;;  %6115 = vtanh.f32 %v5967_v57  ;;  %v6106_v57 = vpop.eup %6105  ;;  %v1163_v0 = vmul.f32 %v6104_v13, %v7144_v60 }
 0x153   :  { %1476 = vadd.xlane.f32.xlu0 %v1248_v41  ;;  %v7266_v41 = vpop.permute.xlu0 %1748  ;;  %6117 = vtanh.f32 %v7203_v39  ;;  %v6108_v8 = vpop.eup %6107 }
 0x154   :  { %1478 = vadd.xlane.f32.xlu1 %v1249_v33  ;;  %v7260_v40 = vpop.f32.mrf.mxu0  ;;  %10350 = vst [vmem:[#allocation60_spill] sm:$0xff] %v7266_v41  ;;  %v5970_v33 = vpop.f32.mrf.mxu1  ;;  %6119 = vtanh.f32 %v7194_v59  ;;  %v1253_v13 = vmul.f32 %v6108_v8, %v7200_v54 }
 0x155   :  { %v7289_v39 = vpop.permute.xlu1 %1752  ;;  %v6110_v59 = vpop.eup %6109 }
 0x156   :  { %v7262_v25 = vpop.f32.mrf.mxu0  ;;  %10353 = vst [vmem:[#allocation63_spill] sm:$0xff] %v7289_v39 }
 0x157   :  { %1300 = vadd.xlane.f32.xlu0 %v1160_v50  ;;  %v7279_v50 = vrot.slane %v1074_v3, %v7115_v21  ;;  %v7285_v41 = vpop.permute.xlu0 %1756  ;;  %v1252_v21 = vmul.f32 %v6106_v57, %v7200_v54 }
 0x158   :  { %1302 = vadd.xlane.f32.xlu1 %v1161_v34  ;;  %v7270_v46 = vpop.f32.mrf.mxu0  ;;  %v830_v34 = vpop.f32.mrf.mxu1  ;;  %10352 = vst [vmem:[#allocation62_spill] sm:$0xff] %v7285_v41 }
 0x159   :  { %6121 = vtanh.f32 %v830_v34  ;;  %v7294_v3 = vrot.slane %v7279_v50, %v6853_v18  ;;  %v7309_v20 = vpop.permute.xlu1 %1760 }
 0x15a   :  { %v7274_v2 = vpop.f32.mrf.mxu0  ;;  %6123 = vtanh.f32 %v5970_v33  ;;  %v5973_v60 = vpop.f32.mrf.mxu1  ;;  %10355 = vst [vmem:[#allocation65_spill] sm:$0xff] %v7309_v20 }
 0x15b   :  { %1480 = vadd.xlane.f32.xlu0 %v1250_v56  ;;  %v7301_v39 = vpop.permute.xlu0 %1764  ;;  %6125 = vtanh.f32 %v7211_v7 }
 0x15c   :  { %1482 = vadd.xlane.f32.xlu1 %v1251_v29  ;;  %v7283_v30 = vpop.f32.mrf.mxu0  ;;  %v6112_v29 = vpop.eup %6111  ;;  %10354 = vst [vmem:[#allocation64_spill] sm:$0xff] %v7301_v39  ;;  %6127 = vtanh.f32 %v7205_v1 }
 0x15d   :  { %v1165_v33 = vmul.f32 %v6112_v29, %v7294_v3  ;;  %v7321_v20 = vpop.permute.xlu1 %1768 }
 0x15e   :  { %v7287_v56 = vpop.f32.mrf.mxu0  ;;  %v6114_v57 = vpop.eup %6113  ;;  %10357 = vst [vmem:[#allocation67_spill] sm:$0xff] %v7321_v20 }
 0x15f   :  { %1304 = vadd.xlane.f32.xlu0 %v1162_v43  ;;  %v1164_v43 = vmul.f32 %v6110_v59, %v7294_v3  ;;  %v6116_v8 = vpop.eup %6115  ;;  %v1254_v7 = vmul.f32 %v6114_v57, %v7200_v54  ;;  %v7317_v39 = vpop.permute.xlu0 %1772 }
 0x160   :  { %1306 = vadd.xlane.f32.xlu1 %v1163_v0  ;;  %v7297_v17 = vpop.f32.mrf.mxu0  ;;  %v840_v0 = vpop.f32.mrf.mxu1  ;;  %v1255_v59 = vmul.f32 %v6116_v8, %v7200_v54  ;;  %10356 = vst [vmem:[#allocation66_spill] sm:$0xff] %v7317_v39 }
 0x161   :  { %6129 = vtanh.f32 %v840_v0  ;;  %v7337_v20 = vpop.permute.xlu1 %1776 }
 0x162   :  { %v7299_v41 = vpop.f32.mrf.mxu0  ;;  %6131 = vtanh.f32 %v5973_v60  ;;  %v5976_v1 = vpop.f32.mrf.mxu1  ;;  %10359 = vst [vmem:[#allocation69_spill] sm:$0xff] %v7337_v20 }
 0x163   :  { %1484 = vadd.xlane.f32.xlu0 %v1252_v21  ;;  %v6118_v21 = vpop.eup %6117  ;;  %6133 = vtanh.f32 %v7220_v55  ;;  %v7331_v32 = vpop.permute.xlu0 %1780 }
 0x164   :  { %1486 = vadd.xlane.f32.xlu1 %v1253_v13  ;;  %v7307_v34 = vpop.f32.mrf.mxu0  ;;  %v6120_v29 = vpop.eup %6119  ;;  %6135 = vtanh.f32 %v7215_v31  ;;  %10358 = vst [vmem:[#allocation68_spill] sm:$0xff] %v7331_v32 }
 0x165   :  { %v1167_v60 = vmul.f32 %v6120_v29, %v7294_v3 }
 0x166   :  { %v7311_v22 = vpop.f32.mrf.mxu0  ;;  %v6122_v57 = vpop.eup %6121 }
 0x167   :  { %1308 = vadd.xlane.f32.xlu0 %v1164_v43  ;;  %v1166_v43 = vmul.f32 %v6118_v21, %v7294_v3  ;;  %v6124_v8 = vpop.eup %6123  ;;  %v1256_v55 = vmul.f32 %v6122_v57, %v7200_v54  ;;  %v7347_v32 = vpop.permute.xlu0 %1788 }
 0x168   :  { %1310 = vadd.xlane.f32.xlu1 %v1165_v33  ;;  %v7315_v13 = vpop.f32.mrf.mxu0  ;;  %v850_v33 = vpop.f32.mrf.mxu1  ;;  %v1257_v21 = vmul.f32 %v6124_v8, %v7200_v54  ;;  %10360 = vst [vmem:[#allocation70_spill] sm:$0xff] %v7347_v32 }
 0x169   :  { %6137 = vtanh.f32 %v850_v33 }
 0x16a   :  { %v7319_v62 = vpop.f32.mrf.mxu0  ;;  %6139 = vtanh.f32 %v5976_v1  ;;  %v5979_v31 = vpop.f32.mrf.mxu1 }
 0x16b   :  { %1488 = vadd.xlane.f32.xlu0 %v1254_v7  ;;  %v6126_v7 = vpop.eup %6125  ;;  %6141 = vtanh.f32 %v7230_v35  ;;  %v7353_v35 = vpop.permute.xlu1 %1784 }
 0x16c   :  { %1490 = vadd.xlane.f32.xlu1 %v1255_v59  ;;  %v7327_v0 = vpop.f32.mrf.mxu0  ;;  %v6128_v29 = vpop.eup %6127  ;;  %6143 = vtanh.f32 %v7224_v51  ;;  %10361 = vst [vmem:[#allocation71_spill] sm:$0xff] %v7353_v35 }
 0x16d   :  { %v1169_v1 = vmul.f32 %v6128_v29, %v7294_v3  ;;  %v860_v57 = vpop.f32.mrf.mxu1  ;;  %v7361_v47 = vpop.permute.xlu0 %1796 }
 0x16e   :  { %v7329_v39 = vpop.f32.mrf.mxu0  ;;  %v6130_v33 = vpop.eup %6129  ;;  %6145 = vtanh.f32 %v860_v57  ;;  %10362 = vst [vmem:[#allocation72_spill] sm:$0xff] %v7361_v47 }
 0x16f   :  { %1312 = vadd.xlane.f32.xlu0 %v1166_v43  ;;  %v1168_v43 = vmul.f32 %v6126_v7, %v7294_v3  ;;  %v6132_v8 = vpop.eup %6131  ;;  %v1258_v7 = vmul.f32 %v6130_v33, %v7200_v54  ;;  %6147 = vtanh.f32 %v5979_v31  ;;  %v5982_v29 = vpop.f32.mrf.mxu1 }
 0x170   :  { %1314 = vadd.xlane.f32.xlu1 %v1167_v60  ;;  %v7335_v59 = vpop.f32.mrf.mxu0  ;;  %v6134_v51 = vpop.eup %6133  ;;  %6149 = vtanh.f32 %v7240_v48 }
 0x171   :  { %v6136_v32 = vpop.eup %6135  ;;  %6151 = vtanh.f32 %v7232_v6  ;;  %v870_v33 = vpop.f32.mrf.mxu1 }
 0x172   :  { %v7339_v58 = vpop.f32.mrf.mxu0  ;;  %6153 = vtanh.f32 %v870_v33  ;;  %v7380_v47 = vpop.permute.xlu0 %1807 }
 0x173   :  { %1492 = vadd.xlane.f32.xlu0 %v1256_v55  ;;  %v1107_v55 = vcombine.high %v7138_v27, %v7138_v27  ;;  %v1170_v27 = vmul.f32 %v6134_v51, %v7294_v3  ;;  %6155 = vtanh.f32 %v5982_v29  ;;  %v5985_v6 = vpop.f32.mrf.mxu1  ;;  %10364 = vst [vmem:[#allocation74_spill] sm:$0xff] %v7380_v47 }
 0x174   :  { %1494 = vadd.xlane.f32.xlu1 %v1257_v21  ;;  %v7345_v60 = vpop.f32.mrf.mxu0  ;;  %v1259_v21 = vmul.f32 %v6132_v8, %v7200_v54  ;;  %v1171_v54 = vmul.f32 %v6136_v32, %v7294_v3  ;;  %v7372_v8 = vpop.permute.xlu1 %1792  ;;  %6157 = vtanh.f32 %v7248_v12 }
 0x175   :  { %10363 = vst [vmem:[#allocation73_spill] sm:$0xff] %v7372_v8  ;;  %6159 = vtanh.f32 %v7244_v38 }
 0x176   :  { %v7349_v20 = vpop.f32.mrf.mxu0  ;;  %v6138_v31 = vpop.eup %6137 }
 0x177   :  { %1316 = vadd.xlane.f32.xlu0 %v1168_v43  ;;  %v7366_v43 = vrot.slane %v1107_v55, %v6853_v18  ;;  %v6140_v57 = vpop.eup %6139  ;;  %v7392_v47 = vpop.permute.xlu0 %1815 }
 0x178   :  { %1318 = vadd.xlane.f32.xlu1 %v1169_v1  ;;  %v7357_v52 = vpop.f32.mrf.mxu0  ;;  %v6142_v55 = vpop.eup %6141  ;;  %10366 = vst [vmem:[#allocation76_spill] sm:$0xff] %v7392_v47 }
 0x179   :  { %v1260_v48 = vmul.f32 %v6138_v31, %v7366_v43  ;;  %v1261_v51 = vmul.f32 %v6140_v57, %v7366_v43  ;;  %v6144_v32 = vpop.eup %6143  ;;  %v7384_v8 = vpop.permute.xlu1 %1800 }
 0x17a   :  { %v7359_v24 = vpop.f32.mrf.mxu0  ;;  %10365 = vst [vmem:[#allocation75_spill] sm:$0xff] %v7384_v8  ;;  %v1173_v29 = vmul.f32 %v6144_v32, %v7294_v3 }
 0x17b   :  { %1496 = vadd.xlane.f32.xlu0 %v1258_v7  ;;  %v6146_v31 = vpop.eup %6145 }
 0x17c   :  { %1498 = vadd.xlane.f32.xlu1 %v1259_v21  ;;  %v7370_v1 = vpop.f32.mrf.mxu0  ;;  %v6148_v57 = vpop.eup %6147 }
 0x17d   :  { %v6150_v8 = vpop.eup %6149  ;;  %v1263_v12 = vmul.f32 %v6148_v57, %v7366_v43  ;;  %v7398_v32 = vpop.permute.xlu1 %1811 }
 0x17e   :  { %v7374_v7 = vpop.f32.mrf.mxu0  ;;  %v6152_v38 = vpop.eup %6151  ;;  %10367 = vst [vmem:[#allocation77_spill] sm:$0xff] %v7398_v32  ;;  %v1174_v47 = vmul.f32 %v6150_v8, %v7294_v3 }
 0x17f   :  { %1320 = vadd.xlane.f32.xlu0 %v1170_v27  ;;  %v1172_v27 = vmul.f32 %v6142_v55, %v7294_v3  ;;  %v7406_v57 = vpop.permute.xlu0 %1823 }
 0x180   :  { %1322 = vadd.xlane.f32.xlu1 %v1171_v54  ;;  %v7378_v21 = vpop.f32.mrf.mxu0  ;;  %v880_v54 = vpop.f32.mrf.mxu1  ;;  %10368 = vst [vmem:[#allocation78_spill] sm:$0xff] %v7406_v57 }
 0x181   :  { %6161 = vtanh.f32 %v880_v54  ;;  %v7408_v37 = vpop.permute.xlu1 %1819 }
 0x182   :  { %v7382_v35 = vpop.f32.mrf.mxu0  ;;  %6163 = vtanh.f32 %v5985_v6  ;;  %v5988_v55 = vpop.f32.mrf.mxu1  ;;  %v1175_v6 = vmul.f32 %v6152_v38, %v7294_v3  ;;  %10369 = vst [vmem:[#allocation79_spill] sm:$0xff] %v7408_v37  ;;  %v1104_v37 = vcombine.high %v7135_v53, %v7135_v53 }
 0x183   :  { %1500 = vadd.xlane.f32.xlu0 %v1260_v48  ;;  %v1262_v48 = vmul.f32 %v6146_v31, %v7366_v43  ;;  %6165 = vtanh.f32 %v7260_v40  ;;  %v7414_v32 = vpop.permute.xlu0 %1831 }
 0x184   :  { %1502 = vadd.xlane.f32.xlu1 %v1261_v51  ;;  %v7390_v33 = vpop.f32.mrf.mxu0  ;;  %6167 = vtanh.f32 %v7252_v63  ;;  %v890_v31 = vpop.f32.mrf.mxu1  ;;  %10370 = vst [vmem:[#allocation80_spill] sm:$0xff] %v7414_v32 }
 0x185   :  { %6169 = vtanh.f32 %v890_v31 }
 0x186   :  { %v7396_v51 = vpop.f32.mrf.mxu0  ;;  %6171 = vtanh.f32 %v5988_v55  ;;  %v5991_v63 = vpop.f32.mrf.mxu1 }
 0x187   :  { %1324 = vadd.xlane.f32.xlu0 %v1172_v27  ;;  %v6154_v27 = vpop.eup %6153  ;;  %6173 = vtanh.f32 %v7270_v46 }
 0x188   :  { %1326 = vadd.xlane.f32.xlu1 %v1173_v29  ;;  %v7404_v29 = vpop.f32.mrf.mxu0  ;;  %v6156_v54 = vpop.eup %6155  ;;  %v1264_v40 = vmul.f32 %v6154_v27, %v7366_v43  ;;  %6175 = vtanh.f32 %v7262_v25 }
 0x189   :  { %v1265_v8 = vmul.f32 %v6156_v54, %v7366_v43  ;;  %v900_v27 = vpop.f32.mrf.mxu1  ;;  %v7422_v54 = vpop.permute.xlu1 %1827 }
 0x18a   :  { %10371 = vst [vmem:[#allocation81_spill] sm:$0xff] %v7422_v54  ;;  %6177 = vtanh.f32 %v900_v27 }
 0x18b   :  { %1504 = vadd.xlane.f32.xlu0 %v1262_v48  ;;  %v6158_v48 = vpop.eup %6157  ;;  %6179 = vtanh.f32 %v5991_v63 }
 0x18c   :  { %1506 = vadd.xlane.f32.xlu1 %v1263_v12  ;;  %v7412_v12 = vpop.f32.mrf.mxu0  ;;  %v6160_v38 = vpop.eup %6159  ;;  %v1176_v57 = vmul.f32 %v6158_v48, %v7294_v3  ;;  %6181 = vtanh.f32 %v7283_v30  ;;  %v7444_v30 = vrot.slane %v1104_v37, %v6853_v18 }
 0x18d   :  { %v1177_v55 = vmul.f32 %v6160_v38, %v7294_v3  ;;  %v5994_v48 = vpop.f32.mrf.mxu1  ;;  %v7428_v38 = vpop.permute.xlu0 %1839  ;;  %6183 = vtanh.f32 %v7274_v2 }
 0x18e   :  { %10372 = vst [vmem:[#allocation82_spill] sm:$0xff] %v7428_v38  ;;  %v7432_v44 = vpop.permute.xlu1 %1835 }
 0x18f   :  { %1328 = vadd.xlane.f32.xlu0 %v1174_v47  ;;  %v6162_v47 = vpop.eup %6161  ;;  %10373 = vst [vmem:[#allocation83_spill] sm:$0xff] %v7432_v44 }
 0x190   :  { %1330 = vadd.xlane.f32.xlu1 %v1175_v6  ;;  %v7420_v6 = vpop.f32.mrf.mxu0  ;;  %v6164_v31 = vpop.eup %6163 }
 0x191   :  { %v6166_v32 = vpop.eup %6165  ;;  %v1267_v46 = vmul.f32 %v6164_v31, %v7366_v43  ;;  %v7440_v38 = vpop.permute.xlu0 %1847 }
 0x192   :  { %v6168_v25 = vpop.eup %6167  ;;  %10374 = vst [vmem:[#allocation84_spill] sm:$0xff] %v7440_v38 }
 0x193   :  { %1508 = vadd.xlane.f32.xlu0 %v1264_v40  ;;  %v1266_v40 = vmul.f32 %v6162_v47, %v7366_v43  ;;  %v6170_v63 = vpop.eup %6169  ;;  %v1179_v47 = vmul.f32 %v6168_v25, %v7294_v3  ;;  %v7449_v25 = vpop.permute.xlu1 %1843 }
 0x194   :  { %1510 = vadd.xlane.f32.xlu1 %v1265_v8  ;;  %v7426_v8 = vpop.f32.mrf.mxu0  ;;  %v6172_v31 = vpop.eup %6171  ;;  %v1268_v53 = vmul.f32 %v6170_v63, %v7366_v43  ;;  %10375 = vst [vmem:[#allocation85_spill] sm:$0xff] %v7449_v25 }
 0x195   :  { %v1269_v2 = vmul.f32 %v6172_v31, %v7366_v43  ;;  %v7457_v31 = vpop.permute.xlu0 %1855 }
 0x196   :  { %v7438_v27 = vpop.f32.mrf.mxu0  ;;  %10376 = vst [vmem:[#allocation86_spill] sm:$0xff] %v7457_v31 }
 0x197   :  { %1332 = vadd.xlane.f32.xlu0 %v1176_v57  ;;  %v1178_v57 = vmul.f32 %v6166_v32, %v7294_v3  ;;  %v6174_v32 = vpop.eup %6173  ;;  %v7459_v38 = vpop.permute.xlu1 %1851 }
 0x198   :  { %1334 = vadd.xlane.f32.xlu1 %v1177_v55  ;;  %v910_v55 = vpop.f32.mrf.mxu1  ;;  %v7447_v3 = vpop.f32.mrf.mxu0  ;;  %10377 = vst [vmem:[#allocation87_spill] sm:$0xff] %v7459_v38 }
 0x199   :  { %6185 = vtanh.f32 %v910_v55  ;;  %v7467_v25 = vpop.permute.xlu0 %1863 }
 0x19a   :  { %6187 = vtanh.f32 %v5994_v48  ;;  %10378 = vst [vmem:[#allocation88_spill] sm:$0xff] %v7467_v25 }
 0x19b   :  { %1512 = vadd.xlane.f32.xlu0 %v1266_v40  ;;  %v5997_v40 = vpop.f32.mrf.mxu1  ;;  %6189 = vtanh.f32 %v7297_v17 }
 0x19c   :  { %1514 = vadd.xlane.f32.xlu1 %v1267_v46  ;;  %v6176_v46 = vpop.eup %6175  ;;  %6191 = vtanh.f32 %v7287_v56 }
 0x19d   :  { %v6178_v63 = vpop.eup %6177  ;;  %v1181_v37 = vmul.f32 %v6176_v46, %v7444_v30  ;;  %v920_v48 = vpop.f32.mrf.mxu1 }
 0x19e   :  { %v6180_v55 = vpop.eup %6179  ;;  %6193 = vtanh.f32 %v920_v48  ;;  %v1270_v17 = vmul.f32 %v6178_v63, %v7366_v43 }
 0x19f   :  { %1336 = vadd.xlane.f32.xlu0 %v1178_v57  ;;  %v1180_v57 = vmul.f32 %v6174_v32, %v7444_v30  ;;  %6195 = vtanh.f32 %v5997_v40  ;;  %v1271_v32 = vmul.f32 %v6180_v55, %v7366_v43 }
 0x1a0   :  { %1338 = vadd.xlane.f32.xlu1 %v1179_v47  ;;  %v7455_v47 = vpop.f32.mrf.mxu0  ;;  %6197 = vtanh.f32 %v7307_v34 }
 0x1a1   :  { %6199 = vtanh.f32 %v7299_v41 }
 0x1a2   :  { %v7463_v56 = vpop.f32.mrf.mxu0  ;;  %6201 = vtanh.f32 %v7315_v13 }
 0x1a3   :  { %1516 = vadd.xlane.f32.xlu0 %v1268_v53  ;;  %v6182_v53 = vpop.eup %6181  ;;  %6203 = vtanh.f32 %v7311_v22 }
 0x1a4   :  { %1518 = vadd.xlane.f32.xlu1 %v1269_v2  ;;  %v6184_v2 = vpop.eup %6183  ;;  %v1182_v46 = vmul.f32 %v6182_v53, %v7444_v30  ;;  %v7471_v40 = vpop.f32.mrf.mxu0  ;;  %6205 = vtanh.f32 %v7327_v0 }
 0x1a5   :  { %6207 = vtanh.f32 %v7319_v62 }
 0x1a6   :  { %v6186_v31 = vpop.eup %6185  ;;  %6209 = vtanh.f32 %v7335_v59 }
 0x1a7   :  { %1340 = vadd.xlane.f32.xlu0 %v1180_v57  ;;  %v1183_v57 = vmul.f32 %v6184_v2, %v7444_v30  ;;  %v6188_v63 = vpop.eup %6187  ;;  %v1272_v34 = vmul.f32 %v6186_v31, %v7366_v43  ;;  %6211 = vtanh.f32 %v7329_v39 }
 0x1a8   :  { %1342 = vadd.xlane.f32.xlu1 %v1181_v37  ;;  %v7473_v37 = vpop.permute.xlu1 %1859  ;;  %v6190_v48 = vpop.eup %6189  ;;  %v1273_v41 = vmul.f32 %v6188_v63, %v7366_v43  ;;  %6213 = vtanh.f32 %v7345_v60 }
 0x1a9   :  { %10379 = vst [vmem:[#allocation89_spill] sm:$0xff] %v7473_v37  ;;  %v6192_v53 = vpop.eup %6191  ;;  %v1184_v13 = vmul.f32 %v6190_v48, %v7444_v30  ;;  %6215 = vtanh.f32 %v7339_v58 }
 0x1aa   :  { %v1185_v22 = vmul.f32 %v6192_v53, %v7444_v30  ;;  %6217 = vtanh.f32 %v7357_v52 }
 0x1ab   :  { %1520 = vadd.xlane.f32.xlu0 %v1270_v17  ;;  %v7481_v17 = vpop.f32.mrf.mxu0  ;;  %v6194_v2 = vpop.eup %6193  ;;  %6219 = vtanh.f32 %v7349_v20 }
 0x1ac   :  { %1522 = vadd.xlane.f32.xlu1 %v1271_v32  ;;  %v1274_v0 = vmul.f32 %v6194_v2, %v7366_v43  ;;  %6221 = vtanh.f32 %v7370_v1 }
 0x1ad   :  { %6223 = vtanh.f32 %v7359_v24 }
 0x1ae   :  { %6225 = vtanh.f32 %v7378_v21 }
 0x1af   :  { %1344 = vadd.xlane.f32.xlu0 %v1182_v46  ;;  %v7491_v46 = vpop.f32.mrf.mxu0 }
 0x1b0   :  { %1346 = vadd.xlane.f32.xlu1 %v1183_v57  ;;  %v7478_v55 = vpop.xlane.xlu0 %1278  ;;  %v6196_v57 = vpop.eup %6195  ;;  %6227 = vtanh.f32 %v7374_v7 }
 0x1b1   :  { %v7483_v32 = vpop.xlane.xlu1 %1458  ;;  %v1275_v62 = vmul.f32 %v6196_v57, %v7366_v43 }
 0x1b2   :  { %10380 = vst [vmem:[#allocation90_spill] sm:$0xff] %v7483_v32 }
 0x1b3   :  { %1524 = vadd.xlane.f32.xlu0 %v1272_v34  ;;  %v6198_v34 = vpop.eup %6197  ;;  %6229 = vtanh.f32 %v7390_v33 }
 0x1b4   :  { %1526 = vadd.xlane.f32.xlu1 %v1273_v41  ;;  %v7488_v31 = vpop.xlane.xlu0 %1276  ;;  %v7501_v41 = vpop.f32.mrf.mxu0  ;;  %v1186_v59 = vmul.f32 %v6198_v34, %v7444_v30 }
 0x1b5   :  { %v7493_v63 = vpop.xlane.xlu1 %1282  ;;  %v6200_v53 = vpop.eup %6199  ;;  %6231 = vtanh.f32 %v7382_v35 }
 0x1b6   :  { %v1187_v39 = vmul.f32 %v6200_v53, %v7444_v30 }
 0x1b7   :  { %1348 = vadd.xlane.f32.xlu0 %v1184_v13  ;;  %v6202_v13 = vpop.eup %6201  ;;  %6233 = vtanh.f32 %v7404_v29 }
 0x1b8   :  { %1350 = vadd.xlane.f32.xlu1 %v1185_v22  ;;  %v7498_v48 = vpop.xlane.xlu0 %1456  ;;  %v7511_v22 = vpop.f32.mrf.mxu0  ;;  %v1188_v60 = vmul.f32 %v6202_v13, %v7444_v30 }
 0x1b9   :  { %10381 = vst [vmem:[#allocation91_spill] sm:$0xff] %v7498_v48  ;;  %v7503_v32 = vpop.xlane.xlu1 %1462  ;;  %v6204_v43 = vpop.eup %6203  ;;  %6235 = vtanh.f32 %v7396_v51 }
 0x1ba   :  { %10382 = vst [vmem:[#allocation92_spill] sm:$0xff] %v7503_v32  ;;  %v1189_v58 = vmul.f32 %v6204_v43, %v7444_v30 }
 0x1bb   :  { %1528 = vadd.xlane.f32.xlu0 %v1274_v0  ;;  %v6206_v0 = vpop.eup %6205  ;;  %6237 = vtanh.f32 %v7420_v6 }
 0x1bc   :  { %1530 = vadd.xlane.f32.xlu1 %v1275_v62  ;;  %v7508_v2 = vpop.xlane.xlu0 %1460  ;;  %v7521_v62 = vpop.f32.mrf.mxu0  ;;  %v1190_v52 = vmul.f32 %v6206_v0, %v7444_v30 }
 0x1bd   :  { %10383 = vst [vmem:[#allocation93_spill] sm:$0xff] %v7508_v2  ;;  %v7513_v57 = vpop.xlane.xlu1 %1280  ;;  %v6208_v53 = vpop.eup %6207  ;;  %6239 = vtanh.f32 %v7412_v12 }
 0x1be   :  { %v1191_v20 = vmul.f32 %v6208_v53, %v7444_v30 }
 0x1bf   :  { %1352 = vadd.xlane.f32.xlu0 %v1186_v59  ;;  %v6210_v59 = vpop.eup %6209  ;;  %6241 = vtanh.f32 %v7438_v27 }
 0x1c0   :  { %1354 = vadd.xlane.f32.xlu1 %v1187_v39  ;;  %v7518_v34 = vpop.xlane.xlu0 %1284  ;;  %v7531_v39 = vpop.f32.mrf.mxu0  ;;  %v1192_v1 = vmul.f32 %v6210_v59, %v7444_v30 }
 0x1c1   :  { %v7523_v32 = vpop.xlane.xlu1 %1286  ;;  %v6212_v43 = vpop.eup %6211  ;;  %6243 = vtanh.f32 %v7426_v8 }
 0x1c2   :  { %v6214_v0 = vpop.eup %6213  ;;  %v7543_v53 = vpop.f32.mrf.mxu0  ;;  %6245 = vtanh.f32 %v7455_v47 }
 0x1c3   :  { %1356 = vadd.xlane.f32.xlu0 %v1188_v60  ;;  %v1106_v60 = vcombine.high %v7279_v50, %v7279_v50  ;;  %v1194_v21 = vmul.f32 %v6214_v0, %v7444_v30 }
 0x1c4   :  { %1358 = vadd.xlane.f32.xlu1 %v1189_v58  ;;  %v7528_v13 = vpop.xlane.xlu0 %1464  ;;  %v1193_v58 = vmul.f32 %v6212_v43, %v7444_v30 }
 0x1c5   :  { %10384 = vst [vmem:[#allocation94_spill] sm:$0xff] %v7528_v13  ;;  %v7533_v2 = vpop.xlane.xlu1 %1466  ;;  %v6216_v13 = vpop.eup %6215  ;;  %v7550_v50 = vrot.slane %v1106_v60, %v6853_v18  ;;  %6247 = vtanh.f32 %v7447_v3 }
 0x1c6   :  { %10385 = vst [vmem:[#allocation95_spill] sm:$0xff] %v7533_v2  ;;  %v1195_v59 = vmul.f32 %v6216_v13, %v7444_v30 }
 0x1c7   :  { %1360 = vadd.xlane.f32.xlu0 %v1190_v52  ;;  %v6218_v52 = vpop.eup %6217  ;;  %6249 = vtanh.f32 %v7471_v40 }
 0x1c8   :  { %1362 = vadd.xlane.f32.xlu1 %v1191_v20  ;;  %v7540_v24 = vpop.xlane.xlu0 %1288  ;;  %v7556_v20 = vpop.f32.mrf.mxu0  ;;  %v1196_v33 = vmul.f32 %v6218_v52, %v7550_v50 }
 0x1c9   :  { %v7545_v2 = vpop.xlane.xlu1 %1290  ;;  %v6220_v43 = vpop.eup %6219  ;;  %6251 = vtanh.f32 %v7463_v56 }
 0x1ca   :  { %v1197_v35 = vmul.f32 %v6220_v43, %v7550_v50  ;;  %v7566_v0 = vpop.f32.mrf.mxu0 }
 0x1cb   :  { %1364 = vadd.xlane.f32.xlu0 %v1192_v1  ;;  %v6222_v1 = vpop.eup %6221  ;;  %6253 = vtanh.f32 %v7491_v46 }
 0x1cc   :  { %1366 = vadd.xlane.f32.xlu1 %v1193_v58  ;;  %v7553_v7 = vpop.xlane.xlu0 %1468  ;;  %v6224_v30 = vpop.eup %6223  ;;  %v1198_v29 = vmul.f32 %v6222_v1, %v7550_v50  ;;  %6255 = vtanh.f32 %v7481_v17 }
 0x1cd   :  { %10386 = vst [vmem:[#allocation96_spill] sm:$0xff] %v7553_v7  ;;  %v7558_v48 = vpop.xlane.xlu1 %1470  ;;  %v6226_v58 = vpop.eup %6225  ;;  %v1199_v51 = vmul.f32 %v6224_v30, %v7550_v50  ;;  %6257 = vtanh.f32 %v7511_v22 }
 0x1ce   :  { %10387 = vst [vmem:[#allocation97_spill] sm:$0xff] %v7558_v48  ;;  %v7576_v52 = vpop.f32.mrf.mxu0  ;;  %v1200_v6 = vmul.f32 %v6226_v58, %v7550_v50 }
 0x1cf   :  { %1368 = vadd.xlane.f32.xlu0 %v1194_v21 }
 0x1d0   :  { %1370 = vadd.xlane.f32.xlu1 %v1195_v59  ;;  %v7563_v60 = vpop.xlane.xlu0 %1292  ;;  %v6228_v59 = vpop.eup %6227  ;;  %6259 = vtanh.f32 %v7501_v41 }
 0x1d1   :  { %v7568_v13 = vpop.xlane.xlu1 %1294  ;;  %v1201_v12 = vmul.f32 %v6228_v59, %v7550_v50 }
 0x1d3   :  { %1372 = vadd.xlane.f32.xlu0 %v1196_v33  ;;  %v6230_v33 = vpop.eup %6229  ;;  %6261 = vtanh.f32 %v7531_v39 }
 0x1d4   :  { %1374 = vadd.xlane.f32.xlu1 %v1197_v35  ;;  %v7573_v21 = vpop.xlane.xlu0 %1472  ;;  %v7586_v35 = vpop.f32.mrf.mxu0  ;;  %v1202_v27 = vmul.f32 %v6230_v33, %v7550_v50 }
 0x1d5   :  { %10388 = vst [vmem:[#allocation98_spill] sm:$0xff] %v7573_v21  ;;  %v7578_v43 = vpop.xlane.xlu1 %1474  ;;  %v6232_v30 = vpop.eup %6231  ;;  %6263 = vtanh.f32 %v7521_v62 }
 0x1d6   :  { %10389 = vst [vmem:[#allocation99_spill] sm:$0xff] %v7578_v43  ;;  %v1203_v8 = vmul.f32 %v6232_v30, %v7550_v50 }
 0x1d7   :  { %1376 = vadd.xlane.f32.xlu0 %v1198_v29  ;;  %v6234_v29 = vpop.eup %6233  ;;  %6265 = vtanh.f32 %v7556_v20 }
 0x1d8   :  { %1378 = vadd.xlane.f32.xlu1 %v1199_v51  ;;  %v7583_v1 = vpop.xlane.xlu0 %1296  ;;  %v7596_v51 = vpop.f32.mrf.mxu0  ;;  %v1204_v47 = vmul.f32 %v6234_v29, %v7550_v50 }
 0x1d9   :  { %v7588_v21 = vpop.xlane.xlu1 %1298  ;;  %v6236_v59 = vpop.eup %6235  ;;  %6267 = vtanh.f32 %v7543_v53 }
 0x1da   :  { %v1205_v3 = vmul.f32 %v6236_v59, %v7550_v50 }
 0x1db   :  { %1380 = vadd.xlane.f32.xlu0 %v1200_v6  ;;  %v6238_v6 = vpop.eup %6237  ;;  %6269 = vtanh.f32 %v7576_v52 }
 0x1dc   :  { %1382 = vadd.xlane.f32.xlu1 %v1201_v12  ;;  %v7593_v58 = vpop.xlane.xlu0 %1476  ;;  %v7606_v12 = vpop.f32.mrf.mxu0  ;;  %v1206_v40 = vmul.f32 %v6238_v6, %v7550_v50 }
 0x1dd   :  { %10390 = vst [vmem:[#allocation100_spill] sm:$0xff] %v7593_v58  ;;  %v7598_v43 = vpop.xlane.xlu1 %1478  ;;  %v6240_v30 = vpop.eup %6239  ;;  %6271 = vtanh.f32 %v7566_v0 }
 0x1de   :  { %10391 = vst [vmem:[#allocation101_spill] sm:$0xff] %v7598_v43  ;;  %v1207_v56 = vmul.f32 %v6240_v30, %v7550_v50 }
 0x1df   :  { %1384 = vadd.xlane.f32.xlu0 %v1202_v27  ;;  %v6242_v27 = vpop.eup %6241  ;;  %6273 = vtanh.f32 %v7596_v51 }
 0x1e0   :  { %1386 = vadd.xlane.f32.xlu1 %v1203_v8  ;;  %v7603_v33 = vpop.xlane.xlu0 %1300  ;;  %v680_v8 = vpop.f32.mrf.mxu0 }
 0x1e1   :  { %v7608_v58 = vpop.xlane.xlu1 %1302  ;;  %v6244_v59 = vpop.eup %6243  ;;  %6275 = vtanh.f32 %v7586_v35 }
 0x1e2   :  { %v6246_v46 = vpop.eup %6245  ;;  %v1209_v17 = vmul.f32 %v6244_v59, %v7550_v50  ;;  %6277 = vtanh.f32 %v680_v8 }
 0x1e3   :  { %1388 = vadd.xlane.f32.xlu0 %v1204_v47  ;;  %v1208_v47 = vmul.f32 %v6242_v27, %v7550_v50  ;;  %v6248_v30 = vpop.eup %6247  ;;  %v1210_v22 = vmul.f32 %v6246_v46, %v7550_v50  ;;  %6279 = vtanh.f32 %v7606_v12 }
 0x1e4   :  { %1390 = vadd.xlane.f32.xlu1 %v1205_v3  ;;  %v7613_v29 = vpop.xlane.xlu0 %1480  ;;  %v7624_v3 = vpop.f32.mrf.mxu0 }
 0x1e5   :  { %10392 = vst [vmem:[#allocation102_spill] sm:$0xff] %v7613_v29  ;;  %v7616_v43 = vpop.xlane.xlu1 %1482  ;;  %v6250_v27 = vpop.eup %6249 }
 0x1e6   :  { %10393 = vst [vmem:[#allocation103_spill] sm:$0xff] %v7616_v43  ;;  %v690_v59 = vpop.f32.mrf.mxu0  ;;  %v6252_v43 = vpop.eup %6251 }
 0x1e7   :  { %1392 = vadd.xlane.f32.xlu0 %v1206_v40  ;;  %v7632_v40 = vrot.slane %v7177_v19, %v6853_v18  ;;  %6281 = vtanh.f32 %v690_v59 }
 0x1e8   :  { %1394 = vadd.xlane.f32.xlu1 %v1207_v56  ;;  %v7621_v6 = vpop.xlane.xlu0 %1304  ;;  %v1211_v56 = vmul.f32 %v6248_v30, %v7550_v50  ;;  %v5931_v46 = vpop.f32.mrf.mxu0  ;;  %6283 = vtanh.f32 %v7624_v3 }
 0x1e9   :  { %v7626_v29 = vpop.xlane.xlu1 %1306  ;;  %v1212_v39 = vmul.f32 %v6250_v27, %v7632_v40  ;;  %v1213_v62 = vmul.f32 %v6252_v43, %v7632_v40 }
 0x1ea   :  { %v700_v27 = vpop.f32.mrf.mxu0 }
 0x1eb   :  { %1396 = vadd.xlane.f32.xlu0 %v1208_v47  ;;  %v6254_v47 = vpop.eup %6253  ;;  %6285 = vtanh.f32 %v700_v27 }
 0x1ec   :  { %1398 = vadd.xlane.f32.xlu1 %v1209_v17  ;;  %v7635_v41 = vpop.xlane.xlu0 %1484  ;;  %v6256_v17 = vpop.eup %6255  ;;  %v1214_v30 = vmul.f32 %v6254_v47, %v7632_v40  ;;  %6287 = vtanh.f32 %v5931_v46 }
 0x1ed   :  { %10394 = vst [vmem:[#allocation104_spill] sm:$0xff] %v7635_v41  ;;  %v7638_v48 = vpop.xlane.xlu1 %1486  ;;  %v6258_v20 = vpop.eup %6257  ;;  %v1215_v53 = vmul.f32 %v6256_v17, %v7632_v40 }
 0x1ee   :  { %10395 = vst [vmem:[#allocation105_spill] sm:$0xff] %v7638_v48 }
 0x1ef   :  { %1400 = vadd.xlane.f32.xlu0 %v1210_v22 }
 0x1f0   :  { %1402 = vadd.xlane.f32.xlu1 %v1211_v56  ;;  %v7643_v19 = vpop.xlane.xlu0 %1308  ;;  %v6260_v56 = vpop.eup %6259 }
 0x1f1   :  { %v7646_v50 = vpop.xlane.xlu1 %1310  ;;  %v6262_v52 = vpop.eup %6261  ;;  %v1217_v0 = vmul.f32 %v6260_v56, %v7632_v40 }
 0x1f2   :  { %v6264_v18 = vpop.eup %6263 }
 0x1f3   :  { %1404 = vadd.xlane.f32.xlu0 %v1212_v39  ;;  %v1216_v39 = vmul.f32 %v6258_v20, %v7632_v40  ;;  %v1219_v35 = vmul.f32 %v6264_v18, %v7632_v40 }
 0x1f4   :  { %1406 = vadd.xlane.f32.xlu1 %v1213_v62  ;;  %v7651_v22 = vpop.xlane.xlu0 %1488  ;;  %v5934_v62 = vpop.f32.mrf.mxu0 }
 0x1f5   :  { %10396 = vst [vmem:[#allocation106_spill] sm:$0xff] %v7651_v22  ;;  %v7654_v43 = vpop.xlane.xlu1 %1490 }
 0x1f6   :  { %10397 = vst [vmem:[#allocation107_spill] sm:$0xff] %v7654_v43  ;;  %v6266_v43 = vpop.eup %6265  ;;  %v710_v20 = vpop.f32.mrf.mxu0 }
 0x1f7   :  { %1408 = vadd.xlane.f32.xlu0 %v1214_v30  ;;  %v1218_v30 = vmul.f32 %v6262_v52, %v7632_v40  ;;  %v1220_v56 = vmul.f32 %v6266_v43, %v7632_v40  ;;  %6289 = vtanh.f32 %v710_v20 }
 0x1f8   :  { %1410 = vadd.xlane.f32.xlu1 %v1215_v53  ;;  %v7659_v47 = vpop.xlane.xlu0 %1312  ;;  %v6268_v53 = vpop.eup %6267  ;;  %6291 = vtanh.f32 %v5934_v62 }
 0x1f9   :  { %v7662_v17 = vpop.xlane.xlu1 %1314  ;;  %v1221_v12 = vmul.f32 %v6268_v53, %v7632_v40  ;;  %v5937_v52 = vpop.f32.mrf.mxu0 }
 0x1fb   :  { %1412 = vadd.xlane.f32.xlu0 %v1216_v39  ;;  %v6270_v39 = vpop.eup %6269  ;;  %v720_v3 = vpop.f32.mrf.mxu0 }
 0x1fc   :  { %1414 = vadd.xlane.f32.xlu1 %v1217_v0  ;;  %v7666_v51 = vpop.xlane.xlu0 %1492  ;;  %v6272_v0 = vpop.eup %6271  ;;  %v1222_v18 = vmul.f32 %v6270_v39, %v7632_v40  ;;  %6293 = vtanh.f32 %v720_v3 }
 0x1fd   :  { %10398 = vst [vmem:[#allocation108_spill] sm:$0xff] %v7666_v51  ;;  %v7669_v22 = vpop.xlane.xlu1 %1494  ;;  %v1223_v43 = vmul.f32 %v6272_v0, %v7632_v40  ;;  %v5940_v46 = vpop.f32.mrf.mxu0  ;;  %6295 = vtanh.f32 %v5937_v52 }
 0x1fe   :  { %10399 = vst [vmem:[#allocation109_spill] sm:$0xff] %v7669_v22 }
 0x1ff   :  { %1416 = vadd.xlane.f32.xlu0 %v1218_v30  ;;  %v6274_v30 = vpop.eup %6273  ;;  %v730_v62 = vpop.f32.mrf.mxu0 }
 0x200   :  { %1418 = vadd.xlane.f32.xlu1 %v1219_v35  ;;  %v7673_v8 = vpop.xlane.xlu0 %1316  ;;  %v6276_v35 = vpop.eup %6275  ;;  %v1224_v53 = vmul.f32 %v6274_v30, %v7632_v40  ;;  %6297 = vtanh.f32 %v730_v62 }
 0x201   :  { %v7676_v51 = vpop.xlane.xlu1 %1318  ;;  %v6278_v48 = vpop.eup %6277  ;;  %6299 = vtanh.f32 %v5940_v46 }
 0x202   :  { %v6280_v39 = vpop.eup %6279  ;;  %v1226_v0 = vmul.f32 %v6278_v48, %v7632_v40 }
 0x203   :  { %1420 = vadd.xlane.f32.xlu0 %v1220_v56  ;;  %v1225_v56 = vmul.f32 %v6276_v35, %v7632_v40 }
 0x204   :  { %1422 = vadd.xlane.f32.xlu1 %v1221_v12  ;;  %v7679_v59 = vpop.xlane.xlu0 %1496 }
 0x205   :  { %10400 = vst [vmem:[#allocation110_spill] sm:$0xff] %v7679_v59  ;;  %v7682_v22 = vpop.xlane.xlu1 %1498 }
 0x206   :  { %10401 = vst [vmem:[#allocation111_spill] sm:$0xff] %v7682_v22  ;;  %v6282_v22 = vpop.eup %6281 }
 0x207   :  { %1424 = vadd.xlane.f32.xlu0 %v1222_v18  ;;  %v1227_v18 = vmul.f32 %v6280_v39, %v7632_v40  ;;  %v6284_v30 = vpop.eup %6283  ;;  %v1228_v35 = vmul.f32 %v6282_v22, %v7148_v61 }
 0x208   :  { %1426 = vadd.xlane.f32.xlu1 %v1223_v43  ;;  %v7685_v27 = vpop.xlane.xlu0 %1320  ;;  %v6286_v59 = vpop.eup %6285  ;;  %v1229_v48 = vmul.f32 %v6284_v30, %v7148_v61 }
 0x209   :  { %v7688_v12 = vpop.xlane.xlu1 %1322  ;;  %v6288_v52 = vpop.eup %6287  ;;  %v1230_v40 = vmul.f32 %v6286_v59, %v7148_v61 }
 0x20b   :  { %1428 = vadd.xlane.f32.xlu0 %v1224_v53 }
 0x20c   :  { %1430 = vadd.xlane.f32.xlu1 %v1225_v56  ;;  %v7691_v20 = vpop.xlane.xlu0 %1500  ;;  %v6290_v56 = vpop.eup %6289 }
 0x20d   :  { %10402 = vst [vmem:[#allocation112_spill] sm:$0xff] %v7691_v20  ;;  %v7694_v43 = vpop.xlane.xlu1 %1502  ;;  %v6292_v22 = vpop.eup %6291  ;;  %v1232_v46 = vmul.f32 %v6290_v56, %v7148_v61 }
 0x20e   :  { %10403 = vst [vmem:[#allocation113_spill] sm:$0xff] %v7694_v43  ;;  %v6294_v30 = vpop.eup %6293  ;;  %v1233_v59 = vmul.f32 %v6292_v22, %v7148_v61 }
 0x20f   :  { %1432 = vadd.xlane.f32.xlu0 %v1226_v0  ;;  %v1231_v0 = vmul.f32 %v6288_v52, %v7148_v61  ;;  %v1234_v52 = vmul.f32 %v6294_v30, %v7148_v61 }
 0x210   :  { %1434 = vadd.xlane.f32.xlu1 %v1227_v18  ;;  %v7697_v3 = vpop.xlane.xlu0 %1324  ;;  %v6796_v18 = vmov 0  }
 0x211   :  { %v7700_v53 = vpop.xlane.xlu1 %1326  ;;  %6043 = vset.pattern.permute.xlu1 %v6796_v18  ;;  %6042 = vset.pattern.permute.xlu0 %v6796_v18 }
 0x213   :  { %1436 = vadd.xlane.f32.xlu0 %v1228_v35  ;;  %v6296_v35 = vpop.eup %6295 }
 0x214   :  { %1438 = vadd.xlane.f32.xlu1 %v1229_v48  ;;  %v7703_v39 = vpop.xlane.xlu0 %1504  ;;  %v1235_v56 = vmul.f32 %v6296_v35, %v7148_v61 }
 0x215   :  { %10404 = vst [vmem:[#allocation114_spill] sm:$0xff] %v7703_v39  ;;  %v7706_v62 = vpop.xlane.xlu1 %1506  ;;  %v6298_v39 = vpop.eup %6297 }
 0x216   :  { %10405 = vst [vmem:[#allocation115_spill] sm:$0xff] %v7706_v62  ;;  %v6300_v62 = vpop.eup %6299 }
 0x217   :  { %1440 = vadd.xlane.f32.xlu0 %v1230_v40  ;;  %v1237_v18 = vmul.f32 %v6300_v62, %v7148_v61 }
 0x218   :  { %1442 = vadd.xlane.f32.xlu1 %v1231_v0  ;;  %v7709_v43 = vpop.xlane.xlu0 %1328  ;;  %v1236_v0 = vmul.f32 %v6298_v39, %v7148_v61  ;;  %v10159_v61 = vsub.s32 5, %v6850_v15 }
 0x219   :  { %v7712_v48 = vpop.xlane.xlu1 %1330 }
 0x21b   :  { %1444 = vadd.xlane.f32.xlu0 %v1232_v46 }
 0x21c   :  { %1446 = vadd.xlane.f32.xlu1 %v1233_v59  ;;  %v7715_v40 = vpop.xlane.xlu0 %1508 }
 0x21d   :  { %10406 = vst [vmem:[#allocation116_spill] sm:$0xff] %v7715_v40  ;;  %v7718_v20 = vpop.xlane.xlu1 %1510 }
 0x21e   :  { %10407 = vst [vmem:[#allocation117_spill] sm:$0xff] %v7718_v20 }
 0x21f   :  { %1448 = vadd.xlane.f32.xlu0 %v1234_v52 }
 0x220   :  { %1450 = vadd.xlane.f32.xlu1 %v1235_v56  ;;  %v7721_v22 = vpop.xlane.xlu0 %1332 }
 0x221   :  { %v7724_v46 = vpop.xlane.xlu1 %1334 }
 0x223   :  { %1452 = vadd.xlane.f32.xlu0 %v1236_v0 }
 0x224   :  { %1454 = vadd.xlane.f32.xlu1 %v1237_v18  ;;  %v7726_v30 = vpop.xlane.xlu0 %1512  ;;  %v7748_v18 = vld [vmem:[#allocation11] sm:$0xff] }
 0x225   :  { %10408 = vst [vmem:[#allocation118_spill] sm:$0xff] %v7726_v30  ;;  %v7728_v59 = vpop.xlane.xlu1 %1514 }
 0x226   :  { %10409 = vst [vmem:[#allocation119_spill] sm:$0xff] %v7728_v59 }
 0x228   :  { %v7730_v35 = vpop.xlane.xlu0 %1336 }
 0x229   :  { %v7732_v40 = vpop.xlane.xlu1 %1338 }
 0x22c   :  { %v7734_v52 = vpop.xlane.xlu0 %1516 }
 0x22d   :  { %10410 = vst [vmem:[#allocation120_spill] sm:$0xff] %v7734_v52  ;;  %v7736_v39 = vpop.xlane.xlu1 %1518  ;;  %v1872_v52 = vrot.slane %v7748_v18, %v10159_v61 }
 0x22e   :  { %10411 = vst [vmem:[#allocation121_spill] sm:$0xff] %v7736_v39 }
 0x230   :  { %v7738_v56 = vpop.xlane.xlu0 %1340 }
 0x231   :  { %v7740_v20 = vpop.xlane.xlu1 %1342 }
 0x234   :  { %v7743_v62 = vpop.xlane.xlu0 %1520 }
 0x235   :  { %10412 = vst [vmem:[#allocation122_spill] sm:$0xff] %v7743_v62  ;;  %v7745_v0 = vpop.xlane.xlu1 %1522  ;;  %1867 = vbcast.lane.b32.xlu1 %v7049_v11, 376 }
 0x236   :  { %10413 = vst [vmem:[#allocation123_spill] sm:$0xff] %v7745_v0 }
 0x238   :  { %v7753_v59 = vpop.xlane.xlu0 %1344 }
 0x239   :  { %v7755_v39 = vpop.xlane.xlu1 %1346  ;;  %1878 = vbcast.lane.b32.xlu1 %v1872_v52, 264  ;;  %1874 = vbcast.lane.b32.xlu0 %v1872_v52, 256 }
 0x23c   :  { %v7757_v30 = vpop.xlane.xlu0 %1524 }
 0x23d   :  { %10414 = vst [vmem:[#allocation124_spill] sm:$0xff] %v7757_v30  ;;  %v7759_v41 = vpop.xlane.xlu1 %1526  ;;  %1886 = vbcast.lane.b32.xlu1 %v1872_v52, 280  ;;  %1882 = vbcast.lane.b32.xlu0 %v1872_v52, 272 }
 0x23e   :  { %10415 = vst [vmem:[#allocation125_spill] sm:$0xff] %v7759_v41 }
 0x240   :  { %v7761_v0 = vpop.xlane.xlu0 %1348 }
 0x241   :  { %v7763_v11 = vpop.xlane.xlu1 %1350  ;;  %1894 = vbcast.lane.b32.xlu1 %v1872_v52, 296  ;;  %1890 = vbcast.lane.b32.xlu0 %v1872_v52, 288 }
 0x244   :  { %v7765_v62 = vpop.xlane.xlu0 %1528 }
 0x245   :  { %10416 = vst [vmem:[#allocation126_spill] sm:$0xff] %v7765_v62  ;;  %v7767_v61 = vpop.xlane.xlu1 %1530  ;;  %1902 = vbcast.lane.b32.xlu1 %v1872_v52, 312  ;;  %1898 = vbcast.lane.b32.xlu0 %v1872_v52, 304 }
 0x246   :  { %10417 = vst [vmem:[#allocation127_spill] sm:$0xff] %v7767_v61  ;;  %v10160_v61 = vsub.s32 6, %v6850_v15 }
 0x248   :  { %v7769_v7 = vpop.xlane.xlu0 %1352  ;;  %v1939_v54 = vrot.slane %v7748_v18, %v10160_v61 }
 0x249   :  { %v7771_v25 = vpop.xlane.xlu1 %1354  ;;  %1910 = vbcast.lane.b32.xlu1 %v1872_v52, 328  ;;  %1906 = vbcast.lane.b32.xlu0 %v1872_v52, 320 }
 0x24c   :  { %v7773_v41 = vpop.xlane.xlu0 %1356 }
 0x24d   :  { %10418 = vst [vmem:[#allocation128_spill] sm:$0xff] %v7773_v41  ;;  %v7775_v30 = vpop.xlane.xlu1 %1358  ;;  %1918 = vbcast.lane.b32.xlu1 %v1872_v52, 344  ;;  %1914 = vbcast.lane.b32.xlu0 %v1872_v52, 336 }
 0x24e   :  { %10419 = vst [vmem:[#allocation129_spill] sm:$0xff] %v7775_v30 }
 0x250   :  { %v7777_v37 = vpop.xlane.xlu0 %1360 }
 0x251   :  { %10420 = vst [vmem:[#allocation130_spill] sm:$0xff] %v7777_v37  ;;  %v7779_v38 = vpop.xlane.xlu1 %1362  ;;  %1926 = vbcast.lane.b32.xlu1 %v1872_v52, 360  ;;  %1922 = vbcast.lane.b32.xlu0 %v1872_v52, 352 }
 0x252   :  { %10421 = vst [vmem:[#allocation131_spill] sm:$0xff] %v7779_v38 }
 0x254   :  { %v7782_v62 = vpop.xlane.xlu0 %1364 }
 0x255   :  { %10422 = vst [vmem:[#allocation132_spill] sm:$0xff] %v7782_v62  ;;  %v7784_v44 = vpop.xlane.xlu1 %1366  ;;  %1934 = vbcast.lane.b32.xlu1 %v1872_v52, 376  ;;  %1930 = vbcast.lane.b32.xlu0 %v1872_v52, 368 }
 0x256   :  { %10423 = vst [vmem:[#allocation133_spill] sm:$0xff] %v7784_v44 }
 0x258   :  { %v7789_v41 = vpop.xlane.xlu0 %1368 }
 0x259   :  { %10424 = vst [vmem:[#allocation134_spill] sm:$0xff] %v7789_v41  ;;  %v7791_v30 = vpop.xlane.xlu1 %1370  ;;  %1945 = vbcast.lane.b32.xlu1 %v1939_v54, 264  ;;  %1941 = vbcast.lane.b32.xlu0 %v1939_v54, 256 }
 0x25a   :  { %10425 = vst [vmem:[#allocation135_spill] sm:$0xff] %v7791_v30 }
 0x25c   :  { %v7793_v37 = vpop.xlane.xlu0 %1372 }
 0x25d   :  { %10426 = vst [vmem:[#allocation136_spill] sm:$0xff] %v7793_v37  ;;  %v7795_v38 = vpop.xlane.xlu1 %1374  ;;  %1953 = vbcast.lane.b32.xlu1 %v1939_v54, 280  ;;  %1949 = vbcast.lane.b32.xlu0 %v1939_v54, 272 }
 0x25e   :  { %10427 = vst [vmem:[#allocation137_spill] sm:$0xff] %v7795_v38 }
 0x260   :  { %v7797_v62 = vpop.xlane.xlu0 %1376 }
 0x261   :  { %10428 = vst [vmem:[#allocation138_spill] sm:$0xff] %v7797_v62  ;;  %v7799_v44 = vpop.xlane.xlu1 %1378  ;;  %1961 = vbcast.lane.b32.xlu1 %v1939_v54, 296  ;;  %1957 = vbcast.lane.b32.xlu0 %v1939_v54, 288 }
 0x262   :  { %10429 = vst [vmem:[#allocation139_spill] sm:$0xff] %v7799_v44 }
 0x264   :  { %v7801_v52 = vpop.xlane.xlu0 %1380 }
 0x265   :  { %10430 = vst [vmem:[#allocation140_spill] sm:$0xff] %v7801_v52  ;;  %v7803_v61 = vpop.xlane.xlu1 %1382  ;;  %1969 = vbcast.lane.b32.xlu1 %v1939_v54, 312  ;;  %1965 = vbcast.lane.b32.xlu0 %v1939_v54, 304  ;;  %v10161_v52 = vsub.s32 7, %v6850_v15 }
 0x266   :  { %10431 = vst [vmem:[#allocation141_spill] sm:$0xff] %v7803_v61 }
 0x268   :  { %v7805_v41 = vpop.xlane.xlu0 %1384 }
 0x269   :  { %10432 = vst [vmem:[#allocation142_spill] sm:$0xff] %v7805_v41  ;;  %v7807_v30 = vpop.xlane.xlu1 %1386  ;;  %1977 = vbcast.lane.b32.xlu1 %v1939_v54, 328  ;;  %1973 = vbcast.lane.b32.xlu0 %v1939_v54, 320 }
 0x26a   :  { %10433 = vst [vmem:[#allocation143_spill] sm:$0xff] %v7807_v30 }
 0x26c   :  { %v7809_v37 = vpop.xlane.xlu0 %1388 }
 0x26d   :  { %10434 = vst [vmem:[#allocation144_spill] sm:$0xff] %v7809_v37  ;;  %v7811_v38 = vpop.xlane.xlu1 %1390  ;;  %1985 = vbcast.lane.b32.xlu1 %v1939_v54, 344  ;;  %1981 = vbcast.lane.b32.xlu0 %v1939_v54, 336  ;;  %v2006_v37 = vrot.slane %v7748_v18, %v10161_v52 }
 0x26e   :  { %10435 = vst [vmem:[#allocation145_spill] sm:$0xff] %v7811_v38 }
 0x270   :  { %v7813_v62 = vpop.xlane.xlu0 %1392 }
 0x271   :  { %10436 = vst [vmem:[#allocation146_spill] sm:$0xff] %v7813_v62  ;;  %v7815_v44 = vpop.xlane.xlu1 %1394  ;;  %1993 = vbcast.lane.b32.xlu1 %v1939_v54, 360  ;;  %1989 = vbcast.lane.b32.xlu0 %v1939_v54, 352 }
 0x272   :  { %10437 = vst [vmem:[#allocation147_spill] sm:$0xff] %v7815_v44 }
 0x274   :  { %v7818_v61 = vpop.xlane.xlu0 %1396 }
 0x275   :  { %10438 = vst [vmem:[#allocation148_spill] sm:$0xff] %v7818_v61  ;;  %v7820_v41 = vpop.xlane.xlu1 %1398  ;;  %2001 = vbcast.lane.b32.xlu1 %v1939_v54, 376  ;;  %1997 = vbcast.lane.b32.xlu0 %v1939_v54, 368 }
 0x276   :  { %10439 = vst [vmem:[#allocation149_spill] sm:$0xff] %v7820_v41 }
 0x278   :  { %v7825_v38 = vpop.xlane.xlu0 %1400 }
 0x279   :  { %v7827_v30 = vpop.xlane.xlu1 %1402  ;;  %2012 = vbcast.lane.b32.xlu1 %v2006_v37, 264  ;;  %2008 = vbcast.lane.b32.xlu0 %v2006_v37, 256 }
 0x27c   :  { %v7829_v62 = vpop.xlane.xlu0 %1404 }
 0x27d   :  { %10440 = vst [vmem:[#allocation150_spill] sm:$0xff] %v7829_v62  ;;  %v7831_v44 = vpop.xlane.xlu1 %1406  ;;  %2020 = vbcast.lane.b32.xlu1 %v2006_v37, 280  ;;  %2016 = vbcast.lane.b32.xlu0 %v2006_v37, 272 }
 0x27e   :  { %10441 = vst [vmem:[#allocation151_spill] sm:$0xff] %v7831_v44 }
 0x280   :  { %v7833_v61 = vpop.xlane.xlu0 %1408 }
 0x281   :  { %10442 = vst [vmem:[#allocation152_spill] sm:$0xff] %v7833_v61  ;;  %v7835_v41 = vpop.xlane.xlu1 %1410  ;;  %2028 = vbcast.lane.b32.xlu1 %v2006_v37, 296  ;;  %2024 = vbcast.lane.b32.xlu0 %v2006_v37, 288 }
 0x282   :  { %10443 = vst [vmem:[#allocation153_spill] sm:$0xff] %v7835_v41 }
 0x284   :  { %v7837_v54 = vpop.xlane.xlu0 %1412 }
 0x285   :  { %10444 = vst [vmem:[#allocation154_spill] sm:$0xff] %v7837_v54  ;;  %v7839_v18 = vpop.xlane.xlu1 %1414  ;;  %2036 = vbcast.lane.b32.xlu1 %v2006_v37, 312  ;;  %2032 = vbcast.lane.b32.xlu0 %v2006_v37, 304 }
 0x286   :  { %10445 = vst [vmem:[#allocation155_spill] sm:$0xff] %v7839_v18 }
 0x288   :  { %v7841_v52 = vpop.xlane.xlu0 %1416 }
 0x289   :  { %10446 = vst [vmem:[#allocation156_spill] sm:$0xff] %v7841_v52  ;;  %v7843_v15 = vpop.xlane.xlu1 %1418  ;;  %2044 = vbcast.lane.b32.xlu1 %v2006_v37, 328  ;;  %2040 = vbcast.lane.b32.xlu0 %v2006_v37, 320  ;;  %v7859_v52 = vadd.f32 %v7033_v4, %v7478_v55  ;;  %v7877_v4 = vadd.f32 %v7040_v9, %v7513_v57 }
 0x28a   :  { %v7887_v55 = vadd.f32 %v7057_v23, %v7523_v32  ;;  %v7905_v23 = vadd.f32 %v7053_v16, %v7540_v24  ;;  %v7915_v57 = vadd.f32 %v7071_v42, %v7568_v13  ;;  %v7933_v42 = vadd.f32 %v7067_v36, %v7583_v1  ;;  %v10464_v13 = vld [vmem:[#allocation24_spill] sm:$0xff]  ;;  %v10466_v1 = vld [vmem:[#allocation27_spill] sm:$0xff] }
 0x28b   :  { %10451 = vst [vmem:[#allocation161_spill] sm:$0xff] %v7859_v52  ;;  %10454 = vst [vmem:[#allocation164_spill] sm:$0xff] %v7877_v4 }
 0x28c   :  { %v7845_v62 = vpop.xlane.xlu0 %1420  ;;  %10455 = vst [vmem:[#allocation165_spill] sm:$0xff] %v7887_v55  ;;  %10458 = vst [vmem:[#allocation168_spill] sm:$0xff] %v7905_v23 }
 0x28d   :  { %10447 = vst [vmem:[#allocation157_spill] sm:$0xff] %v7845_v62  ;;  %v7847_v44 = vpop.xlane.xlu1 %1422  ;;  %2052 = vbcast.lane.b32.xlu1 %v2006_v37, 344  ;;  %2048 = vbcast.lane.b32.xlu0 %v2006_v37, 336  ;;  %v7863_v62 = vadd.f32 %v7035_v5, %v7488_v31  ;;  %10459 = vst [vmem:[#allocation169_spill] sm:$0xff] %v7915_v57 }
 0x28e   :  { %10448 = vst [vmem:[#allocation158_spill] sm:$0xff] %v7847_v44  ;;  %10462 = vst [vmem:[#allocation172_spill] sm:$0xff] %v7933_v42 }
 0x28f   :  { %10452 = vst [vmem:[#allocation162_spill] sm:$0xff] %v7863_v62 }
 0x290   :  { %v7849_v61 = vpop.xlane.xlu0 %1424 }
 0x291   :  { %10449 = vst [vmem:[#allocation159_spill] sm:$0xff] %v7849_v61  ;;  %v7851_v41 = vpop.xlane.xlu1 %1426  ;;  %2060 = vbcast.lane.b32.xlu1 %v2006_v37, 360  ;;  %2056 = vbcast.lane.b32.xlu0 %v2006_v37, 352 }
 0x294   :  { %v7853_v54 = vpop.xlane.xlu0 %1428 }
 0x295   :  { %10450 = vst [vmem:[#allocation160_spill] sm:$0xff] %v7853_v54  ;;  %v7855_v18 = vpop.xlane.xlu1 %1430  ;;  %2068 = vbcast.lane.b32.xlu1 %v2006_v37, 376  ;;  %2064 = vbcast.lane.b32.xlu0 %v2006_v37, 368  ;;  %v7873_v54 = vadd.f32 %v7051_v14, %v7493_v63  ;;  %v7891_v14 = vadd.f32 %v7042_v10, %v7518_v34 }
 0x296   :  { %v7901_v63 = vadd.f32 %v7063_v28, %v7545_v2  ;;  %v7919_v28 = vadd.f32 %v7061_v26, %v7563_v60  ;;  %v7929_v34 = vadd.f32 %v7077_v45, %v7588_v21  ;;  %v7943_v60 = vadd.f32 %v7085_v49, %v7608_v58 }
 0x297   :  { %10453 = vst [vmem:[#allocation163_spill] sm:$0xff] %v7873_v54  ;;  %10456 = vst [vmem:[#allocation166_spill] sm:$0xff] %v7891_v14  ;;  %v7947_v45 = vadd.f32 %v10464_v13, %v7603_v33  ;;  %v10470_v13 = vld [vmem:[#allocation29_spill] sm:$0xff] }
 0x298   :  { %v7865_v44 = vpop.xlane.xlu0 %1432  ;;  %10457 = vst [vmem:[#allocation167_spill] sm:$0xff] %v7901_v63  ;;  %10460 = vst [vmem:[#allocation170_spill] sm:$0xff] %v7919_v28 }
 0x299   :  { %v7867_v61 = vpop.xlane.xlu1 %1434  ;;  %2459 = vperm.xlu1 %6043, %v7859_v52   ;;  %2456 = vperm.xlu0 %6042, %v7863_v62   ;;  %10461 = vst [vmem:[#allocation171_spill] sm:$0xff] %v7929_v34  ;;  %10463 = vst [vmem:[#allocation173_spill] sm:$0xff] %v7943_v60 }
 0x29a   :  { %10465 = vst [vmem:[#allocation24_spill] sm:$0xff] %v7947_v45 }
 0x29c   :  { %v7879_v37 = vpop.xlane.xlu0 %1436 }
 0x29d   :  { %v7881_v5 = vpop.xlane.xlu1 %1438  ;;  %2462 = vperm.xlu1 %6043, %v7877_v4   ;;  %2465 = vperm.xlu0 %6042, %v7873_v54  }
 0x2a0   :  { %v7893_v31 = vpop.xlane.xlu0 %1440 }
 0x2a1   :  { %v7895_v9 = vpop.xlane.xlu1 %1442  ;;  %2468 = vperm.xlu1 %6043, %v7891_v14   ;;  %2471 = vperm.xlu0 %6042, %v7887_v55  }
 0x2a4   :  { %v7907_v32 = vpop.xlane.xlu0 %1444 }
 0x2a5   :  { %v7909_v10 = vpop.xlane.xlu1 %1446  ;;  %2474 = vperm.xlu1 %6043, %v7905_v23   ;;  %2477 = vperm.xlu0 %6042, %v7901_v63  }
 0x2a8   :  { %v7921_v2 = vpop.xlane.xlu0 %1448 }
 0x2a9   :  { %v7923_v16 = vpop.xlane.xlu1 %1450  ;;  %2480 = vperm.xlu1 %6043, %v7919_v28   ;;  %2483 = vperm.xlu0 %6042, %v7915_v57   ;;  %v10548_v28 = vld [vmem:[#allocation58_spill] sm:$0xff] }
 0x2ac   :  { %v7935_v24 = vpop.xlane.xlu0 %1452 }
 0x2ad   :  { %2486 = vperm.xlu1 %6043, %v7933_v42   ;;  %v7938_v26 = vpop.xlane.xlu1 %1454  ;;  %2489 = vperm.xlu0 %6042, %v7929_v34   ;;  %v7957_v42 = vadd.f32 %v10466_v1, %v7626_v29  ;;  %v10468_v34 = vld [vmem:[#allocation25_spill] sm:$0xff] }
 0x2ae   :  { %v7961_v49 = vadd.f32 %v10468_v34, %v7621_v6  ;;  %v10474_v34 = vld [vmem:[#allocation31_spill] sm:$0xff] }
 0x2af   :  { %10467 = vst [vmem:[#allocation27_spill] sm:$0xff] %v7957_v42  ;;  %v7985_v57 = vadd.f32 %v10474_v34, %v7662_v17 }
 0x2b0   :  { %v7949_v21 = vpop.permute.xlu0 %1874  ;;  %10469 = vst [vmem:[#allocation25_spill] sm:$0xff] %v7961_v49 }
 0x2b1   :  { %2492 = vperm.xlu1 %6043, %v7947_v45   ;;  %v7952_v36 = vpop.permute.xlu1 %1867  ;;  %2495 = vperm.xlu0 %6042, %v7943_v60   ;;  %v7971_v45 = vadd.f32 %v10470_v13, %v7646_v50  ;;  %v10472_v60 = vld [vmem:[#allocation26_spill] sm:$0xff]  ;;  %10475 = vst [vmem:[#allocation31_spill] sm:$0xff] %v7985_v57 }
 0x2b2   :  { %v7975_v29 = vadd.f32 %v10472_v60, %v7643_v19  ;;  %v10478_v60 = vld [vmem:[#allocation33_spill] sm:$0xff] }
 0x2b3   :  { %10471 = vst [vmem:[#allocation29_spill] sm:$0xff] %v7971_v45  ;;  %v7999_v63 = vadd.f32 %v10478_v60, %v7676_v51 }
 0x2b4   :  { %v7963_v58 = vpop.permute.xlu0 %1882  ;;  %10473 = vst [vmem:[#allocation26_spill] sm:$0xff] %v7975_v29 }
 0x2b5   :  { %2498 = vperm.xlu1 %6043, %v7961_v49   ;;  %v7966_v33 = vpop.permute.xlu1 %1878  ;;  %2501 = vperm.xlu0 %6042, %v7957_v42   ;;  %v10476_v42 = vld [vmem:[#allocation28_spill] sm:$0xff]  ;;  %10479 = vst [vmem:[#allocation33_spill] sm:$0xff] %v7999_v63 }
 0x2b6   :  { %v7989_v50 = vadd.f32 %v10476_v42, %v7659_v47  ;;  %v10482_v42 = vld [vmem:[#allocation35_spill] sm:$0xff]  ;;  %v10540_v49 = vld [vmem:[#allocation56_spill] sm:$0xff] }
 0x2b7   :  { %v8013_v23 = vadd.f32 %v10482_v42, %v7688_v12 }
 0x2b8   :  { %v7977_v1 = vpop.permute.xlu0 %1890  ;;  %10477 = vst [vmem:[#allocation28_spill] sm:$0xff] %v7989_v50 }
 0x2b9   :  { %2504 = vperm.xlu1 %6043, %v7975_v29   ;;  %v7980_v6 = vpop.permute.xlu1 %1886  ;;  %2507 = vperm.xlu0 %6042, %v7971_v45   ;;  %v10480_v45 = vld [vmem:[#allocation30_spill] sm:$0xff]  ;;  %10483 = vst [vmem:[#allocation35_spill] sm:$0xff] %v8013_v23 }
 0x2ba   :  { %v8003_v17 = vadd.f32 %v10480_v45, %v7673_v8  ;;  %v10486_v45 = vld [vmem:[#allocation37_spill] sm:$0xff]  ;;  %v10534_v29 = vld [vmem:[#allocation54_spill] sm:$0xff] }
 0x2bb   :  { %v8027_v55 = vadd.f32 %v10486_v45, %v7700_v53 }
 0x2bc   :  { %v7991_v13 = vpop.permute.xlu0 %1898  ;;  %10481 = vst [vmem:[#allocation30_spill] sm:$0xff] %v8003_v17 }
 0x2bd   :  { %2510 = vperm.xlu1 %6043, %v7989_v50   ;;  %v7994_v19 = vpop.permute.xlu1 %1894  ;;  %2513 = vperm.xlu0 %6042, %v7985_v57   ;;  %v10484_v57 = vld [vmem:[#allocation32_spill] sm:$0xff]  ;;  %10487 = vst [vmem:[#allocation37_spill] sm:$0xff] %v8027_v55 }
 0x2be   :  { %v8017_v51 = vadd.f32 %v10484_v57, %v7685_v27  ;;  %v10490_v57 = vld [vmem:[#allocation39_spill] sm:$0xff]  ;;  %v10528_v50 = vld [vmem:[#allocation52_spill] sm:$0xff] }
 0x2c0   :  { %v8005_v34 = vpop.permute.xlu0 %1906  ;;  %10485 = vst [vmem:[#allocation32_spill] sm:$0xff] %v8017_v51 }
 0x2c1   :  { %2516 = vperm.xlu1 %6043, %v8003_v17   ;;  %v8008_v47 = vpop.permute.xlu1 %1902  ;;  %2519 = vperm.xlu0 %6042, %v7999_v63   ;;  %v10488_v63 = vld [vmem:[#allocation34_spill] sm:$0xff] }
 0x2c2   :  { %v8031_v12 = vadd.f32 %v10488_v63, %v7697_v3  ;;  %v10494_v63 = vld [vmem:[#allocation41_spill] sm:$0xff]  ;;  %v10522_v17 = vld [vmem:[#allocation50_spill] sm:$0xff] }
 0x2c4   :  { %v8019_v60 = vpop.permute.xlu0 %1914  ;;  %10489 = vst [vmem:[#allocation34_spill] sm:$0xff] %v8031_v12 }
 0x2c5   :  { %2522 = vperm.xlu1 %6043, %v8017_v51   ;;  %v8022_v8 = vpop.permute.xlu1 %1910  ;;  %2525 = vperm.xlu0 %6042, %v8013_v23   ;;  %v8041_v51 = vadd.f32 %v10490_v57, %v7712_v48  ;;  %v10492_v23 = vld [vmem:[#allocation36_spill] sm:$0xff] }
 0x2c6   :  { %v8045_v53 = vadd.f32 %v10492_v23, %v7709_v43  ;;  %v10498_v23 = vld [vmem:[#allocation43_spill] sm:$0xff] }
 0x2c7   :  { %10491 = vst [vmem:[#allocation39_spill] sm:$0xff] %v8041_v51 }
 0x2c8   :  { %v8033_v42 = vpop.permute.xlu0 %1922  ;;  %10493 = vst [vmem:[#allocation36_spill] sm:$0xff] %v8045_v53 }
 0x2c9   :  { %2528 = vperm.xlu1 %6043, %v8031_v12   ;;  %v8036_v27 = vpop.permute.xlu1 %1918  ;;  %2531 = vperm.xlu0 %6042, %v8027_v55   ;;  %v8055_v12 = vadd.f32 %v10494_v63, %v7724_v46  ;;  %v10496_v55 = vld [vmem:[#allocation38_spill] sm:$0xff] }
 0x2ca   :  { %v8059_v48 = vadd.f32 %v10496_v55, %v7721_v22  ;;  %v10502_v55 = vld [vmem:[#allocation45_spill] sm:$0xff] }
 0x2cb   :  { %10495 = vst [vmem:[#allocation41_spill] sm:$0xff] %v8055_v12 }
 0x2cc   :  { %v8047_v45 = vpop.permute.xlu0 %1930  ;;  %10497 = vst [vmem:[#allocation38_spill] sm:$0xff] %v8059_v48 }
 0x2cd   :  { %2534 = vperm.xlu1 %6043, %v8045_v53   ;;  %v8050_v3 = vpop.permute.xlu1 %1926  ;;  %2537 = vperm.xlu0 %6042, %v8041_v51   ;;  %v8069_v53 = vadd.f32 %v10498_v23, %v7732_v40  ;;  %v10500_v51 = vld [vmem:[#allocation40_spill] sm:$0xff] }
 0x2ce   :  { %v8073_v46 = vadd.f32 %v10500_v51, %v7730_v35  ;;  %v10506_v51 = vld [vmem:[#allocation47_spill] sm:$0xff] }
 0x2cf   :  { %10499 = vst [vmem:[#allocation43_spill] sm:$0xff] %v8069_v53 }
 0x2d0   :  { %v8061_v57 = vpop.permute.xlu0 %1941  ;;  %10501 = vst [vmem:[#allocation40_spill] sm:$0xff] %v8073_v46 }
 0x2d1   :  { %2540 = vperm.xlu1 %6043, %v8059_v48   ;;  %v8064_v43 = vpop.permute.xlu1 %1934  ;;  %2543 = vperm.xlu0 %6042, %v8055_v12   ;;  %v8083_v48 = vadd.f32 %v10502_v55, %v7740_v20  ;;  %v10504_v12 = vld [vmem:[#allocation42_spill] sm:$0xff] }
 0x2d2   :  { %v8087_v40 = vadd.f32 %v10504_v12, %v7738_v56  ;;  %v10510_v12 = vld [vmem:[#allocation49_spill] sm:$0xff] }
 0x2d3   :  { %10503 = vst [vmem:[#allocation45_spill] sm:$0xff] %v8083_v48 }
 0x2d4   :  { %v8075_v63 = vpop.permute.xlu0 %1949  ;;  %10505 = vst [vmem:[#allocation42_spill] sm:$0xff] %v8087_v40 }
 0x2d5   :  { %2546 = vperm.xlu1 %6043, %v8073_v46   ;;  %v8078_v22 = vpop.permute.xlu1 %1945  ;;  %2549 = vperm.xlu0 %6042, %v8069_v53   ;;  %v8097_v46 = vadd.f32 %v10506_v51, %v7755_v39  ;;  %v10508_v53 = vld [vmem:[#allocation44_spill] sm:$0xff] }
 0x2d6   :  { %v8101_v20 = vadd.f32 %v10508_v53, %v7753_v59  ;;  %v10514_v53 = vld [vmem:[#allocation51_spill] sm:$0xff] }
 0x2d7   :  { %10507 = vst [vmem:[#allocation47_spill] sm:$0xff] %v8097_v46 }
 0x2d8   :  { %v8089_v23 = vpop.permute.xlu0 %1957  ;;  %10509 = vst [vmem:[#allocation44_spill] sm:$0xff] %v8101_v20 }
 0x2d9   :  { %2552 = vperm.xlu1 %6043, %v8087_v40   ;;  %v8092_v35 = vpop.permute.xlu1 %1953  ;;  %2555 = vperm.xlu0 %6042, %v8083_v48   ;;  %v8111_v40 = vadd.f32 %v10510_v12, %v7763_v11  ;;  %v10512_v48 = vld [vmem:[#allocation46_spill] sm:$0xff] }
 0x2da   :  { %v8115_v39 = vadd.f32 %v10512_v48, %v7761_v0  ;;  %v10518_v48 = vld [vmem:[#allocation129_spill] sm:$0xff] }
 0x2db   :  { %10511 = vst [vmem:[#allocation49_spill] sm:$0xff] %v8111_v40 }
 0x2dc   :  { %v8103_v55 = vpop.permute.xlu0 %1965  ;;  %10513 = vst [vmem:[#allocation46_spill] sm:$0xff] %v8115_v39 }
 0x2dd   :  { %2558 = vperm.xlu1 %6043, %v8101_v20   ;;  %v8106_v56 = vpop.permute.xlu1 %1961  ;;  %2561 = vperm.xlu0 %6042, %v8097_v46   ;;  %v8125_v20 = vadd.f32 %v10514_v53, %v7771_v25  ;;  %v10516_v46 = vld [vmem:[#allocation48_spill] sm:$0xff] }
 0x2de   :  { %v8129_v11 = vadd.f32 %v10516_v46, %v7769_v7  ;;  %v10524_v46 = vld [vmem:[#allocation131_spill] sm:$0xff] }
 0x2df   :  { %10515 = vst [vmem:[#allocation51_spill] sm:$0xff] %v8125_v20 }
 0x2e0   :  { %v8117_v51 = vpop.permute.xlu0 %1973  ;;  %10517 = vst [vmem:[#allocation48_spill] sm:$0xff] %v8129_v11 }
 0x2e1   :  { %2564 = vperm.xlu1 %6043, %v8115_v39   ;;  %v8120_v59 = vpop.permute.xlu1 %1969  ;;  %2567 = vperm.xlu0 %6042, %v8111_v40   ;;  %v10519_v39 = vld [vmem:[#allocation53_spill] sm:$0xff]  ;;  %v10521_v40 = vld [vmem:[#allocation128_spill] sm:$0xff] }
 0x2e2   :  { %v8139_v14 = vadd.f32 %v10519_v39, %v10518_v48  ;;  %v8143_v25 = vadd.f32 %v10522_v17, %v10521_v40  ;;  %v10530_v40 = vld [vmem:[#allocation133_spill] sm:$0xff] }
 0x2e4   :  { %v8131_v12 = vpop.permute.xlu0 %1981  ;;  %10520 = vst [vmem:[#allocation129_spill] sm:$0xff] %v8139_v14  ;;  %10523 = vst [vmem:[#allocation53_spill] sm:$0xff] %v8143_v25 }
 0x2e5   :  { %2570 = vperm.xlu1 %6043, %v8129_v11   ;;  %v8134_v0 = vpop.permute.xlu1 %1977  ;;  %2573 = vperm.xlu0 %6042, %v8125_v20   ;;  %v10525_v11 = vld [vmem:[#allocation55_spill] sm:$0xff]  ;;  %v10527_v20 = vld [vmem:[#allocation130_spill] sm:$0xff] }
 0x2e6   :  { %v8153_v54 = vadd.f32 %v10525_v11, %v10524_v46  ;;  %v8157_v39 = vadd.f32 %v10528_v50, %v10527_v20  ;;  %v10536_v20 = vld [vmem:[#allocation135_spill] sm:$0xff] }
 0x2e8   :  { %v8145_v53 = vpop.permute.xlu0 %1989  ;;  %10526 = vst [vmem:[#allocation128_spill] sm:$0xff] %v8153_v54  ;;  %10529 = vst [vmem:[#allocation50_spill] sm:$0xff] %v8157_v39 }
 0x2e9   :  { %2576 = vperm.xlu1 %6043, %v8143_v25   ;;  %v8148_v7 = vpop.permute.xlu1 %1985  ;;  %2579 = vperm.xlu0 %6042, %v8139_v14   ;;  %v10531_v25 = vld [vmem:[#allocation57_spill] sm:$0xff]  ;;  %v10533_v14 = vld [vmem:[#allocation132_spill] sm:$0xff] }
 0x2ea   :  { %v8167_v4 = vadd.f32 %v10531_v25, %v10530_v40  ;;  %v8171_v11 = vadd.f32 %v10534_v29, %v10533_v14  ;;  %v10544_v29 = vld [vmem:[#allocation137_spill] sm:$0xff] }
 0x2ec   :  { %v8159_v48 = vpop.permute.xlu0 %1997  ;;  %10532 = vst [vmem:[#allocation131_spill] sm:$0xff] %v8167_v4  ;;  %10535 = vst [vmem:[#allocation55_spill] sm:$0xff] %v8171_v11 }
 0x2ed   :  { %2582 = vperm.xlu1 %6043, %v8157_v39   ;;  %v8162_v17 = vpop.permute.xlu1 %1993  ;;  %2585 = vperm.xlu0 %6042, %v8153_v54   ;;  %v10537_v39 = vld [vmem:[#allocation59_spill] sm:$0xff]  ;;  %v10539_v54 = vld [vmem:[#allocation134_spill] sm:$0xff] }
 0x2ee   :  { %v8181_v52 = vadd.f32 %v10537_v39, %v10536_v20  ;;  %v8185_v25 = vadd.f32 %v10540_v49, %v10539_v54  ;;  %v10552_v49 = vld [vmem:[#allocation139_spill] sm:$0xff] }
 0x2f0   :  { %v8173_v46 = vpop.permute.xlu0 %2008  ;;  %10538 = vst [vmem:[#allocation130_spill] sm:$0xff] %v8181_v52  ;;  %10541 = vst [vmem:[#allocation52_spill] sm:$0xff] %v8185_v25 }
 0x2f1   :  { %2588 = vperm.xlu1 %6043, %v8171_v11   ;;  %v8176_v50 = vpop.permute.xlu1 %2001  ;;  %2591 = vperm.xlu0 %6042, %v8167_v4   ;;  %v10545_v11 = vld [vmem:[#allocation61_spill] sm:$0xff]  ;;  %v10547_v4 = vld [vmem:[#allocation136_spill] sm:$0xff] }
 0x2f2   :  { %v8195_v62 = vadd.f32 %v10545_v11, %v10544_v29  ;;  %v8199_v39 = vadd.f32 %v10548_v28, %v10547_v4  ;;  %v10560_v28 = vld [vmem:[#allocation141_spill] sm:$0xff] }
 0x2f4   :  { %v8187_v40 = vpop.permute.xlu0 %2016  ;;  %10546 = vst [vmem:[#allocation132_spill] sm:$0xff] %v8195_v62  ;;  %10549 = vst [vmem:[#allocation54_spill] sm:$0xff] %v8199_v39 }
 0x2f5   :  { %10542 = vst [vmem:[#allocation133_spill] sm:$0xff] %v8187_v40  ;;  %2594 = vperm.xlu1 %6043, %v8185_v25   ;;  %v8190_v14 = vpop.permute.xlu1 %2012  ;;  %2597 = vperm.xlu0 %6042, %v8181_v52   ;;  %v10553_v25 = vld [vmem:[#allocation63_spill] sm:$0xff]  ;;  %v10555_v52 = vld [vmem:[#allocation138_spill] sm:$0xff] }
 0x2f6   :  { %10543 = vst [vmem:[#allocation57_spill] sm:$0xff] %v8190_v14  ;;  %v8209_v40 = vadd.f32 %v10553_v25, %v10552_v49  ;;  %v10556_v14 = vld [vmem:[#allocation60_spill] sm:$0xff] }
 0x2f7   :  { %v8213_v11 = vadd.f32 %v10556_v14, %v10555_v52  ;;  %v10568_v14 = vld [vmem:[#allocation143_spill] sm:$0xff] }
 0x2f8   :  { %v8201_v20 = vpop.permute.xlu0 %2024  ;;  %10554 = vst [vmem:[#allocation134_spill] sm:$0xff] %v8209_v40 }
 0x2f9   :  { %10550 = vst [vmem:[#allocation135_spill] sm:$0xff] %v8201_v20  ;;  %2600 = vperm.xlu1 %6043, %v8199_v39   ;;  %v8204_v54 = vpop.permute.xlu1 %2020  ;;  %2603 = vperm.xlu0 %6042, %v8195_v62   ;;  %10557 = vst [vmem:[#allocation56_spill] sm:$0xff] %v8213_v11  ;;  %v10561_v39 = vld [vmem:[#allocation65_spill] sm:$0xff]  ;;  %v10563_v62 = vld [vmem:[#allocation140_spill] sm:$0xff] }
 0x2fa   :  { %10551 = vst [vmem:[#allocation59_spill] sm:$0xff] %v8204_v54  ;;  %v8223_v20 = vadd.f32 %v10561_v39, %v10560_v28  ;;  %v10564_v54 = vld [vmem:[#allocation62_spill] sm:$0xff] }
 0x2fb   :  { %v8227_v25 = vadd.f32 %v10564_v54, %v10563_v62  ;;  %v10576_v54 = vld [vmem:[#allocation145_spill] sm:$0xff] }
 0x2fc   :  { %v8215_v29 = vpop.permute.xlu0 %2032  ;;  %10562 = vst [vmem:[#allocation136_spill] sm:$0xff] %v8223_v20 }
 0x2fd   :  { %10558 = vst [vmem:[#allocation137_spill] sm:$0xff] %v8215_v29  ;;  %2606 = vperm.xlu1 %6043, %v8213_v11   ;;  %v8218_v4 = vpop.permute.xlu1 %2028  ;;  %2609 = vperm.xlu0 %6042, %v8209_v40   ;;  %10565 = vst [vmem:[#allocation58_spill] sm:$0xff] %v8227_v25  ;;  %v10569_v11 = vld [vmem:[#allocation67_spill] sm:$0xff]  ;;  %v10571_v40 = vld [vmem:[#allocation142_spill] sm:$0xff] }
 0x2fe   :  { %10559 = vst [vmem:[#allocation61_spill] sm:$0xff] %v8218_v4  ;;  %v8237_v29 = vadd.f32 %v10569_v11, %v10568_v14  ;;  %v10572_v4 = vld [vmem:[#allocation64_spill] sm:$0xff]  ;;  %v10584_v14 = vld [vmem:[#allocation147_spill] sm:$0xff] }
 0x2ff   :  { %v8241_v39 = vadd.f32 %v10572_v4, %v10571_v40 }
 0x300   :  { %v8229_v49 = vpop.permute.xlu0 %2040  ;;  %10570 = vst [vmem:[#allocation138_spill] sm:$0xff] %v8237_v29 }
 0x301   :  { %10566 = vst [vmem:[#allocation139_spill] sm:$0xff] %v8229_v49  ;;  %2612 = vperm.xlu1 %6043, %v8227_v25   ;;  %v8232_v52 = vpop.permute.xlu1 %2036  ;;  %2615 = vperm.xlu0 %6042, %v8223_v20   ;;  %10573 = vst [vmem:[#allocation60_spill] sm:$0xff] %v8241_v39  ;;  %v10577_v25 = vld [vmem:[#allocation69_spill] sm:$0xff]  ;;  %v10579_v20 = vld [vmem:[#allocation144_spill] sm:$0xff] }
 0x302   :  { %10567 = vst [vmem:[#allocation63_spill] sm:$0xff] %v8232_v52  ;;  %v8251_v49 = vadd.f32 %v10577_v25, %v10576_v54  ;;  %v10580_v52 = vld [vmem:[#allocation66_spill] sm:$0xff]  ;;  %v10591_v54 = vld [vmem:[#allocation73_spill] sm:$0xff] }
 0x303   :  { %v8255_v11 = vadd.f32 %v10580_v52, %v10579_v20  ;;  %v10590_v52 = vld [vmem:[#allocation149_spill] sm:$0xff] }
 0x304   :  { %v8243_v28 = vpop.permute.xlu0 %2048  ;;  %10578 = vst [vmem:[#allocation140_spill] sm:$0xff] %v8251_v49 }
 0x305   :  { %10574 = vst [vmem:[#allocation141_spill] sm:$0xff] %v8243_v28  ;;  %2618 = vperm.xlu1 %6043, %v8241_v39   ;;  %v8246_v62 = vpop.permute.xlu1 %2044  ;;  %2621 = vperm.xlu0 %6042, %v8237_v29   ;;  %10581 = vst [vmem:[#allocation62_spill] sm:$0xff] %v8255_v11  ;;  %v10585_v39 = vld [vmem:[#allocation71_spill] sm:$0xff]  ;;  %v10587_v29 = vld [vmem:[#allocation146_spill] sm:$0xff] }
 0x306   :  { %10575 = vst [vmem:[#allocation65_spill] sm:$0xff] %v8246_v62  ;;  %v8265_v28 = vadd.f32 %v10585_v39, %v10584_v14  ;;  %v10588_v62 = vld [vmem:[#allocation68_spill] sm:$0xff] }
 0x307   :  { %v8269_v25 = vadd.f32 %v10588_v62, %v10587_v29  ;;  %v10597_v62 = vld [vmem:[#allocation75_spill] sm:$0xff] }
 0x308   :  { %v8261_v4 = vpop.permute.xlu0 %2056  ;;  %10586 = vst [vmem:[#allocation142_spill] sm:$0xff] %v8265_v28  ;;  %v8291_v14 = vadd.f32 %v10597_v62, %v7827_v30 }
 0x309   :  { %2624 = vperm.xlu1 %6043, %v8255_v11   ;;  %v8258_v40 = vpop.permute.xlu1 %2052  ;;  %2627 = vperm.xlu0 %6042, %v8251_v49   ;;  %10583 = vst [vmem:[#allocation67_spill] sm:$0xff] %v8261_v4  ;;  %10589 = vst [vmem:[#allocation64_spill] sm:$0xff] %v8269_v25  ;;  %v8277_v11 = vadd.f32 %v10591_v54, %v10590_v52  ;;  %v10593_v49 = vld [vmem:[#allocation148_spill] sm:$0xff]  ;;  %v10594_v4 = vld [vmem:[#allocation70_spill] sm:$0xff] }
 0x30a   :  { %10582 = vst [vmem:[#allocation143_spill] sm:$0xff] %v8258_v40  ;;  %v8281_v40 = vadd.f32 %v10594_v4, %v10593_v49  ;;  %10598 = vst [vmem:[#allocation66_spill] sm:$0xff] %v8291_v14  ;;  %v10603_v4 = vld [vmem:[#allocation151_spill] sm:$0xff] }
 0x30b   :  { %10592 = vst [vmem:[#allocation145_spill] sm:$0xff] %v8277_v11 }
 0x30c   :  { %10595 = vst [vmem:[#allocation69_spill] sm:$0xff] %v8281_v40  ;;  %v8283_v39 = vpop.permute.xlu0 %2064 }
 0x30d   :  { %2630 = vperm.xlu1 %6043, %v8269_v25   ;;  %v8272_v20 = vpop.permute.xlu1 %2060  ;;  %2633 = vperm.xlu0 %6042, %v8265_v28   ;;  %v10599_v28 = vld [vmem:[#allocation72_spill] sm:$0xff] }
 0x30e   :  { %v8295_v52 = vadd.f32 %v10599_v28, %v7825_v38  ;;  %v10611_v28 = vld [vmem:[#allocation153_spill] sm:$0xff] }
 0x310   :  { %10600 = vst [vmem:[#allocation147_spill] sm:$0xff] %v8295_v52 }
 0x311   :  { %2636 = vperm.xlu1 %6043, %v8281_v40   ;;  %v8286_v29 = vpop.permute.xlu1 %2068  ;;  %2639 = vperm.xlu0 %6042, %v8277_v11   ;;  %v10604_v40 = vld [vmem:[#allocation77_spill] sm:$0xff]  ;;  %v10606_v11 = vld [vmem:[#allocation150_spill] sm:$0xff] }
 0x312   :  { %10596 = vst [vmem:[#allocation144_spill] sm:$0xff] %v8286_v29  ;;  %v8305_v25 = vadd.f32 %v10604_v40, %v10603_v4  ;;  %v10607_v29 = vld [vmem:[#allocation74_spill] sm:$0xff] }
 0x313   :  { %v8309_v30 = vadd.f32 %v10607_v29, %v10606_v11  ;;  %v10618_v29 = vld [vmem:[#allocation155_spill] sm:$0xff] }
 0x314   :  { %v8297_v54 = vpop.permute.xlu0 %2456  ;;  %10605 = vst [vmem:[#allocation68_spill] sm:$0xff] %v8305_v25 }
 0x315   :  { %10601 = vst [vmem:[#allocation71_spill] sm:$0xff] %v8297_v54  ;;  %2642 = vperm.xlu1 %6043, %v8295_v52   ;;  %v8300_v49 = vpop.permute.xlu1 %2459  ;;  %2645 = vperm.xlu0 %6042, %v8291_v14   ;;  %10608 = vst [vmem:[#allocation149_spill] sm:$0xff] %v8309_v30  ;;  %v10612_v52 = vld [vmem:[#allocation79_spill] sm:$0xff]  ;;  %v10614_v14 = vld [vmem:[#allocation152_spill] sm:$0xff] }
 0x316   :  { %10602 = vst [vmem:[#allocation146_spill] sm:$0xff] %v8300_v49  ;;  %v8319_v54 = vadd.f32 %v10612_v52, %v10611_v28  ;;  %v10615_v49 = vld [vmem:[#allocation76_spill] sm:$0xff] }
 0x317   :  { %v8323_v40 = vadd.f32 %v10615_v49, %v10614_v14  ;;  %v10626_v49 = vld [vmem:[#allocation83_spill] sm:$0xff] }
 0x318   :  { %v8311_v62 = vpop.permute.xlu0 %2465  ;;  %10613 = vst [vmem:[#allocation70_spill] sm:$0xff] %v8319_v54 }
 0x319   :  { %10609 = vst [vmem:[#allocation73_spill] sm:$0xff] %v8311_v62  ;;  %2648 = vperm.xlu1 %6043, %v8309_v30   ;;  %v8314_v38 = vpop.permute.xlu1 %2462  ;;  %2651 = vperm.xlu0 %6042, %v8305_v25   ;;  %10616 = vst [vmem:[#allocation75_spill] sm:$0xff] %v8323_v40  ;;  %v10619_v30 = vld [vmem:[#allocation81_spill] sm:$0xff]  ;;  %v10621_v25 = vld [vmem:[#allocation154_spill] sm:$0xff] }
 0x31a   :  { %10610 = vst [vmem:[#allocation148_spill] sm:$0xff] %v8314_v38  ;;  %v8333_v62 = vadd.f32 %v10619_v30, %v10618_v29  ;;  %v10622_v38 = vld [vmem:[#allocation78_spill] sm:$0xff] }
 0x31b   :  { %v8337_v52 = vadd.f32 %v10622_v38, %v10621_v25  ;;  %v10632_v38 = vld [vmem:[#allocation158_spill] sm:$0xff] }
 0x31c   :  { %v8325_v4 = vpop.permute.xlu0 %2471  ;;  %10620 = vst [vmem:[#allocation151_spill] sm:$0xff] %v8333_v62 }
 0x31d   :  { %10617 = vst [vmem:[#allocation72_spill] sm:$0xff] %v8325_v4  ;;  %2654 = vperm.xlu1 %6043, %v8323_v40   ;;  %v8328_v11 = vpop.permute.xlu1 %2468  ;;  %2657 = vperm.xlu0 %6042, %v8319_v54   ;;  %10623 = vst [vmem:[#allocation77_spill] sm:$0xff] %v8337_v52  ;;  %v8347_v40 = vadd.f32 %v10626_v49, %v7843_v15  ;;  %v10628_v54 = vld [vmem:[#allocation156_spill] sm:$0xff] }
 0x31e   :  { %v10629_v4 = vld [vmem:[#allocation80_spill] sm:$0xff] }
 0x31f   :  { %10627 = vst [vmem:[#allocation153_spill] sm:$0xff] %v8347_v40  ;;  %v8351_v30 = vadd.f32 %v10629_v4, %v10628_v54  ;;  %v10639_v4 = vld [vmem:[#allocation87_spill] sm:$0xff] }
 0x320   :  { %v8339_v28 = vpop.permute.xlu0 %2477 }
 0x321   :  { %10624 = vst [vmem:[#allocation150_spill] sm:$0xff] %v8339_v28  ;;  %2660 = vperm.xlu1 %6043, %v8337_v52   ;;  %v8342_v14 = vpop.permute.xlu1 %2474  ;;  %2663 = vperm.xlu0 %6042, %v8333_v62   ;;  %10630 = vst [vmem:[#allocation79_spill] sm:$0xff] %v8351_v30  ;;  %v10633_v52 = vld [vmem:[#allocation85_spill] sm:$0xff] }
 0x322   :  { %10625 = vst [vmem:[#allocation74_spill] sm:$0xff] %v8342_v14  ;;  %v8361_v28 = vadd.f32 %v10633_v52, %v10632_v38  ;;  %v10635_v62 = vld [vmem:[#allocation157_spill] sm:$0xff]  ;;  %v10636_v14 = vld [vmem:[#allocation82_spill] sm:$0xff] }
 0x323   :  { %v8365_v15 = vadd.f32 %v10636_v14, %v10635_v62  ;;  %v10644_v14 = vld [vmem:[#allocation89_spill] sm:$0xff] }
 0x324   :  { %v8353_v29 = vpop.permute.xlu0 %2483  ;;  %10634 = vst [vmem:[#allocation76_spill] sm:$0xff] %v8361_v28 }
 0x325   :  { %10631 = vst [vmem:[#allocation152_spill] sm:$0xff] %v8353_v29  ;;  %2666 = vperm.xlu1 %6043, %v8351_v30   ;;  %v8356_v25 = vpop.permute.xlu1 %2480  ;;  %2669 = vperm.xlu0 %6042, %v8347_v40   ;;  %10637 = vst [vmem:[#allocation155_spill] sm:$0xff] %v8365_v15  ;;  %v8375_v30 = vadd.f32 %v10639_v4, %v7851_v41  ;;  %v10641_v40 = vld [vmem:[#allocation159_spill] sm:$0xff]  ;;  %v10642_v29 = vld [vmem:[#allocation84_spill] sm:$0xff] }
 0x326   :  { %v8379_v52 = vadd.f32 %v10642_v29, %v10641_v40  ;;  %v10650_v29 = vld [vmem:[#allocation88_spill] sm:$0xff] }
 0x327   :  { %10640 = vst [vmem:[#allocation154_spill] sm:$0xff] %v8375_v30 }
 0x328   :  { %v8367_v49 = vpop.permute.xlu0 %2489  ;;  %10643 = vst [vmem:[#allocation78_spill] sm:$0xff] %v8379_v52 }
 0x329   :  { %10638 = vst [vmem:[#allocation81_spill] sm:$0xff] %v8367_v49  ;;  %2672 = vperm.xlu1 %6043, %v8365_v15   ;;  %v8370_v54 = vpop.permute.xlu1 %2486  ;;  %2675 = vperm.xlu0 %6042, %v8361_v28   ;;  %v8389_v15 = vadd.f32 %v10644_v14, %v7855_v18  ;;  %v10646_v28 = vld [vmem:[#allocation160_spill] sm:$0xff]  ;;  %v10647_v49 = vld [vmem:[#allocation86_spill] sm:$0xff]  ;;  %v8407_v18 = vadd.f32 %v7952_v36, %v7867_v61 }
 0x32a   :  { %v8393_v41 = vadd.f32 %v10647_v49, %v10646_v28  ;;  %v8417_v49 = vadd.f32 %v7949_v21, %v7879_v37  ;;  %v8431_v36 = vadd.f32 %v7963_v58, %v7893_v31  ;;  %v8435_v37 = vadd.f32 %v7980_v6, %v7895_v9 }
 0x32b   :  { %10645 = vst [vmem:[#allocation83_spill] sm:$0xff] %v8389_v15  ;;  %10652 = vst [vmem:[#allocation85_spill] sm:$0xff] %v8407_v18  ;;  %v8449_v31 = vadd.f32 %v7994_v19, %v7909_v10  ;;  %v8459_v6 = vadd.f32 %v7991_v13, %v7921_v2  ;;  %v8473_v19 = vadd.f32 %v8005_v34, %v7935_v24 }
 0x32c   :  { %v8381_v38 = vpop.permute.xlu0 %2495  ;;  %10648 = vst [vmem:[#allocation156_spill] sm:$0xff] %v8393_v41  ;;  %10653 = vst [vmem:[#allocation157_spill] sm:$0xff] %v8417_v49  ;;  %v8477_v2 = vadd.f32 %v8022_v8, %v7938_v26  ;;  %v10667_v8 = vld [vmem:[#allocation93_spill] sm:$0xff] }
 0x32d   :  { %2678 = vperm.xlu1 %6043, %v8379_v52   ;;  %v8384_v62 = vpop.permute.xlu1 %2492  ;;  %2681 = vperm.xlu0 %6042, %v8375_v30   ;;  %v8403_v52 = vadd.f32 %v10650_v29, %v7865_v44  ;;  %v8421_v44 = vadd.f32 %v7966_v33, %v7881_v5  ;;  %10655 = vst [vmem:[#allocation87_spill] sm:$0xff] %v8431_v36  ;;  %10656 = vst [vmem:[#allocation159_spill] sm:$0xff] %v8435_v37 }
 0x32e   :  { %v8445_v33 = vadd.f32 %v7977_v1, %v7907_v32  ;;  %10658 = vst [vmem:[#allocation89_spill] sm:$0xff] %v8449_v31  ;;  %10659 = vst [vmem:[#allocation160_spill] sm:$0xff] %v8459_v6  ;;  %v8463_v32 = vadd.f32 %v8008_v47, %v7923_v16  ;;  %v10663_v47 = vld [vmem:[#allocation91_spill] sm:$0xff]  ;;  %v8501_v30 = vadd.f32 %v8033_v42, %v10667_v8 }
 0x32f   :  { %10651 = vst [vmem:[#allocation158_spill] sm:$0xff] %v8403_v52  ;;  %10654 = vst [vmem:[#allocation82_spill] sm:$0xff] %v8421_v44 }
 0x330   :  { %v8395_v4 = vpop.permute.xlu0 %2501  ;;  %10657 = vst [vmem:[#allocation84_spill] sm:$0xff] %v8445_v33  ;;  %10660 = vst [vmem:[#allocation86_spill] sm:$0xff] %v8463_v32 }
 0x331   :  { %10649 = vst [vmem:[#allocation80_spill] sm:$0xff] %v8395_v4  ;;  %2684 = vperm.xlu1 %6043, %v8393_v41   ;;  %v8398_v40 = vpop.permute.xlu1 %2498  ;;  %2687 = vperm.xlu0 %6042, %v8389_v15   ;;  %10661 = vst [vmem:[#allocation88_spill] sm:$0xff] %v8473_v19  ;;  %v8487_v15 = vadd.f32 %v8019_v60, %v10663_v47  ;;  %v10665_v41 = vld [vmem:[#allocation90_spill] sm:$0xff] }
 0x332   :  { %10662 = vst [vmem:[#allocation174_spill] sm:$0xff] %v8477_v2  ;;  %v8491_v24 = vadd.f32 %v8036_v27, %v10665_v41  ;;  %10668 = vst [vmem:[#allocation93_spill] sm:$0xff] %v8501_v30  ;;  %v10673_v41 = vld [vmem:[#allocation94_spill] sm:$0xff] }
 0x333   :  { %10664 = vst [vmem:[#allocation91_spill] sm:$0xff] %v8487_v15 }
 0x334   :  { %v8409_v14 = vpop.permute.xlu0 %2507  ;;  %10666 = vst [vmem:[#allocation90_spill] sm:$0xff] %v8491_v24 }
 0x335   :  { %2690 = vperm.xlu1 %6043, %v8403_v52   ;;  %v8412_v28 = vpop.permute.xlu1 %2504  ;;  %2693 = vperm.xlu0 %6042, %v8407_v18   ;;  %v10669_v18 = vld [vmem:[#allocation92_spill] sm:$0xff]  ;;  %v8515_v52 = vadd.f32 %v8047_v45, %v10673_v41 }
 0x336   :  { %v8505_v60 = vadd.f32 %v8050_v3, %v10669_v18  ;;  %v10677_v18 = vld [vmem:[#allocation96_spill] sm:$0xff] }
 0x337   :  { %10674 = vst [vmem:[#allocation94_spill] sm:$0xff] %v8515_v52 }
 0x338   :  { %v8423_v29 = vpop.permute.xlu0 %2513  ;;  %10670 = vst [vmem:[#allocation92_spill] sm:$0xff] %v8505_v60 }
 0x339   :  { %v8425_v61 = vpop.permute.xlu1 %2510  ;;  %2696 = vperm.xlu1 %6043, %v8417_v49   ;;  %2699 = vperm.xlu0 %6042, %v8421_v44   ;;  %v10729_v49 = vld [vmem:[#allocation61_spill] sm:$0xff]  ;;  %v10753_v44 = vld [vmem:[#allocation143_spill] sm:$0xff] }
 0x33c   :  { %v8437_v21 = vpop.permute.xlu0 %2519 }
 0x33d   :  { %v8439_v5 = vpop.permute.xlu1 %2516  ;;  %2702 = vperm.xlu1 %6043, %v8431_v36   ;;  %2705 = vperm.xlu0 %6042, %v8435_v37   ;;  %v10726_v36 = vld [vmem:[#allocation135_spill] sm:$0xff]  ;;  %v10745_v37 = vld [vmem:[#allocation65_spill] sm:$0xff] }
 0x340   :  { %v8451_v58 = vpop.permute.xlu0 %2525 }
 0x341   :  { %v8453_v9 = vpop.permute.xlu1 %2522  ;;  %2708 = vperm.xlu1 %6043, %v8445_v33   ;;  %2711 = vperm.xlu0 %6042, %v8449_v31   ;;  %v10737_v33 = vld [vmem:[#allocation63_spill] sm:$0xff] }
 0x344   :  { %v8465_v1 = vpop.permute.xlu0 %2531 }
 0x345   :  { %v8467_v10 = vpop.permute.xlu1 %2528  ;;  %2714 = vperm.xlu1 %6043, %v8459_v6   ;;  %2717 = vperm.xlu0 %6042, %v8463_v32   ;;  %v10675_v32 = vld [vmem:[#allocation95_spill] sm:$0xff] }
 0x346   :  { %v8519_v42 = vadd.f32 %v8064_v43, %v10675_v32  ;;  %v10681_v32 = vld [vmem:[#allocation98_spill] sm:$0xff] }
 0x348   :  { %v8479_v13 = vpop.permute.xlu0 %2537  ;;  %10676 = vst [vmem:[#allocation95_spill] sm:$0xff] %v8519_v42 }
 0x349   :  { %v8481_v16 = vpop.permute.xlu1 %2534  ;;  %2720 = vperm.xlu1 %6043, %v8473_v19   ;;  %2723 = vperm.xlu0 %6042, %v8477_v2   ;;  %v10691_v2 = vld [vmem:[#allocation103_spill] sm:$0xff] }
 0x34c   :  { %v8493_v34 = vpop.permute.xlu0 %2543 }
 0x34d   :  { %v8495_v26 = vpop.permute.xlu1 %2540  ;;  %2726 = vperm.xlu1 %6043, %v8487_v15   ;;  %2729 = vperm.xlu0 %6042, %v8491_v24   ;;  %v10687_v15 = vld [vmem:[#allocation101_spill] sm:$0xff] }
 0x350   :  { %v8507_v47 = vpop.permute.xlu0 %2549 }
 0x351   :  { %10671 = vst [vmem:[#allocation175_spill] sm:$0xff] %v8507_v47  ;;  %v8509_v27 = vpop.permute.xlu1 %2546  ;;  %2732 = vperm.xlu1 %6043, %v8501_v30   ;;  %2735 = vperm.xlu0 %6042, %v8505_v60   ;;  %v8529_v30 = vadd.f32 %v8061_v57, %v10677_v18  ;;  %v10679_v60 = vld [vmem:[#allocation97_spill] sm:$0xff] }
 0x352   :  { %10672 = vst [vmem:[#allocation176_spill] sm:$0xff] %v8509_v27  ;;  %v8533_v45 = vadd.f32 %v8078_v22, %v10679_v60  ;;  %v10685_v60 = vld [vmem:[#allocation100_spill] sm:$0xff] }
 0x353   :  { %10678 = vst [vmem:[#allocation96_spill] sm:$0xff] %v8529_v30  ;;  %v8557_v24 = vadd.f32 %v8089_v23, %v10685_v60  ;;  %v8575_v23 = vadd.f32 %v8120_v59, %v10691_v2  ;;  %v10698_v2 = vld [vmem:[#allocation106_spill] sm:$0xff] }
 0x354   :  { %v8521_v8 = vpop.permute.xlu0 %2555  ;;  %10680 = vst [vmem:[#allocation97_spill] sm:$0xff] %v8533_v45  ;;  %v8599_v19 = vadd.f32 %v8131_v12, %v10698_v2 }
 0x355   :  { %v8523_v3 = vpop.permute.xlu1 %2552  ;;  %2738 = vperm.xlu1 %6043, %v8515_v52   ;;  %2741 = vperm.xlu0 %6042, %v8519_v42   ;;  %v8543_v52 = vadd.f32 %v8075_v63, %v10681_v32  ;;  %v10683_v42 = vld [vmem:[#allocation99_spill] sm:$0xff]  ;;  %10686 = vst [vmem:[#allocation100_spill] sm:$0xff] %v8557_v24  ;;  %v8561_v63 = vadd.f32 %v8106_v56, %v10687_v15  ;;  %10692 = vst [vmem:[#allocation103_spill] sm:$0xff] %v8575_v23  ;;  %v10693_v15 = vld [vmem:[#allocation104_spill] sm:$0xff] }
 0x356   :  { %v8547_v57 = vadd.f32 %v8092_v35, %v10683_v42  ;;  %v10689_v42 = vld [vmem:[#allocation102_spill] sm:$0xff]  ;;  %10699 = vst [vmem:[#allocation106_spill] sm:$0xff] %v8599_v19 }
 0x357   :  { %10682 = vst [vmem:[#allocation98_spill] sm:$0xff] %v8543_v52  ;;  %10688 = vst [vmem:[#allocation101_spill] sm:$0xff] %v8561_v63  ;;  %v8571_v31 = vadd.f32 %v8103_v55, %v10689_v42 }
 0x358   :  { %v8535_v41 = vpop.permute.xlu0 %2561  ;;  %10684 = vst [vmem:[#allocation99_spill] sm:$0xff] %v8547_v57 }
 0x359   :  { %v8537_v43 = vpop.permute.xlu1 %2558  ;;  %2744 = vperm.xlu1 %6043, %v8529_v30   ;;  %2747 = vperm.xlu0 %6042, %v8533_v45   ;;  %10690 = vst [vmem:[#allocation102_spill] sm:$0xff] %v8571_v31  ;;  %v10723_v45 = vld [vmem:[#allocation59_spill] sm:$0xff] }
 0x35c   :  { %v8549_v18 = vpop.permute.xlu0 %2567 }
 0x35d   :  { %v8551_v22 = vpop.permute.xlu1 %2564  ;;  %2750 = vperm.xlu1 %6043, %v8543_v52   ;;  %2753 = vperm.xlu0 %6042, %v8547_v57   ;;  %v8585_v57 = vadd.f32 %v8117_v51, %v10693_v15  ;;  %v10717_v52 = vld [vmem:[#allocation57_spill] sm:$0xff] }
 0x35f   :  { %10694 = vst [vmem:[#allocation104_spill] sm:$0xff] %v8585_v57 }
 0x360   :  { %v8563_v32 = vpop.permute.xlu0 %2573 }
 0x361   :  { %v8565_v35 = vpop.permute.xlu1 %2570  ;;  %2756 = vperm.xlu1 %6043, %v8557_v24   ;;  %2759 = vperm.xlu0 %6042, %v8561_v63   ;;  %v10695_v63 = vld [vmem:[#allocation105_spill] sm:$0xff] }
 0x362   :  { %v8589_v55 = vadd.f32 %v8134_v0, %v10695_v63  ;;  %v10704_v63 = vld [vmem:[#allocation108_spill] sm:$0xff]  ;;  %v10734_v24 = vld [vmem:[#allocation137_spill] sm:$0xff] }
 0x364   :  { %v8577_v60 = vpop.permute.xlu0 %2579  ;;  %10696 = vst [vmem:[#allocation105_spill] sm:$0xff] %v8589_v55 }
 0x365   :  { %v8579_v56 = vpop.permute.xlu1 %2576  ;;  %2762 = vperm.xlu1 %6043, %v8571_v31   ;;  %2765 = vperm.xlu0 %6042, %v8575_v23   ;;  %v10700_v23 = vld [vmem:[#allocation107_spill] sm:$0xff] }
 0x366   :  { %v8603_v51 = vadd.f32 %v8148_v7, %v10700_v23  ;;  %v10710_v23 = vld [vmem:[#allocation110_spill] sm:$0xff] }
 0x368   :  { %v8591_v42 = vpop.permute.xlu0 %2585  ;;  %10701 = vst [vmem:[#allocation107_spill] sm:$0xff] %v8603_v51 }
 0x369   :  { %10697 = vst [vmem:[#allocation177_spill] sm:$0xff] %v8591_v42  ;;  %v8593_v59 = vpop.permute.xlu1 %2582  ;;  %2768 = vperm.xlu1 %6043, %v8585_v57   ;;  %2771 = vperm.xlu0 %6042, %v8589_v55   ;;  %v8613_v57 = vadd.f32 %v8145_v53, %v10704_v63  ;;  %v10706_v55 = vld [vmem:[#allocation109_spill] sm:$0xff] }
 0x36a   :  { %v8617_v12 = vadd.f32 %v8162_v17, %v10706_v55  ;;  %v10714_v55 = vld [vmem:[#allocation112_spill] sm:$0xff] }
 0x36b   :  { %10705 = vst [vmem:[#allocation108_spill] sm:$0xff] %v8613_v57 }
 0x36c   :  { %v8605_v15 = vpop.permute.xlu0 %2591  ;;  %10707 = vst [vmem:[#allocation109_spill] sm:$0xff] %v8617_v12 }
 0x36d   :  { %10702 = vst [vmem:[#allocation178_spill] sm:$0xff] %v8605_v15  ;;  %v8607_v0 = vpop.permute.xlu1 %2588  ;;  %2774 = vperm.xlu1 %6043, %v8599_v19   ;;  %2777 = vperm.xlu0 %6042, %v8603_v51   ;;  %v8627_v19 = vadd.f32 %v8159_v48, %v10710_v23  ;;  %v10712_v51 = vld [vmem:[#allocation111_spill] sm:$0xff] }
 0x36e   :  { %10703 = vst [vmem:[#allocation179_spill] sm:$0xff] %v8607_v0  ;;  %v8631_v53 = vadd.f32 %v8176_v50, %v10712_v51  ;;  %v10719_v51 = vld [vmem:[#allocation114_spill] sm:$0xff] }
 0x36f   :  { %10711 = vst [vmem:[#allocation110_spill] sm:$0xff] %v8627_v19 }
 0x370   :  { %v8619_v2 = vpop.permute.xlu0 %2597  ;;  %10713 = vst [vmem:[#allocation111_spill] sm:$0xff] %v8631_v53 }
 0x371   :  { %10708 = vst [vmem:[#allocation180_spill] sm:$0xff] %v8619_v2  ;;  %v8621_v7 = vpop.permute.xlu1 %2594  ;;  %2780 = vperm.xlu1 %6043, %v8613_v57   ;;  %2783 = vperm.xlu0 %6042, %v8617_v12   ;;  %v8641_v57 = vadd.f32 %v8173_v46, %v10714_v55  ;;  %v10716_v12 = vld [vmem:[#allocation113_spill] sm:$0xff] }
 0x372   :  { %10709 = vst [vmem:[#allocation181_spill] sm:$0xff] %v8621_v7  ;;  %v8645_v48 = vadd.f32 %v10717_v52, %v10716_v12  ;;  %v10725_v12 = vld [vmem:[#allocation116_spill] sm:$0xff]  ;;  %v10799_v7 = vld [vmem:[#allocation146_spill] sm:$0xff] }
 0x373   :  { %10715 = vst [vmem:[#allocation112_spill] sm:$0xff] %v8641_v57  ;;  %v8669_v6 = vadd.f32 %v10726_v36, %v10725_v12 }
 0x374   :  { %v8633_v63 = vpop.permute.xlu0 %2603  ;;  %10718 = vst [vmem:[#allocation113_spill] sm:$0xff] %v8645_v48 }
 0x375   :  { %v8635_v17 = vpop.permute.xlu1 %2600  ;;  %2786 = vperm.xlu1 %6043, %v8627_v19   ;;  %2789 = vperm.xlu0 %6042, %v8631_v53   ;;  %v10720_v19 = vld [vmem:[#allocation133_spill] sm:$0xff]  ;;  %v10722_v53 = vld [vmem:[#allocation115_spill] sm:$0xff] }
 0x376   :  { %v8655_v31 = vadd.f32 %v10720_v19, %v10719_v51  ;;  %v8659_v46 = vadd.f32 %v10723_v45, %v10722_v53  ;;  %10727 = vst [vmem:[#allocation133_spill] sm:$0xff] %v8669_v6  ;;  %v10733_v53 = vld [vmem:[#allocation118_spill] sm:$0xff] }
 0x378   :  { %v8647_v23 = vpop.permute.xlu0 %2609  ;;  %10721 = vst [vmem:[#allocation57_spill] sm:$0xff] %v8655_v31  ;;  %10724 = vst [vmem:[#allocation114_spill] sm:$0xff] %v8659_v46 }
 0x379   :  { %v8649_v50 = vpop.permute.xlu1 %2606  ;;  %2792 = vperm.xlu1 %6043, %v8641_v57   ;;  %2795 = vperm.xlu0 %6042, %v8645_v48   ;;  %v10728_v48 = vld [vmem:[#allocation117_spill] sm:$0xff] }
 0x37a   :  { %v8673_v19 = vadd.f32 %v10729_v49, %v10728_v48  ;;  %v10741_v48 = vld [vmem:[#allocation120_spill] sm:$0xff] }
 0x37c   :  { %v8661_v55 = vpop.permute.xlu0 %2615  ;;  %10730 = vst [vmem:[#allocation115_spill] sm:$0xff] %v8673_v19 }
 0x37d   :  { %v8663_v52 = vpop.permute.xlu1 %2612  ;;  %2798 = vperm.xlu1 %6043, %v8655_v31   ;;  %2801 = vperm.xlu0 %6042, %v8659_v46   ;;  %v8683_v31 = vadd.f32 %v10734_v24, %v10733_v53  ;;  %v10736_v46 = vld [vmem:[#allocation119_spill] sm:$0xff] }
 0x37e   :  { %v8687_v36 = vadd.f32 %v10737_v33, %v10736_v46  ;;  %v10749_v46 = vld [vmem:[#allocation122_spill] sm:$0xff] }
 0x37f   :  { %10735 = vst [vmem:[#allocation135_spill] sm:$0xff] %v8683_v31 }
 0x380   :  { %v8675_v51 = vpop.permute.xlu0 %2621  ;;  %10738 = vst [vmem:[#allocation117_spill] sm:$0xff] %v8687_v36 }
 0x381   :  { %10731 = vst [vmem:[#allocation59_spill] sm:$0xff] %v8675_v51  ;;  %v8677_v45 = vpop.permute.xlu1 %2618  ;;  %2804 = vperm.xlu1 %6043, %v8669_v6   ;;  %2807 = vperm.xlu0 %6042, %v8673_v19   ;;  %v10742_v6 = vld [vmem:[#allocation139_spill] sm:$0xff]  ;;  %v10744_v19 = vld [vmem:[#allocation121_spill] sm:$0xff] }
 0x382   :  { %10732 = vst [vmem:[#allocation116_spill] sm:$0xff] %v8677_v45  ;;  %v8697_v57 = vadd.f32 %v10742_v6, %v10741_v48  ;;  %v8701_v24 = vadd.f32 %v10745_v37, %v10744_v19  ;;  %v10757_v19 = vld [vmem:[#allocation124_spill] sm:$0xff]  ;;  %v10804_v51 = vld [vmem:[#allocation73_spill] sm:$0xff]  ;;  %v10809_v45 = vld [vmem:[#allocation74_spill] sm:$0xff] }
 0x384   :  { %v8689_v12 = vpop.permute.xlu0 %2627  ;;  %10743 = vst [vmem:[#allocation137_spill] sm:$0xff] %v8697_v57  ;;  %10746 = vst [vmem:[#allocation119_spill] sm:$0xff] %v8701_v24 }
 0x385   :  { %10739 = vst [vmem:[#allocation61_spill] sm:$0xff] %v8689_v12  ;;  %v8691_v49 = vpop.permute.xlu1 %2624  ;;  %2810 = vperm.xlu1 %6043, %v8683_v31   ;;  %2813 = vperm.xlu0 %6042, %v8687_v36   ;;  %v10750_v31 = vld [vmem:[#allocation141_spill] sm:$0xff]  ;;  %v10752_v36 = vld [vmem:[#allocation123_spill] sm:$0xff] }
 0x386   :  { %10740 = vst [vmem:[#allocation118_spill] sm:$0xff] %v8691_v49  ;;  %v8711_v30 = vadd.f32 %v10750_v31, %v10749_v46  ;;  %v8715_v6 = vadd.f32 %v10753_v44, %v10752_v36  ;;  %v10764_v36 = vld [vmem:[#allocation126_spill] sm:$0xff] }
 0x388   :  { %v8703_v53 = vpop.permute.xlu0 %2633  ;;  %10751 = vst [vmem:[#allocation139_spill] sm:$0xff] %v8711_v30  ;;  %10754 = vst [vmem:[#allocation121_spill] sm:$0xff] %v8715_v6 }
 0x389   :  { %10747 = vst [vmem:[#allocation63_spill] sm:$0xff] %v8703_v53  ;;  %v8705_v33 = vpop.permute.xlu1 %2630  ;;  %2816 = vperm.xlu1 %6043, %v8697_v57   ;;  %2819 = vperm.xlu0 %6042, %v8701_v24   ;;  %v10758_v57 = vld [vmem:[#allocation67_spill] sm:$0xff]  ;;  %v10760_v24 = vld [vmem:[#allocation125_spill] sm:$0xff] }
 0x38a   :  { %10748 = vst [vmem:[#allocation120_spill] sm:$0xff] %v8705_v33  ;;  %v8725_v2 = vadd.f32 %v10758_v57, %v10757_v19  ;;  %v8729_v31 = vadd.f32 %v8272_v20, %v10760_v24 }
 0x38c   :  { %v8717_v48 = vpop.permute.xlu0 %2639  ;;  %10759 = vst [vmem:[#allocation141_spill] sm:$0xff] %v8725_v2  ;;  %10761 = vst [vmem:[#allocation123_spill] sm:$0xff] %v8729_v31 }
 0x38d   :  { %10755 = vst [vmem:[#allocation65_spill] sm:$0xff] %v8717_v48  ;;  %v8719_v37 = vpop.permute.xlu1 %2636  ;;  %2822 = vperm.xlu1 %6043, %v8711_v30   ;;  %2825 = vperm.xlu0 %6042, %v8715_v6   ;;  %v8739_v30 = vadd.f32 %v8283_v39, %v10764_v36  ;;  %v10766_v6 = vld [vmem:[#allocation127_spill] sm:$0xff] }
 0x38e   :  { %10756 = vst [vmem:[#allocation122_spill] sm:$0xff] %v8719_v37  ;;  %v10767_v37 = vld [vmem:[#allocation144_spill] sm:$0xff] }
 0x38f   :  { %10765 = vst [vmem:[#allocation67_spill] sm:$0xff] %v8739_v30  ;;  %v8743_v57 = vadd.f32 %v10767_v37, %v10766_v6 }
 0x390   :  { %v8731_v46 = vpop.permute.xlu0 %2645 }
 0x391   :  { %10762 = vst [vmem:[#allocation143_spill] sm:$0xff] %v8731_v46  ;;  %v8733_v44 = vpop.permute.xlu1 %2642  ;;  %2828 = vperm.xlu1 %6043, %v8725_v2   ;;  %2831 = vperm.xlu0 %6042, %v8729_v31   ;;  %10768 = vst [vmem:[#allocation125_spill] sm:$0xff] %v8743_v57  ;;  %v6797_v2 = vmov -inf  }
 0x392   :  { %10763 = vst [vmem:[#allocation124_spill] sm:$0xff] %v8733_v44  ;;  %77 = vst.msk [vmem:[#allocation3] sm:$0xff] %vm10308_vm0, %v6797_v2 }
 0x394   :  { %v8745_v19 = vpop.permute.xlu0 %2651 }
 0x395   :  { %10769 = vst [vmem:[#allocation126_spill] sm:$0xff] %v8745_v19  ;;  %v8747_v20 = vpop.permute.xlu1 %2648  ;;  %2834 = vperm.xlu1 %6043, %v8739_v30   ;;  %2837 = vperm.xlu0 %6042, %v8743_v57  }
 0x396   :  { %10770 = vst [vmem:[#allocation127_spill] sm:$0xff] %v8747_v20 }
 0x398   :  { %v8751_v24 = vpop.permute.xlu0 %2657 }
 0x399   :  { %10771 = vst [vmem:[#allocation144_spill] sm:$0xff] %v8751_v24  ;;  %v8754_v39 = vpop.permute.xlu1 %2654 }
 0x39a   :  { %10772 = vst [vmem:[#allocation182_spill] sm:$0xff] %v8754_v39 }
 0x39c   :  { %v8756_v36 = vpop.permute.xlu0 %2663 }
 0x39d   :  { %10773 = vst [vmem:[#allocation183_spill] sm:$0xff] %v8756_v36  ;;  %v8758_v6 = vpop.permute.xlu1 %2660 }
 0x39e   :  { %10774 = vst [vmem:[#allocation184_spill] sm:$0xff] %v8758_v6 }
 0x3a0   :  { %v8760_v37 = vpop.permute.xlu0 %2669 }
 0x3a1   :  { %10775 = vst [vmem:[#allocation185_spill] sm:$0xff] %v8760_v37  ;;  %v8762_v31 = vpop.permute.xlu1 %2666 }
 0x3a2   :  { %10776 = vst [vmem:[#allocation186_spill] sm:$0xff] %v8762_v31 }
 0x3a4   :  { %v8764_v44 = vpop.permute.xlu0 %2675 }
 0x3a5   :  { %10777 = vst [vmem:[#allocation187_spill] sm:$0xff] %v8764_v44  ;;  %v8766_v30 = vpop.permute.xlu1 %2672 }
 0x3a6   :  { %10778 = vst [vmem:[#allocation188_spill] sm:$0xff] %v8766_v30 }
 0x3a8   :  { %v8768_v57 = vpop.permute.xlu0 %2681 }
 0x3a9   :  { %10779 = vst [vmem:[#allocation189_spill] sm:$0xff] %v8768_v57  ;;  %v8770_v46 = vpop.permute.xlu1 %2678 }
 0x3aa   :  { %10780 = vst [vmem:[#allocation190_spill] sm:$0xff] %v8770_v46  ;;  %v10791_v46 = vlaneseq }
 0x3ac   :  { %v8772_v48 = vpop.permute.xlu0 %2687 }
 0x3ad   :  { %10781 = vst [vmem:[#allocation191_spill] sm:$0xff] %v8772_v48  ;;  %v8774_v2 = vpop.permute.xlu1 %2684  ;;  %v8793_v48 = vand.u32 127, %v10791_v46 }
 0x3ae   :  { %10782 = vst [vmem:[#allocation192_spill] sm:$0xff] %v8774_v2 }
 0x3af   :  { %v2887_v39 = vadd.s32 4294967240, %v8793_v48  ;;  %v2908_v47 = vadd.s32 4294967216, %v8793_v48 }
 0x3b0   :  { %v8776_v53 = vpop.permute.xlu0 %2693 }
 0x3b1   :  { %10783 = vst [vmem:[#allocation193_spill] sm:$0xff] %v8776_v53  ;;  %v8778_v36 = vpop.permute.xlu1 %2690 }
 0x3b2   :  { %10784 = vst [vmem:[#allocation194_spill] sm:$0xff] %v8778_v36  ;;  %v2845_v36 = vadd.s32 4294967288, %v8793_v48 }
 0x3b4   :  { %v8780_v6 = vpop.permute.xlu0 %2699 }
 0x3b5   :  { %10785 = vst [vmem:[#allocation195_spill] sm:$0xff] %v8780_v6  ;;  %v8782_v37 = vpop.permute.xlu1 %2696 }
 0x3b6   :  { %10786 = vst [vmem:[#allocation196_spill] sm:$0xff] %v8782_v37  ;;  %v2852_v37 = vadd.s32 4294967280, %v8793_v48 }
 0x3b8   :  { %v8784_v31 = vpop.permute.xlu0 %2705 }
 0x3b9   :  { %10787 = vst [vmem:[#allocation197_spill] sm:$0xff] %v8784_v31  ;;  %v8786_v44 = vpop.permute.xlu1 %2702 }
 0x3ba   :  { %10788 = vst [vmem:[#allocation198_spill] sm:$0xff] %v8786_v44  ;;  %v2859_v44 = vadd.s32 4294967272, %v8793_v48 }
 0x3bc   :  { %v8788_v30 = vpop.permute.xlu0 %2711 }
 0x3bd   :  { %10789 = vst [vmem:[#allocation199_spill] sm:$0xff] %v8788_v30  ;;  %v8790_v57 = vpop.permute.xlu1 %2708  ;;  %v10796_v30 = vld [vmem:[#allocation22_spill] sm:$0xff] }
 0x3be   :  { %10790 = vst [vmem:[#allocation200_spill] sm:$0xff] %v8790_v57  ;;  %v8807_v24 = vsub.s32 %v2845_v36, %v10796_v30  ;;  %v8811_v46 = vsub.s32 %v8793_v48, %v10796_v30  ;;  %v2873_v57 = vadd.s32 4294967256, %v8793_v48  ;;  %v8824_v36 = vsub.s32 %v2859_v44, %v10796_v30 }
 0x3bf   :  { %v8858_v0 = vsub.s32 %v2887_v39, %v10796_v30  ;;  %v8877_v39 = vsub.s32 %v2908_v47, %v10796_v30 }
 0x3c0   :  { %v8795_v2 = vpop.permute.xlu0 %2717  ;;  %v2849_v12 = vrot.slane %v10799_v7, %v8807_v24  ;;  %v8839_v44 = vsub.s32 %v2873_v57, %v10796_v30  ;;  %v2957_v57 = vrot.slane %v8409_v14, %v8807_v24 }
 0x3c1   :  { %10792 = vst [vmem:[#allocation201_spill] sm:$0xff] %v8795_v2  ;;  %v8797_v53 = vpop.permute.xlu1 %2714 }
 0x3c2   :  { %10793 = vst [vmem:[#allocation202_spill] sm:$0xff] %v8797_v53  ;;  %v8816_v53 = vsub.s32 %v2852_v37, %v10796_v30 }
 0x3c4   :  { %v8800_v6 = vpop.permute.xlu0 %2723  ;;  %v2962_v42 = vrot.slane %v8425_v61, %v8816_v53  ;;  %v2922_v61 = vadd.s32 4294967200, %v8793_v48 }
 0x3c5   :  { %10794 = vst [vmem:[#allocation203_spill] sm:$0xff] %v8800_v6  ;;  %v8803_v31 = vpop.permute.xlu1 %2720  ;;  %v2866_v6 = vadd.s32 4294967264, %v8793_v48 }
 0x3c6   :  { %10795 = vst [vmem:[#allocation204_spill] sm:$0xff] %v8803_v31  ;;  %v2880_v31 = vadd.s32 4294967248, %v8793_v48 }
 0x3c7   :  { %v8836_v20 = vsub.s32 %v2866_v6, %v10796_v30  ;;  %v2953_v6 = vrot.slane %v8412_v28, %v8811_v46 }
 0x3c8   :  { %v8813_v2 = vpop.permute.xlu0 %2729  ;;  %v8844_v7 = vsub.s32 %v2880_v31, %v10796_v30  ;;  %v2863_v31 = vrot.slane %v10804_v51, %v8824_v36 }
 0x3c9   :  { %10797 = vst [vmem:[#allocation205_spill] sm:$0xff] %v8813_v2  ;;  %v8820_v33 = vpop.permute.xlu1 %2726  ;;  %v10800_v2 = vld [vmem:[#allocation71_spill] sm:$0xff]  ;;  %v2870_v28 = vrot.slane %v8328_v11, %v8836_v20  ;;  %v2958_v11 = vsel %vm2850_vm1, %v2957_v57, %v2953_v6 }
 0x3ca   :  { %10798 = vst [vmem:[#allocation206_spill] sm:$0xff] %v8820_v33  ;;  %v2844_v37 = vrot.slane %v10800_v2, %v8811_v46  ;;  %v10802_v33 = vld [vmem:[#allocation148_spill] sm:$0xff]  ;;  %v2894_v2 = vadd.s32 4294967232, %v8793_v48  ;;  %v2884_v6 = vrot.slane %v10809_v45, %v8844_v7  ;;  %v2936_v45 = vadd.s32 4294967184, %v8793_v48 }
 0x3cb   :  { %v2856_v19 = vrot.slane %v10802_v33, %v8816_v53  ;;  %v2915_v33 = vadd.s32 4294967208, %v8793_v48 }
 0x3cc   :  { %v8831_v15 = vpop.permute.xlu0 %2735 }
 0x3cd   :  { %10801 = vst [vmem:[#allocation146_spill] sm:$0xff] %v8831_v15  ;;  %v8841_v49 = vpop.permute.xlu1 %2732  ;;  %v2901_v15 = vadd.s32 4294967224, %v8793_v48 }
 0x3ce   :  { %10803 = vst [vmem:[#allocation71_spill] sm:$0xff] %v8841_v49  ;;  %v2851_v49 = vsel %vm2850_vm1, %v2849_v12, %v2844_v37  ;;  %v8870_v12 = vsub.s32 %v2894_v2, %v10796_v30  ;;  %v10807_v2 = vld [vmem:[#allocation72_spill] sm:$0xff] }
 0x3cf   :  { %v2858_v27 = vsel %vm2857_vm2, %v2856_v19, %v2851_v49  ;;  %v8873_v51 = vsub.s32 %v2901_v15, %v10796_v30  ;;  %v8880_v49 = vsub.s32 %v2915_v33, %v10796_v30  ;;  %v2967_v19 = vrot.slane %v8423_v29, %v8824_v36 }
 0x3d0   :  { %v8862_v4 = vpop.permute.xlu0 %2741  ;;  %v2865_v37 = vsel %vm2864_vm3, %v2863_v31, %v2858_v27  ;;  %v2963_v15 = vsel %vm2857_vm2, %v2962_v42, %v2958_v11  ;;  %v3032_v29 = vrot.slane %v8523_v3, %v8811_v46  ;;  %v3036_v27 = vrot.slane %v8521_v8, %v8807_v24 }
 0x3d1   :  { %10805 = vst [vmem:[#allocation148_spill] sm:$0xff] %v8862_v4  ;;  %v8867_v14 = vpop.permute.xlu1 %2738  ;;  %v2877_v4 = vrot.slane %v10807_v2, %v8839_v44  ;;  %v2872_v33 = vsel %vm10294_vm4, %v2870_v28, %v2865_v37  ;;  %v8903_v42 = vsub.s32 %v2922_v61, %v10796_v30  ;;  %v3041_v31 = vrot.slane %v8537_v43, %v8816_v53  ;;  %v10811_v37 = vld [vmem:[#allocation150_spill] sm:$0xff] }
 0x3d2   :  { %10806 = vst [vmem:[#allocation73_spill] sm:$0xff] %v8867_v14  ;;  %v2972_v14 = vrot.slane %v8439_v5, %v8836_v20  ;;  %v2929_v5 = vadd.s32 4294967192, %v8793_v48  ;;  %v2943_v28 = vadd.s32 4294967176, %v8793_v48  ;;  %v2968_v3 = vsel %vm2864_vm3, %v2967_v19, %v2963_v15 }
 0x3d3   :  { %v2977_v8 = vrot.slane %v8437_v21, %v8839_v44  ;;  %v2879_v11 = vsel %vm10295_vm5, %v2877_v4, %v2872_v33  ;;  %v2891_v61 = vrot.slane %v10811_v37, %v8858_v0  ;;  %v2898_v48 = vrot.slane %v8356_v25, %v8870_v12 }
 0x3d4   :  { %v8891_v47 = vpop.permute.xlu0 %2747  ;;  %v2973_v2 = vsel %vm10294_vm4, %v2972_v14, %v2968_v3  ;;  %v3037_v21 = vsel %vm2850_vm1, %v3036_v27, %v3032_v29  ;;  %v3046_v4 = vrot.slane %v8535_v41, %v8824_v36  ;;  %v8930_v14 = vsub.s32 %v2929_v5, %v10796_v30  ;;  %v10815_v27 = vld [vmem:[#allocation152_spill] sm:$0xff] }
 0x3d5   :  { %10808 = vst [vmem:[#allocation72_spill] sm:$0xff] %v8891_v47  ;;  %v8900_v57 = vpop.permute.xlu1 %2744  ;;  %v2982_v47 = vrot.slane %v8453_v9, %v8844_v7  ;;  %v3042_v9 = vsel %vm2857_vm2, %v3041_v31, %v3037_v21  ;;  %v3051_v15 = vrot.slane %v8551_v22, %v8836_v20  ;;  %v8936_v33 = vsub.s32 %v2936_v45, %v10796_v30 }
 0x3d6   :  { %10810 = vst [vmem:[#allocation74_spill] sm:$0xff] %v8900_v57  ;;  %v2886_v57 = vsel %vm10296_vm6, %v2884_v6, %v2879_v11  ;;  %10812 = vst [vmem:[#allocation150_spill] sm:$0xff] %v8930_v14  ;;  %v8939_v25 = vsub.s32 %v2943_v28, %v10796_v30  ;;  %v2978_v6 = vsel %vm10295_vm5, %v2977_v8, %v2973_v2 }
 0x3d7   :  { %10813 = vst [vmem:[#allocation207_spill] sm:$0xff] %v8936_v33  ;;  %v2987_v41 = vrot.slane %v8451_v58, %v8858_v0  ;;  %v2893_v29 = vsel %vm2892_vm7, %v2891_v61, %v2886_v57  ;;  %v2905_v5 = vrot.slane %v10815_v27, %v8873_v51  ;;  %v2983_v31 = vsel %vm10296_vm6, %v2982_v47, %v2978_v6 }
 0x3d8   :  { %v8919_v43 = vpop.permute.xlu0 %2753  ;;  %10814 = vst [vmem:[#allocation208_spill] sm:$0xff] %v8939_v25  ;;  %v2992_v22 = vrot.slane %v8467_v10, %v8870_v12  ;;  %v2900_v28 = vsel %vm2899_vm8, %v2898_v48, %v2893_v29  ;;  %v2912_v3 = vrot.slane %v8370_v54, %v8877_v39  ;;  %v3047_v58 = vsel %vm2864_vm3, %v3046_v4, %v3042_v9  ;;  %v10816_v48 = vld [vmem:[#allocation81_spill] sm:$0xff] }
 0x3d9   :  { %v8927_v19 = vpop.permute.xlu1 %2750  ;;  %v3056_v57 = vrot.slane %v8549_v18, %v8839_v44  ;;  %v3052_v47 = vsel %vm10294_vm4, %v3051_v15, %v3047_v58  ;;  %v3061_v10 = vrot.slane %v8565_v35, %v8844_v7  ;;  %v3111_v11 = vrot.slane %v8635_v17, %v8811_v46 }
 0x3da   :  { %v3115_v37 = vrot.slane %v8633_v63, %v8807_v24  ;;  %v2988_v54 = vsel %vm2892_vm7, %v2987_v41, %v2983_v31  ;;  %v2997_v61 = vrot.slane %v8465_v1, %v8873_v51  ;;  %v3120_v18 = vrot.slane %v8649_v50, %v8816_v53 }
 0x3db   :  { %v2907_v2 = vsel %vm2906_vm9, %v2905_v5, %v2900_v28  ;;  %v2919_v35 = vrot.slane %v10816_v48, %v8880_v49  ;;  %v2993_v21 = vsel %vm2899_vm8, %v2992_v22, %v2988_v54  ;;  %v3002_v17 = vrot.slane %v8481_v16, %v8877_v39 }
 0x3dc   :  { %v8950_v45 = vpop.permute.xlu0 %2759  ;;  %v2914_v4 = vsel %vm10297_vm10, %v2912_v3, %v2907_v2  ;;  %v2926_v1 = vrot.slane %v8384_v62, %v8903_v42  ;;  %v3057_v9 = vsel %vm10295_vm5, %v3056_v57, %v3052_v47  ;;  %v3066_v50 = vrot.slane %v8563_v32, %v8858_v0 }
 0x3dd   :  { %v8958_v8 = vpop.permute.xlu1 %2756  ;;  %v3062_v6 = vsel %vm10296_vm6, %v3061_v10, %v3057_v9  ;;  %v3071_v41 = vrot.slane %v8579_v56, %v8870_v12  ;;  %v3116_v16 = vsel %vm2850_vm1, %v3115_v37, %v3111_v11  ;;  %v3125_v29 = vrot.slane %v8647_v23, %v8824_v36 }
 0x3de   :  { %v2998_v27 = vsel %vm2906_vm9, %v2997_v61, %v2993_v21  ;;  %v3007_v62 = vrot.slane %v8479_v13, %v8880_v49  ;;  %v3121_v5 = vsel %vm2857_vm2, %v3120_v18, %v3116_v16  ;;  %v3130_v32 = vrot.slane %v8663_v52, %v8836_v20  ;;  %v10818_v18 = vld [vmem:[#allocation176_spill] sm:$0xff]  ;;  %v10822_v16 = vld [vmem:[#allocation59_spill] sm:$0xff] }
 0x3df   :  { %v2921_v31 = vsel %vm10298_vm11, %v2919_v35, %v2914_v4  ;;  %v2933_v56 = vrot.slane %v8381_v38, %v8930_v14  ;;  %v3003_v22 = vsel %vm10297_vm10, %v3002_v17, %v2998_v27  ;;  %v3012_v23 = vrot.slane %v8495_v26, %v8903_v42  ;;  %v10819_v35 = vld [vmem:[#allocation80_spill] sm:$0xff]  ;;  %v10820_v17 = vld [vmem:[#allocation177_spill] sm:$0xff] }
 0x3e0   :  { %v8978_v63 = vpop.permute.xlu0 %2765  ;;  %v2928_v3 = vsel %vm10300_vm12, %v2926_v1, %v2921_v31  ;;  %v2940_v13 = vrot.slane %v8398_v40, %v8936_v33  ;;  %v3067_v58 = vsel %vm2892_vm7, %v3066_v50, %v3062_v6  ;;  %v3076_v52 = vrot.slane %v8577_v60, %v8873_v51  ;;  %v10817_v60 = vld [vmem:[#allocation116_spill] sm:$0xff]  ;;  %v10821_v50 = vld [vmem:[#allocation179_spill] sm:$0xff]  ;;  %v10824_v31 = vld [vmem:[#allocation118_spill] sm:$0xff] }
 0x3e1   :  { %v8986_v15 = vpop.permute.xlu1 %2762  ;;  %v3072_v38 = vsel %vm2899_vm8, %v3071_v41, %v3067_v58  ;;  %v3081_v47 = vrot.slane %v8593_v59, %v8877_v39  ;;  %v3126_v26 = vsel %vm2864_vm3, %v3125_v29, %v3121_v5  ;;  %v3135_v10 = vrot.slane %v8661_v55, %v8839_v44 }
 0x3e2   :  { %v3008_v11 = vsel %vm10298_vm11, %v3007_v62, %v3003_v22  ;;  %v3017_v40 = vrot.slane %v8493_v34, %v8930_v14  ;;  %v3131_v37 = vsel %vm10294_vm4, %v3130_v32, %v3126_v26  ;;  %v3140_v54 = vrot.slane %v10817_v60, %v8844_v7  ;;  %v10823_v62 = vld [vmem:[#allocation175_spill] sm:$0xff] }
 0x3e3   :  { %v2935_v61 = vsel %vm2934_vm13, %v2933_v56, %v2928_v3  ;;  %v3013_v59 = vsel %vm10300_vm12, %v3012_v23, %v3008_v11  ;;  %v3022_v2 = vrot.slane %v10818_v18, %v8936_v33  ;;  %v2947_v34 = vrot.slane %v10819_v35, %v8939_v25  ;;  %v10825_v23 = vld [vmem:[#allocation127_spill] sm:$0xff] }
 0x3e4   :  { %v9006_v28 = vpop.permute.xlu0 %2771  ;;  %v2942_v55 = vsel %vm2941_vm14, %v2940_v13, %v2935_v61  ;;  %v3077_v21 = vsel %vm2906_vm9, %v3076_v52, %v3072_v38  ;;  %v3086_v4 = vrot.slane %v10820_v17, %v8880_v49  ;;  %v3091_v6 = vrot.slane %v10821_v50, %v8903_v42  ;;  %v10826_v13 = vld [vmem:[#allocation126_spill] sm:$0xff]  ;;  %v10829_v61 = vld [vmem:[#allocation61_spill] sm:$0xff]  ;;  %v10831_v17 = vld [vmem:[#allocation120_spill] sm:$0xff] }
 0x3e5   :  { %v9014_v57 = vpop.permute.xlu1 %2768  ;;  %v3082_v9 = vsel %vm10297_vm10, %v3081_v47, %v3077_v21  ;;  %v3136_v41 = vsel %vm10295_vm5, %v3135_v10, %v3131_v37  ;;  %v3145_v29 = vrot.slane %v10822_v16, %v8858_v0  ;;  %v3018_v27 = vsel %vm2934_vm13, %v3017_v40, %v3013_v59  ;;  %v10827_v47 = vld [vmem:[#allocation178_spill] sm:$0xff]  ;;  %v10833_v50 = vld [vmem:[#allocation196_spill] sm:$0xff] }
 0x3e6   :  { %v3027_v5 = vrot.slane %v10823_v62, %v8939_v25  ;;  %v3141_v32 = vsel %vm10296_vm6, %v3140_v54, %v3136_v41  ;;  %v3150_v56 = vrot.slane %v10824_v31, %v8870_v12  ;;  %v3023_v22 = vsel %vm2941_vm14, %v3022_v2, %v3018_v27  ;;  %v10828_v10 = vld [vmem:[#allocation182_spill] sm:$0xff]  ;;  %v10830_v2 = vld [vmem:[#allocation181_spill] sm:$0xff]  ;;  %v10834_v41 = vld [vmem:[#allocation195_spill] sm:$0xff] }
 0x3e7   :  { %v3190_v3 = vrot.slane %v10825_v23, %v8811_v46  ;;  %v3194_v58 = vrot.slane %v10826_v13, %v8807_v24  ;;  %v3087_v38 = vsel %vm10298_vm11, %v3086_v4, %v3082_v9  ;;  %v3096_v26 = vrot.slane %v10827_v47, %v8930_v14  ;;  %v10836_v31 = vld [vmem:[#allocation198_spill] sm:$0xff]  ;;  %v10839_v47 = vld [vmem:[#allocation72_spill] sm:$0xff] }
 0x3e8   :  { %v9032_v48 = vpop.permute.xlu0 %2777  ;;  %v3199_v11 = vrot.slane %v10828_v10, %v8816_v53  ;;  %v9069_v37 = vsel %vm2948_vm15, %v2947_v34, %v2942_v55  ;;  %v3092_v60 = vsel %vm10300_vm12, %v3091_v6, %v3087_v38  ;;  %v3146_v54 = vsel %vm2892_vm7, %v3145_v29, %v3141_v32  ;;  %v10832_v34 = vld [vmem:[#allocation144_spill] sm:$0xff] }
 0x3e9   :  { %v9040_v1 = vpop.permute.xlu1 %2774  ;;  %v3155_v59 = vrot.slane %v10829_v61, %v8873_v51  ;;  %v9076_v18 = vsel %vm2948_vm15, %v3027_v5, %v3023_v22  ;;  %v3101_v35 = vrot.slane %v10830_v2, %v8936_v33  ;;  %v3151_v21 = vsel %vm2899_vm8, %v3150_v56, %v3146_v54  ;;  %v10835_v5 = vld [vmem:[#allocation184_spill] sm:$0xff]  ;;  %v10841_v2 = vld [vmem:[#allocation183_spill] sm:$0xff] }
 0x3ea   :  { %v3160_v4 = vrot.slane %v10831_v17, %v8877_v39  ;;  %v3195_v55 = vsel %vm2850_vm1, %v3194_v58, %v3190_v3  ;;  %v3204_v9 = vrot.slane %v10832_v34, %v8824_v36  ;;  %v3269_v6 = vrot.slane %v10833_v50, %v8811_v46  ;;  %v10837_v3 = vld [vmem:[#allocation63_spill] sm:$0xff]  ;;  %v10838_v58 = vld [vmem:[#allocation74_spill] sm:$0xff] }
 0x3eb   :  { %v3273_v16 = vrot.slane %v10834_v41, %v8807_v24  ;;  %v3097_v27 = vsel %vm2934_vm13, %v3096_v26, %v3092_v60  ;;  %v3200_v62 = vsel %vm2857_vm2, %v3199_v11, %v3195_v55  ;;  %v3209_v32 = vrot.slane %v10835_v5, %v8836_v20  ;;  %v10840_v11 = vld [vmem:[#allocation180_spill] sm:$0xff]  ;;  %v10842_v55 = vld [vmem:[#allocation197_spill] sm:$0xff]  ;;  %v10843_v41 = vld [vmem:[#allocation186_spill] sm:$0xff] }
 0x3ec   :  { %v9059_v52 = vpop.permute.xlu0 %2783  ;;  %v3278_v56 = vrot.slane %v10836_v31, %v8816_v53  ;;  %v3156_v23 = vsel %vm2906_vm9, %v3155_v59, %v3151_v21  ;;  %v3165_v13 = vrot.slane %v10837_v3, %v8880_v49  ;;  %v3348_v38 = vrot.slane %v10838_v58, %v8811_v46  ;;  %v10845_v31 = vld [vmem:[#allocation65_spill] sm:$0xff] }
 0x3ed   :  { %v9066_v40 = vpop.permute.xlu1 %2780  ;;  %v3352_v26 = vrot.slane %v10839_v47, %v8807_v24  ;;  %v9108_v10 = vsel %vm2941_vm14, %v3101_v35, %v3097_v27  ;;  %v3106_v60 = vrot.slane %v10840_v11, %v8939_v25  ;;  %v3161_v54 = vsel %vm10297_vm10, %v3160_v4, %v3156_v23  ;;  %v10846_v47 = vld [vmem:[#allocation122_spill] sm:$0xff] }
 0x3ee   :  { %v3357_v61 = vrot.slane %v8927_v19, %v8816_v53  ;;  %v3205_v59 = vsel %vm2864_vm3, %v3204_v9, %v3200_v62  ;;  %v3214_v21 = vrot.slane %v10841_v2, %v8839_v44  ;;  %v3274_v17 = vsel %vm2850_vm1, %v3273_v16, %v3269_v6  ;;  %v10844_v19 = vld [vmem:[#allocation200_spill] sm:$0xff]  ;;  %v10848_v2 = vld [vmem:[#allocation185_spill] sm:$0xff] }
 0x3ef   :  { %v3283_v34 = vrot.slane %v10842_v55, %v8824_v36  ;;  %v3210_v50 = vsel %vm10294_vm4, %v3209_v32, %v3205_v59  ;;  %v3219_v27 = vrot.slane %v10843_v41, %v8844_v7  ;;  %v3279_v4 = vsel %vm2857_vm2, %v3278_v56, %v3274_v17  ;;  %v10849_v55 = vld [vmem:[#allocation202_spill] sm:$0xff] }
 0x3f0   :  { %v9090_v29 = vpop.permute.xlu0 %2789  ;;  %v3288_v5 = vrot.slane %v10844_v19, %v8836_v20  ;;  %v3166_v62 = vsel %vm10298_vm11, %v3165_v13, %v3161_v54  ;;  %v3175_v6 = vrot.slane %v10845_v31, %v8930_v14  ;;  %v3353_v16 = vsel %vm2850_vm1, %v3352_v26, %v3348_v38  ;;  %v10847_v38 = vld [vmem:[#allocation199_spill] sm:$0xff]  ;;  %v10850_v19 = vld [vmem:[#allocation188_spill] sm:$0xff] }
 0x3f1   :  { %v9098_v22 = vpop.permute.xlu1 %2786  ;;  %v3362_v23 = vrot.slane %v8919_v43, %v8824_v36  ;;  %v3358_v32 = vsel %vm2857_vm2, %v3357_v61, %v3353_v16  ;;  %v3367_v3 = vrot.slane %v8958_v8, %v8836_v20  ;;  %v3170_v13 = vrot.slane %v10846_v47, %v8903_v42 }
 0x3f2   :  { %v3215_v54 = vsel %vm10295_vm5, %v3214_v21, %v3210_v50  ;;  %v3284_v59 = vsel %vm2864_vm3, %v3283_v34, %v3279_v4  ;;  %v3293_v26 = vrot.slane %v10847_v38, %v8839_v44  ;;  %v3224_v8 = vrot.slane %v10848_v2, %v8858_v0 }
 0x3f3   :  { %v3220_v61 = vsel %vm10296_vm6, %v3219_v27, %v3215_v54  ;;  %v3289_v17 = vsel %vm10294_vm4, %v3288_v5, %v3284_v59  ;;  %v3229_v21 = vrot.slane %v10850_v19, %v8870_v12  ;;  %v3363_v34 = vsel %vm2864_vm3, %v3362_v23, %v3358_v32  ;;  %v10851_v23 = vld [vmem:[#allocation201_spill] sm:$0xff]  ;;  %v10854_v19 = vld [vmem:[#allocation203_spill] sm:$0xff] }
 0x3f4   :  { %v2796_v35 = vpop.permute.xlu0 %2795  ;;  %v3372_v50 = vrot.slane %v8950_v45, %v8839_v44  ;;  %v3368_v27 = vsel %vm10294_vm4, %v3367_v3, %v3363_v34  ;;  %v3171_v16 = vsel %vm10300_vm12, %v3170_v13, %v3166_v62  ;;  %v3294_v47 = vsel %vm10295_vm5, %v3293_v26, %v3289_v17  ;;  %v10852_v3 = vld [vmem:[#allocation187_spill] sm:$0xff] }
 0x3f5   :  { %v2793_v9 = vpop.permute.xlu1 %2792  ;;  %v3431_v58 = vrot.slane %v2796_v35, %v8807_v24  ;;  %v3298_v35 = vrot.slane %v10849_v55, %v8844_v7  ;;  %v3303_v32 = vrot.slane %v10851_v23, %v8858_v0  ;;  %v3225_v59 = vsel %vm2892_vm7, %v3224_v8, %v3220_v61 }
 0x3f6   :  { %v3427_v56 = vrot.slane %v2793_v9, %v8811_v46  ;;  %v3377_v9 = vrot.slane %v8986_v15, %v8844_v7  ;;  %v3234_v38 = vrot.slane %v10852_v3, %v8873_v51  ;;  %v3230_v62 = vsel %vm2899_vm8, %v3229_v21, %v3225_v59 }
 0x3f7   :  { %v3299_v15 = vsel %vm10296_vm6, %v3298_v35, %v3294_v47  ;;  %v3373_v13 = vsel %vm10295_vm5, %v3372_v50, %v3368_v27  ;;  %v3382_v26 = vrot.slane %v8978_v63, %v8858_v0  ;;  %v3387_v8 = vrot.slane %v9014_v57, %v8870_v12  ;;  %v10855_v50 = vld [vmem:[#allocation143_spill] sm:$0xff]  ;;  %v10856_v27 = vld [vmem:[#allocation190_spill] sm:$0xff] }
 0x3f8   :  { %v2802_v43 = vpop.permute.xlu0 %2801  ;;  %v3432_v5 = vsel %vm2850_vm1, %v3431_v58, %v3427_v56  ;;  %v10853_v56 = vld [vmem:[#allocation204_spill] sm:$0xff]  ;;  %v3378_v61 = vsel %vm10296_vm6, %v3377_v9, %v3373_v13  ;;  %v3176_v35 = vsel %vm2934_vm13, %v3175_v6, %v3171_v16  ;;  %v3313_v21 = vrot.slane %v10854_v19, %v8873_v51 }
 0x3f9   :  { %v2799_v41 = vpop.permute.xlu1 %2798  ;;  %v3441_v31 = vrot.slane %v2802_v43, %v8824_v36  ;;  %v3308_v58 = vrot.slane %v10853_v56, %v8870_v12  ;;  %v3239_v57 = vrot.slane %v10856_v27, %v8877_v39  ;;  %v3235_v16 = vsel %vm2906_vm9, %v3234_v38, %v3230_v62 }
 0x3fa   :  { %v3436_v4 = vrot.slane %v2799_v41, %v8816_v53  ;;  %v3304_v41 = vsel %vm2892_vm7, %v3303_v32, %v3299_v15  ;;  %v3383_v47 = vsel %vm2892_vm7, %v3382_v26, %v3378_v61  ;;  %v3392_v23 = vrot.slane %v9006_v28, %v8873_v51  ;;  %v10858_v15 = vld [vmem:[#allocation189_spill] sm:$0xff]  ;;  %v10861_v61 = vld [vmem:[#allocation71_spill] sm:$0xff] }
 0x3fb   :  { %v3309_v9 = vsel %vm2899_vm8, %v3308_v58, %v3304_v41  ;;  %v3244_v56 = vrot.slane %v10858_v15, %v8880_v49  ;;  %v10859_v58 = vld [vmem:[#allocation205_spill] sm:$0xff]  ;;  %v3240_v13 = vsel %vm10297_vm10, %v3239_v57, %v3235_v16  ;;  %v3407_v27 = vrot.slane %v9066_v40, %v8903_v42 }
 0x3fc   :  { %v3437_v45 = vsel %vm2857_vm2, %v3436_v4, %v3432_v5  ;;  %v2808_v54 = vpop.permute.xlu0 %2807  ;;  %v3185_v4 = vrot.slane %v10855_v50, %v8939_v25  ;;  %v10857_v5 = vld [vmem:[#allocation206_spill] sm:$0xff]  ;;  %v3314_v38 = vsel %vm2906_vm9, %v3313_v21, %v3309_v9  ;;  %v3402_v21 = vrot.slane %v9032_v48, %v8880_v49  ;;  %v10866_v15 = vld [vmem:[#allocation73_spill] sm:$0xff] }
 0x3fd   :  { %v2805_v43 = vpop.permute.xlu1 %2804  ;;  %v3442_v17 = vsel %vm2864_vm3, %v3441_v31, %v3437_v45  ;;  %v3451_v55 = vrot.slane %v2808_v54, %v8839_v44  ;;  %v3318_v31 = vrot.slane %v10857_v5, %v8877_v39  ;;  %v3388_v45 = vsel %vm2899_vm8, %v3387_v8, %v3383_v47 }
 0x3fe   :  { %v3446_v2 = vrot.slane %v2805_v43, %v8836_v20  ;;  %v3397_v54 = vrot.slane %v9040_v1, %v8877_v39  ;;  %v3323_v43 = vrot.slane %v10859_v58, %v8880_v49  ;;  %v10860_v1 = vld [vmem:[#allocation192_spill] sm:$0xff]  ;;  %v3328_v8 = vrot.slane %v10861_v61, %v8903_v42  ;;  %v10867_v61 = vld [vmem:[#allocation193_spill] sm:$0xff] }
 0x3ff   :  { %v3249_v26 = vrot.slane %v10860_v1, %v8903_v42  ;;  %v3393_v19 = vsel %vm2906_vm9, %v3392_v23, %v3388_v45  ;;  %v3245_v5 = vsel %vm10298_vm11, %v3244_v56, %v3240_v13  ;;  %v3338_v56 = vrot.slane %v10866_v15, %v8936_v33  ;;  %v9293_v15 = vld [vmem:[#allocation3] sm:$0xff] }
 0x400   :  { %v3447_v63 = vsel %vm10294_vm4, %v3446_v2, %v3442_v17  ;;  %v2814_v34 = vpop.permute.xlu0 %2813  ;;  %vm10299_vm4 = vcmask 1041409   ;;  %v3319_v2 = vsel %vm10297_vm10, %v3318_v31, %v3314_v38  ;;  %v10863_v31 = vld [vmem:[#allocation191_spill] sm:$0xff]  ;;  %v3412_v58 = vrot.slane %v9059_v52, %v8930_v14 }
 0x401   :  { %v2811_v6 = vpop.permute.xlu1 %2810  ;;  %v3452_v59 = vsel %vm10295_vm5, %v3451_v55, %v3447_v63  ;;  %v3461_v3 = vrot.slane %v2814_v34, %v8858_v0  ;;  %vm3505_vm5 = vcmask 1042434   ;;  %v10862_v55 = vld [vmem:[#allocation124_spill] sm:$0xff]  ;;  %v3398_v34 = vsel %vm10297_vm10, %v3397_v54, %v3393_v19  ;;  %v10865_v54 = vld [vmem:[#allocation146_spill] sm:$0xff] }
 0x402   :  { %v3456_v32 = vrot.slane %v2811_v6, %v8844_v7  ;;  %v3180_v41 = vrot.slane %v10862_v55, %v8936_v33  ;;  %v3254_v6 = vrot.slane %v10863_v31, %v8930_v14  ;;  %v3324_v16 = vsel %vm10298_vm11, %v3323_v43, %v3319_v2 }
 0x403   :  { %v3250_v23 = vsel %vm10300_vm12, %v3249_v26, %v3245_v5  ;;  %v3329_v40 = vsel %vm10300_vm12, %v3328_v8, %v3324_v16  ;;  %v3403_v38 = vsel %vm10298_vm11, %v3402_v21, %v3398_v34  ;;  %v3264_v8 = vrot.slane %v10867_v61, %v8939_v25 }
 0x404   :  { %v3457_v28 = vsel %vm10296_vm6, %v3456_v32, %v3452_v59  ;;  %v2820_v62 = vpop.permute.xlu0 %2819  ;;  %vm3507_vm6 = vcmask 1043459   ;;  %v10864_v32 = vld [vmem:[#allocation194_spill] sm:$0xff]  ;;  %v3333_v59 = vrot.slane %v10865_v54, %v8930_v14  ;;  %v3181_v26 = vsel %vm2941_vm14, %v3180_v41, %v3176_v35  ;;  %v10868_v35 = vld [vmem:[#allocation148_spill] sm:$0xff] }
 0x405   :  { %v2817_v17 = vpop.permute.xlu1 %2816  ;;  %v3462_v57 = vsel %vm2892_vm7, %v3461_v3, %v3457_v28  ;;  %v3471_v9 = vrot.slane %v2820_v62, %v8873_v51  ;;  %v3259_v45 = vrot.slane %v10864_v32, %v8936_v33  ;;  %v3408_v28 = vsel %vm10300_vm12, %v3407_v27, %v3403_v38 }
 0x406   :  { %v3466_v63 = vrot.slane %v2817_v17, %v8870_v12  ;;  %v3417_v62 = vrot.slane %v9098_v22, %v8936_v33  ;;  %v3255_v2 = vsel %vm2934_vm13, %v3254_v6, %v3250_v23  ;;  %v3107_v22 = vsel %vm2948_vm15, %v3106_v60, %v9108_v10 }
 0x407   :  { %v3260_v55 = vsel %vm2941_vm14, %v3259_v45, %v3255_v2  ;;  %v3334_v19 = vsel %vm2934_vm13, %v3333_v59, %v3329_v40  ;;  %v3343_v41 = vrot.slane %v10868_v35, %v8939_v25  ;;  %v3413_v34 = vsel %vm2934_vm13, %v3412_v58, %v3408_v28  ;;  %v10871_v2 = vld [vmem:[#allocation170_spill] sm:$0xff] }
 0x408   :  { %v3467_v48 = vsel %vm2899_vm8, %v3466_v63, %v3462_v57  ;;  %v2826_v47 = vpop.permute.xlu0 %2825  ;;  %v3339_v63 = vsel %vm2941_vm14, %v3338_v56, %v3334_v19  ;;  %v3422_v27 = vrot.slane %v9090_v29, %v8939_v25  ;;  %v3186_v10 = vsel %vm2948_vm15, %v3185_v4, %v3181_v26 }
 0x409   :  { %v2823_v3 = vpop.permute.xlu1 %2822  ;;  %v3472_v13 = vsel %vm2906_vm9, %v3471_v9, %v3467_v48  ;;  %v3481_v1 = vrot.slane %v2826_v47, %v8880_v49  ;;  %v3418_v11 = vsel %vm2941_vm14, %v3417_v62, %v3413_v34  ;;  %v3504_v5 = vsel %vm10299_vm4, %v9076_v18, %v9069_v37  ;;  %v10869_v62 = vld [vmem:[#allocation23_spill] sm:$0xff] }
 0x40a   :  { %v3476_v43 = vrot.slane %v2823_v3, %v8877_v39  ;;  %v3265_v31 = vsel %vm2948_vm15, %v3264_v8, %v3260_v55  ;;  %v3506_v50 = vsel %vm3505_vm5, %v3107_v22, %v3504_v5  ;;  %v3344_v4 = vsel %vm2948_vm15, %v3343_v41, %v3339_v63  ;;  %v10872_v8 = vld [vmem:[#allocation162_spill] sm:$0xff]  ;;  %v10874_v55 = vld [vmem:[#allocation161_spill] sm:$0xff] }
 0x40b   :  { %v3508_v47 = vsel %vm3507_vm6, %v3186_v10, %v3506_v50  ;;  %v3423_v37 = vsel %vm2948_vm15, %v3422_v27, %v3418_v11  ;;  %vm10310_vm4 = vcmask 1046534   ;;  %v10875_v63 = vld [vmem:[#allocation26_spill] sm:$0xff] }
 0x40c   :  { %v3477_v52 = vsel %vm10297_vm10, %v3476_v43, %v3472_v13  ;;  %v2832_v17 = vpop.permute.xlu0 %2831  ;;  %vm3509_vm10 = vcmask 1044484   ;;  %v6798_v43 = vmov 0.0   ;;  %v10879_v50 = vld [vmem:[#allocation30_spill] sm:$0xff] }
 0x40d   :  { %v2829_v21 = vpop.permute.xlu1 %2828  ;;  %v3482_v60 = vsel %vm10298_vm11, %v3481_v1, %v3477_v52  ;;  %v3491_v9 = vrot.slane %v2832_v17, %v8930_v14  ;;  %vm10311_vm11 = vcmask 1045509   ;;  %v3510_v32 = vsel %vm3509_vm10, %v3265_v31, %v3508_v47  ;;  %78 = vst.msk [vmem:[#allocation4] sm:$0xff] %vm10308_vm0, %v6798_v43  ;;  %v10873_v17 = vld [vmem:[#allocation25_spill] sm:$0xff]  ;;  %v10878_v31 = vld [vmem:[#allocation163_spill] sm:$0xff] }
 0x40e   :  { %v3486_v57 = vrot.slane %v2829_v21, %v8903_v42  ;;  %v3512_v40 = vsel %vm10311_vm11, %v3344_v4, %v3510_v32  ;;  %v10870_v1 = vsub.s32 1, %v10796_v30  ;;  %vm11036_vm11 = vcmask 786112  }
 0x40f   :  { %v3514_v59 = vsel %vm10310_vm4, %v3423_v37, %v3512_v40  ;;  %v10881_v37 = vld [vmem:[#allocation32_spill] sm:$0xff]  ;;  %v10882_v40 = vld [vmem:[#allocation165_spill] sm:$0xff]  ;;  %vm11030_vm4 = vcmask 458112  }
 0x410   :  { %v3487_v29 = vsel %vm10300_vm12, %v3486_v57, %v3482_v60  ;;  %v2838_v6 = vpop.permute.xlu0 %2837  ;;  %vm10309_vm12 = vcmask 1047559   ;;  %v10876_v57 = vld [vmem:[#allocation164_spill] sm:$0xff] }
 0x411   :  { %v2835_v16 = vpop.permute.xlu1 %2834  ;;  %v3501_v48 = vrot.slane %v2838_v6, %v8939_v25  ;;  %v3492_v18 = vsel %vm2934_vm13, %v3491_v9, %v3487_v29  ;;  %v10877_v60 = vld [vmem:[#allocation28_spill] sm:$0xff] }
 0x412   :  { %v3496_v23 = vrot.slane %v2835_v16, %v8936_v33 }
 0x414   :  { %v3497_v45 = vsel %vm2941_vm14, %v3496_v23, %v3492_v18 }
 0x415   :  { %v3502_v54 = vsel %vm2948_vm15, %v3501_v48, %v3497_v45  ;;  %v10880_v48 = vld [vmem:[#allocation166_spill] sm:$0xff] }
 0x416   :  { %v3516_v3 = vsel %vm10309_vm12, %v3502_v54, %v3514_v59  ;;  %vm11015_vm12 = vcmask 392512  }
 0x417   :  { %3518 = vmax.xlane.f32.xlu1 %v3516_v3 }
 0x4a0   :  { %v3519_v56 = vpop.xlane.xlu1 %3518 }
 0x4a1   :  { %v9296_v38 = vmax.f32 %v9293_v15, %v3519_v56  ;;  %v10883_v56 = vld [vmem:[#allocation34_spill] sm:$0xff] }
 0x4a3   :  { %5109 = vst.msk [vmem:[#allocation2] sm:$0xff] %vm10308_vm0, %v9296_v38  ;;  %5423 = vst.msk [vmem:[#allocation3] sm:$0xff] %vm10308_vm0, %v9296_v38  ;;  %3526 = vperm.xlu0 %6042, %v9296_v38   ;;  %vm11014_vm0 = vcmask 326912  }
 0x51e   :  { %v9306_v28 = vpop.permute.xlu0 %3526 }
 0x51f   :  { %v9310_v13 = vrot.slane %v9306_v28, %v10869_v62  ;;  %v9315_v26 = vrot.slane %v9306_v28, %v10870_v1 }
 0x521   :  { %v3576_v61 = vsub.f32 %v10871_v2, %v9310_v13  ;;  %v3568_v52 = vsub.f32 %v10872_v8, %v9310_v13  ;;  %v3582_v22 = vsub.f32 %v10873_v17, %v9310_v13  ;;  %v3569_v19 = vsub.f32 %v10874_v55, %v9310_v13  ;;  %v10884_v2 = vld [vmem:[#allocation168_spill] sm:$0xff] }
 0x522   :  { %v3584_v34 = vsub.f32 %v10875_v63, %v9315_v26  ;;  %v3570_v10 = vsub.f32 %v10876_v57, %v9310_v13  ;;  %v3586_v9 = vsub.f32 %v10877_v60, %v9315_v26  ;;  %v3571_v29 = vsub.f32 %v10878_v31, %v9310_v13  ;;  %v10885_v17 = vld [vmem:[#allocation36_spill] sm:$0xff] }
 0x523   :  { %v3712_v35 = vmul.f32 1.442695, %v3576_v61  ;;  %v3696_v41 = vmul.f32 1.442695, %v3568_v52  ;;  %v3724_v21 = vmul.f32 1.442695, %v3582_v22  ;;  %v3588_v4 = vsub.f32 %v10879_v50, %v9315_v26 }
 0x524   :  { %v3698_v27 = vmul.f32 1.442695, %v3569_v19  ;;  %v3728_v11 = vmul.f32 1.442695, %v3584_v34  ;;  %v3700_v5 = vmul.f32 1.442695, %v3570_v10  ;;  %v3572_v47 = vsub.f32 %v10880_v48, %v9310_v13 }
 0x525   :  { %6301 = vpow2.f32 %v3712_v35  ;;  %v3732_v6 = vmul.f32 1.442695, %v3586_v9  ;;  %v3702_v16 = vmul.f32 1.442695, %v3571_v29  ;;  %v3736_v23 = vmul.f32 1.442695, %v3588_v4 }
 0x526   :  { %6303 = vpow2.f32 %v3696_v41  ;;  %v3590_v18 = vsub.f32 %v10881_v37, %v9315_v26  ;;  %v3704_v45 = vmul.f32 1.442695, %v3572_v47  ;;  %v3573_v54 = vsub.f32 %v10882_v40, %v9310_v13  ;;  %v10886_v35 = vld [vmem:[#allocation167_spill] sm:$0xff]  ;;  %v10887_v34 = vld [vmem:[#allocation38_spill] sm:$0xff]  ;;  %v10891_v48 = vld [vmem:[#allocation172_spill] sm:$0xff] }
 0x527   :  { %6305 = vpow2.f32 %v3724_v21  ;;  %v3592_v43 = vsub.f32 %v10883_v56, %v9315_v26  ;;  %v3574_v61 = vsub.f32 %v10884_v2, %v9310_v13  ;;  %v3594_v22 = vsub.f32 %v10885_v17, %v9315_v26 }
 0x528   :  { %6307 = vpow2.f32 %v3698_v27  ;;  %v3740_v3 = vmul.f32 1.442695, %v3590_v18  ;;  %v3706_v1 = vmul.f32 1.442695, %v3573_v54  ;;  %v3575_v41 = vsub.f32 %v10886_v35, %v9310_v13  ;;  %v10892_v18 = vld [vmem:[#allocation42_spill] sm:$0xff]  ;;  %v10893_v54 = vld [vmem:[#allocation171_spill] sm:$0xff] }
 0x529   :  { %6309 = vpow2.f32 %v3728_v11  ;;  %v3744_v52 = vmul.f32 1.442695, %v3592_v43  ;;  %v3708_v19 = vmul.f32 1.442695, %v3574_v61  ;;  %v3748_v63 = vmul.f32 1.442695, %v3594_v22 }
 0x52a   :  { %6311 = vpow2.f32 %v3700_v5  ;;  %v3596_v27 = vsub.f32 %v10887_v34, %v9315_v26  ;;  %v3710_v10 = vmul.f32 1.442695, %v3575_v41  ;;  %v10888_v11 = vld [vmem:[#allocation169_spill] sm:$0xff]  ;;  %v10889_v5 = vsub.s32 2, %v10796_v30  ;;  %v10894_v43 = vld [vmem:[#allocation44_spill] sm:$0xff]  ;;  %v10896_v22 = vld [vmem:[#allocation46_spill] sm:$0xff] }
 0x52b   :  { %6313 = vpow2.f32 %v3732_v6  ;;  %v3577_v60 = vsub.f32 %v10888_v11, %v9310_v13  ;;  %v10890_v6 = vld [vmem:[#allocation40_spill] sm:$0xff]  ;;  %v3578_v47 = vsub.f32 %v10891_v48, %v9310_v13  ;;  %v10897_v41 = vld [vmem:[#allocation173_spill] sm:$0xff] }
 0x52c   :  { %6315 = vpow2.f32 %v3702_v16  ;;  %v9356_v31 = vrot.slane %v9306_v28, %v10889_v5  ;;  %v3752_v29 = vmul.f32 1.442695, %v3596_v27  ;;  %v3598_v50 = vsub.f32 %v10890_v6, %v9315_v26  ;;  %v10895_v61 = vld [vmem:[#allocation24_spill] sm:$0xff]  ;;  %v10900_v6 = vld [vmem:[#allocation53_spill] sm:$0xff] }
 0x52d   :  { %6317 = vpow2.f32 %v3736_v23  ;;  %v3714_v16 = vmul.f32 1.442695, %v3577_v60  ;;  %v3716_v40 = vmul.f32 1.442695, %v3578_v47  ;;  %v10898_v27 = vld [vmem:[#allocation48_spill] sm:$0xff]  ;;  %v10899_v60 = vld [vmem:[#allocation27_spill] sm:$0xff] }
 0x52e   :  { %6319 = vpow2.f32 %v3704_v45  ;;  %v3756_v37 = vmul.f32 1.442695, %v3598_v50  ;;  %v3608_v50 = vsub.f32 %v10900_v6, %v9356_v31  ;;  %v10901_v48 = vld [vmem:[#allocation29_spill] sm:$0xff] }
 0x52f   :  { %6321 = vpow2.f32 %v3740_v3  ;;  %v3585_v47 = vsub.f32 %v10901_v48, %v9315_v26 }
 0x530   :  { %6323 = vpow2.f32 %v3706_v1 }
 0x531   :  { %6325 = vpow2.f32 %v3744_v52 }
 0x532   :  { %v6302_v32 = vpop.eup %6301  ;;  %6327 = vpow2.f32 %v3708_v19 }
 0x533   :  { %v6304_v59 = vpop.eup %6303  ;;  %4105 = vperm.xlu1 %6043, %v6302_v32   ;;  %6329 = vpow2.f32 %v3748_v63  ;;  %v3600_v32 = vsub.f32 %v10892_v18, %v9356_v31  ;;  %v3776_v18 = vmul.f32 1.442695, %v3608_v50 }
 0x534   :  { %4081 = vperm.xlu0 %6042, %v6304_v59   ;;  %v6306_v62 = vpop.eup %6305  ;;  %6331 = vpow2.f32 %v3710_v10  ;;  %v3579_v59 = vsub.f32 %v10893_v54, %v9310_v13  ;;  %v3730_v54 = vmul.f32 1.442695, %v3585_v47  ;;  %v10913_v47 = vld [vmem:[#allocation75_spill] sm:$0xff] }
 0x535   :  { %v6308_v8 = vpop.eup %6307  ;;  %6333 = vpow2.f32 %v3752_v29  ;;  %v3760_v56 = vmul.f32 1.442695, %v3600_v32  ;;  %v10903_v32 = vld [vmem:[#allocation50_spill] sm:$0xff] }
 0x536   :  { %v6310_v55 = vpop.eup %6309  ;;  %6335 = vpow2.f32 %v3714_v16  ;;  %v3718_v2 = vmul.f32 1.442695, %v3579_v59  ;;  %v10904_v59 = vld [vmem:[#allocation31_spill] sm:$0xff] }
 0x537   :  { %4123 = vperm.xlu1 %6043, %v6306_v62   ;;  %v6312_v21 = vpop.eup %6311  ;;  %6337 = vpow2.f32 %v3756_v37  ;;  %v3602_v62 = vsub.f32 %v10894_v43, %v9356_v31  ;;  %v10902_v37 = vsub.s32 3, %v10796_v30 }
 0x538   :  { %4084 = vperm.xlu0 %6042, %v6308_v8   ;;  %v6314_v57 = vpop.eup %6313  ;;  %6339 = vpow2.f32 %v3716_v40  ;;  %v3580_v8 = vsub.f32 %v10895_v61, %v9310_v13 }
 0x539   :  { %v6316_v9 = vpop.eup %6315  ;;  %6341 = vpow2.f32 %v3760_v56  ;;  %v3764_v17 = vmul.f32 1.442695, %v3602_v62  ;;  %v10905_v62 = vld [vmem:[#allocation54_spill] sm:$0xff] }
 0x53a   :  { %v6318_v4 = vpop.eup %6317  ;;  %6343 = vpow2.f32 %v3718_v2  ;;  %v3720_v35 = vmul.f32 1.442695, %v3580_v8  ;;  %v10906_v8 = vld [vmem:[#allocation33_spill] sm:$0xff] }
 0x53b   :  { %4129 = vperm.xlu1 %6043, %v6310_v55   ;;  %v6320_v23 = vpop.eup %6319  ;;  %v3604_v55 = vsub.f32 %v10896_v22, %v9356_v31  ;;  %6345 = vpow2.f32 %v3764_v17  ;;  %v10907_v22 = vsub.s32 4, %v10796_v30 }
 0x53c   :  { %4087 = vperm.xlu0 %6042, %v6312_v21   ;;  %v6322_v45 = vpop.eup %6321  ;;  %v3581_v21 = vsub.f32 %v10897_v41, %v9310_v13  ;;  %6347 = vpow2.f32 %v3720_v35  ;;  %v10908_v35 = vld [vmem:[#allocation56_spill] sm:$0xff] }
 0x53d   :  { %v6324_v3 = vpop.eup %6323  ;;  %v3768_v34 = vmul.f32 1.442695, %v3604_v55  ;;  %v9398_v55 = vrot.slane %v9306_v28, %v10907_v22 }
 0x53e   :  { %v6326_v1 = vpop.eup %6325  ;;  %v3722_v11 = vmul.f32 1.442695, %v3581_v21 }
 0x53f   :  { %4135 = vperm.xlu1 %6043, %v6314_v57   ;;  %v6328_v52 = vpop.eup %6327  ;;  %v3606_v57 = vsub.f32 %v10898_v27, %v9356_v31  ;;  %6349 = vpow2.f32 %v3768_v34  ;;  %v10909_v34 = vld [vmem:[#allocation35_spill] sm:$0xff] }
 0x540   :  { %4090 = vperm.xlu0 %6042, %v6316_v9   ;;  %v6330_v19 = vpop.eup %6329  ;;  %v3583_v9 = vsub.f32 %v10899_v60, %v9310_v13  ;;  %6351 = vpow2.f32 %v3722_v11  ;;  %v9385_v13 = vrot.slane %v9306_v28, %v10902_v37  ;;  %v3591_v27 = vsub.f32 %v10909_v34, %v9315_v26  ;;  %v10910_v11 = vld [vmem:[#allocation68_spill] sm:$0xff] }
 0x541   :  { %v6332_v63 = vpop.eup %6331  ;;  %v3772_v29 = vmul.f32 1.442695, %v3606_v57  ;;  %v3633_v60 = vsub.f32 %v10910_v11, %v9398_v55 }
 0x542   :  { %v6334_v10 = vpop.eup %6333  ;;  %v3726_v16 = vmul.f32 1.442695, %v3583_v9  ;;  %v3618_v41 = vsub.f32 %v10908_v35, %v9385_v13 }
 0x543   :  { %4141 = vperm.xlu1 %6043, %v6318_v4   ;;  %v6336_v5 = vpop.eup %6335  ;;  %6353 = vpow2.f32 %v3772_v29  ;;  %v10911_v29 = vld [vmem:[#allocation37_spill] sm:$0xff]  ;;  %v3826_v48 = vmul.f32 1.442695, %v3633_v60 }
 0x544   :  { %4093 = vperm.xlu0 %6042, %v6320_v23   ;;  %v6338_v4 = vpop.eup %6337  ;;  %6355 = vpow2.f32 %v3726_v16  ;;  %v3593_v6 = vsub.f32 %v10911_v29, %v9315_v26  ;;  %v10921_v60 = vld [vmem:[#allocation45_spill] sm:$0xff] }
 0x545   :  { %v6340_v23 = vpop.eup %6339  ;;  %6357 = vpow2.f32 %v3776_v18 }
 0x546   :  { %v6342_v40 = vpop.eup %6341  ;;  %6359 = vpow2.f32 %v3730_v54  ;;  %v3746_v18 = vmul.f32 1.442695, %v3593_v6 }
 0x547   :  { %4147 = vperm.xlu1 %6043, %v6322_v45   ;;  %v3610_v45 = vsub.f32 %v10903_v32, %v9356_v31  ;;  %v6344_v56 = vpop.eup %6343  ;;  %v10914_v32 = vld [vmem:[#allocation39_spill] sm:$0xff] }
 0x548   :  { %4096 = vperm.xlu0 %6042, %v6324_v3   ;;  %v3587_v3 = vsub.f32 %v10904_v59, %v9315_v26  ;;  %v6346_v2 = vpop.eup %6345  ;;  %v10915_v59 = vld [vmem:[#allocation82_spill] sm:$0xff] }
 0x549   :  { %v3780_v43 = vmul.f32 1.442695, %v3610_v45  ;;  %v6348_v17 = vpop.eup %6347  ;;  %v3595_v45 = vsub.f32 %v10914_v32, %v9315_v26 }
 0x54a   :  { %v3734_v61 = vmul.f32 1.442695, %v3587_v3 }
 0x54b   :  { %4153 = vperm.xlu1 %6043, %v6326_v1   ;;  %v3616_v1 = vsub.f32 %v10905_v62, %v9385_v13  ;;  %6361 = vpow2.f32 %v3780_v43  ;;  %v3750_v43 = vmul.f32 1.442695, %v3595_v45  ;;  %v10916_v62 = vld [vmem:[#allocation41_spill] sm:$0xff]  ;;  %v10925_v45 = vld [vmem:[#allocation159_spill] sm:$0xff] }
 0x54c   :  { %4099 = vperm.xlu0 %6042, %v6328_v52   ;;  %v3589_v52 = vsub.f32 %v10906_v8, %v9315_v26  ;;  %v6350_v21 = vpop.eup %6349  ;;  %6363 = vpow2.f32 %v3734_v61  ;;  %v10917_v61 = vsub.s32 6, %v10796_v30 }
 0x54d   :  { %v6352_v57 = vpop.eup %6351 }
 0x54e   :  { %v9424_v8 = vrot.slane %v9306_v28, %v10917_v61 }
 0x54f   :  { %4159 = vperm.xlu1 %6043, %v6330_v19   ;;  %v3792_v19 = vmul.f32 1.442695, %v3616_v1  ;;  %v3597_v1 = vsub.f32 %v10916_v62, %v9315_v26 }
 0x550   :  { %4102 = vperm.xlu0 %6042, %v6332_v63   ;;  %v3738_v63 = vmul.f32 1.442695, %v3589_v52  ;;  %v6354_v9 = vpop.eup %6353 }
 0x551   :  { %6365 = vpow2.f32 %v3792_v19  ;;  %v6356_v50 = vpop.eup %6355  ;;  %v3754_v35 = vmul.f32 1.442695, %v3597_v1  ;;  %v10927_v1 = vld [vmem:[#allocation112_spill] sm:$0xff] }
 0x552   :  { %6367 = vpow2.f32 %v3738_v63  ;;  %v6358_v37 = vpop.eup %6357 }
 0x553   :  { %4165 = vperm.xlu1 %6043, %v6334_v10   ;;  %v3796_v10 = vmul.f32 1.442695, %v3618_v41  ;;  %v10919_v41 = vld [vmem:[#allocation43_spill] sm:$0xff] }
 0x554   :  { %4108 = vperm.xlu0 %6042, %v6336_v5   ;;  %v3742_v5 = vmul.f32 1.442695, %v3591_v27  ;;  %v10920_v27 = vld [vmem:[#allocation96_spill] sm:$0xff] }
 0x555   :  { %6369 = vpow2.f32 %v3796_v10 }
 0x556   :  { %6371 = vpow2.f32 %v3742_v5 }
 0x557   :  { %4171 = vperm.xlu1 %6043, %v6338_v4   ;;  %v10912_v4 = vsub.s32 5, %v10796_v30  ;;  %6373 = vpow2.f32 %v3826_v48  ;;  %v10923_v48 = vld [vmem:[#allocation47_spill] sm:$0xff] }
 0x558   :  { %4111 = vperm.xlu0 %6042, %v6340_v23   ;;  %v3634_v23 = vsub.f32 %v10913_v47, %v9398_v55  ;;  %6375 = vpow2.f32 %v3746_v18  ;;  %v3603_v47 = vsub.f32 %v10923_v48, %v9356_v31 }
 0x559   :  { %v9411_v16 = vrot.slane %v9306_v28, %v10912_v4 }
 0x55a   :  { %v3828_v54 = vmul.f32 1.442695, %v3634_v23 }
 0x55b   :  { %4177 = vperm.xlu1 %6043, %v6342_v40   ;;  %v6360_v40 = vpop.eup %6359  ;;  %v3649_v3 = vsub.f32 %v10915_v59, %v9411_v16  ;;  %v3766_v59 = vmul.f32 1.442695, %v3603_v47 }
 0x55c   :  { %4114 = vperm.xlu0 %6042, %v6344_v56   ;;  %v6362_v56 = vpop.eup %6361  ;;  %6377 = vpow2.f32 %v3828_v54 }
 0x55d   :  { %v3858_v52 = vmul.f32 1.442695, %v3649_v3  ;;  %6379 = vpow2.f32 %v3750_v43  ;;  %v10926_v3 = vld [vmem:[#allocation49_spill] sm:$0xff] }
 0x55f   :  { %4183 = vperm.xlu1 %6043, %v6346_v2   ;;  %v6364_v2 = vpop.eup %6363  ;;  %6381 = vpow2.f32 %v3858_v52  ;;  %v10928_v52 = vld [vmem:[#allocation51_spill] sm:$0xff] }
 0x560   :  { %4117 = vperm.xlu0 %6042, %v6348_v17   ;;  %v10918_v17 = vld [vmem:[#allocation70_spill] sm:$0xff]  ;;  %v6366_v19 = vpop.eup %6365  ;;  %6383 = vpow2.f32 %v3754_v35  ;;  %v10929_v35 = vld [vmem:[#allocation60_spill] sm:$0xff] }
 0x561   :  { %v3635_v22 = vsub.f32 %v10918_v17, %v9398_v55  ;;  %v6368_v63 = vpop.eup %6367  ;;  %v3607_v17 = vsub.f32 %v10928_v52, %v9356_v31 }
 0x562   :  { %v6370_v10 = vpop.eup %6369 }
 0x563   :  { %4189 = vperm.xlu1 %6043, %v6350_v21   ;;  %v3599_v21 = vsub.f32 %v10919_v41, %v9315_v26  ;;  %v3830_v34 = vmul.f32 1.442695, %v3635_v22  ;;  %v6372_v5 = vpop.eup %6371  ;;  %v10922_v26 = vld [vmem:[#allocation136_spill] sm:$0xff]  ;;  %v3622_v41 = vsub.f32 %v10929_v35, %v9385_v13 }
 0x564   :  { %4120 = vperm.xlu0 %6042, %v6352_v57   ;;  %v3664_v57 = vsub.f32 %v10920_v27, %v9424_v8  ;;  %v3621_v6 = vsub.f32 %v10922_v26, %v9385_v13 }
 0x565   :  { %v3758_v11 = vmul.f32 1.442695, %v3599_v21  ;;  %6385 = vpow2.f32 %v3830_v34  ;;  %v10930_v34 = vld [vmem:[#allocation129_spill] sm:$0xff] }
 0x566   :  { %v3888_v29 = vmul.f32 1.442695, %v3664_v57  ;;  %v3802_v32 = vmul.f32 1.442695, %v3621_v6  ;;  %v3609_v27 = vsub.f32 %v10930_v34, %v9356_v31 }
 0x567   :  { %4195 = vperm.xlu1 %6043, %v6354_v9   ;;  %v3601_v9 = vsub.f32 %v10921_v60, %v9356_v31  ;;  %6387 = vpow2.f32 %v3758_v11  ;;  %v10931_v11 = vld [vmem:[#allocation84_spill] sm:$0xff] }
 0x568   :  { %4126 = vperm.xlu0 %6042, %v6356_v50   ;;  %v6374_v50 = vpop.eup %6373  ;;  %6389 = vpow2.f32 %v3888_v29  ;;  %v3652_v60 = vsub.f32 %v10931_v11, %v9411_v16  ;;  %v10932_v29 = vld [vmem:[#allocation128_spill] sm:$0xff] }
 0x569   :  { %v3762_v4 = vmul.f32 1.442695, %v3601_v9  ;;  %v6376_v23 = vpop.eup %6375  ;;  %v3611_v26 = vsub.f32 %v10932_v29, %v9356_v31 }
 0x56a   :  { %v6378_v54 = vpop.eup %6377 }
 0x56b   :  { %4201 = vperm.xlu1 %6043, %v6358_v37   ;;  %v10924_v37 = vsub.s32 7, %v10796_v30  ;;  %6391 = vpow2.f32 %v3762_v4  ;;  %v6380_v43 = vpop.eup %6379  ;;  %v10933_v4 = vld [vmem:[#allocation57_spill] sm:$0xff] }
 0x56c   :  { %4132 = vperm.xlu0 %6042, %v6360_v40   ;;  %v3651_v40 = vsub.f32 %v10925_v45, %v9411_v16  ;;  %6393 = vpow2.f32 %v3802_v32 }
 0x56d   :  { %v9441_v18 = vrot.slane %v9306_v28, %v10924_v37  ;;  %6395 = vpow2.f32 %v3766_v59  ;;  %v10934_v37 = vld [vmem:[#allocation132_spill] sm:$0xff] }
 0x56e   :  { %v3862_v62 = vmul.f32 1.442695, %v3651_v40  ;;  %v3617_v32 = vsub.f32 %v10934_v37, %v9385_v13 }
 0x56f   :  { %4207 = vperm.xlu1 %6043, %v6362_v56   ;;  %v3605_v56 = vsub.f32 %v10926_v3, %v9356_v31  ;;  %v3680_v28 = vsub.f32 %v10927_v1, %v9441_v18  ;;  %v3682_v48 = vsub.f32 %v10933_v4, %v9441_v18 }
 0x570   :  { %4138 = vperm.xlu0 %6042, %v6364_v2   ;;  %v6382_v2 = vpop.eup %6381  ;;  %6397 = vpow2.f32 %v3862_v62 }
 0x571   :  { %v3770_v61 = vmul.f32 1.442695, %v3605_v56  ;;  %v6384_v22 = vpop.eup %6383  ;;  %v3924_v40 = vmul.f32 1.442695, %v3682_v48  ;;  %v3794_v56 = vmul.f32 1.442695, %v3617_v32 }
 0x572   :  { %v6386_v21 = vpop.eup %6385 }
 0x573   :  { %4225 = vperm.xlu1 %6043, %v6366_v19   ;;  %v3920_v19 = vmul.f32 1.442695, %v3680_v28  ;;  %6399 = vpow2.f32 %v3770_v61 }
 0x574   :  { %4144 = vperm.xlu0 %6042, %v6368_v63   ;;  %v3774_v63 = vmul.f32 1.442695, %v3607_v17  ;;  %v6388_v57 = vpop.eup %6387 }
 0x575   :  { %6401 = vpow2.f32 %v3920_v19  ;;  %v6390_v9 = vpop.eup %6389 }
 0x576   :  { %6403 = vpow2.f32 %v3774_v63 }
 0x577   :  { %4231 = vperm.xlu1 %6043, %v6370_v10   ;;  %v3804_v10 = vmul.f32 1.442695, %v3622_v41 }
 0x578   :  { %4150 = vperm.xlu0 %6042, %v6372_v5   ;;  %v3778_v5 = vmul.f32 1.442695, %v3609_v27  ;;  %v6392_v6 = vpop.eup %6391 }
 0x579   :  { %6405 = vpow2.f32 %v3804_v10  ;;  %v6394_v47 = vpop.eup %6393 }
 0x57a   :  { %6407 = vpow2.f32 %v3778_v5  ;;  %v6396_v45 = vpop.eup %6395 }
 0x57b   :  { %4276 = vperm.xlu1 %6043, %v6374_v50   ;;  %v3864_v50 = vmul.f32 1.442695, %v3652_v60 }
 0x57c   :  { %4156 = vperm.xlu0 %6042, %v6376_v23   ;;  %v3782_v23 = vmul.f32 1.442695, %v3611_v26 }
 0x57d   :  { %6409 = vpow2.f32 %v3864_v50  ;;  %v6398_v3 = vpop.eup %6397 }
 0x57e   :  { %6411 = vpow2.f32 %v3782_v23 }
 0x57f   :  { %4279 = vperm.xlu1 %6043, %v6378_v54   ;;  %v10935_v54 = vld [vmem:[#allocation79_spill] sm:$0xff]  ;;  %6413 = vpow2.f32 %v3924_v40 }
 0x580   :  { %4162 = vperm.xlu0 %6042, %v6380_v43   ;;  %v3638_v59 = vsub.f32 %v10935_v54, %v9398_v55  ;;  %v10936_v43 = vld [vmem:[#allocation149_spill] sm:$0xff]  ;;  %v6400_v1 = vpop.eup %6399  ;;  %6415 = vpow2.f32 %v3794_v56 }
 0x581   :  { %v3632_v62 = vsub.f32 %v10936_v43, %v9398_v55 }
 0x582   :  { %v3836_v28 = vmul.f32 1.442695, %v3638_v59  ;;  %v6402_v52 = vpop.eup %6401 }
 0x583   :  { %4324 = vperm.xlu1 %6043, %v6382_v2   ;;  %v10937_v2 = vld [vmem:[#allocation100_spill] sm:$0xff]  ;;  %v3824_v17 = vmul.f32 1.442695, %v3632_v62  ;;  %v6404_v35 = vpop.eup %6403 }
 0x584   :  { %4168 = vperm.xlu0 %6042, %v6384_v22   ;;  %v3668_v61 = vsub.f32 %v10937_v2, %v9424_v8  ;;  %v10938_v22 = vld [vmem:[#allocation134_spill] sm:$0xff]  ;;  %6417 = vpow2.f32 %v3836_v28 }
 0x585   :  { %v3619_v19 = vsub.f32 %v10938_v22, %v9385_v13  ;;  %6419 = vpow2.f32 %v3824_v17 }
 0x586   :  { %v3896_v41 = vmul.f32 1.442695, %v3668_v61  ;;  %v6406_v34 = vpop.eup %6405 }
 0x587   :  { %4282 = vperm.xlu1 %6043, %v6386_v21   ;;  %v10939_v21 = vld [vmem:[#allocation62_spill] sm:$0xff]  ;;  %v3798_v27 = vmul.f32 1.442695, %v3619_v19  ;;  %v6408_v11 = vpop.eup %6407 }
 0x588   :  { %4174 = vperm.xlu0 %6042, %v6388_v57   ;;  %v3624_v63 = vsub.f32 %v10939_v21, %v9385_v13  ;;  %v10940_v57 = vld [vmem:[#allocation157_spill] sm:$0xff]  ;;  %6421 = vpow2.f32 %v3896_v41 }
 0x589   :  { %v3648_v10 = vsub.f32 %v10940_v57, %v9411_v16  ;;  %6423 = vpow2.f32 %v3798_v27 }
 0x58a   :  { %v3808_v60 = vmul.f32 1.442695, %v3624_v63  ;;  %v6410_v29 = vpop.eup %6409 }
 0x58b   :  { %4369 = vperm.xlu1 %6043, %v6390_v9   ;;  %v10941_v9 = vld [vmem:[#allocation160_spill] sm:$0xff]  ;;  %v3856_v26 = vmul.f32 1.442695, %v3648_v10  ;;  %v6412_v4 = vpop.eup %6411 }
 0x58c   :  { %4180 = vperm.xlu0 %6042, %v6392_v6   ;;  %v3654_v5 = vsub.f32 %v10941_v9, %v9411_v16  ;;  %v10942_v6 = vld [vmem:[#allocation58_spill] sm:$0xff]  ;;  %6425 = vpow2.f32 %v3808_v60  ;;  %v6414_v37 = vpop.eup %6413 }
 0x58d   :  { %v3620_v50 = vsub.f32 %v10942_v6, %v9385_v13  ;;  %6427 = vpow2.f32 %v3856_v26  ;;  %v6416_v54 = vpop.eup %6415  ;;  %v10951_v60 = vld [vmem:[#allocation98_spill] sm:$0xff]  ;;  %v10952_v6 = vld [vmem:[#allocation88_spill] sm:$0xff] }
 0x58e   :  { %v3868_v48 = vmul.f32 1.442695, %v3654_v5  ;;  %v3666_v9 = vsub.f32 %v10951_v60, %v9424_v8 }
 0x58f   :  { %4240 = vperm.xlu1 %6043, %v6394_v47   ;;  %v10943_v47 = vld [vmem:[#allocation133_spill] sm:$0xff]  ;;  %v3800_v32 = vmul.f32 1.442695, %v3620_v50  ;;  %v3656_v50 = vsub.f32 %v10952_v6, %v9411_v16 }
 0x590   :  { %4186 = vperm.xlu0 %6042, %v6396_v45   ;;  %v3684_v23 = vsub.f32 %v10943_v47, %v9441_v18  ;;  %v10944_v45 = vld [vmem:[#allocation87_spill] sm:$0xff]  ;;  %6429 = vpow2.f32 %v3868_v48  ;;  %v3892_v47 = vmul.f32 1.442695, %v3666_v9 }
 0x591   :  { %v3650_v40 = vsub.f32 %v10944_v45, %v9411_v16  ;;  %v6418_v43 = vpop.eup %6417  ;;  %6431 = vpow2.f32 %v3800_v32 }
 0x592   :  { %v3928_v59 = vmul.f32 1.442695, %v3684_v23  ;;  %v6420_v2 = vpop.eup %6419  ;;  %v10954_v23 = vld [vmem:[#allocation113_spill] sm:$0xff] }
 0x593   :  { %4330 = vperm.xlu1 %6043, %v6398_v3   ;;  %v10945_v3 = vld [vmem:[#allocation155_spill] sm:$0xff]  ;;  %v3860_v62 = vmul.f32 1.442695, %v3650_v40  ;;  %v3872_v40 = vmul.f32 1.442695, %v3656_v50 }
 0x594   :  { %4192 = vperm.xlu0 %6042, %v6400_v1   ;;  %v3640_v56 = vsub.f32 %v10945_v3, %v9398_v55  ;;  %v10946_v1 = vld [vmem:[#allocation97_spill] sm:$0xff]  ;;  %6433 = vpow2.f32 %v3928_v59 }
 0x595   :  { %v3665_v28 = vsub.f32 %v10946_v1, %v9424_v8  ;;  %v6422_v22 = vpop.eup %6421  ;;  %6435 = vpow2.f32 %v3860_v62  ;;  %v10956_v62 = vld [vmem:[#allocation151_spill] sm:$0xff] }
 0x596   :  { %v3840_v61 = vmul.f32 1.442695, %v3640_v56  ;;  %v6424_v21 = vpop.eup %6423  ;;  %v3637_v1 = vsub.f32 %v10956_v62, %v9398_v55 }
 0x597   :  { %4417 = vperm.xlu1 %6043, %v6402_v52   ;;  %v10947_v52 = vld [vmem:[#allocation102_spill] sm:$0xff]  ;;  %v3890_v19 = vmul.f32 1.442695, %v3665_v28 }
 0x598   :  { %4198 = vperm.xlu0 %6042, %v6404_v35   ;;  %v3670_v17 = vsub.f32 %v10947_v52, %v9424_v8  ;;  %v10948_v35 = vld [vmem:[#allocation77_spill] sm:$0xff]  ;;  %6437 = vpow2.f32 %v3840_v61  ;;  %v10957_v52 = vld [vmem:[#allocation142_spill] sm:$0xff] }
 0x599   :  { %v3636_v41 = vsub.f32 %v10948_v35, %v9398_v55  ;;  %v6426_v57 = vpop.eup %6425  ;;  %6439 = vpow2.f32 %v3890_v19  ;;  %v3834_v35 = vmul.f32 1.442695, %v3637_v1 }
 0x59a   :  { %v3900_v63 = vmul.f32 1.442695, %v3670_v17  ;;  %v6428_v5 = vpop.eup %6427  ;;  %v3627_v17 = vsub.f32 %v10957_v52, %v9385_v13 }
 0x59b   :  { %4243 = vperm.xlu1 %6043, %v6406_v34   ;;  %v10949_v34 = vld [vmem:[#allocation64_spill] sm:$0xff] }
 0x59c   :  { %4204 = vperm.xlu0 %6042, %v6408_v11   ;;  %v3626_v27 = vsub.f32 %v10949_v34, %v9385_v13  ;;  %v3832_v11 = vmul.f32 1.442695, %v3636_v41  ;;  %6441 = vpow2.f32 %v3900_v63  ;;  %v10958_v41 = vld [vmem:[#allocation99_spill] sm:$0xff] }
 0x59e   :  { %v3812_v26 = vmul.f32 1.442695, %v3626_v27  ;;  %6443 = vpow2.f32 %v3832_v11  ;;  %v3814_v27 = vmul.f32 1.442695, %v3627_v17 }
 0x59f   :  { %4333 = vperm.xlu1 %6043, %v6410_v29  }
 0x5a0   :  { %4210 = vperm.xlu0 %6042, %v6412_v4   ;;  %v6430_v4 = vpop.eup %6429  ;;  %6445 = vpow2.f32 %v3812_v26  ;;  %v10960_v26 = vld [vmem:[#allocation138_spill] sm:$0xff] }
 0x5a1   :  { %v6432_v32 = vpop.eup %6431  ;;  %6447 = vpow2.f32 %v3892_v47  ;;  %v3623_v6 = vsub.f32 %v10960_v26, %v9385_v13 }
 0x5a2   :  { %v6434_v3 = vpop.eup %6433  ;;  %6449 = vpow2.f32 %v3872_v40 }
 0x5a3   :  { %4423 = vperm.xlu1 %6043, %v6414_v37   ;;  %v3681_v37 = vsub.f32 %v10954_v23, %v9441_v18  ;;  %v6436_v28 = vpop.eup %6435  ;;  %v10961_v23 = vld [vmem:[#allocation117_spill] sm:$0xff] }
 0x5a4   :  { %4228 = vperm.xlu0 %6042, %v6416_v54   ;;  %v10955_v54 = vld [vmem:[#allocation135_spill] sm:$0xff] }
 0x5a5   :  { %v3686_v59 = vsub.f32 %v10955_v54, %v9441_v18  ;;  %v3806_v54 = vmul.f32 1.442695, %v3623_v6  ;;  %v10970_v6 = vld [vmem:[#allocation153_spill] sm:$0xff] }
 0x5a7   :  { %4291 = vperm.xlu1 %6043, %v6418_v43   ;;  %v3922_v43 = vmul.f32 1.442695, %v3681_v37  ;;  %v3932_v61 = vmul.f32 1.442695, %v3686_v59  ;;  %v3687_v37 = vsub.f32 %v10961_v23, %v9441_v18  ;;  %v10962_v59 = vld [vmem:[#allocation89_spill] sm:$0xff] }
 0x5a8   :  { %4273 = vperm.xlu0 %6042, %v6420_v2  }
 0x5a9   :  { %6451 = vpow2.f32 %v3922_v43  ;;  %v3934_v1 = vmul.f32 1.442695, %v3687_v37 }
 0x5aa   :  { %6453 = vpow2.f32 %v3932_v61 }
 0x5ab   :  { %4381 = vperm.xlu1 %6043, %v6422_v22   ;;  %v6438_v22 = vpop.eup %6437  ;;  %6455 = vpow2.f32 %v3834_v35  ;;  %v10966_v35 = vld [vmem:[#allocation114_spill] sm:$0xff] }
 0x5ac   :  { %4234 = vperm.xlu0 %6042, %v6424_v21   ;;  %v3667_v21 = vsub.f32 %v10958_v41, %v9424_v8  ;;  %v6440_v63 = vpop.eup %6439  ;;  %6457 = vpow2.f32 %v3814_v27  ;;  %v3683_v41 = vsub.f32 %v10966_v35, %v9441_v18  ;;  %v10976_v35 = vld [vmem:[#allocation145_spill] sm:$0xff] }
 0x5ad   :  { %v6442_v60 = vpop.eup %6441 }
 0x5ae   :  { %v9493_v10 = vpop.permute.xlu1 %4105  ;;  %v6444_v50 = vpop.eup %6443  ;;  %v3926_v26 = vmul.f32 1.442695, %v3683_v41  ;;  %v3629_v41 = vsub.f32 %v10976_v35, %v9385_v13 }
 0x5af   :  { %10950 = vst [vmem:[#allocation152_spill] sm:$0xff] %v9493_v10  ;;  %v9497_v29 = vpop.permute.xlu0 %4081  ;;  %4249 = vperm.xlu1 %6043, %v6426_v57   ;;  %v10959_v57 = vld [vmem:[#allocation174_spill] sm:$0xff] }
 0x5b0   :  { %4321 = vperm.xlu0 %6042, %v6428_v5   ;;  %v3657_v11 = vsub.f32 %v10959_v57, %v9411_v16  ;;  %v3894_v5 = vmul.f32 1.442695, %v3667_v21  ;;  %v10968_v57 = vld [vmem:[#allocation91_spill] sm:$0xff] }
 0x5b2   :  { %v9501_v48 = vpop.permute.xlu1 %4123  ;;  %v3874_v47 = vmul.f32 1.442695, %v3657_v11  ;;  %6459 = vpow2.f32 %v3894_v5  ;;  %v3658_v11 = vsub.f32 %v10968_v57, %v9411_v16 }
 0x5b3   :  { %10953 = vst [vmem:[#allocation81_spill] sm:$0xff] %v9501_v48  ;;  %v9505_v45 = vpop.permute.xlu0 %4084  ;;  %4339 = vperm.xlu1 %6043, %v6430_v4  }
 0x5b4   :  { %4237 = vperm.xlu0 %6042, %v6432_v32   ;;  %v6446_v32 = vpop.eup %6445  ;;  %6461 = vpow2.f32 %v3874_v47  ;;  %v3876_v37 = vmul.f32 1.442695, %v3658_v11  ;;  %v10978_v11 = vld [vmem:[#allocation140_spill] sm:$0xff] }
 0x5b5   :  { %v6448_v43 = vpop.eup %6447  ;;  %6463 = vpow2.f32 %v3806_v54 }
 0x5b6   :  { %v9509_v56 = vpop.permute.xlu1 %4129  ;;  %v6450_v52 = vpop.eup %6449  ;;  %6465 = vpow2.f32 %v3934_v1  ;;  %v10974_v1 = vld [vmem:[#allocation101_spill] sm:$0xff] }
 0x5b7   :  { %v9513_v2 = vpop.permute.xlu0 %4087  ;;  %4429 = vperm.xlu1 %6043, %v6434_v3   ;;  %v3653_v3 = vsub.f32 %v10962_v59, %v9411_v16  ;;  %v6452_v21 = vpop.eup %6451 }
 0x5b8   :  { %4327 = vperm.xlu0 %6042, %v6436_v28   ;;  %v10964_v28 = vld [vmem:[#allocation69_spill] sm:$0xff] }
 0x5b9   :  { %v3628_v61 = vsub.f32 %v10964_v28, %v9385_v13  ;;  %v3669_v28 = vsub.f32 %v10974_v1, %v9424_v8 }
 0x5ba   :  { %v9517_v19 = vpop.permute.xlu1 %4135 }
 0x5bb   :  { %v9521_v34 = vpop.permute.xlu0 %4090  ;;  %4297 = vperm.xlu1 %6043, %v6438_v22   ;;  %v3866_v22 = vmul.f32 1.442695, %v3653_v3  ;;  %v3816_v27 = vmul.f32 1.442695, %v3628_v61  ;;  %v3898_v57 = vmul.f32 1.442695, %v3669_v28 }
 0x5bc   :  { %4372 = vperm.xlu0 %6042, %v6440_v63  }
 0x5bd   :  { %6467 = vpow2.f32 %v3866_v22 }
 0x5be   :  { %v9525_v9 = vpop.permute.xlu1 %4141  ;;  %6469 = vpow2.f32 %v3816_v27 }
 0x5bf   :  { %v9529_v4 = vpop.permute.xlu0 %4093  ;;  %4387 = vperm.xlu1 %6043, %v6442_v60   ;;  %v6454_v60 = vpop.eup %6453  ;;  %6471 = vpow2.f32 %v3926_v26 }
 0x5c0   :  { %4285 = vperm.xlu0 %6042, %v6444_v50   ;;  %v3639_v50 = vsub.f32 %v10970_v6, %v9398_v55  ;;  %v6456_v47 = vpop.eup %6455  ;;  %6473 = vpow2.f32 %v3876_v37 }
 0x5c1   :  { %v6458_v59 = vpop.eup %6457 }
 0x5c2   :  { %v9533_v40 = vpop.permute.xlu1 %4147  ;;  %v6460_v61 = vpop.eup %6459 }
 0x5c3   :  { %v9537_v62 = vpop.permute.xlu0 %4096  ;;  %4255 = vperm.xlu1 %6043, %v6446_v32   ;;  %v10972_v32 = vld [vmem:[#allocation137_spill] sm:$0xff] }
 0x5c4   :  { %10963 = vst [vmem:[#allocation116_spill] sm:$0xff] %v9537_v62  ;;  %4375 = vperm.xlu0 %6042, %v6448_v43   ;;  %v3688_v54 = vsub.f32 %v10972_v32, %v9441_v18  ;;  %v3838_v43 = vmul.f32 1.442695, %v3639_v50  ;;  %v3818_v50 = vmul.f32 1.442695, %v3629_v41 }
 0x5c6   :  { %v9541_v17 = vpop.permute.xlu1 %4153  ;;  %v3936_v22 = vmul.f32 1.442695, %v3688_v54  ;;  %6475 = vpow2.f32 %v3838_v43  ;;  %v10981_v43 = vld [vmem:[#allocation86_spill] sm:$0xff] }
 0x5c7   :  { %10965 = vst [vmem:[#allocation176_spill] sm:$0xff] %v9541_v17  ;;  %v9545_v63 = vpop.permute.xlu0 %4099  ;;  %4345 = vperm.xlu1 %6043, %v6450_v52   ;;  %v3655_v1 = vsub.f32 %v10981_v43, %v9411_v16 }
 0x5c8   :  { %10967 = vst [vmem:[#allocation80_spill] sm:$0xff] %v9545_v63  ;;  %4420 = vperm.xlu0 %6042, %v6452_v21   ;;  %v6462_v21 = vpop.eup %6461  ;;  %6477 = vpow2.f32 %v3936_v22  ;;  %v10983_v22 = vld [vmem:[#allocation119_spill] sm:$0xff] }
 0x5c9   :  { %v6464_v26 = vpop.eup %6463  ;;  %6479 = vpow2.f32 %v3898_v57  ;;  %v3689_v41 = vsub.f32 %v10983_v22, %v9441_v18  ;;  %v10984_v57 = vld [vmem:[#allocation115_spill] sm:$0xff] }
 0x5ca   :  { %v9549_v5 = vpop.permute.xlu1 %4159  ;;  %v6466_v32 = vpop.eup %6465  ;;  %6481 = vpow2.f32 %v3818_v50  ;;  %v10986_v50 = vld [vmem:[#allocation147_spill] sm:$0xff] }
 0x5cb   :  { %10969 = vst [vmem:[#allocation177_spill] sm:$0xff] %v9549_v5  ;;  %v9553_v23 = vpop.permute.xlu0 %4102  ;;  %4435 = vperm.xlu1 %6043, %v6454_v60   ;;  %v3625_v60 = vsub.f32 %v10978_v11, %v9385_v13  ;;  %v6468_v28 = vpop.eup %6467 }
 0x5cc   :  { %10971 = vst [vmem:[#allocation179_spill] sm:$0xff] %v9553_v23  ;;  %4288 = vperm.xlu0 %6042, %v6456_v47   ;;  %v10980_v47 = vld [vmem:[#allocation90_spill] sm:$0xff] }
 0x5cd   :  { %v3659_v37 = vsub.f32 %v10980_v47, %v9411_v16 }
 0x5ce   :  { %v9557_v3 = vpop.permute.xlu1 %4165 }
 0x5cf   :  { %10973 = vst [vmem:[#allocation59_spill] sm:$0xff] %v9557_v3  ;;  %v9561_v52 = vpop.permute.xlu0 %4108  ;;  %4258 = vperm.xlu1 %6043, %v6458_v59   ;;  %v3810_v59 = vmul.f32 1.442695, %v3625_v60  ;;  %v3878_v35 = vmul.f32 1.442695, %v3659_v37  ;;  %v3685_v60 = vsub.f32 %v10984_v57, %v9441_v18  ;;  %v3630_v37 = vsub.f32 %v10986_v50, %v9385_v13 }
 0x5d0   :  { %10975 = vst [vmem:[#allocation175_spill] sm:$0xff] %v9561_v52  ;;  %4378 = vperm.xlu0 %6042, %v6460_v61  }
 0x5d1   :  { %6483 = vpow2.f32 %v3810_v59  ;;  %v3930_v58 = vmul.f32 1.442695, %v3685_v60  ;;  %v10987_v59 = vld [vmem:[#allocation76_spill] sm:$0xff] }
 0x5d2   :  { %v9565_v27 = vpop.permute.xlu1 %4171  ;;  %6485 = vpow2.f32 %v3878_v35  ;;  %v10989_v35 = vld [vmem:[#allocation93_spill] sm:$0xff] }
 0x5d3   :  { %10977 = vst [vmem:[#allocation118_spill] sm:$0xff] %v9565_v27  ;;  %v9569_v6 = vpop.permute.xlu0 %4111  ;;  %4348 = vperm.xlu1 %6043, %v6462_v21   ;;  %v6470_v21 = vpop.eup %6469 }
 0x5d4   :  { %10979 = vst [vmem:[#allocation127_spill] sm:$0xff] %v9569_v6  ;;  %4246 = vperm.xlu0 %6042, %v6464_v26   ;;  %v3870_v26 = vmul.f32 1.442695, %v3655_v1  ;;  %v6472_v47 = vpop.eup %6471  ;;  %v3641_v1 = vsub.f32 %v10987_v59, %v9398_v55 }
 0x5d6   :  { %v9573_v54 = vpop.permute.xlu1 %4177  ;;  %6487 = vpow2.f32 %v3870_v26  ;;  %v3842_v25 = vmul.f32 1.442695, %v3641_v1  ;;  %v10990_v26 = vld [vmem:[#allocation103_spill] sm:$0xff] }
 0x5d7   :  { %v9577_v61 = vpop.permute.xlu0 %4114  ;;  %4438 = vperm.xlu1 %6043, %v6466_v32   ;;  %v3938_v32 = vmul.f32 1.442695, %v3689_v41  ;;  %v3660_v41 = vsub.f32 %v10989_v35, %v9411_v16  ;;  %v3671_v60 = vsub.f32 %v10990_v26, %v9424_v8 }
 0x5d8   :  { %10982 = vst [vmem:[#allocation126_spill] sm:$0xff] %v9577_v61  ;;  %4336 = vperm.xlu0 %6042, %v6468_v28   ;;  %v6474_v28 = vpop.eup %6473 }
 0x5d9   :  { %v6476_v30 = vpop.eup %6475  ;;  %6489 = vpow2.f32 %v3938_v32  ;;  %v10992_v32 = vld [vmem:[#allocation139_spill] sm:$0xff] }
 0x5da   :  { %v9581_v11 = vpop.permute.xlu1 %4183  ;;  %6491 = vpow2.f32 %v3930_v58  ;;  %v10993_v58 = vld [vmem:[#allocation55_spill] sm:$0xff] }
 0x5db   :  { %v9585_v43 = vpop.permute.xlu0 %4117  ;;  %4261 = vperm.xlu1 %6043, %v6470_v21   ;;  %v3820_v21 = vmul.f32 1.442695, %v3630_v37  ;;  %v3690_v37 = vsub.f32 %v10992_v32, %v9441_v18  ;;  %v3612_v1 = vsub.f32 %v10993_v58, %v9356_v31 }
 0x5dc   :  { %10985 = vst [vmem:[#allocation178_spill] sm:$0xff] %v9585_v43  ;;  %4426 = vperm.xlu0 %6042, %v6472_v47   ;;  %v6478_v47 = vpop.eup %6477 }
 0x5dd   :  { %v6480_v27 = vpop.eup %6479  ;;  %6493 = vpow2.f32 %v3820_v21  ;;  %v10994_v21 = vld [vmem:[#allocation158_spill] sm:$0xff] }
 0x5de   :  { %v9589_v22 = vpop.permute.xlu1 %4189  ;;  %6495 = vpow2.f32 %v3842_v25  ;;  %v10995_v25 = vld [vmem:[#allocation78_spill] sm:$0xff] }
 0x5df   :  { %v9593_v57 = vpop.permute.xlu0 %4120  ;;  %4351 = vperm.xlu1 %6043, %v6474_v28   ;;  %v6482_v28 = vpop.eup %6481 }
 0x5e0   :  { %10988 = vst [vmem:[#allocation182_spill] sm:$0xff] %v9593_v57  ;;  %4294 = vperm.xlu0 %6042, %v6476_v30   ;;  %v3880_v30 = vmul.f32 1.442695, %v3660_v41  ;;  %v3902_v57 = vmul.f32 1.442695, %v3671_v60  ;;  %v6484_v43 = vpop.eup %6483  ;;  %v3646_v41 = vsub.f32 %v10994_v21, %v9398_v55  ;;  %v3642_v60 = vsub.f32 %v10995_v25, %v9398_v55 }
 0x5e2   :  { %v9597_v50 = vpop.permute.xlu1 %4195  ;;  %6497 = vpow2.f32 %v3880_v30  ;;  %v10996_v30 = vld [vmem:[#allocation108_spill] sm:$0xff]  ;;  %v3844_v33 = vmul.f32 1.442695, %v3642_v60 }
 0x5e3   :  { %v9601_v59 = vpop.permute.xlu0 %4126  ;;  %4441 = vperm.xlu1 %6043, %v6478_v47   ;;  %v6486_v47 = vpop.eup %6485  ;;  %6499 = vpow2.f32 %v3902_v57  ;;  %v10997_v57 = vld [vmem:[#allocation104_spill] sm:$0xff] }
 0x5e4   :  { %10991 = vst [vmem:[#allocation61_spill] sm:$0xff] %v9601_v59  ;;  %4384 = vperm.xlu0 %6042, %v6480_v27   ;;  %v3940_v27 = vmul.f32 1.442695, %v3690_v37  ;;  %v3784_v59 = vmul.f32 1.442695, %v3612_v1  ;;  %v6488_v48 = vpop.eup %6487  ;;  %v3676_v37 = vsub.f32 %v10996_v30, %v9424_v8  ;;  %v3672_v1 = vsub.f32 %v10997_v57, %v9424_v8 }
 0x5e6   :  { %v9605_v35 = vpop.permute.xlu1 %4201  ;;  %6501 = vpow2.f32 %v3940_v27  ;;  %v10998_v27 = vld [vmem:[#allocation85_spill] sm:$0xff]  ;;  %v3904_v3 = vmul.f32 1.442695, %v3672_v1 }
 0x5e7   :  { %v9609_v26 = vpop.permute.xlu0 %4132  ;;  %4264 = vperm.xlu1 %6043, %v6482_v28   ;;  %v6490_v28 = vpop.eup %6489  ;;  %6503 = vpow2.f32 %v3784_v59  ;;  %v10999_v59 = vld [vmem:[#allocation131_spill] sm:$0xff] }
 0x5e8   :  { %4252 = vperm.xlu0 %6042, %v6484_v43   ;;  %v3852_v43 = vmul.f32 1.442695, %v3646_v41  ;;  %v6492_v61 = vpop.eup %6491  ;;  %v3647_v41 = vsub.f32 %v10998_v27, %v9398_v55  ;;  %v3613_v60 = vsub.f32 %v10999_v59, %v9356_v31 }
 0x5ea   :  { %v9613_v32 = vpop.permute.xlu1 %4207  ;;  %6505 = vpow2.f32 %v3852_v43  ;;  %v11000_v43 = vld [vmem:[#allocation109_spill] sm:$0xff]  ;;  %v3786_v6 = vmul.f32 1.442695, %v3613_v60 }
 0x5eb   :  { %v9617_v58 = vpop.permute.xlu0 %4138  ;;  %4354 = vperm.xlu1 %6043, %v6486_v47   ;;  %v6494_v47 = vpop.eup %6493  ;;  %6507 = vpow2.f32 %v3844_v33  ;;  %v11001_v33 = vld [vmem:[#allocation154_spill] sm:$0xff] }
 0x5ec   :  { %4342 = vperm.xlu0 %6042, %v6488_v48   ;;  %v3912_v48 = vmul.f32 1.442695, %v3676_v37  ;;  %v6496_v14 = vpop.eup %6495  ;;  %v3677_v37 = vsub.f32 %v11000_v43, %v9424_v8  ;;  %v3643_v1 = vsub.f32 %v11001_v33, %v9398_v55 }
 0x5ee   :  { %v9621_v21 = vpop.permute.xlu1 %4225  ;;  %6509 = vpow2.f32 %v3912_v48  ;;  %v11002_v48 = vld [vmem:[#allocation95_spill] sm:$0xff]  ;;  %v3846_v52 = vmul.f32 1.442695, %v3643_v1 }
 0x5ef   :  { %v9625_v25 = vpop.permute.xlu0 %4144  ;;  %4444 = vperm.xlu1 %6043, %v6490_v28   ;;  %v6498_v28 = vpop.eup %6497  ;;  %6511 = vpow2.f32 %v3904_v3  ;;  %v11003_v3 = vld [vmem:[#allocation105_spill] sm:$0xff] }
 0x5f0   :  { %4432 = vperm.xlu0 %6042, %v6492_v61   ;;  %v3854_v61 = vmul.f32 1.442695, %v3647_v41  ;;  %v6500_v10 = vpop.eup %6499  ;;  %v3663_v41 = vsub.f32 %v11002_v48, %v9411_v16  ;;  %v3673_v60 = vsub.f32 %v11003_v3, %v9424_v8 }
 0x5f2   :  { %v9629_v30 = vpop.permute.xlu1 %4231  ;;  %6513 = vpow2.f32 %v3854_v61  ;;  %v11005_v61 = vld [vmem:[#allocation123_spill] sm:$0xff]  ;;  %v3906_v23 = vmul.f32 1.442695, %v3673_v60 }
 0x5f3   :  { %v9633_v57 = vpop.permute.xlu0 %4150  ;;  %4267 = vperm.xlu1 %6043, %v6494_v47   ;;  %v6502_v47 = vpop.eup %6501  ;;  %6515 = vpow2.f32 %v3786_v6  ;;  %v11006_v6 = vld [vmem:[#allocation52_spill] sm:$0xff] }
 0x5f4   :  { %4300 = vperm.xlu0 %6042, %v6496_v14   ;;  %v3914_v14 = vmul.f32 1.442695, %v3677_v37  ;;  %v6504_v5 = vpop.eup %6503  ;;  %v3693_v37 = vsub.f32 %v11005_v61, %v9441_v18  ;;  %v3614_v1 = vsub.f32 %v11006_v6, %v9356_v31 }
 0x5f6   :  { %v9637_v27 = vpop.permute.xlu1 %4276  ;;  %6517 = vpow2.f32 %v3914_v14  ;;  %v11008_v14 = vld [vmem:[#allocation67_spill] sm:$0xff] }
 0x5f7   :  { %v9641_v59 = vpop.permute.xlu0 %4156  ;;  %4357 = vperm.xlu1 %6043, %v6498_v28   ;;  %v6506_v28 = vpop.eup %6505  ;;  %6519 = vpow2.f32 %v3846_v52  ;;  %v11009_v52 = vld [vmem:[#allocation156_spill] sm:$0xff] }
 0x5f8   :  { %4390 = vperm.xlu0 %6042, %v6500_v10   ;;  %v3886_v10 = vmul.f32 1.442695, %v3663_v41  ;;  %v6508_v63 = vpop.eup %6507  ;;  %v3694_v41 = vsub.f32 %v11008_v14, %v9441_v18  ;;  %v3644_v60 = vsub.f32 %v11009_v52, %v9398_v55  ;;  %v11011_v14 = vld [vmem:[#allocation106_spill] sm:$0xff]  ;;  %v4625_v52 = vrot.slane %v9573_v54, %v8811_v46 }
 0x5fa   :  { %v9645_v43 = vpop.permute.xlu1 %4279  ;;  %6521 = vpow2.f32 %v3886_v10 }
 0x5fb   :  { %v9649_v33 = vpop.permute.xlu0 %4162  ;;  %4447 = vperm.xlu1 %6043, %v6502_v47   ;;  %v6510_v47 = vpop.eup %6509  ;;  %6523 = vpow2.f32 %v3906_v23 }
 0x5fc   :  { %11004 = vst [vmem:[#allocation181_spill] sm:$0xff] %v9649_v33  ;;  %4213 = vperm.xlu0 %6042, %v6504_v5   ;;  %v3946_v5 = vmul.f32 1.442695, %v3693_v37  ;;  %v3788_v33 = vmul.f32 1.442695, %v3614_v1  ;;  %v6512_v17 = vpop.eup %6511 }
 0x5fe   :  { %v9653_v48 = vpop.permute.xlu1 %4324  ;;  %6525 = vpow2.f32 %v3946_v5 }
 0x5ff   :  { %v9657_v3 = vpop.permute.xlu0 %4168  ;;  %4315 = vperm.xlu1 %6043, %v6506_v28   ;;  %v6514_v10 = vpop.eup %6513  ;;  %6527 = vpow2.f32 %v3788_v33  ;;  %v3848_v28 = vmul.f32 1.442695, %v3644_v60  ;;  %v11012_v60 = vld [vmem:[#allocation130_spill] sm:$0xff] }
 0x600   :  { %11007 = vst [vmem:[#allocation120_spill] sm:$0xff] %v9657_v3  ;;  %4303 = vperm.xlu0 %6042, %v6508_v63   ;;  %v3948_v63 = vmul.f32 1.442695, %v3694_v41  ;;  %v3674_v3 = vsub.f32 %v11011_v14, %v9424_v8  ;;  %v6516_v23 = vpop.eup %6515 }
 0x602   :  { %v9661_v61 = vpop.permute.xlu1 %4282  ;;  %6529 = vpow2.f32 %v3948_v63 }
 0x603   :  { %v9665_v6 = vpop.permute.xlu0 %4174  ;;  %4405 = vperm.xlu1 %6043, %v6510_v47   ;;  %v6518_v5 = vpop.eup %6517  ;;  %6531 = vpow2.f32 %v3848_v28  ;;  %v3908_v47 = vmul.f32 1.442695, %v3674_v3 }
 0x604   :  { %11010 = vst [vmem:[#allocation144_spill] sm:$0xff] %v9665_v6  ;;  %4393 = vperm.xlu0 %6042, %v6512_v17   ;;  %v4634_v17 = vrot.slane %v9581_v11, %v8816_v53  ;;  %v6520_v14 = vpop.eup %6519  ;;  %v4644_v11 = vrot.slane %v9589_v22, %v8836_v20  ;;  %v4654_v22 = vrot.slane %v9597_v50, %v8844_v7 }
 0x605   :  { %6533 = vpow2.f32 %v3908_v47  ;;  %v4664_v50 = vrot.slane %v9605_v35, %v8870_v12  ;;  %v4674_v35 = vrot.slane %v9613_v32, %v8877_v39 }
 0x606   :  { %v9667_v37 = vpop.permute.xlu1 %4369 }
 0x607   :  { %v4181_v1 = vpop.permute.xlu0 %4180  ;;  %4318 = vperm.xlu1 %6043, %v6514_v10   ;;  %v3615_v10 = vsub.f32 %v11012_v60, %v9356_v31  ;;  %v6522_v63 = vpop.eup %6521  ;;  %v11013_v31 = vld [vmem:[#allocation83_spill] sm:$0xff] }
 0x608   :  { %v4629_v6 = vrot.slane %v4181_v1, %v8807_v24  ;;  %4216 = vperm.xlu0 %6042, %v6516_v23   ;;  %v3645_v28 = vsub.f32 %v11013_v31, %v9398_v55  ;;  %v11016_v55 = vld [vmem:[#allocation107_spill] sm:$0xff] }
 0x609   :  { %v3790_v3 = vmul.f32 1.442695, %v3615_v10  ;;  %v3675_v10 = vsub.f32 %v11016_v55, %v9424_v8 }
 0x60a   :  { %v4630_v33 = vsel %vm2850_vm1, %v4629_v6, %v4625_v52  ;;  %v9677_v41 = vpop.permute.xlu1 %4240  ;;  %v6524_v52 = vpop.eup %6523  ;;  %v3850_v47 = vmul.f32 1.442695, %v3645_v28  ;;  %v11018_v28 = vld [vmem:[#allocation66_spill] sm:$0xff] }
 0x60b   :  { %v4635_v54 = vsel %vm2857_vm2, %v4634_v17, %v4630_v33  ;;  %v4187_v62 = vpop.permute.xlu0 %4186  ;;  %4408 = vperm.xlu1 %6043, %v6518_v5   ;;  %v6526_v33 = vpop.eup %6525  ;;  %6535 = vpow2.f32 %v3790_v3  ;;  %v3910_v3 = vmul.f32 1.442695, %v3675_v10  ;;  %v11019_v10 = vld [vmem:[#allocation92_spill] sm:$0xff] }
 0x60c   :  { %v4639_v23 = vrot.slane %v4187_v62, %v8824_v36  ;;  %4306 = vperm.xlu0 %6042, %v6520_v14   ;;  %6537 = vpow2.f32 %v3850_v47 }
 0x60d   :  { %6539 = vpow2.f32 %v3910_v3 }
 0x60e   :  { %v4640_v6 = vsel %vm2864_vm3, %v4639_v23, %v4635_v54  ;;  %v9686_v1 = vpop.permute.xlu1 %4330  ;;  %v6528_v54 = vpop.eup %6527 }
 0x60f   :  { %v4645_v17 = vsel %vm11014_vm0, %v4644_v11, %v4640_v6  ;;  %v4193_v5 = vpop.permute.xlu0 %4192  ;;  %4366 = vperm.xlu1 %6043, %v6522_v63   ;;  %vm11017_vm0 = vcmask 458112   ;;  %v6530_v6 = vpop.eup %6529 }
 0x610   :  { %v4649_v62 = vrot.slane %v4193_v5, %v8839_v44  ;;  %4396 = vperm.xlu0 %6042, %v6524_v52   ;;  %v6532_v5 = vpop.eup %6531 }
 0x612   :  { %v4650_v60 = vsel %vm11015_vm12, %v4649_v62, %v4645_v17  ;;  %v9695_v14 = vpop.permute.xlu1 %4417  ;;  %v3631_v17 = vsub.f32 %v11018_v28, %v9385_v13  ;;  %v3661_v13 = vsub.f32 %v11019_v10, %v9411_v16  ;;  %vm11020_vm12 = vcmask 720512  }
 0x613   :  { %v4655_v23 = vsel %vm11017_vm0, %v4654_v22, %v4650_v60  ;;  %v4199_v11 = vpop.permute.xlu0 %4198  ;;  %4456 = vperm.xlu1 %6043, %v6526_v33   ;;  %vm11021_vm0 = vcmask 786112  }
 0x614   :  { %v4659_v63 = vrot.slane %v4199_v11, %v8858_v0  ;;  %4219 = vperm.xlu0 %6042, %v6528_v54   ;;  %v3822_v47 = vmul.f32 1.442695, %v3631_v17  ;;  %v6534_v54 = vpop.eup %6533 }
 0x616   :  { %v4660_v31 = vsel %vm2892_vm7, %v4659_v63, %v4655_v23  ;;  %v9704_v52 = vpop.permute.xlu1 %4243  ;;  %6541 = vpow2.f32 %v3822_v47 }
 0x617   :  { %v4665_v62 = vsel %vm2899_vm8, %v4664_v50, %v4660_v31  ;;  %v4205_v22 = vpop.permute.xlu0 %4204  ;;  %4459 = vperm.xlu1 %6043, %v6530_v6   ;;  %v3882_v6 = vmul.f32 1.442695, %v3661_v13  ;;  %v11022_v31 = vld [vmem:[#allocation121_spill] sm:$0xff] }
 0x618   :  { %v4669_v33 = vrot.slane %v4205_v22, %v8873_v51  ;;  %4309 = vperm.xlu0 %6042, %v6532_v5   ;;  %v3691_v3 = vsub.f32 %v11022_v31, %v9441_v18  ;;  %v6536_v28 = vpop.eup %6535  ;;  %v4704_v5 = vrot.slane %v9621_v21, %v8811_v46  ;;  %v4713_v22 = vrot.slane %v9629_v30, %v8816_v53 }
 0x619   :  { %6543 = vpow2.f32 %v3882_v6  ;;  %v6538_v13 = vpop.eup %6537  ;;  %v4787_v21 = vrot.slane %v9637_v27, %v8807_v24  ;;  %v4792_v30 = vrot.slane %v9645_v43, %v8816_v53 }
 0x61a   :  { %v4670_v60 = vsel %vm2906_vm9, %v4669_v33, %v4665_v62  ;;  %v9713_v55 = vpop.permute.xlu1 %4333  ;;  %v11023_v33 = vld [vmem:[#allocation94_spill] sm:$0xff]  ;;  %v3942_v10 = vmul.f32 1.442695, %v3691_v3  ;;  %v11024_v3 = vld [vmem:[#allocation141_spill] sm:$0xff] }
 0x61b   :  { %v4675_v23 = vsel %vm11020_vm12, %v4674_v35, %v4670_v60  ;;  %v4211_v11 = vpop.permute.xlu0 %4210  ;;  %v3662_v35 = vsub.f32 %v11023_v33, %v9411_v16  ;;  %vm11028_vm12 = vcmask 326912  }
 0x61c   :  { %v4679_v63 = vrot.slane %v4211_v11, %v8880_v49  ;;  %4399 = vperm.xlu0 %6042, %v6534_v54   ;;  %6545 = vpow2.f32 %v3942_v10 }
 0x61d   :  { %v3884_v16 = vmul.f32 1.442695, %v3662_v35  ;;  %v11025_v35 = vld [vmem:[#allocation110_spill] sm:$0xff] }
 0x61e   :  { %v9720_v50 = vsel %vm11021_vm0, %v4679_v63, %v4675_v23  ;;  %v9722_v32 = vpop.permute.xlu1 %4423  ;;  %v4797_v63 = vrot.slane %v9661_v61, %v8824_v36  ;;  %vm11029_vm0 = vcmask 392512  }
 0x61f   :  { %v4229_v17 = vpop.permute.xlu0 %4228  ;;  %6547 = vpow2.f32 %v3884_v16  ;;  %v11026_v16 = vld [vmem:[#allocation111_spill] sm:$0xff] }
 0x620   :  { %v4708_v62 = vrot.slane %v4229_v17, %v8807_v24  ;;  %4222 = vperm.xlu0 %6042, %v6536_v28   ;;  %v3692_v28 = vsub.f32 %v11024_v3, %v9441_v18  ;;  %v6540_v17 = vpop.eup %6539 }
 0x622   :  { %v4709_v60 = vsel %vm2850_vm1, %v4708_v62, %v4704_v5  ;;  %v9734_v47 = vpop.permute.xlu1 %4291  ;;  %v3944_v33 = vmul.f32 1.442695, %v3692_v28 }
 0x623   :  { %v4274_v54 = vpop.permute.xlu0 %4273  ;;  %v4714_v23 = vsel %vm2857_vm2, %v4713_v22, %v4709_v60  ;;  %v3678_v60 = vsub.f32 %v11025_v35, %v9424_v8  ;;  %v6542_v10 = vpop.eup %6541 }
 0x624   :  { %v4783_v11 = vrot.slane %v4274_v54, %v8811_v46  ;;  %4312 = vperm.xlu0 %6042, %v6538_v13   ;;  %v4866_v54 = vrot.slane %v9653_v48, %v8807_v24  ;;  %6549 = vpow2.f32 %v3944_v33  ;;  %v4728_v48 = vrot.slane %v9677_v41, %v8839_v44 }
 0x626   :  { %v4788_v6 = vsel %vm2850_vm1, %v4787_v21, %v4783_v11  ;;  %v9745_v31 = vpop.permute.xlu1 %4381 }
 0x627   :  { %v4793_v27 = vsel %vm2857_vm2, %v4792_v30, %v4788_v6  ;;  %v4235_v5 = vpop.permute.xlu0 %4234  ;;  %v6544_v6 = vpop.eup %6543 }
 0x628   :  { %v4718_v62 = vrot.slane %v4235_v5, %v8824_v36  ;;  %4402 = vperm.xlu0 %6042, %v6540_v17   ;;  %v4798_v43 = vsel %vm2864_vm3, %v4797_v63, %v4793_v27  ;;  %v3679_v63 = vsub.f32 %v11026_v16, %v9424_v8  ;;  %v11027_v17 = vld [vmem:[#allocation125_spill] sm:$0xff]  ;;  %v4733_v5 = vrot.slane %v9704_v52, %v8844_v7 }
 0x629   :  { %v3695_v27 = vsub.f32 %v11027_v17, %v9441_v18  ;;  %v6546_v35 = vpop.eup %6545  ;;  %v4876_v18 = vrot.slane %v9686_v1, %v8824_v36  ;;  %v4881_v52 = vrot.slane %v9713_v55, %v8836_v20  ;;  %v11032_v55 = vsub.f32 %v9293_v15, %v9296_v38 }
 0x62a   :  { %v4719_v22 = vsel %vm2864_vm3, %v4718_v62, %v4714_v23  ;;  %v9753_v61 = vpop.permute.xlu1 %4249  ;;  %v3916_v23 = vmul.f32 1.442695, %v3678_v60  ;;  %v3918_v8 = vmul.f32 1.442695, %v3679_v63 }
 0x62b   :  { %v4322_v13 = vpop.permute.xlu0 %4321 }
 0x62c   :  { %v4862_v21 = vrot.slane %v4322_v13, %v8811_v46  ;;  %4270 = vperm.xlu0 %6042, %v6542_v10   ;;  %6551 = vpow2.f32 %v3916_v23  ;;  %v6548_v23 = vpop.eup %6547 }
 0x62d   :  { %6553 = vpow2.f32 %v3918_v8 }
 0x62e   :  { %v4867_v11 = vsel %vm2850_vm1, %v4866_v54, %v4862_v21  ;;  %v9761_v30 = vpop.permute.xlu1 %4339  ;;  %v3950_v21 = vmul.f32 1.442695, %v3695_v27 }
 0x62f   :  { %v4238_v3 = vpop.permute.xlu0 %4237 }
 0x630   :  { %v4723_v28 = vrot.slane %v4238_v3, %v8836_v20  ;;  %4360 = vperm.xlu0 %6042, %v6544_v6   ;;  %v4941_v6 = vrot.slane %v9667_v37, %v8811_v46  ;;  %6555 = vpow2.f32 %v3950_v21 }
 0x631   :  { %v6550_v17 = vpop.eup %6549 }
 0x632   :  { %v4724_v62 = vsel %vm11028_vm12, %v4723_v28, %v4719_v22  ;;  %v9773_v33 = vpop.permute.xlu1 %4429 }
 0x633   :  { %v4729_v60 = vsel %vm11029_vm0, %v4728_v48, %v4724_v62  ;;  %v4328_v10 = vpop.permute.xlu0 %4327 }
 0x634   :  { %v4871_v13 = vrot.slane %v4328_v10, %v8816_v53  ;;  %4450 = vperm.xlu0 %6042, %v6546_v35   ;;  %v4734_v41 = vsel %vm11030_vm4, %v4733_v5, %v4729_v60  ;;  %vm11031_vm4 = vmmov %vm11028_vm12 }
 0x635   :  { %vm11033_vm12 = vmmov %vm11031_vm4 }
 0x636   :  { %v4872_v22 = vsel %vm2857_vm2, %v4871_v13, %v4867_v11  ;;  %v9783_v54 = vpop.permute.xlu1 %4297  ;;  %v3522_v11 = vmul.f32 1.442695, %v11032_v55  ;;  %v5020_v13 = vrot.slane %v9695_v14, %v8811_v46 }
 0x637   :  { %v4877_v16 = vsel %vm2864_vm3, %v4876_v18, %v4872_v22  ;;  %v4373_v63 = vpop.permute.xlu0 %4372 }
 0x638   :  { %v4945_v3 = vrot.slane %v4373_v63, %v8807_v24  ;;  %4363 = vperm.xlu0 %6042, %v6548_v23   ;;  %v4882_v1 = vsel %vm11031_vm4, %v4881_v52, %v4877_v16  ;;  %6557 = vpow2.f32 %v3522_v11  ;;  %vm11034_vm4 = vcmask 458112  }
 0x639   :  { %v6552_v62 = vpop.eup %6551 }
 0x63a   :  { %v4946_v28 = vsel %vm2850_vm1, %v4945_v3, %v4941_v6  ;;  %v9794_v48 = vpop.permute.xlu1 %4387  ;;  %v6554_v60 = vpop.eup %6553  ;;  %v4812_v6 = vrot.slane %v9734_v47, %v8844_v7 }
 0x63b   :  { %v4286_v27 = vpop.permute.xlu0 %4285 }
 0x63c   :  { %v4802_v5 = vrot.slane %v4286_v27, %v8836_v20  ;;  %4453 = vperm.xlu0 %6042, %v6550_v17   ;;  %v4960_v17 = vrot.slane %v9745_v31, %v8836_v20  ;;  %v4891_v31 = vrot.slane %v9761_v30, %v8844_v7  ;;  %v4822_v30 = vrot.slane %v9783_v54, %v8870_v12 }
 0x63d   :  { %v6556_v21 = vpop.eup %6555 }
 0x63e   :  { %v4803_v37 = vsel %vm11033_vm12, %v4802_v5, %v4798_v43  ;;  %v9798_v35 = vpop.permute.xlu1 %4255  ;;  %v5029_v43 = vrot.slane %v9722_v32, %v8816_v53 }
 0x63f   :  { %v4376_v8 = vpop.permute.xlu0 %4375 }
 0x640   :  { %v4950_v15 = vrot.slane %v4376_v8, %v8816_v53  ;;  %4411 = vperm.xlu0 %6042, %v6552_v62   ;;  %v4743_v62 = vrot.slane %v9753_v61, %v8870_v12 }
 0x642   :  { %v4951_v38 = vsel %vm2857_vm2, %v4950_v15, %v4946_v28  ;;  %v4346_v52 = vpop.permute.xlu1 %4345 }
 0x643   :  { %v4421_v10 = vpop.permute.xlu0 %4420 }
 0x644   :  { %v5024_v18 = vrot.slane %v4421_v10, %v8807_v24  ;;  %4414 = vperm.xlu0 %6042, %v6554_v60  }
 0x645   :  { %v9813_v3 = vpop.eup %6557 }
 0x646   :  { %v5025_v22 = vsel %vm2850_vm1, %v5024_v18, %v5020_v13  ;;  %v4436_v11 = vpop.permute.xlu1 %4435 }
 0x647   :  { %v4289_v23 = vpop.permute.xlu0 %4288  ;;  %v5030_v16 = vsel %vm2857_vm2, %v5029_v43, %v5025_v22 }
 0x648   :  { %v4807_v63 = vrot.slane %v4289_v23, %v8839_v44  ;;  %4462 = vperm.xlu0 %6042, %v6556_v21  }
 0x64a   :  { %v4808_v14 = vsel %vm11029_vm0, %v4807_v63, %v4803_v37  ;;  %v4259_v8 = vpop.permute.xlu1 %4258 }
 0x64b   :  { %v4379_v55 = vpop.permute.xlu0 %4378  ;;  %v4813_v32 = vsel %vm11034_vm4, %v4812_v6, %v4808_v14 }
 0x64c   :  { %v4955_v28 = vrot.slane %v4379_v55, %v8824_v36  ;;  %5137 = vperm.xlu0 %6042, %v9813_v3  }
 0x64e   :  { %v4956_v27 = vsel %vm2864_vm3, %v4955_v28, %v4951_v38  ;;  %v9832_v22 = vpop.permute.xlu1 %4348 }
 0x64f   :  { %v4247_v5 = vpop.permute.xlu0 %4246  ;;  %v4961_v47 = vsel %vm11033_vm12, %v4960_v17, %v4956_v27 }
 0x650   :  { %v4738_v37 = vrot.slane %v4247_v5, %v8858_v0 }
 0x652   :  { %v4739_v15 = vsel %vm2892_vm7, %v4738_v37, %v4734_v41  ;;  %v5039_v41 = vrot.slane %v9773_v33, %v8836_v20  ;;  %v4970_v33 = vrot.slane %v9794_v48, %v8844_v7 }
 0x653   :  { %v4337_v60 = vpop.permute.xlu0 %4336  ;;  %v4744_v10 = vsel %vm2899_vm8, %v4743_v62, %v4739_v15  ;;  %v4758_v62 = vrot.slane %v4259_v8, %v8880_v49 }
 0x654   :  { %v4886_v13 = vrot.slane %v4337_v60, %v8839_v44 }
 0x656   :  { %v4887_v38 = vsel %vm11029_vm0, %v4886_v13, %v4882_v1  ;;  %v9842_v1 = vpop.permute.xlu1 %4438 }
 0x657   :  { %v4427_v18 = vpop.permute.xlu0 %4426  ;;  %v4892_v43 = vsel %vm11034_vm4, %v4891_v31, %v4887_v38  ;;  %v4901_v31 = vrot.slane %v4346_v52, %v8870_v12 }
 0x658   :  { %v5034_v61 = vrot.slane %v4427_v18, %v8824_v36 }
 0x65a   :  { %v5035_v21 = vsel %vm2864_vm3, %v5034_v61, %v5030_v16  ;;  %v9851_v37 = vpop.permute.xlu1 %4261  ;;  %v5049_v61 = vrot.slane %v4436_v11, %v8844_v7 }
 0x65b   :  { %v4295_v23 = vpop.permute.xlu0 %4294  ;;  %v5040_v63 = vsel %vm11033_vm12, %v5039_v41, %v5035_v21  ;;  %vm11035_vm12 = vcmask 720512  }
 0x65c   :  { %v4817_v6 = vrot.slane %v4295_v23, %v8858_v0 }
 0x65e   :  { %v4818_v14 = vsel %vm2892_vm7, %v4817_v6, %v4813_v32  ;;  %v4753_v32 = vrot.slane %v9798_v35, %v8877_v39  ;;  %v9864_v38 = vpop.permute.xlu1 %4351 }
 0x65f   :  { %v4385_v55 = vpop.permute.xlu0 %4384  ;;  %v4823_v28 = vsel %vm2899_vm8, %v4822_v30, %v4818_v14 }
 0x660   :  { %v4965_v17 = vrot.slane %v4385_v55, %v8839_v44 }
 0x662   :  { %v4966_v16 = vsel %vm11029_vm0, %v4965_v17, %v4961_v47  ;;  %v9876_v6 = vpop.permute.xlu1 %4441 }
 0x663   :  { %v4253_v27 = vpop.permute.xlu0 %4252  ;;  %v4971_v5 = vsel %vm11034_vm4, %v4970_v33, %v4966_v16 }
 0x664   :  { %v4748_v54 = vrot.slane %v4253_v27, %v8873_v51 }
 0x666   :  { %v4749_v15 = vsel %vm2906_vm9, %v4748_v54, %v4744_v10  ;;  %v9881_v55 = vpop.permute.xlu1 %4264 }
 0x667   :  { %v4754_v60 = vsel %vm11035_vm12, %v4753_v32, %v4749_v15  ;;  %v4343_v13 = vpop.permute.xlu0 %4342  ;;  %v4550_v15 = vrot.slane %v9609_v26, %v8807_v24 }
 0x668   :  { %v9860_v48 = vsel %vm11036_vm11, %v4758_v62, %v4754_v60  ;;  %v4896_v47 = vrot.slane %v4343_v13, %v8858_v0  ;;  %vm11037_vm11 = vmmov %vm11034_vm4  ;;  %vm11038_vm4 = vcmask 851712  }
 0x66a   :  { %v4897_v18 = vsel %vm2892_vm7, %v4896_v47, %v4892_v43  ;;  %v9891_v27 = vpop.permute.xlu1 %4354 }
 0x66b   :  { %v9868_v35 = vsel %vm2899_vm8, %v4901_v31, %v4897_v18  ;;  %v4433_v8 = vpop.permute.xlu0 %4432  ;;  %v4560_v31 = vrot.slane %v9617_v58, %v8824_v36  ;;  %v4555_v18 = vrot.slane %v9517_v19, %v8816_v53 }
 0x66c   :  { %v5044_v10 = vrot.slane %v4433_v8, %v8839_v44 }
 0x66e   :  { %v5045_v41 = vsel %vm11029_vm0, %v5044_v10, %v5040_v63  ;;  %v9899_v62 = vpop.permute.xlu1 %4444  ;;  %vm11039_vm0 = vcmask 326912  }
 0x66f   :  { %v9874_v21 = vsel %vm11037_vm11, %v5049_v61, %v5045_v41  ;;  %v4301_v23 = vpop.permute.xlu0 %4300  ;;  %v4565_v61 = vrot.slane %v9525_v9, %v8836_v20  ;;  %vm11040_vm11 = vcmask 392512   ;;  %v4476_v9 = vrot.slane %v9513_v2, %v8816_v53  ;;  %v11042_v2 = vld [vmem:[#allocation116_spill] sm:$0xff] }
 0x670   :  { %v4827_v52 = vrot.slane %v4301_v23, %v8873_v51 }
 0x672   :  { %v4828_v43 = vsel %vm2906_vm9, %v4827_v52, %v4823_v28  ;;  %v9909_v13 = vpop.permute.xlu1 %4267  ;;  %v4580_v52 = vrot.slane %v9633_v57, %v8858_v0  ;;  %v11044_v57 = vld [vmem:[#allocation80_spill] sm:$0xff] }
 0x673   :  { %v4391_v30 = vpop.permute.xlu0 %4390 }
 0x674   :  { %v4975_v14 = vrot.slane %v4391_v30, %v8858_v0 }
 0x676   :  { %v9884_v17 = vsel %vm2892_vm7, %v4975_v14, %v4971_v5  ;;  %v9924_v41 = vpop.permute.xlu1 %4357  ;;  %v4467_v14 = vrot.slane %v9497_v29, %v8811_v46  ;;  %v11043_v29 = vld [vmem:[#allocation176_spill] sm:$0xff] }
 0x677   :  { %v4214_v11 = vpop.permute.xlu0 %4213 }
 0x678   :  { %v4684_v63 = vrot.slane %v4214_v11, %v8903_v42  ;;  %v4481_v11 = vrot.slane %v9521_v34, %v8824_v36  ;;  %v4585_v36 = vrot.slane %v11043_v29, %v8870_v12  ;;  %v11059_v29 = vld [vmem:[#allocation126_spill] sm:$0xff] }
 0x67a   :  { %v9889_v33 = vsel %vm11038_vm4, %v4684_v63, %v9720_v50  ;;  %v4546_v50 = vrot.slane %v9509_v56, %v8811_v46  ;;  %v4570_v56 = vrot.slane %v9625_v25, %v8839_v44  ;;  %v4575_v25 = vrot.slane %v9533_v40, %v8844_v7 }
 0x67b   :  { %v4304_v16 = vpop.permute.xlu0 %4303  ;;  %vm11041_vm4 = vcmask 458112   ;;  %v4590_v40 = vrot.slane %v9641_v59, %v8873_v51  ;;  %v4491_v46 = vrot.slane %v11042_v2, %v8839_v44  ;;  %v11058_v2 = vld [vmem:[#allocation59_spill] sm:$0xff] }
 0x67c   :  { %v4832_v28 = vrot.slane %v4304_v16, %v8877_v39  ;;  %v4551_v47 = vsel %vm2850_vm1, %v4550_v15, %v4546_v50  ;;  %v9943_v16 = vpop.permute.xlu1 %4447 }
 0x67d   :  { %v4556_v10 = vsel %vm2857_vm2, %v4555_v18, %v4551_v47 }
 0x67e   :  { %v9895_v54 = vsel %vm11035_vm12, %v4832_v28, %v4828_v43  ;;  %v4561_v26 = vsel %vm2864_vm3, %v4560_v31, %v4556_v10  ;;  %v4471_v43 = vrot.slane %v9505_v45, %v8807_v24  ;;  %v4486_v24 = vrot.slane %v9529_v4, %v8836_v20  ;;  %v11045_v4 = vld [vmem:[#allocation179_spill] sm:$0xff]  ;;  %v11047_v31 = vld [vmem:[#allocation181_spill] sm:$0xff]  ;;  %vm11050_vm12 = vmmov %vm11041_vm4 }
 0x67f   :  { %v9897_v32 = vpop.permute.xlu0 %4393  ;;  %v4566_v58 = vsel %vm11039_vm0, %v4565_v61, %v4561_v26  ;;  %v4496_v28 = vrot.slane %v11044_v57, %v8844_v7  ;;  %v4501_v59 = vrot.slane %v11045_v4, %v8858_v0  ;;  %v4600_v18 = vrot.slane %v11047_v31, %v8880_v49  ;;  %v11049_v7 = vld [vmem:[#allocation177_spill] sm:$0xff]  ;;  %v11062_v4 = vld [vmem:[#allocation178_spill] sm:$0xff] }
 0x680   :  { %v4571_v19 = vsel %vm11040_vm11, %v4570_v56, %v4566_v58  ;;  %v4472_v53 = vsel %vm2850_vm1, %v4471_v43, %v4467_v14  ;;  %vm11046_vm1 = vmmov %vm11039_vm0  ;;  %v4595_v26 = vrot.slane %v11049_v7, %v8877_v39  ;;  %v4316_v56 = vpop.permute.xlu1 %4315  ;;  %vm11055_vm0 = vcmask 786112   ;;  %v11061_v57 = vld [vmem:[#allocation81_spill] sm:$0xff]  ;;  %v11063_v31 = vld [vmem:[#allocation182_spill] sm:$0xff] }
 0x681   :  { %v4576_v63 = vsel %vm11041_vm4, %v4575_v25, %v4571_v19  ;;  %v4477_v34 = vsel %vm2857_vm2, %v4476_v9, %v4472_v53  ;;  %vm11048_vm2 = vmmov %vm11040_vm11  ;;  %v11053_v9 = vld [vmem:[#allocation152_spill] sm:$0xff]  ;;  %vm11064_vm11 = vcmask 851712  }
 0x682   :  { %v4581_v45 = vsel %vm2892_vm7, %v4580_v52, %v4576_v63  ;;  %v4482_v20 = vsel %vm2864_vm3, %v4481_v11, %v4477_v34  ;;  %v11051_v52 = vld [vmem:[#allocation175_spill] sm:$0xff]  ;;  %vm11052_vm3 = vcmask 720512   ;;  %v4506_v14 = vrot.slane %v11053_v9, %v8870_v12 }
 0x683   :  { %v9901_v5 = vpop.permute.xlu0 %4216  ;;  %v4586_v50 = vsel %vm2899_vm8, %v4585_v36, %v4581_v45  ;;  %v4487_v47 = vsel %vm11046_vm1, %v4486_v24, %v4482_v20  ;;  %v4511_v43 = vrot.slane %v11051_v52, %v8873_v51  ;;  %v11054_v11 = vld [vmem:[#allocation127_spill] sm:$0xff]  ;;  %v11056_v45 = vld [vmem:[#allocation150_spill] sm:$0xff]  ;;  %v4521_v36 = vrot.slane %v11059_v29, %v8880_v49  ;;  %vm11065_vm4 = vmmov %vm11052_vm3 }
 0x684   :  { %v4591_v44 = vsel %vm2906_vm9, %v4590_v40, %v4586_v50  ;;  %v4492_v10 = vsel %vm11048_vm2, %v4491_v46, %v4487_v47  ;;  %v4516_v63 = vrot.slane %v11054_v11, %v8877_v39  ;;  %v11057_v40 = vld [vmem:[#allocation120_spill] sm:$0xff]  ;;  %v4605_v46 = vrot.slane %v11058_v2, %v8903_v42  ;;  %v11060_v34 = vld [vmem:[#allocation207_spill] sm:$0xff]  ;;  %v9998_v7 = vpop.permute.xlu1 %4405  ;;  %vm11067_vm1 = vmmov %vm11055_vm0 }
 0x685   :  { %v4497_v61 = vsel %vm11050_vm12, %v4496_v28, %v4492_v10  ;;  %v4596_v25 = vsel %vm11052_vm3, %v4595_v26, %v4591_v44  ;;  %v4610_v53 = vrot.slane %v11057_v40, %v11056_v45  ;;  %v4536_v28 = vrot.slane %v11061_v57, %v11060_v34  ;;  %v11069_v11 = vld [vmem:[#allocation144_spill] sm:$0xff]  ;;  %vm11070_vm2 = vmmov %vm11064_vm11  ;;  %v11072_v29 = vld [vmem:[#allocation61_spill] sm:$0xff] }
 0x686   :  { %v4502_v19 = vsel %vm2892_vm7, %v4501_v59, %v4497_v61  ;;  %v4601_v24 = vsel %vm11055_vm0, %v4600_v18, %v4596_v25  ;;  %v4526_v59 = vrot.slane %v11062_v4, %v8903_v42  ;;  %v4531_v18 = vrot.slane %v11063_v31, %v11056_v45  ;;  %vm11071_vm12 = vmmov %vm11055_vm0 }
 0x687   :  { %v9907_v60 = vpop.permute.xlu0 %4306  ;;  %v4507_v20 = vsel %vm2899_vm8, %v4506_v14, %v4502_v19  ;;  %v4606_v10 = vsel %vm11064_vm11, %v4605_v46, %v4601_v24  ;;  %v4689_v52 = vrot.slane %v9901_v5, %v11056_v45  ;;  %v11068_v14 = vld [vmem:[#allocation208_spill] sm:$0xff]  ;;  %v4763_v40 = vrot.slane %v9851_v37, %v8903_v42  ;;  %vm11073_vm3 = vmmov %vm11070_vm2 }
 0x688   :  { %v4837_v50 = vrot.slane %v9907_v60, %v8880_v49  ;;  %v4512_v44 = vsel %vm2906_vm9, %v4511_v43, %v4507_v20  ;;  %v4611_v19 = vsel %vm2934_vm13, %v4610_v53, %v4606_v10  ;;  %v11066_v43 = vld [vmem:[#allocation118_spill] sm:$0xff]  ;;  %v4620_v24 = vrot.slane %v11069_v11, %v11068_v14  ;;  %vm11074_vm0 = vmmov %vm11070_vm2 }
 0x689   :  { %v4517_v61 = vsel %vm11065_vm4, %v4516_v63, %v4512_v44  ;;  %v4615_v25 = vrot.slane %v11066_v43, %v11060_v34  ;;  %v4764_v20 = vsel %vm11074_vm0, %v4763_v40, %v9860_v48  ;;  %v4773_v37 = vrot.slane %v9909_v13, %v11060_v34 }
 0x68a   :  { %v4522_v9 = vsel %vm11067_vm1, %v4521_v36, %v4517_v61  ;;  %v4838_v5 = vsel %vm11071_vm12, %v4837_v50, %v9895_v54  ;;  %v4541_v36 = vrot.slane %v11072_v29, %v11068_v14  ;;  %v4690_v54 = vsel %vm2934_vm13, %v4689_v52, %v9889_v33  ;;  %vm11083_vm12 = vmmov %vm11067_vm1 }
 0x68b   :  { %v9916_v8 = vpop.permute.xlu0 %4396  ;;  %v4527_v63 = vsel %vm11070_vm2, %v4526_v59, %v4522_v9  ;;  %v4616_v57 = vsel %vm2941_vm14, %v4615_v25, %v4611_v19  ;;  %v4768_v59 = vrot.slane %v9881_v55, %v11056_v45  ;;  %v4852_v50 = vrot.slane %v4316_v56, %v11060_v34  ;;  %vm11082_vm2 = vmmov %vm11074_vm0 }
 0x68c   :  { %v4532_v46 = vsel %vm2934_vm13, %v4531_v18, %v4527_v63  ;;  %v4621_v4 = vsel %vm2948_vm15, %v4620_v24, %v4616_v57  ;;  %vm11075_vm11 = vcmask 1041409   ;;  %v4906_v52 = vrot.slane %v9832_v22, %v8873_v51 }
 0x68d   :  { %v4537_v48 = vsel %vm2941_vm14, %v4536_v28, %v4532_v46  ;;  %v4769_v33 = vsel %vm2934_vm13, %v4768_v59, %v4764_v20  ;;  %v4921_v22 = vrot.slane %v9924_v41, %v8903_v42  ;;  %v4985_v41 = vrot.slane %v9916_v8, %v8873_v51 }
 0x68e   :  { %v4542_v18 = vsel %vm2948_vm15, %v4541_v36, %v4537_v48  ;;  %v4774_v56 = vsel %vm2941_vm14, %v4773_v37, %v4769_v33  ;;  %v4907_v24 = vsel %vm2906_vm9, %v4906_v52, %v9868_v35  ;;  %v4980_v35 = vrot.slane %v9897_v32, %v8870_v12 }
 0x68f   :  { %v9926_v23 = vpop.permute.xlu0 %4219  ;;  %v5096_v55 = vsel %vm11075_vm11, %v4621_v4, %v4542_v18  ;;  %v5059_v8 = vrot.slane %v9876_v6, %v8870_v12  ;;  %v5064_v12 = vrot.slane %v9899_v62, %v8873_v51 }
 0x693   :  { %v4310_v30 = vpop.permute.xlu0 %4309 }
 0x694   :  { %v4842_v26 = vrot.slane %v4310_v30, %v8903_v42  ;;  %v4694_v30 = vrot.slane %v9926_v23, %v11060_v34 }
 0x696   :  { %v4843_v23 = vsel %vm11073_vm3, %v4842_v26, %v4838_v5  ;;  %v4695_v44 = vsel %vm2941_vm14, %v4694_v30, %v4690_v54  ;;  %v4911_v30 = vrot.slane %v9864_v38, %v8877_v39  ;;  %v4916_v5 = vrot.slane %v9891_v27, %v8880_v49  ;;  %vm11084_vm3 = vmmov %vm11074_vm0 }
 0x697   :  { %v9958_v15 = vpop.permute.xlu0 %4399  ;;  %v5054_v38 = vrot.slane %v9842_v1, %v8858_v0  ;;  %v4981_v54 = vsel %vm2899_vm8, %v4980_v35, %v9884_v17  ;;  %v6576_v35 = vld [vmem:[#allocation9 + $0x148] sm:$0xff] }
 0x698   :  { %v4990_v20 = vrot.slane %v9958_v15, %v8877_v39  ;;  %v4986_v15 = vsel %vm2906_vm9, %v4985_v41, %v4981_v54  ;;  %v6580_v41 = vld [vmem:[#allocation9 + $0x138] sm:$0xff]  ;;  %v6589_v54 = vld [vmem:[#allocation9 + $0x190] sm:$0xff] }
 0x699   :  { %v5055_v32 = vsel %vm2892_vm7, %v5054_v38, %v9874_v21  ;;  %v6578_v38 = vld [vmem:[#allocation9 + $0x140] sm:$0xff] }
 0x69a   :  { %v5060_v21 = vsel %vm2899_vm8, %v5059_v8, %v5055_v32  ;;  %v6585_v32 = vld [vmem:[#allocation9 + $0x1a0] sm:$0xff]  ;;  %v6588_v8 = vld [vmem:[#allocation9 + $0x118] sm:$0xff] }
 0x69b   :  { %v4223_v58 = vpop.permute.xlu0 %4222 }
 0x69c   :  { %v4699_v53 = vrot.slane %v4223_v58, %v11068_v14 }
 0x69e   :  { %v4700_v31 = vsel %vm2948_vm15, %v4699_v53, %v4695_v44  ;;  %v5000_v44 = vrot.slane %v9998_v7, %v8903_v42 }
 0x69f   :  { %v4313_v47 = vpop.permute.xlu0 %4312  ;;  %v5097_v19 = vsel %vm3505_vm5, %v4700_v31, %v5096_v55  ;;  %vm11076_vm5 = vmmov %vm11065_vm4  ;;  %vm11079_vm4 = vcmask 1045509  }
 0x6a0   :  { %v4847_v60 = vrot.slane %v4313_v47, %v11056_v45  ;;  %v4319_v47 = vpop.permute.xlu1 %4318  ;;  %v4912_v40 = vsel %vm11076_vm5, %v4911_v30, %v4907_v24  ;;  %vm11080_vm7 = vmmov %vm11076_vm5  ;;  %v6567_v24 = vld [vmem:[#allocation9 + $0x1e8] sm:$0xff] }
 0x6a1   :  { %v4857_v61 = vrot.slane %v4319_v47, %v11068_v14  ;;  %vm11081_vm8 = vmmov %vm11076_vm5  ;;  %vm11087_vm5 = vcmask 1047559   ;;  %v6568_v30 = vld [vmem:[#allocation9 + $0x168] sm:$0xff] }
 0x6a2   :  { %v4848_v58 = vsel %vm2934_vm13, %v4847_v60, %v4843_v23 }
 0x6a3   :  { %v10019_v2 = vpop.permute.xlu0 %4402  ;;  %v4853_v10 = vsel %vm2941_vm14, %v4852_v50, %v4848_v58  ;;  %v4991_v50 = vsel %vm11080_vm7, %v4990_v20, %v4986_v15  ;;  %v6583_v20 = vld [vmem:[#allocation9 + $0x1a8] sm:$0xff]  ;;  %vm11088_vm7 = vcmask 7168  }
 0x6a4   :  { %v4858_v60 = vsel %vm2948_vm15, %v4857_v61, %v4853_v10  ;;  %v4409_v9 = vpop.permute.xlu1 %4408  ;;  %v4995_v0 = vrot.slane %v10019_v2, %v8880_v49  ;;  %v5069_v2 = vrot.slane %v9943_v16, %v8877_v39  ;;  %v6592_v15 = vld [vmem:[#allocation9 + $0x108] sm:$0xff] }
 0x6a5   :  { %v5005_v51 = vrot.slane %v4409_v9, %v11056_v45 }
 0x6a6   :  { %v4996_v17 = vsel %vm11067_vm1, %v4995_v0, %v4991_v50  ;;  %v6586_v0 = vld [vmem:[#allocation9 + $0x120] sm:$0xff]  ;;  %v6596_v50 = vld [vmem:[#allocation9 + $0x278] sm:$0xff] }
 0x6a7   :  { %v4271_v13 = vpop.permute.xlu0 %4270  ;;  %v5001_v16 = vsel %vm11082_vm2, %v5000_v44, %v4996_v17  ;;  %v6599_v17 = vld [vmem:[#allocation9 + $0x2e8] sm:$0xff]  ;;  %v6601_v44 = vld [vmem:[#allocation9 + $0x2e0] sm:$0xff] }
 0x6a8   :  { %v4778_v26 = vrot.slane %v4271_v13, %v11068_v14  ;;  %v4367_v46 = vpop.permute.xlu1 %4366  ;;  %v5065_v13 = vsel %vm2906_vm9, %v5064_v12, %v5060_v21  ;;  %vm11085_vm9 = vcmask 1046534   ;;  %v6594_v21 = vld [vmem:[#allocation9 + $0x100] sm:$0xff]  ;;  %v6597_v12 = vld [vmem:[#allocation9 + $0x2f0] sm:$0xff] }
 0x6a9   :  { %v4936_v27 = vrot.slane %v4367_v46, %v11068_v14  ;;  %v5070_v39 = vsel %vm11081_vm8, %v5069_v2, %v5065_v13  ;;  %v6574_v46 = vld [vmem:[#allocation9 + $0x150] sm:$0xff]  ;;  %v6595_v2 = vld [vmem:[#allocation9 + $0x2f8] sm:$0xff] }
 0x6aa   :  { %v4779_v28 = vsel %vm2948_vm15, %v4778_v26, %v4774_v56  ;;  %v6604_v13 = vld [vmem:[#allocation9 + $0x258] sm:$0xff] }
 0x6ab   :  { %v5098_v43 = vsel %vm3507_vm6, %v4779_v28, %v5097_v19  ;;  %v4361_v25 = vpop.permute.xlu0 %4360  ;;  %vm11077_vm6 = vmmov %vm11067_vm1 }
 0x6ac   :  { %v5099_v11 = vsel %vm3509_vm10, %v4858_v60, %v5098_v43  ;;  %v4926_v53 = vrot.slane %v4361_v25, %v11056_v45  ;;  %v4917_v29 = vsel %vm11077_vm6, %v4916_v5, %v4912_v40  ;;  %vm11078_vm10 = vmmov %vm11074_vm0  ;;  %v4457_v6 = vpop.permute.xlu1 %4456  ;;  %v11086_v43 = vld [vmem:[#allocation22_spill] sm:$0xff]  ;;  %v6570_v40 = vld [vmem:[#allocation9 + $0x160] sm:$0xff] }
 0x6ad   :  { %v4922_v57 = vsel %vm11078_vm10, %v4921_v22, %v4917_v29  ;;  %v5084_v7 = vrot.slane %v4457_v6, %v11056_v45  ;;  %vm5120_vm0 = vcmp.eq.s32.totalorder %v11086_v43, 1  ;;  %vm5118_vm11 = vcmp.eq.s32.totalorder %v11086_v43, 0  ;;  %v6571_v22 = vld [vmem:[#allocation9 + $0x1d8] sm:$0xff]  ;;  %v6575_v29 = vld [vmem:[#allocation9 + $0x1c8] sm:$0xff]  ;;  %v6598_v6 = vld [vmem:[#allocation9 + $0x270] sm:$0xff] }
 0x6ae   :  { %v4927_v37 = vsel %vm2934_vm13, %v4926_v53, %v4922_v57  ;;  %v6572_v5 = vld [vmem:[#allocation9 + $0x158] sm:$0xff]  ;;  %v6573_v53 = vld [vmem:[#allocation9 + $0x1d0] sm:$0xff]  ;;  %vm5126_vm6 = vcmp.eq.s32.totalorder %v11086_v43, 4  ;;  %vm5132_vm10 = vcmp.eq.s32.totalorder %v11086_v43, 7 }
 0x6af   :  { %v4451_v63 = vpop.permute.xlu0 %4450  ;;  %v6579_v57 = vld [vmem:[#allocation9 + $0x1b8] sm:$0xff] }
 0x6b0   :  { %v5074_v47 = vrot.slane %v4451_v63, %v8880_v49  ;;  %v4460_v10 = vpop.permute.xlu1 %4459  ;;  %v6569_v63 = vld [vmem:[#allocation9 + $0x1e0] sm:$0xff] }
 0x6b1   :  { %v5089_v19 = vrot.slane %v4460_v10, %v11060_v34  ;;  %v6613_v10 = vld [vmem:[#allocation9 + $0x2b0] sm:$0xff] }
 0x6b2   :  { %v5075_v62 = vsel %vm11083_vm12, %v5074_v47, %v5070_v39  ;;  %v6600_v47 = vld [vmem:[#allocation9 + $0x268] sm:$0xff]  ;;  %v6605_v39 = vld [vmem:[#allocation9 + $0x2d0] sm:$0xff] }
 0x6b3   :  { %v4364_v36 = vpop.permute.xlu0 %4363 }
 0x6b4   :  { %v4931_v23 = vrot.slane %v4364_v36, %v11060_v34  ;;  %v6577_v36 = vld [vmem:[#allocation9 + $0x1c0] sm:$0xff] }
 0x6b6   :  { %v4932_v1 = vsel %vm2941_vm14, %v4931_v23, %v4927_v37  ;;  %v6581_v23 = vld [vmem:[#allocation9 + $0x1b0] sm:$0xff]  ;;  %v6584_v37 = vld [vmem:[#allocation9 + $0x128] sm:$0xff] }
 0x6b7   :  { %v4937_v58 = vsel %vm2948_vm15, %v4936_v27, %v4932_v1  ;;  %v4454_v4 = vpop.permute.xlu0 %4453  ;;  %v6582_v27 = vld [vmem:[#allocation9 + $0x130] sm:$0xff]  ;;  %v6587_v1 = vld [vmem:[#allocation9 + $0x198] sm:$0xff] }
 0x6b8   :  { %v5100_v59 = vsel %vm11079_vm4, %v4937_v58, %v5099_v11  ;;  %v5079_v48 = vrot.slane %v4454_v4, %v8903_v42  ;;  %v5006_v42 = vsel %vm2934_vm13, %v5005_v51, %v5001_v16  ;;  %v6566_v11 = vld [vmem:[#allocation9 + $0x170] sm:$0xff]  ;;  %v6591_v4 = vld [vmem:[#allocation9 + $0x188] sm:$0xff]  ;;  %vm5130_vm4 = vcmp.eq.s32.totalorder %v11086_v43, 6 }
 0x6b9   :  { %v6590_v58 = vld [vmem:[#allocation9 + $0x110] sm:$0xff]  ;;  %v6608_v51 = vld [vmem:[#allocation9 + $0x248] sm:$0xff] }
 0x6ba   :  { %v5080_v49 = vsel %vm11084_vm3, %v5079_v48, %v5075_v62  ;;  %v6602_v48 = vld [vmem:[#allocation9 + $0x260] sm:$0xff]  ;;  %v6606_v16 = vld [vmem:[#allocation9 + $0x250] sm:$0xff] }
 0x6bb   :  { %v4412_v31 = vpop.permute.xlu0 %4411  ;;  %v5085_v56 = vsel %vm2934_vm13, %v5084_v7, %v5080_v49  ;;  %vm5124_vm13 = vcmp.eq.s32.totalorder %v11086_v43, 3  ;;  %v6609_v62 = vld [vmem:[#allocation9 + $0x2c0] sm:$0xff]  ;;  %v6612_v7 = vld [vmem:[#allocation9 + $0x238] sm:$0xff] }
 0x6bc   :  { %v5010_v18 = vrot.slane %v4412_v31, %v11060_v34  ;;  %v5090_v45 = vsel %vm2941_vm14, %v5089_v19, %v5085_v56  ;;  %v6564_v34 = vld [vmem:[#allocation9 + $0x178] sm:$0xff]  ;;  %v6610_v49 = vld [vmem:[#allocation9 + $0x240] sm:$0xff] }
 0x6bd   :  { %v6603_v31 = vld [vmem:[#allocation9 + $0x2d8] sm:$0xff]  ;;  %v6617_v56 = vld [vmem:[#allocation9 + $0x2a0] sm:$0xff] }
 0x6be   :  { %v5011_v55 = vsel %vm2941_vm14, %v5010_v18, %v5006_v42  ;;  %vm5122_vm14 = vcmp.eq.s32.totalorder %v11086_v43, 2  ;;  %v6607_v18 = vld [vmem:[#allocation9 + $0x2c8] sm:$0xff]  ;;  %v6614_v42 = vld [vmem:[#allocation9 + $0x230] sm:$0xff]  ;;  %v6619_v19 = vld [vmem:[#allocation9 + $0x298] sm:$0xff] }
 0x6bf   :  { %v4415_v33 = vpop.permute.xlu0 %4414 }
 0x6c0   :  { %v5015_v26 = vrot.slane %v4415_v33, %v11068_v14  ;;  %v6611_v33 = vld [vmem:[#allocation9 + $0x2b8] sm:$0xff] }
 0x6c2   :  { %v5016_v61 = vsel %vm2948_vm15, %v5015_v26, %v5011_v55  ;;  %v6615_v26 = vld [vmem:[#allocation9 + $0x2a8] sm:$0xff] }
 0x6c3   :  { %v5101_v28 = vsel %vm11085_vm9, %v5016_v61, %v5100_v59  ;;  %v4463_v52 = vpop.permute.xlu0 %4462  ;;  %v6593_v59 = vld [vmem:[#allocation9 + $0x180] sm:$0xff]  ;;  %v6616_v55 = vld [vmem:[#allocation9 + $0x228] sm:$0xff] }
 0x6c4   :  { %v5094_v60 = vrot.slane %v4463_v52, %v11068_v14  ;;  %v6565_v14 = vld [vmem:[#allocation9 + $0x1f0] sm:$0xff]  ;;  %v6618_v61 = vld [vmem:[#allocation9 + $0x220] sm:$0xff] }
 0x6c5   :  { %v6621_v52 = vld [vmem:[#allocation9 + $0x290] sm:$0xff] }
 0x6c6   :  { %v5095_v25 = vsel %vm2948_vm15, %v5094_v60, %v5090_v45  ;;  %vm5128_vm15 = vcmp.eq.s32.totalorder %v11086_v43, 5  ;;  %v6622_v60 = vld [vmem:[#allocation9 + $0x210] sm:$0xff]  ;;  %v6623_v45 = vld [vmem:[#allocation9 + $0x288] sm:$0xff] }
 0x6c7   :  { %v10121_v9 = vsel %vm11087_vm5, %v5095_v25, %v5101_v28  ;;  %v6620_v28 = vld [vmem:[#allocation9 + $0x218] sm:$0xff]  ;;  %v6624_v25 = vld [vmem:[#allocation9 + $0x208] sm:$0xff] }
 0x6c8   :  { %5112 = vadd.xlane.f32.xlu1 %v10121_v9  ;;  %5482 = vmatprep.mubr.msk.f32.mxu1 %vm5120_vm0, %v10121_v9 }
 0x6c9   :  { %5483 = vmatmul.mubr.msk.f32.vlgmr.msra.gmra.mxu1 %vm5118_vm11, %v10121_v9 }
 0x6ca   :  { %5670 = vmatpush3.msra.mxu1 %v6564_v34  ;;  %5484 = vmatprep.mubr.msk.f32.mxu1 %vm5124_vm13, %v10121_v9  ;;  %v6625_v34 = vld [vmem:[#allocation9 + $0x280] sm:$0xff] }
 0x6cb   :  { %5671 = vmatprep.subr.mxu1 %v6565_v14  ;;  %v6626_v14 = vld [vmem:[#allocation9 + $0x200] sm:$0xff] }
 0x6cc   :  { %5672 = vmatpush3.msra.mxu1 %v6566_v11  ;;  %v6627_v11 = vld [vmem:[#allocation9 + $0x3f8] sm:$0xff] }
 0x6cd   :  { %5673 = vmatprep.subr.mxu1 %v6567_v24  ;;  %v6628_v24 = vld [vmem:[#allocation9 + $0x378] sm:$0xff] }
 0x6ce   :  { %5674 = vmatpush3.msra.mxu1 %v6568_v30  ;;  %v6629_v30 = vld [vmem:[#allocation9 + $0x3f0] sm:$0xff] }
 0x6cf   :  { %5675 = vmatprep.subr.mxu1 %v6569_v63  ;;  %v6630_v63 = vld [vmem:[#allocation9 + $0x370] sm:$0xff] }
 0x6d0   :  { %5676 = vmatpush3.msra.mxu1 %v6570_v40  ;;  %v6631_v40 = vld [vmem:[#allocation9 + $0x3e8] sm:$0xff] }
 0x6d1   :  { %5677 = vmatprep.subr.mxu1 %v6571_v22  ;;  %v6632_v22 = vld [vmem:[#allocation9 + $0x368] sm:$0xff] }
 0x6d2   :  { %5678 = vmatpush3.msra.mxu1 %v6572_v5  ;;  %v6633_v5 = vld [vmem:[#allocation9 + $0x3e0] sm:$0xff] }
 0x6d3   :  { %5679 = vmatprep.subr.mxu1 %v6573_v53  ;;  %v6634_v53 = vld [vmem:[#allocation9 + $0x360] sm:$0xff] }
 0x6d4   :  { %5680 = vmatpush3.msra.mxu1 %v6574_v46  ;;  %v6635_v46 = vld [vmem:[#allocation9 + $0x3d8] sm:$0xff] }
 0x6d5   :  { %5681 = vmatprep.subr.mxu1 %v6575_v29  ;;  %v6636_v29 = vld [vmem:[#allocation9 + $0x358] sm:$0xff] }
 0x6d6   :  { %5682 = vmatpush3.msra.mxu1 %v6576_v35  ;;  %v6637_v35 = vld [vmem:[#allocation9 + $0x3d0] sm:$0xff] }
 0x6d7   :  { %5683 = vmatprep.subr.mxu1 %v6577_v36  ;;  %v6638_v36 = vld [vmem:[#allocation9 + $0x350] sm:$0xff] }
 0x6d8   :  { %5684 = vmatpush3.msra.mxu1 %v6578_v38  ;;  %v6639_v38 = vld [vmem:[#allocation9 + $0x3c8] sm:$0xff] }
 0x6d9   :  { %5685 = vmatprep.subr.mxu1 %v6579_v57  ;;  %v6640_v57 = vld [vmem:[#allocation9 + $0x348] sm:$0xff] }
 0x6da   :  { %5686 = vmatpush3.msra.mxu1 %v6580_v41  ;;  %v6641_v41 = vld [vmem:[#allocation9 + $0x3c0] sm:$0xff] }
 0x6db   :  { %5687 = vmatprep.subr.mxu1 %v6581_v23  ;;  %v6642_v23 = vld [vmem:[#allocation9 + $0x340] sm:$0xff] }
 0x6dc   :  { %5688 = vmatpush3.msra.mxu1 %v6582_v27  ;;  %v6643_v27 = vld [vmem:[#allocation9 + $0x3b8] sm:$0xff] }
 0x6dd   :  { %5689 = vmatprep.subr.mxu1 %v6583_v20  ;;  %v6644_v20 = vld [vmem:[#allocation9 + $0x338] sm:$0xff] }
 0x6de   :  { %5690 = vmatpush3.msra.mxu1 %v6584_v37  ;;  %v6645_v37 = vld [vmem:[#allocation9 + $0x3b0] sm:$0xff] }
 0x6df   :  { %5691 = vmatprep.subr.mxu1 %v6585_v32  ;;  %v6646_v32 = vld [vmem:[#allocation9 + $0x330] sm:$0xff] }
 0x6e0   :  { %5692 = vmatpush3.msra.mxu1 %v6586_v0  ;;  %v6647_v0 = vld [vmem:[#allocation9 + $0x3a8] sm:$0xff] }
 0x6e1   :  { %5693 = vmatprep.subr.mxu1 %v6587_v1  ;;  %v6648_v1 = vld [vmem:[#allocation9 + $0x328] sm:$0xff] }
 0x6e2   :  { %5694 = vmatpush3.msra.mxu1 %v6588_v8  ;;  %v6649_v8 = vld [vmem:[#allocation9 + $0x3a0] sm:$0xff] }
 0x6e3   :  { %5695 = vmatprep.subr.mxu1 %v6589_v54  ;;  %v6650_v54 = vld [vmem:[#allocation9 + $0x320] sm:$0xff] }
 0x6e4   :  { %5696 = vmatpush3.msra.mxu1 %v6590_v58  ;;  %v6651_v58 = vld [vmem:[#allocation9 + $0x398] sm:$0xff] }
 0x6e5   :  { %5697 = vmatprep.subr.mxu1 %v6591_v4  ;;  %v6652_v4 = vld [vmem:[#allocation9 + $0x318] sm:$0xff] }
 0x6e6   :  { %5698 = vmatpush3.msra.mxu1 %v6592_v15  ;;  %v6653_v15 = vld [vmem:[#allocation9 + $0x390] sm:$0xff] }
 0x6e7   :  { %5699 = vmatprep.subr.mxu1 %v6593_v59  ;;  %v6654_v59 = vld [vmem:[#allocation9 + $0x310] sm:$0xff] }
 0x6e8   :  { %5700 = vmatpush3.msra.mxu1 %v6594_v21  ;;  %v6655_v21 = vld [vmem:[#allocation9 + $0x388] sm:$0xff] }
 0x6e9   :  { %5485 = vmatmul.mubr.msk.f32.vlgmr.msra.gmra.mxu1 %vm5122_vm14, %v10121_v9  ;;  %5704 = vmatprep.subr.mxu1 %v6595_v2  ;;  %v6656_v2 = vld [vmem:[#allocation9 + $0x308] sm:$0xff] }
 0x6ea   :  { %5705 = vmatpush3.msra.mxu1 %v6596_v50  ;;  %5486 = vmatprep.mubr.msk.f32.mxu1 %vm5128_vm15, %v10121_v9  ;;  %v6657_v50 = vld [vmem:[#allocation9 + $0x380] sm:$0xff] }
 0x6eb   :  { %5706 = vmatprep.subr.mxu1 %v6597_v12  ;;  %v6658_v12 = vld [vmem:[#allocation9 + $0x300] sm:$0xff] }
 0x6ec   :  { %5707 = vmatpush3.msra.mxu1 %v6598_v6  ;;  %v5110_v6 = vld [vmem:[#allocation4] sm:$0xff] }
 0x6ed   :  { %5708 = vmatprep.subr.mxu1 %v6599_v17  ;;  %v5111_v17 = vmul.f32 %v9813_v3, %v5110_v6 }
 0x6ee   :  { %5709 = vmatpush3.msra.mxu1 %v6600_v47  ;;  %v5429_v47 = vld [vmem:[#allocation2] sm:$0xff] }
 0x6ef   :  { %5710 = vmatprep.subr.mxu1 %v6601_v44  ;;  %v5430_v44 = vld [vmem:[#allocation3] sm:$0xff] }
 0x6f0   :  { %5711 = vmatpush3.msra.mxu1 %v6602_v48 }
 0x6f1   :  { %5712 = vmatprep.subr.mxu1 %v6603_v31 }
 0x6f2   :  { %5713 = vmatpush3.msra.mxu1 %v6604_v13  ;;  %v5431_v13 = vsub.f32 %v5429_v47, %v5430_v44 }
 0x6f3   :  { %5714 = vmatprep.subr.mxu1 %v6605_v39 }
 0x6f4   :  { %5715 = vmatpush3.msra.mxu1 %v6606_v16  ;;  %v5432_v39 = vmul.f32 1.442695, %v5431_v13 }
 0x6f5   :  { %5716 = vmatprep.subr.mxu1 %v6607_v18 }
 0x6f6   :  { %5717 = vmatpush3.msra.mxu1 %v6608_v51  ;;  %6559 = vpow2.f32 %v5432_v39 }
 0x6f7   :  { %5718 = vmatprep.subr.mxu1 %v6609_v62 }
 0x6f8   :  { %5719 = vmatpush3.msra.mxu1 %v6610_v49 }
 0x6f9   :  { %5720 = vmatprep.subr.mxu1 %v6611_v33 }
 0x6fa   :  { %5721 = vmatpush3.msra.mxu1 %v6612_v7 }
 0x6fb   :  { %5722 = vmatprep.subr.mxu1 %v6613_v10  ;;  %v5138_v10 = vpop.permute.xlu0 %5137 }
 0x6fc   :  { %5723 = vmatpush3.msra.mxu1 %v6614_v42 }
 0x6fd   :  { %5724 = vmatprep.subr.mxu1 %v6615_v26 }
 0x6fe   :  { %5725 = vmatpush3.msra.mxu1 %v6616_v55 }
 0x6ff   :  { %5726 = vmatprep.subr.mxu1 %v6617_v56 }
 0x700   :  { %5727 = vmatpush3.msra.mxu1 %v6618_v61 }
 0x701   :  { %5728 = vmatprep.subr.mxu1 %v6619_v19 }
 0x702   :  { %5729 = vmatpush3.msra.mxu1 %v6620_v28 }
 0x703   :  { %5730 = vmatprep.subr.mxu1 %v6621_v52  ;;  %v6560_v43 = vpop.eup %6559 }
 0x704   :  { %5731 = vmatpush3.msra.mxu1 %v6622_v60 }
 0x705   :  { %5732 = vmatprep.subr.mxu1 %v6623_v45 }
 0x706   :  { %5733 = vmatpush3.msra.mxu1 %v6624_v25 }
 0x707   :  { %5734 = vmatprep.subr.mxu1 %v6625_v34 }
 0x708   :  { %5735 = vmatpush3.msra.mxu1 %v6626_v14 }
 0x709   :  { %5487 = vmatmul.mubr.msk.f32.vlgmr.msra.gmra.mxu1 %vm5126_vm6, %v10121_v9  ;;  %5739 = vmatprep.subr.mxu1 %v6627_v11 }
 0x70a   :  { %5740 = vmatpush3.msra.mxu1 %v6628_v24  ;;  %5488 = vmatprep.mubr.msk.f32.mxu1 %vm5132_vm10, %v10121_v9 }
 0x70b   :  { %5741 = vmatprep.subr.mxu1 %v6629_v30 }
 0x70c   :  { %5742 = vmatpush3.msra.mxu1 %v6630_v63 }
 0x70d   :  { %5743 = vmatprep.subr.mxu1 %v6631_v40 }
 0x70e   :  { %5744 = vmatpush3.msra.mxu1 %v6632_v22 }
 0x70f   :  { %5745 = vmatprep.subr.mxu1 %v6633_v5 }
 0x710   :  { %5746 = vmatpush3.msra.mxu1 %v6634_v53 }
 0x711   :  { %5747 = vmatprep.subr.mxu1 %v6635_v46 }
 0x712   :  { %5748 = vmatpush3.msra.mxu1 %v6636_v29 }
 0x713   :  { %5749 = vmatprep.subr.mxu1 %v6637_v35 }
 0x714   :  { %5750 = vmatpush3.msra.mxu1 %v6638_v36 }
 0x715   :  { %5751 = vmatprep.subr.mxu1 %v6639_v38 }
 0x716   :  { %5752 = vmatpush3.msra.mxu1 %v6640_v57 }
 0x717   :  { %5753 = vmatprep.subr.mxu1 %v6641_v41 }
 0x718   :  { %5754 = vmatpush3.msra.mxu1 %v6642_v23 }
 0x719   :  { %5755 = vmatprep.subr.mxu1 %v6643_v27 }
 0x71a   :  { %5756 = vmatpush3.msra.mxu1 %v6644_v20 }
 0x71b   :  { %5757 = vmatprep.subr.mxu1 %v6645_v37 }
 0x71c   :  { %5758 = vmatpush3.msra.mxu1 %v6646_v32 }
 0x71d   :  { %5759 = vmatprep.subr.mxu1 %v6647_v0 }
 0x71e   :  { %5760 = vmatpush3.msra.mxu1 %v6648_v1 }
 0x71f   :  { %5761 = vmatprep.subr.mxu1 %v6649_v8 }
 0x720   :  { %5762 = vmatpush3.msra.mxu1 %v6650_v54 }
 0x721   :  { %5763 = vmatprep.subr.mxu1 %v6651_v58 }
 0x722   :  { %5764 = vmatpush3.msra.mxu1 %v6652_v4 }
 0x723   :  { %5765 = vmatprep.subr.mxu1 %v6653_v15 }
 0x724   :  { %5766 = vmatpush3.msra.mxu1 %v6654_v59 }
 0x725   :  { %5767 = vmatprep.subr.mxu1 %v6655_v21 }
 0x726   :  { %5768 = vmatpush3.msra.mxu1 %v6656_v2 }
 0x727   :  { %5769 = vmatprep.subr.mxu1 %v6657_v50 }
 0x728   :  { %5770 = vmatpush3.msra.mxu1 %v6658_v12 }
 0x729   :  { %5489 = vmatmul.mubr.msk.f32.vlgmr.msra.gmra.mxu1 %vm5130_vm4, %v10121_v9 }
 0x751   :  { %v5113_v48 = vpop.xlane.xlu1 %5112 }
 0x752   :  { %v5114_v31 = vadd.f32 %v5113_v48, %v5111_v17 }
 0x754   :  { %5115 = vst.msk [vmem:[#allocation4] sm:$0xff] %vm11088_vm7, %v5114_v31 }
 0x75b   :  { %v5427_v16 = vld [vmem:[#allocation4] sm:$0xff] }
 0x75c   :  { %6561 = vrcp.f32 %v5427_v16 }
 0x769   :  { %v6562_v18 = vpop.eup %6561 }
 0x76a   :  { %v5434_v51 = vmul.f32 %v6562_v18, %v6560_v43 }
 0x76c   :  { %5438 = vperm.xlu0 %6042, %v5434_v51  }
 0x770   :  { %5446 = vperm.xlu0 %6042, %v6562_v18  }
 0x789   :  { %v5666_v62 = vpop.f32.mrf.mxu1 }
 0x78b   :  { %v5667_v49 = vpop.f32.mrf.mxu1 }
 0x78c   :  { %v5668_v56 = vadd.f32 %v5667_v49, %v5666_v62 }
 0x7a9   :  { %v5701_v33 = vpop.f32.mrf.mxu1 }
 0x7ab   :  { %v5702_v3 = vpop.f32.mrf.mxu1 }
 0x7ac   :  { %v5703_v26 = vadd.f32 %v5702_v3, %v5701_v33 }
 0x7ae   :  { %v5278_v52 = vadd.f32 %v5703_v26, %v5668_v56 }
 0x7c9   :  { %v5736_v7 = vpop.f32.mrf.mxu1 }
 0x7cb   :  { %v5737_v42 = vpop.f32.mrf.mxu1 }
 0x7cc   :  { %v5738_v61 = vadd.f32 %v5737_v42, %v5736_v7 }
 0x7e7   :  { %v5439_v55 = vpop.permute.xlu0 %5438 }
 0x7e8   :  { %v5441_v19 = vmul.f32 %v5439_v55, %v10121_v9 }
 0x7e9   :  { %v5771_v28 = vpop.f32.mrf.mxu1 }
 0x7ea   :  { %5442 = vst [vmem:[#allocation14] sm:$0xff] %v5441_v19 }
 0x7eb   :  { %v5772_v60 = vpop.f32.mrf.mxu1 }
 0x7ec   :  { %6750 = shalt.err (!%p6747_p10)
}
 0x7ed   :  { %5460 = dma.vmem_to_hbm [thread:$0]  %s5458_s3, 128, %s10151_s4, [#allocation8]   ;;  %v5348_v45 = vadd.f32 %v5738_v61, %v5278_v52  ;;  %v5773_v25 = vadd.f32 %v5772_v60, %v5771_v28  ;;  %v5140_v34 = vmul.f32 0.0, %v5138_v10  ;;  %v5447_v11 = vpop.permute.xlu0 %5446 }
 0x7ee   :  { %s6800_s16 = smov [#allocation15]  }
 0x7ef   :  { %v5418_v9 = vadd.f32 %v5773_v25, %v5348_v45  ;;  %s5467_s17 = sshll.u32 %s6800_s16, 4  ;;  %s5468_s17 = int_to_ptr.vmem [resolvable:$true] %s5467_s17 }
 0x7f0   :  { %s6759_s18 = scalar_lea.vmem %s5468_s17, 128  ;;  %p6764_p12 = scmp.lt.s32.totalorder %s5468_s17, %s5468_s17 }
 0x7f1   :  { %v5421_v14 = vadd.f32 %v5418_v9, %v5140_v34  ;;  %p6760_p11 = scmp.ne.s32.totalorder %s5468_s17, %s6759_s18  ;;  %p6765_p13 = scmp.lt.s32.totalorder %s6759_s18, %s6759_s18 }
 0x7f3   :  { %v5449_v24 = vmul.f32 %v5447_v11, %v5421_v14  ;;  %p6766_p0 = por %p6765_p13, %p6764_p12 }
 0x7f5   :  { %5450 = vst [vmem:[#allocation15] sm:$0xff] %v5449_v24  ;;  %p6767_p1 = pnand %p6766_p0, %p6760_p11 }
 0x7f7   :  { %6770 = shalt.err (!%p6767_p1)
}
 0x7f8   :  { %5470 = dma.vmem_to_hbm [thread:$0]  %s5468_s17, 128, %s10152_s5, [#allocation16]  }
 0x7f9   :  { %6785 = dma.done.wait [#allocation8], 128  }
 0x7fa   :  { %6786 = vsyncadd [#allocation8], 4294967168 }
 0x7fb   :  { %6787 = dma.done.wait [#allocation16], 128  }
 0x7fc   :  { %6788 = vsyncadd [#allocation16], 4294967168 }
 0x7fd   :  { %5477 = vsyncpa [#allocation7], 1 }
 0x7fe   :  { %5478 = vsyncpa [#allocation10], 1 }
 0x7ff   :  { %5479 = vsyncpa [#allocation13], 1 }
 0x800   :  { %5480 = vsyncpa [#allocation8], 1 }
 0x801   :  { %5481 = vsyncpa [#allocation16], 1 }

</bundles_post_ra>
